<compile_context>
chip_gen: v7x
topology: tpu7x:2x2x1
jax: 0.10.0
libtpu: 0.0.40
codegen_flags: <defaults>
</compile_context>

<pallas_src>
import functools

import jax
import jax.numpy as jnp
from jax import lax
from jax.experimental import pallas as pl
from jax.experimental.pallas import tpu as pltpu

LATENT_DIM = 32
NUM_NODES = 8
NUM_VARS = 4
BATCH = 256        # number of independent decode instances processed together
BLOCK_B = 128      # batch tile (sublane height) per grid step; grid = B // BLOCK_B
LANE = 128


def _row_layout(D):
    """Row offsets of the packed parameter slab."""
    r = {}
    r["wbig"] = 0                 # D rows : [w1^T | W_hh^T]                      (D, 4D)
    r["wfused"] = D               # 2D rows: [[W_ih^T | 0], [W_hh^T | W_hh_n^T]]  (2D, 4D)
    base = 3 * D
    r["bbig"] = base + 0          # 1 row  : [b1 | b_hh]                          (1, 4D)
    r["bfused"] = base + 1        # 1 row  : [b_ih + b_hh | b_hh_n]               (1, 4D)
    r["w2b2"] = base + 2          # 1 row  : w2 row (cols 0:D), b2 at col D
    r["bd"] = base + 3            # 1 row  : decision bias                        (1, 3)
    r["gi_and"] = base + 4        # 1 row  : and_emb @ W_ih^T + b_ih              (1, 3D)
    r["gi_or"] = base + 5         # 1 row  : or_emb  @ W_ih^T + b_ih              (1, 3D)
    r["wd"] = base + 6            # 3 rows : decision weight                      (3, D)
    r["rows"] = base + 16         # padded to a multiple of 8 sublanes
    return r


# ----------------------------- kernel ---------------------------------------
def idecoder_kernel(node_ref, prm_ref, out_ref, *, num_nodes, num_vars, latent_dim):
    f32 = jnp.float32
    D = latent_dim
    N = num_nodes
    BB = node_ref.shape[0]
    H3 = 3 * D
    R = _row_layout(D)

    node2 = node_ref[...]              # (BB, N*D) lane-dense node embeddings
    prm = prm_ref[...]                 # (rows, lane) packed parameter slab

    w_big = prm[R["wbig"]:R["wbig"] + D, :4 * D]            # (D, 4D) = [w1^T | W_hh^T]
    w_hh = w_big[:, D:]                                     # (D, 3D)
    w_fused = prm[R["wfused"]:R["wfused"] + 2 * D, :4 * D]  # (2D, 4D) fused gi3/gh3 weight
    b_big = prm[R["bbig"]:R["bbig"] + 1, :4 * D]            # (1, 4D) = [b1 | b_hh]
    b_hh = b_big[:, D:]                                     # (1, 3D)
    b_fused = prm[R["bfused"]:R["bfused"] + 1, :4 * D]      # (1, 4D)
    w2row = prm[R["w2b2"]:R["w2b2"] + 1, :D]                # (1, D)
    b2 = prm[R["w2b2"]:R["w2b2"] + 1, D:D + 1]              # (1, 1)
    bd = prm[R["bd"]:R["bd"] + 1, :3]                       # (1, 3)
    gi_and = prm[R["gi_and"]:R["gi_and"] + 1, :H3]          # (1, 3D) precomputed
    gi_or = prm[R["gi_or"]:R["gi_or"] + 1, :H3]             # (1, 3D) precomputed
    wd = prm[R["wd"]:R["wd"] + 3, :D]                       # (3, D)

    # Per-node (BB, D) views are lane slices of the lane-dense (BB, N*D) value.
    nodes = [node2[:, n * D:(n + 1) * D] for n in range(N)]

    # embed_tree substitute (non-attention get_init_embedding): mean over nodes,
    # computed as a pairwise tree of adds (log2(N) levels, not a serial chain).
    acc = list(nodes)
    while len(acc) > 1:
        nxt = [acc[i] + acc[i + 1] for i in range(0, len(acc) - 1, 2)]
        if len(acc) % 2:
            nxt.append(acc[-1])
        acc = nxt
    state0 = acc[0] * (1.0 / N)                             # (BB, D)

    def choose_greedy(logits):
        """Greedy choose_action: first-index argmax + NLL, via shifted logits.

        s = logits - rowmax is exactly 0.0 at the row max in f32, so
        picked = first index where s == 0, and nll = -log_softmax[picked]
                = log(sum(exp(s))).
        """
        m = jnp.max(logits, axis=1, keepdims=True)
        s = logits - m
        C = logits.shape[1]
        iota = lax.broadcasted_iota(jnp.int32, logits.shape, 1)
        picked = jnp.min(jnp.where(s == 0.0, iota, C), axis=1, keepdims=True)
        onehot = (iota == picked).astype(f32)
        nll = jnp.log(jnp.sum(jnp.exp(s), axis=1, keepdims=True))
        return picked, onehot, nll

    def gru_merge(gi, gh, h):
        """nn.GRUCell combine, gate order (r, z, n); gi/gh are (*, 3D)."""
        i_r, i_z, i_n = gi[:, :D], gi[:, D:2 * D], gi[:, 2 * D:]
        h_r, h_z, h_n = gh[:, :D], gh[:, D:2 * D], gh[:, 2 * D:]
        r = jax.nn.sigmoid(i_r + h_r)
        z = jax.nn.sigmoid(i_z + h_z)
        n = jnp.tanh(i_n + r * h_n)
        return (1.0 - z) * n + z * h

    # MXU push #1 (lane-dense, K=D): feeds both the value head and the first GRU:
    #   cols [0, D)  = state0 @ w1^T  + b1    (value head hidden, pre-ReLU)
    #   cols [D, 4D) = state0 @ W_hh^T + b_hh (first GRU hidden projection)
    big = jnp.dot(state0, w_big, preferred_element_type=f32) + b_big  # (BB, 4D)
    h1 = jnp.maximum(big[:, :D], 0.0)
    gh1 = big[:, D:]

    # value head second layer: one useful lane -> VPU mul + lane reduce.
    est = jnp.sum(h1 * w2row, axis=1, keepdims=True) + b2             # (BB, 1)

    # first decision (3 classes) on the VPU (no MXU push, no transpose).
    d_cols = [jnp.sum(state0 * wd[c:c + 1, :], axis=1, keepdims=True)
              for c in range(3)]
    d_logits = jnp.concatenate(d_cols, axis=1) + bd                   # (BB, 3)
    d_pick, _, d_nll = choose_greedy(d_logits)
    nll = d_nll
    # TODO(synk): early-return branches on first_decision / and-or budgets are
    # Python-side env control flow; the kernel always follows the act == 1 path.

    # act == 1: update_state(and_embedding); update_state(or_embedding).
    # gi_and / gi_or are the constant-input GRU projections (precomputed host-side).
    state1 = gru_merge(gi_and, gh1, state0)
    gh2 = jnp.dot(state1, w_hh, preferred_element_type=f32) + b_hh    # MXU push #2
    state2 = gru_merge(gi_or, gh2, state1)

    # recursive_decode lv=0, first step: pick a variable against
    # variable_embedding = node_embedding[:num_vars], gather it, GRU update.
    v_cols = [jnp.sum(state2 * nodes[v], axis=1, keepdims=True)
              for v in range(num_vars)]
    v_logits = jnp.concatenate(v_cols, axis=1)                        # (BB, V)
    v_pick, v_onehot, v_nll = choose_greedy(v_logits)
    nll = nll + v_nll
    sel = v_onehot[:, 0:1] * nodes[0]                                 # one-hot gather
    for v in range(1, num_vars):
        sel = sel + v_onehot[:, v:v + 1] * nodes[v]                   # (BB, D)

    # MXU push #3: fused gi3/gh3 GRU projections in one K=2D, 4D-lane matmul:
    #   cols [0, 3D) = sel@W_ih^T + state2@W_hh^T + b_ih + b_hh  (r/z/n gate sums)
    #   cols [3D,4D) = state2@W_hh_n^T + b_hh_n                  (h_n alone)
    # so n = tanh((i_n + h_n) - h_n + r*h_n) = tanh(i_n + r*h_n), exactly GRUCell.
    xcat = jnp.concatenate([sel, state2], axis=1)                     # (BB, 2D)
    fused = jnp.dot(xcat, w_fused, preferred_element_type=f32) + b_fused
    r3 = jax.nn.sigmoid(fused[:, :D])
    z3 = jax.nn.sigmoid(fused[:, D:2 * D])
    h_n3 = fused[:, 3 * D:]
    n3 = jnp.tanh(fused[:, 2 * D:3 * D] - h_n3 + r3 * h_n3)
    state3 = (1.0 - z3) * n3 + z3 * state2
    # TODO(synk): the remaining recursive_decode is data-dependent Python
    # recursion over ExprNode/env objects (plus multinomial sampling when
    # use_random=True); no clean Pallas equivalent.

    # Single lane-dense output slab (one unmasked full-width store):
    # [state | est | nll | d_pick | v_pick | 0...]
    lane = out_ref.shape[1]
    pad = jnp.zeros((BB, lane - (D + 4)), f32)
    out_ref[...] = jnp.concatenate(
        [state3, est, nll, d_pick.astype(f32), v_pick.astype(f32), pad], axis=1)


# ----------------------------- wrapper ---------------------------------------
def init_params(key, latent_dim):
    ks = jax.random.split(key, 12)
    rnd = lambda k, s: (0.1 * jax.random.normal(k, s)).astype(jnp.float32)
    D = latent_dim
    return {
        "w1": rnd(ks[0], (D, D)), "b1": rnd(ks[1], (1, D)),              # value_pred_w1
        "w2": rnd(ks[2], (1, D)), "b2": rnd(ks[3], (1, 1)),              # value_pred_w2
        "wd": rnd(ks[4], (3, D)), "bd": rnd(ks[5], (1, 3)),              # decision
        "w_ih": rnd(ks[6], (3 * D, D)), "w_hh": rnd(ks[7], (3 * D, D)),  # state_gru
        "b_ih": rnd(ks[8], (3 * D,)), "b_hh": rnd(ks[9], (3 * D,)),
        "and_emb": rnd(ks[10], (1, D)), "or_emb": rnd(ks[11], (1, D)),
    }


def pack_params(p, latent_dim):
    """Pack all parameters (pre-transposed / pre-projected / pre-fused) into one slab."""
    D = latent_dim
    H3 = 3 * D
    lane = max(LANE, 4 * D)
    R = _row_layout(D)

    w1t = p["w1"].T                                    # (D, D)
    wih = p["w_ih"].T                                  # (D, 3D), gate order (r, z, n)
    whh = p["w_hh"].T                                  # (D, 3D)
    bih = p["b_ih"].reshape(1, H3)
    bhh = p["b_hh"].reshape(1, H3)
    gi_and = p["and_emb"] @ wih + bih                  # constant-input GRU projections
    gi_or = p["or_emb"] @ wih + bih
    w_big = jnp.concatenate([w1t, whh], axis=1)        # (D, 4D)
    b_big = jnp.concatenate([p["b1"], bhh], axis=1)    # (1, 4D)

    # Fused gi3/gh3 weight: [sel | state] @ w_fused + b_fused yields the three
    # gate sums (r, z, n) in cols [0,3D) and h_n alone in cols [3D,4D).
    zero_blk = jnp.zeros((D, D), jnp.float32)
    w_fused = jnp.concatenate(
        [jnp.concatenate([wih, zero_blk], axis=1),
         jnp.concatenate([whh, whh[:, 2 * D:]], axis=1)], axis=0)      # (2D, 4D)
    b_fused = jnp.concatenate([bih + bhh, bhh[:, 2 * D:]], axis=1)     # (1, 4D)

    slab = jnp.zeros((R["rows"], lane), jnp.float32)
    slab = slab.at[R["wbig"]:R["wbig"] + D, :4 * D].set(w_big)
    slab = slab.at[R["wfused"]:R["wfused"] + 2 * D, :4 * D].set(w_fused)
    slab = slab.at[R["bbig"], :4 * D].set(b_big[0])
    slab = slab.at[R["bfused"], :4 * D].set(b_fused[0])
    slab = slab.at[R["w2b2"], :D].set(p["w2"][0])
    slab = slab.at[R["w2b2"], D].set(p["b2"][0, 0])
    slab = slab.at[R["bd"], :3].set(p["bd"][0])
    slab = slab.at[R["gi_and"], :H3].set(gi_and[0])
    slab = slab.at[R["gi_or"], :H3].set(gi_or[0])
    slab = slab.at[R["wd"]:R["wd"] + 3, :D].set(p["wd"])
    return slab


def idecoder_forward(node_emb, num_vars, slab, *, block_b=BLOCK_B):
    """node_emb: (B, num_nodes, D) — B independent decode instances."""
    B, N, D = node_emb.shape
    lane = slab.shape[1]
    assert B % block_b == 0, "batch must be a multiple of the batch tile"
    assert block_b % 8 == 0, "batch tile must be a multiple of the f32 sublane height (8)"

    # Free row-major reshape (pure metadata) — no HBM transpose before the kernel.
    node_flat = node_emb.reshape(B, N * D)

    out = pl.pallas_call(
        functools.partial(idecoder_kernel,
                          num_nodes=N, num_vars=num_vars, latent_dim=D),
        out_shape=jax.ShapeDtypeStruct((B, lane), jnp.float32),
        grid_spec=pltpu.PrefetchScalarGridSpec(
            num_scalar_prefetch=0,
            grid=(B // block_b,),
            in_specs=[
                pl.BlockSpec((block_b, N * D), lambda i: (i, 0)),
                # Constant index_map: Pallas fetches the param slab once and
                # does not re-DMA it across grid steps.
                pl.BlockSpec(slab.shape, lambda i: (0, 0)),
            ],
            out_specs=pl.BlockSpec((block_b, lane), lambda i: (i, 0)),
        ),
        compiler_params=pltpu.CompilerParams(
            # >= 2 grid steps at the shipped sizes so v7x's second TC gets work;
            # on v5e/v6e (1 TC) the grid is just a short sequential loop.
            dimension_semantics=("parallel",)),
    )(node_flat, slab)

    state = out[:, :D]
    est = out[:, D:D + 1]
    nll = out[:, D + 1:D + 2]
    picks = jnp.round(out[:, D + 2:D + 4]).astype(jnp.int32)
    return est, nll, state, picks


# ----------------------------- pure-JAX reference ----------------------------
def idecoder_reference(node_emb, num_vars, p):
    state = jnp.mean(node_emb, axis=1)                           # (B, D)
    h1 = jnp.maximum(state @ p["w1"].T + p["b1"], 0.0)
    est = h1 @ p["w2"].T + p["b2"]                               # (B, 1)

    def choose(logits):
        ll = jax.nn.log_softmax(logits, axis=1)
        picked = jnp.argmax(ll, axis=1)                          # (B,)
        nll = -jnp.take_along_axis(ll, picked[:, None], axis=1)  # (B, 1)
        return picked, nll

    d_pick, nll = choose(state @ p["wd"].T + p["bd"])

    def gru(x, h):
        gi = x @ p["w_ih"].T + p["b_ih"]
        gh = h @ p["w_hh"].T + p["b_hh"]
        i_r, i_z, i_n = jnp.split(gi, 3, axis=1)
        h_r, h_z, h_n = jnp.split(gh, 3, axis=1)
        r = jax.nn.sigmoid(i_r + h_r)
        z = jax.nn.sigmoid(i_z + h_z)
        n = jnp.tanh(i_n + r * h_n)
        return (1.0 - z) * n + z * h

    state = gru(p["and_emb"], state)
    state = gru(p["or_emb"], state)

    var = node_emb[:, :num_vars, :]                              # (B, V, D)
    v_logits = jnp.einsum("bd,bvd->bv", state, var)
    v_pick, v_nll = choose(v_logits)
    nll = nll + v_nll
    sel = jnp.take_along_axis(var, v_pick[:, None, None], axis=1)[:, 0, :]
    state = gru(sel, state)
    picks = jnp.stack([d_pick, v_pick], axis=1).astype(jnp.int32)
    return est, nll, state, picks


# ----------------------------- main -------------------------------------------
if __name__ == "__main__":
    key = jax.random.PRNGKey(0)
    k_data, k_params = jax.random.split(key)
    node_embedding = (0.5 * jax.random.normal(
        k_data, (BATCH, NUM_NODES, LATENT_DIM))).astype(jnp.float32)
    params = init_params(k_params, LATENT_DIM)
    param_slab = pack_params(params, LATENT_DIM)

    est, nll, state, picks = idecoder_forward(node_embedding, NUM_VARS, param_slab)
    jax.block_until_ready((est, nll, state, picks))

    est_r, nll_r, state_r, picks_r = idecoder_reference(node_embedding, NUM_VARS, params)
    assert jnp.allclose(est, est_r, rtol=1e-4, atol=1e-4), (est, est_r)
    assert jnp.allclose(nll, nll_r, rtol=1e-4, atol=1e-4), (nll, nll_r)
    assert jnp.allclose(state, state_r, rtol=1e-4, atol=1e-4)
    assert jnp.array_equal(picks, picks_r), (picks, picks_r)

    print("KERNEL_OK")
</pallas_src>

<mosaic_0001>
module attributes {stable_mosaic.version = 11 : i64} {
  func.func @idecoder_kernel(%arg0: i32, %arg1: memref<128x256xf32, #tpu.memory_space<vmem>>, %arg2: memref<112x128xf32, #tpu.memory_space<vmem>>, %arg3: memref<128x128xf32, #tpu.memory_space<vmem>>) attributes {dimension_semantics = [#tpu.dimension_semantics<parallel>], iteration_bounds = array<i64: 2>, scalar_prefetch = 0 : i64, scratch_operands = 0 : i64, tpu.core_type = #tpu.core_type<tc>, window_params = [{transform_indices = @transform_0, window_bounds = array<i64: 128, 256>}, {pipeline_mode = #tpu.pipeline_mode<synchronous>, transform_indices = @transform_1, window_bounds = array<i64: 112, 128>}, {transform_indices = @transform_2, window_bounds = array<i64: 128, 128>}]} {
    %c0 = arith.constant 0 : index
    %c0_0 = arith.constant 0 : index
    %0 = vector.load %arg1[%c0, %c0_0] : memref<128x256xf32, #tpu.memory_space<vmem>>, vector<128x256xf32>
    %c0_1 = arith.constant 0 : index
    %c0_2 = arith.constant 0 : index
    %1 = vector.load %arg2[%c0_1, %c0_2] : memref<112x128xf32, #tpu.memory_space<vmem>>, vector<112x128xf32>
    %2 = vector.extract_strided_slice %1 {offsets = [0, 0], sizes = [32, 128], strides = [1, 1]} : vector<112x128xf32> to vector<32x128xf32>
    %3 = vector.extract_strided_slice %2 {offsets = [0, 32], sizes = [32, 96], strides = [1, 1]} : vector<32x128xf32> to vector<32x96xf32>
    %4 = vector.extract_strided_slice %1 {offsets = [32, 0], sizes = [64, 128], strides = [1, 1]} : vector<112x128xf32> to vector<64x128xf32>
    %5 = vector.extract_strided_slice %1 {offsets = [96, 0], sizes = [1, 128], strides = [1, 1]} : vector<112x128xf32> to vector<1x128xf32>
    %6 = vector.extract_strided_slice %5 {offsets = [0, 32], sizes = [1, 96], strides = [1, 1]} : vector<1x128xf32> to vector<1x96xf32>
    %7 = vector.extract_strided_slice %1 {offsets = [97, 0], sizes = [1, 128], strides = [1, 1]} : vector<112x128xf32> to vector<1x128xf32>
    %8 = vector.extract_strided_slice %1 {offsets = [98, 0], sizes = [1, 32], strides = [1, 1]} : vector<112x128xf32> to vector<1x32xf32>
    %9 = vector.extract_strided_slice %1 {offsets = [98, 32], sizes = [1, 1], strides = [1, 1]} : vector<112x128xf32> to vector<1x1xf32>
    %10 = vector.extract_strided_slice %1 {offsets = [99, 0], sizes = [1, 3], strides = [1, 1]} : vector<112x128xf32> to vector<1x3xf32>
    %11 = vector.extract_strided_slice %1 {offsets = [100, 0], sizes = [1, 96], strides = [1, 1]} : vector<112x128xf32> to vector<1x96xf32>
    %12 = vector.extract_strided_slice %1 {offsets = [101, 0], sizes = [1, 96], strides = [1, 1]} : vector<112x128xf32> to vector<1x96xf32>
    %13 = vector.extract_strided_slice %1 {offsets = [102, 0], sizes = [3, 32], strides = [1, 1]} : vector<112x128xf32> to vector<3x32xf32>
    %14 = vector.extract_strided_slice %0 {offsets = [0, 0], sizes = [128, 32], strides = [1, 1]} : vector<128x256xf32> to vector<128x32xf32>
    %15 = vector.extract_strided_slice %0 {offsets = [0, 32], sizes = [128, 32], strides = [1, 1]} : vector<128x256xf32> to vector<128x32xf32>
    %16 = vector.extract_strided_slice %0 {offsets = [0, 64], sizes = [128, 32], strides = [1, 1]} : vector<128x256xf32> to vector<128x32xf32>
    %17 = vector.extract_strided_slice %0 {offsets = [0, 96], sizes = [128, 32], strides = [1, 1]} : vector<128x256xf32> to vector<128x32xf32>
    %18 = vector.extract_strided_slice %0 {offsets = [0, 128], sizes = [128, 32], strides = [1, 1]} : vector<128x256xf32> to vector<128x32xf32>
    %19 = vector.extract_strided_slice %0 {offsets = [0, 160], sizes = [128, 32], strides = [1, 1]} : vector<128x256xf32> to vector<128x32xf32>
    %20 = vector.extract_strided_slice %0 {offsets = [0, 192], sizes = [128, 32], strides = [1, 1]} : vector<128x256xf32> to vector<128x32xf32>
    %21 = vector.extract_strided_slice %0 {offsets = [0, 224], sizes = [128, 32], strides = [1, 1]} : vector<128x256xf32> to vector<128x32xf32>
    %22 = arith.addf %14, %15 : vector<128x32xf32>
    %23 = arith.addf %16, %17 : vector<128x32xf32>
    %24 = arith.addf %18, %19 : vector<128x32xf32>
    %25 = arith.addf %20, %21 : vector<128x32xf32>
    %26 = arith.addf %22, %23 : vector<128x32xf32>
    %27 = arith.addf %24, %25 : vector<128x32xf32>
    %28 = arith.addf %26, %27 : vector<128x32xf32>
    %cst = arith.constant 1.250000e-01 : f32
    %29 = vector.broadcast %cst : f32 to vector<128x32xf32>
    %30 = arith.mulf %28, %29 : vector<128x32xf32>
    %cst_3 = arith.constant dense<0.000000e+00> : vector<128x128xf32>
    %31 = tpu.matmul %30, %2, %cst_3 {dimension_numbers = #tpu.dot_dimension_numbers<[1], [0], [0], [1], [0, 0, 1, 1], [], []>} : vector<128x32xf32>, vector<32x128xf32>, vector<128x128xf32> -> vector<128x128xf32>
    %32 = vector.broadcast %5 : vector<1x128xf32> to vector<128x128xf32>
    %33 = arith.addf %31, %32 : vector<128x128xf32>
    %34 = vector.extract_strided_slice %33 {offsets = [0, 0], sizes = [128, 32], strides = [1, 1]} : vector<128x128xf32> to vector<128x32xf32>
    %cst_4 = arith.constant 0.000000e+00 : f32
    %35 = vector.broadcast %cst_4 : f32 to vector<128x32xf32>
    %36 = arith.maximumf %34, %35 : vector<128x32xf32>
    %37 = vector.extract_strided_slice %33 {offsets = [0, 32], sizes = [128, 96], strides = [1, 1]} : vector<128x128xf32> to vector<128x96xf32>
    %38 = vector.broadcast %8 : vector<1x32xf32> to vector<128x32xf32>
    %39 = arith.mulf %36, %38 : vector<128x32xf32>
    %cst_5 = arith.constant dense<0.000000e+00> : vector<128xf32>
    %40 = vector.multi_reduction <add>, %39, %cst_5 [1] : vector<128x32xf32> to vector<128xf32>
    %41 = vector.shape_cast %40 : vector<128xf32> to vector<128x1xf32>
    %42 = vector.broadcast %9 : vector<1x1xf32> to vector<128x1xf32>
    %43 = arith.addf %41, %42 : vector<128x1xf32>
    %44 = vector.extract_strided_slice %13 {offsets = [0, 0], sizes = [1, 32], strides = [1, 1]} : vector<3x32xf32> to vector<1x32xf32>
    %45 = vector.broadcast %44 : vector<1x32xf32> to vector<128x32xf32>
    %46 = arith.mulf %30, %45 : vector<128x32xf32>
    %cst_6 = arith.constant dense<0.000000e+00> : vector<128xf32>
    %47 = vector.multi_reduction <add>, %46, %cst_6 [1] : vector<128x32xf32> to vector<128xf32>
    %48 = vector.shape_cast %47 : vector<128xf32> to vector<128x1xf32>
    %49 = vector.extract_strided_slice %13 {offsets = [1, 0], sizes = [1, 32], strides = [1, 1]} : vector<3x32xf32> to vector<1x32xf32>
    %50 = vector.broadcast %49 : vector<1x32xf32> to vector<128x32xf32>
    %51 = arith.mulf %30, %50 : vector<128x32xf32>
    %cst_7 = arith.constant dense<0.000000e+00> : vector<128xf32>
    %52 = vector.multi_reduction <add>, %51, %cst_7 [1] : vector<128x32xf32> to vector<128xf32>
    %53 = vector.shape_cast %52 : vector<128xf32> to vector<128x1xf32>
    %54 = vector.extract_strided_slice %13 {offsets = [2, 0], sizes = [1, 32], strides = [1, 1]} : vector<3x32xf32> to vector<1x32xf32>
    %55 = vector.broadcast %54 : vector<1x32xf32> to vector<128x32xf32>
    %56 = arith.mulf %30, %55 : vector<128x32xf32>
    %cst_8 = arith.constant dense<0.000000e+00> : vector<128xf32>
    %57 = vector.multi_reduction <add>, %56, %cst_8 [1] : vector<128x32xf32> to vector<128xf32>
    %58 = vector.shape_cast %57 : vector<128xf32> to vector<128x1xf32>
    %59 = tpu.concatenate %48, %53, %58 in 1 : vector<128x1xf32>, vector<128x1xf32>, vector<128x1xf32> -> vector<128x3xf32>
    %60 = vector.broadcast %10 : vector<1x3xf32> to vector<128x3xf32>
    %61 = arith.addf %59, %60 : vector<128x3xf32>
    %cst_9 = arith.constant dense<0xFF800000> : vector<128xf32>
    %62 = vector.multi_reduction <maximumf>, %61, %cst_9 [1] : vector<128x3xf32> to vector<128xf32>
    %63 = vector.shape_cast %62 : vector<128xf32> to vector<128x1xf32>
    %64 = vector.broadcast %63 : vector<128x1xf32> to vector<128x3xf32>
    %65 = arith.subf %61, %64 : vector<128x3xf32>
    %66 = tpu.iota {dimensions = array<i32: 1>} : vector<128x3xi32>
    %cst_10 = arith.constant 0.000000e+00 : f32
    %67 = vector.broadcast %cst_10 : f32 to vector<128x3xf32>
    %68 = arith.cmpf oeq, %65, %67 : vector<128x3xf32>
    %c3_i32 = arith.constant 3 : i32
    %69 = vector.broadcast %c3_i32 : i32 to vector<128x3xi32>
    %70 = arith.select %68, %66, %69 : vector<128x3xi1>, vector<128x3xi32>
    %cst_11 = arith.constant dense<2147483647> : vector<128xi32>
    %71 = vector.multi_reduction <minsi>, %70, %cst_11 [1] : vector<128x3xi32> to vector<128xi32>
    %72 = vector.shape_cast %71 : vector<128xi32> to vector<128x1xi32>
    %73 = math.exp %65 : vector<128x3xf32>
    %cst_12 = arith.constant dense<0.000000e+00> : vector<128xf32>
    %74 = vector.multi_reduction <add>, %73, %cst_12 [1] : vector<128x3xf32> to vector<128xf32>
    %75 = vector.shape_cast %74 : vector<128xf32> to vector<128x1xf32>
    %76 = math.log %75 : vector<128x1xf32>
    %77 = vector.extract_strided_slice %11 {offsets = [0, 0], sizes = [1, 32], strides = [1, 1]} : vector<1x96xf32> to vector<1x32xf32>
    %78 = vector.extract_strided_slice %11 {offsets = [0, 32], sizes = [1, 32], strides = [1, 1]} : vector<1x96xf32> to vector<1x32xf32>
    %79 = vector.extract_strided_slice %11 {offsets = [0, 64], sizes = [1, 32], strides = [1, 1]} : vector<1x96xf32> to vector<1x32xf32>
    %80 = vector.extract_strided_slice %37 {offsets = [0, 0], sizes = [128, 32], strides = [1, 1]} : vector<128x96xf32> to vector<128x32xf32>
    %81 = vector.extract_strided_slice %37 {offsets = [0, 32], sizes = [128, 32], strides = [1, 1]} : vector<128x96xf32> to vector<128x32xf32>
    %82 = vector.extract_strided_slice %37 {offsets = [0, 64], sizes = [128, 32], strides = [1, 1]} : vector<128x96xf32> to vector<128x32xf32>
    %83 = vector.broadcast %77 : vector<1x32xf32> to vector<128x32xf32>
    %84 = arith.addf %83, %80 : vector<128x32xf32>
    %85 = arith.negf %84 : vector<128x32xf32>
    %86 = math.exp %85 : vector<128x32xf32>
    %cst_13 = arith.constant 1.000000e+00 : f32
    %87 = vector.broadcast %cst_13 : f32 to vector<128x32xf32>
    %88 = arith.addf %87, %86 : vector<128x32xf32>
    %89 = arith.divf %87, %88 : vector<128x32xf32>
    %90 = vector.broadcast %78 : vector<1x32xf32> to vector<128x32xf32>
    %91 = arith.addf %90, %81 : vector<128x32xf32>
    %92 = arith.negf %91 : vector<128x32xf32>
    %93 = math.exp %92 : vector<128x32xf32>
    %cst_14 = arith.constant 1.000000e+00 : f32
    %94 = vector.broadcast %cst_14 : f32 to vector<128x32xf32>
    %95 = arith.addf %94, %93 : vector<128x32xf32>
    %96 = arith.divf %94, %95 : vector<128x32xf32>
    %97 = arith.mulf %89, %82 : vector<128x32xf32>
    %98 = vector.broadcast %79 : vector<1x32xf32> to vector<128x32xf32>
    %99 = arith.addf %98, %97 : vector<128x32xf32>
    %100 = math.tanh %99 : vector<128x32xf32>
    %cst_15 = arith.constant 1.000000e+00 : f32
    %101 = vector.broadcast %cst_15 : f32 to vector<128x32xf32>
    %102 = arith.subf %101, %96 : vector<128x32xf32>
    %103 = arith.mulf %102, %100 : vector<128x32xf32>
    %104 = arith.mulf %96, %30 : vector<128x32xf32>
    %105 = arith.addf %103, %104 : vector<128x32xf32>
    %cst_16 = arith.constant dense<0.000000e+00> : vector<128x96xf32>
    %106 = tpu.matmul %105, %3, %cst_16 {dimension_numbers = #tpu.dot_dimension_numbers<[1], [0], [0], [1], [0, 0, 1, 1], [], []>} : vector<128x32xf32>, vector<32x96xf32>, vector<128x96xf32> -> vector<128x96xf32>
    %107 = vector.broadcast %6 : vector<1x96xf32> to vector<128x96xf32>
    %108 = arith.addf %106, %107 : vector<128x96xf32>
    %109 = vector.extract_strided_slice %12 {offsets = [0, 0], sizes = [1, 32], strides = [1, 1]} : vector<1x96xf32> to vector<1x32xf32>
    %110 = vector.extract_strided_slice %12 {offsets = [0, 32], sizes = [1, 32], strides = [1, 1]} : vector<1x96xf32> to vector<1x32xf32>
    %111 = vector.extract_strided_slice %12 {offsets = [0, 64], sizes = [1, 32], strides = [1, 1]} : vector<1x96xf32> to vector<1x32xf32>
    %112 = vector.extract_strided_slice %108 {offsets = [0, 0], sizes = [128, 32], strides = [1, 1]} : vector<128x96xf32> to vector<128x32xf32>
    %113 = vector.extract_strided_slice %108 {offsets = [0, 32], sizes = [128, 32], strides = [1, 1]} : vector<128x96xf32> to vector<128x32xf32>
    %114 = vector.extract_strided_slice %108 {offsets = [0, 64], sizes = [128, 32], strides = [1, 1]} : vector<128x96xf32> to vector<128x32xf32>
    %115 = vector.broadcast %109 : vector<1x32xf32> to vector<128x32xf32>
    %116 = arith.addf %115, %112 : vector<128x32xf32>
    %117 = arith.negf %116 : vector<128x32xf32>
    %118 = math.exp %117 : vector<128x32xf32>
    %cst_17 = arith.constant 1.000000e+00 : f32
    %119 = vector.broadcast %cst_17 : f32 to vector<128x32xf32>
    %120 = arith.addf %119, %118 : vector<128x32xf32>
    %121 = arith.divf %119, %120 : vector<128x32xf32>
    %122 = vector.broadcast %110 : vector<1x32xf32> to vector<128x32xf32>
    %123 = arith.addf %122, %113 : vector<128x32xf32>
    %124 = arith.negf %123 : vector<128x32xf32>
    %125 = math.exp %124 : vector<128x32xf32>
    %cst_18 = arith.constant 1.000000e+00 : f32
    %126 = vector.broadcast %cst_18 : f32 to vector<128x32xf32>
    %127 = arith.addf %126, %125 : vector<128x32xf32>
    %128 = arith.divf %126, %127 : vector<128x32xf32>
    %129 = arith.mulf %121, %114 : vector<128x32xf32>
    %130 = vector.broadcast %111 : vector<1x32xf32> to vector<128x32xf32>
    %131 = arith.addf %130, %129 : vector<128x32xf32>
    %132 = math.tanh %131 : vector<128x32xf32>
    %cst_19 = arith.constant 1.000000e+00 : f32
    %133 = vector.broadcast %cst_19 : f32 to vector<128x32xf32>
    %134 = arith.subf %133, %128 : vector<128x32xf32>
    %135 = arith.mulf %134, %132 : vector<128x32xf32>
    %136 = arith.mulf %128, %105 : vector<128x32xf32>
    %137 = arith.addf %135, %136 : vector<128x32xf32>
    %138 = arith.mulf %137, %14 : vector<128x32xf32>
    %cst_20 = arith.constant dense<0.000000e+00> : vector<128xf32>
    %139 = vector.multi_reduction <add>, %138, %cst_20 [1] : vector<128x32xf32> to vector<128xf32>
    %140 = vector.shape_cast %139 : vector<128xf32> to vector<128x1xf32>
    %141 = arith.mulf %137, %15 : vector<128x32xf32>
    %cst_21 = arith.constant dense<0.000000e+00> : vector<128xf32>
    %142 = vector.multi_reduction <add>, %141, %cst_21 [1] : vector<128x32xf32> to vector<128xf32>
    %143 = vector.shape_cast %142 : vector<128xf32> to vector<128x1xf32>
    %144 = arith.mulf %137, %16 : vector<128x32xf32>
    %cst_22 = arith.constant dense<0.000000e+00> : vector<128xf32>
    %145 = vector.multi_reduction <add>, %144, %cst_22 [1] : vector<128x32xf32> to vector<128xf32>
    %146 = vector.shape_cast %145 : vector<128xf32> to vector<128x1xf32>
    %147 = arith.mulf %137, %17 : vector<128x32xf32>
    %cst_23 = arith.constant dense<0.000000e+00> : vector<128xf32>
    %148 = vector.multi_reduction <add>, %147, %cst_23 [1] : vector<128x32xf32> to vector<128xf32>
    %149 = vector.shape_cast %148 : vector<128xf32> to vector<128x1xf32>
    %150 = tpu.concatenate %140, %143, %146, %149 in 1 : vector<128x1xf32>, vector<128x1xf32>, vector<128x1xf32>, vector<128x1xf32> -> vector<128x4xf32>
    %cst_24 = arith.constant dense<0xFF800000> : vector<128xf32>
    %151 = vector.multi_reduction <maximumf>, %150, %cst_24 [1] : vector<128x4xf32> to vector<128xf32>
    %152 = vector.shape_cast %151 : vector<128xf32> to vector<128x1xf32>
    %153 = vector.broadcast %152 : vector<128x1xf32> to vector<128x4xf32>
    %154 = arith.subf %150, %153 : vector<128x4xf32>
    %155 = tpu.iota {dimensions = array<i32: 1>} : vector<128x4xi32>
    %cst_25 = arith.constant 0.000000e+00 : f32
    %156 = vector.broadcast %cst_25 : f32 to vector<128x4xf32>
    %157 = arith.cmpf oeq, %154, %156 : vector<128x4xf32>
    %c4_i32 = arith.constant 4 : i32
    %158 = vector.broadcast %c4_i32 : i32 to vector<128x4xi32>
    %159 = arith.select %157, %155, %158 : vector<128x4xi1>, vector<128x4xi32>
    %cst_26 = arith.constant dense<2147483647> : vector<128xi32>
    %160 = vector.multi_reduction <minsi>, %159, %cst_26 [1] : vector<128x4xi32> to vector<128xi32>
    %161 = vector.shape_cast %160 : vector<128xi32> to vector<128x1xi32>
    %162 = vector.broadcast %161 : vector<128x1xi32> to vector<128x4xi32>
    %163 = arith.cmpi eq, %155, %162 : vector<128x4xi32>
    %164 = arith.extui %163 : vector<128x4xi1> to vector<128x4xi32>
    %165 = arith.sitofp %164 : vector<128x4xi32> to vector<128x4xf32>
    %166 = math.exp %154 : vector<128x4xf32>
    %cst_27 = arith.constant dense<0.000000e+00> : vector<128xf32>
    %167 = vector.multi_reduction <add>, %166, %cst_27 [1] : vector<128x4xf32> to vector<128xf32>
    %168 = vector.shape_cast %167 : vector<128xf32> to vector<128x1xf32>
    %169 = math.log %168 : vector<128x1xf32>
    %170 = arith.addf %76, %169 : vector<128x1xf32>
    %171 = vector.extract_strided_slice %165 {offsets = [0, 0], sizes = [128, 1], strides = [1, 1]} : vector<128x4xf32> to vector<128x1xf32>
    %172 = vector.broadcast %171 : vector<128x1xf32> to vector<128x32xf32>
    %173 = arith.mulf %172, %14 : vector<128x32xf32>
    %174 = vector.extract_strided_slice %165 {offsets = [0, 1], sizes = [128, 1], strides = [1, 1]} : vector<128x4xf32> to vector<128x1xf32>
    %175 = vector.broadcast %174 : vector<128x1xf32> to vector<128x32xf32>
    %176 = arith.mulf %175, %15 : vector<128x32xf32>
    %177 = arith.addf %173, %176 : vector<128x32xf32>
    %178 = vector.extract_strided_slice %165 {offsets = [0, 2], sizes = [128, 1], strides = [1, 1]} : vector<128x4xf32> to vector<128x1xf32>
    %179 = vector.broadcast %178 : vector<128x1xf32> to vector<128x32xf32>
    %180 = arith.mulf %179, %16 : vector<128x32xf32>
    %181 = arith.addf %177, %180 : vector<128x32xf32>
    %182 = vector.extract_strided_slice %165 {offsets = [0, 3], sizes = [128, 1], strides = [1, 1]} : vector<128x4xf32> to vector<128x1xf32>
    %183 = vector.broadcast %182 : vector<128x1xf32> to vector<128x32xf32>
    %184 = arith.mulf %183, %17 : vector<128x32xf32>
    %185 = arith.addf %181, %184 : vector<128x32xf32>
    %186 = tpu.concatenate %185, %137 in 1 : vector<128x32xf32>, vector<128x32xf32> -> vector<128x64xf32>
    %cst_28 = arith.constant dense<0.000000e+00> : vector<128x128xf32>
    %187 = tpu.matmul %186, %4, %cst_28 {dimension_numbers = #tpu.dot_dimension_numbers<[1], [0], [0], [1], [0, 0, 1, 1], [], []>} : vector<128x64xf32>, vector<64x128xf32>, vector<128x128xf32> -> vector<128x128xf32>
    %188 = vector.broadcast %7 : vector<1x128xf32> to vector<128x128xf32>
    %189 = arith.addf %187, %188 : vector<128x128xf32>
    %190 = vector.extract_strided_slice %189 {offsets = [0, 0], sizes = [128, 32], strides = [1, 1]} : vector<128x128xf32> to vector<128x32xf32>
    %191 = arith.negf %190 : vector<128x32xf32>
    %192 = math.exp %191 : vector<128x32xf32>
    %cst_29 = arith.constant 1.000000e+00 : f32
    %193 = vector.broadcast %cst_29 : f32 to vector<128x32xf32>
    %194 = arith.addf %193, %192 : vector<128x32xf32>
    %195 = arith.divf %193, %194 : vector<128x32xf32>
    %196 = vector.extract_strided_slice %189 {offsets = [0, 32], sizes = [128, 32], strides = [1, 1]} : vector<128x128xf32> to vector<128x32xf32>
    %197 = arith.negf %196 : vector<128x32xf32>
    %198 = math.exp %197 : vector<128x32xf32>
    %cst_30 = arith.constant 1.000000e+00 : f32
    %199 = vector.broadcast %cst_30 : f32 to vector<128x32xf32>
    %200 = arith.addf %199, %198 : vector<128x32xf32>
    %201 = arith.divf %199, %200 : vector<128x32xf32>
    %202 = vector.extract_strided_slice %189 {offsets = [0, 96], sizes = [128, 32], strides = [1, 1]} : vector<128x128xf32> to vector<128x32xf32>
    %203 = vector.extract_strided_slice %189 {offsets = [0, 64], sizes = [128, 32], strides = [1, 1]} : vector<128x128xf32> to vector<128x32xf32>
    %204 = arith.subf %203, %202 : vector<128x32xf32>
    %205 = arith.mulf %195, %202 : vector<128x32xf32>
    %206 = arith.addf %204, %205 : vector<128x32xf32>
    %207 = math.tanh %206 : vector<128x32xf32>
    %cst_31 = arith.constant 1.000000e+00 : f32
    %208 = vector.broadcast %cst_31 : f32 to vector<128x32xf32>
    %209 = arith.subf %208, %201 : vector<128x32xf32>
    %210 = arith.mulf %209, %207 : vector<128x32xf32>
    %211 = arith.mulf %201, %137 : vector<128x32xf32>
    %212 = arith.addf %210, %211 : vector<128x32xf32>
    %cst_32 = arith.constant 0.000000e+00 : f32
    %213 = vector.broadcast %cst_32 : f32 to vector<128x92xf32>
    %214 = arith.sitofp %72 : vector<128x1xi32> to vector<128x1xf32>
    %215 = arith.sitofp %161 : vector<128x1xi32> to vector<128x1xf32>
    %216 = tpu.concatenate %212, %43, %170, %214, %215, %213 in 1 : vector<128x32xf32>, vector<128x1xf32>, vector<128x1xf32>, vector<128x1xf32>, vector<128x1xf32>, vector<128x92xf32> -> vector<128x128xf32>
    %c0_33 = arith.constant 0 : index
    %c0_34 = arith.constant 0 : index
    %217 = vector.load %arg3[%c0_33, %c0_34] : memref<128x128xf32, #tpu.memory_space<vmem>>, vector<128x128xf32>
    tpu.vector_store %arg3[%c0_33, %c0_34], %216 {strides = array<i32>} : memref<128x128xf32, #tpu.memory_space<vmem>>, vector<128x128xf32>,
    return
  }
  func.func @transform_0(%arg0: i32) -> (i32, i32) {
    %c0_i32 = arith.constant 0 : i32
    %c0_i32_0 = arith.constant 0 : i32
    return %arg0, %c0_i32 : i32, i32
  }
  func.func @transform_1(%arg0: i32) -> (i32, i32) {
    %c0_i32 = arith.constant 0 : i32
    %c0_i32_0 = arith.constant 0 : i32
    %c0_i32_1 = arith.constant 0 : i32
    return %c0_i32, %c0_i32_0 : i32, i32
  }
  func.func @transform_2(%arg0: i32) -> (i32, i32) {
    %c0_i32 = arith.constant 0 : i32
    %c0_i32_0 = arith.constant 0 : i32
    return %arg0, %c0_i32 : i32, i32
  }
}

</mosaic_0001>

<bundles_post_ra>
// kernel: tpu_custom_call.1
= control target key start
LH: loop header
LB: loop body
LE: loop exit
PB: predicated region body
PF: predicated region fallthrough
CT: control target
= control target key end

     0   :  { %7 = vsyncpa [#allocation3], 0  ;;  %s10854_s0 = inlined_call_operand.hbm [shape: f32[256,256], index: 0, kind: input, shape index: {}]   ;;  %s10855_s1 = inlined_call_operand.hbm [shape: f32[112,128], index: 1, kind: input, shape index: {}]   ;;  %s10856_s2 = inlined_call_operand.hbm [shape: f32[256,128], index: 2, kind: output, shape index: {}]  }
   0x1   :  { %9 = vsyncpa [#allocation3 + $0x1], 0 }
   0x2   :  { %10 = vsyncpa [#allocation6], 0 }
   0x3   :  { %11 = vsyncpa [#allocation4], 0 }
   0x4   :  { %13 = vsyncpa [#allocation4 + $0x1], 0  ;;  %s6704_s9 = smov 0   ;;  %s6706_s10 = smov 0  }
   0x5   :  { %s6708_s11 = smov 0   ;;  %s6710_s12 = smov 0  }
   0x6 LB: > { %s6725_s13 = sadd.s32 4294967295, %s6670_s12   ;;  %s5482_s14 = sadd.s32 4294967294, %s6670_s12   ;;  %s6670_s12 = sphi %s6710_s12, %s11469_s12   ;;  %s6666_s11 = sphi %s6708_s11, %s11468_s11   ;;  %s6662_s10 = sphi %s6706_s10, %s11467_s10   ;;  %s6658_s9 = sphi %s6704_s9, %s11466_s9  }
   0x7   : > { %p39_p0 = scmp.ne.s32.totalorder %s6662_s10, %s6658_s9  ;;  %p10857_p1 = scmp.eq.s32.totalorder %s6725_s13, 0 }
   0x8   : > { %p90_p3 = scmp.eq.s32.totalorder %s5482_s14, 1  ;;  %p5483_p5 = scmp.ge.s32.totalorder %s6670_s12, 1 }
   0x9   : > { %p6734_p4 = por %p10857_p1, %p39_p0  ;;  %p97_p7 = scmp.lt.s32.totalorder %s6670_s12, 3 }
   0xa   : > { %p6739_p6 = por %p90_p3, %p39_p0  ;;  %s6672_s18 = smov [#allocation5]  }
   0xb   : > { %s11003_s15 = scalar_select %p6734_p4, 1, 0 }
   0xc   : > { %s11004_s16 = scalar_select %p6739_p6, 1, 0 }
   0xd   : > { %p6744_p8 = pnand %p5483_p5, %p97_p7  ;;  %s109_s19 = sshll.u32 %s6672_s18, 4  ;;  %s6748_s19 = int_to_ptr.vmem [resolvable:$true] %s109_s19 }
   0xe   : > { %s6760_s21 = sadd.s32 1, %s6670_s12   ;;  %s26_s22 = sadd.s32 1, %s6666_s11 }
   0xf   : > { %s11005_s17 = scalar_select %p6744_p8, 1, 0 }
  0x10   : > { %p5826_p9 = pneg %p6744_p8  ;;  %s23_s23 = ssub.s32 %s6670_s12, %s6760_s21 }
  0x11   : > { %s6542_s26 = scalar_lea.hbm %s10855_s1, 1792 }
  0x12   : > { %p6755_p11 = pnand %p5826_p9, %p10857_p1  ;;  %p6543_p12 = scmp.ne.s32.totalorder %s10855_s1, %s6542_s26 }
  0x13   : > { %p6549_p5 = scmp.lt.u32.totalorder %s6542_s26, %s10855_s1 }
  0x14   : > { %p6544_p13 = pneg %p6755_p11 }
  0x16   : > { %p6545_p0 = pnand %p6544_p13, %p6543_p12 }
  0x18   : > { %p6546_p3 = pneg %p6545_p0 }
  0x1a   : > { %p6551_p7 = pnand %p6549_p5, %p6546_p3 }
  0x1c   : > { %6554 = shalt.err (!%p6551_p7)
}
  0x1d   : > { %s6555_s3 = scalar_lea.vmem %s6748_s19, 1792  ;;  %p6563_p2 = scmp.lt.s32.totalorder %s6748_s19, %s6748_s19 }
  0x1e   : > { %p6556_p9 = scmp.ne.s32.totalorder %s6748_s19, %s6555_s3  ;;  %p6564_p6 = scmp.lt.s32.totalorder %s6555_s3, %s6555_s3 }
  0x20   : > { %p6558_p10 = pnand %p6556_p9, %p6544_p13  ;;  %p6565_p4 = por %p6564_p6, %p6563_p2 }
  0x22   : > { %p6559_p1 = pneg %p6558_p10 }
  0x24   : > { %p6566_p8 = pnand %p6565_p4, %p6559_p1 }
  0x26   : > { %6569 = shalt.err (!%p6566_p8)
}
  0x27   : > { %s6673_s4 = smov 128   ;;  %s6674_s5 = smov 8  }
  0x28   : > { %5829 = dma.hbm_to_vmem [thread:$0]  (!%p6755_p11), %s10855_s1, 1792, %s6748_s19, [#allocation6], %s6673_s4, %s6673_s4, %s6674_s5  }
  0x29   : > { %p24_p2 = scmp.eq.s32.totalorder %s23_s23, 0  ;;  %p33_p1 = scmp.ne.s32.totalorder %s6666_s11, %s6662_s10 }
  0x2a   : > { %p34_p4 = scmp.eq.s32.totalorder %s6670_s12, 0  ;;  %p5839_p6 = scmp.lt.s32.totalorder %s6670_s12, 2 }
  0x2b   : > { %s6791_s8 = scalar_select %p24_p2, %s6666_s11, %s26_s22  }
  0x2c   : > { %p35_p8 = por %p34_p4, %p33_p1  ;;  %p11007_p10 = scmp.eq.s32.totalorder %s6725_s13, 1 }
  0x2d   : > { %s123_s18 = sand.u32 1, %s6666_s11   ;;  %s5612_s24 = sshll.u32 %s6670_s12, 12 }
  0x2e   : > { %p6795_p12 = por %p11007_p10, %p33_p1  ;;  %s5486_s25 = sshll.u32 %s123_s18, 8 }
  0x2f   : > { %s6804_s27 = scalar_lea.hbm %s10854_s0, %s5612_s24  ;;  %s127_s19 = scalar_lea.vmem [#allocation2], %s5486_s25 }
  0x30   : > { %s135_s22 = sshll.u32 %s127_s19, 4  ;;  %p6806_p11 = pnand %p5839_p6, %p35_p8  ;;  %s6810_s22 = int_to_ptr.vmem [resolvable:$true] %s135_s22 }
  0x31   : > { %s6812_s28 = scalar_lea.sflag [#allocation3], %s123_s18  ;;  %s6570_s29 = scalar_lea.hbm %s6804_s27, 4096 }
  0x32   : > { %p6571_p13 = scmp.ne.s32.totalorder %s6804_s27, %s6570_s29  ;;  %p6572_p0 = pneg %p6806_p11 }
  0x33   : > { %s6575_s4 = scalar_lea.hbm %s10854_s0, 8192  ;;  %p6576_p7 = scmp.lt.u32.totalorder %s6804_s27, %s10854_s0 }
  0x34   : > { %p6573_p3 = pnand %p6572_p0, %p6571_p13  ;;  %p6577_p9 = scmp.lt.u32.totalorder %s6575_s4, %s6570_s29 }
  0x35   : > { %p6579_p1 = scmp.lt.u32.totalorder %s6570_s29, %s6804_s27 }
  0x36   : > { %p6574_p5 = pneg %p6573_p3  ;;  %p6578_p2 = por %p6577_p9, %p6576_p7 }
  0x38   : > { %p6580_p4 = por %p6579_p1, %p6578_p2 }
  0x3a   : > { %p6581_p6 = pnand %p6580_p4, %p6574_p5 }
  0x3c   : > { %6584 = shalt.err (!%p6581_p6)
}
  0x3d   : > { %s6585_s7 = scalar_lea.vmem %s6810_s22, 4096  ;;  %s6675_s18 = smov [#allocation2]  }
  0x3e   : > { %p6586_p8 = scmp.ne.s32.totalorder %s6810_s22, %s6585_s7  ;;  %s6590_s24 = sshll.u32 %s6675_s18, 4  ;;  %s6591_s24 = int_to_ptr.vmem [resolvable:$false] %s6590_s24 }
  0x3f   : > { %s6592_s25 = scalar_lea.vmem %s6591_s24, 8192  ;;  %p6593_p3 = scmp.lt.s32.totalorder %s6810_s22, %s6591_s24 }
  0x40   : > { %p6588_p10 = pnand %p6586_p8, %p6572_p0  ;;  %p6594_p7 = scmp.lt.s32.totalorder %s6592_s25, %s6585_s7 }
  0x42   : > { %p6589_p13 = pneg %p6588_p10  ;;  %p6595_p9 = por %p6594_p7, %p6593_p3 }
  0x44   : > { %p6596_p2 = pnand %p6595_p9, %p6589_p13 }
  0x46   : > { %6599 = shalt.err (!%p6596_p2)
}
  0x47   : > { %s6676_s20 = smov 256   ;;  %s6677_s26 = smov 16  }
  0x48   : > { %5833 = dma.hbm_to_vmem [thread:$0]  (!%p6806_p11), %s6804_s27, 4096, %s6810_s22, %s6812_s28, %s6676_s20, %s6676_s20, %s6677_s26  }
  0x49   : > { %p11010_p0 = scmp.ne.s32.totalorder %s11005_s17, 0 }
  0x4b   : > { %147 = sbr.rel (%p11010_p0) target bundleno = 4655 (0x122f), region = 28 }
  0x52   : > { %s6843_s19 = sand.u32 1, %s6662_s10   ;;  %p11011_p5 = scmp.ne.s32.totalorder %s11003_s15, 0 }
  0x53   : > { %s5491_s29 = sshll.u32 %s6843_s19, 8  ;;  %s150_s30 = scalar_lea.sflag [#allocation3], %s6843_s19 }
  0x54   : > { %s6847_s3 = scalar_lea.vmem [#allocation2], %s5491_s29 }
  0x55   : > { %6645 = dma.done.wait (%p11011_p5), %s150_s30, 4096  }
  0x56   : > { %6647 = vsyncadd (%p11011_p5), %s150_s30, 4294963200  ;;  %p11012_p11 = scmp.eq.s32.totalorder %s6725_s13, 0 }
  0x58   : > { %6649 = dma.done.wait (%p11012_p11), [#allocation6], 1792   ;;  %p11013_p1 = pmov %p11012_p11 }
  0x59   : > { %v6858_v0 = vld [vmem:[%s6847_s3] sm:$0xff]  ;;  %v6861_v1 = vld [vmem:[%s6847_s3 + $0x10] sm:$0xff]  ;;  %s6678_s15 = smov 96   ;;  %v6868_v2 = vld [vmem:[%s6847_s3 + $0x8] sm:$0xff]  ;;  %s6679_s17 = smov 64   ;;  %vm582_vm0 = vcmask 261120  }
  0x5a   : > { %6651 = vsyncadd (%p11013_p1), [#allocation6], 4294965504  ;;  %242 = vrot.lane.b32.xlu0 %v6858_v0, %s6678_s15  ;;  %244 = vrot.lane.b32.xlu1 %v6861_v1, %s6678_s15  ;;  %v6871_v3 = vld [vmem:[%s6847_s3 + $0x18] sm:$0xff]  ;;  %v6878_v4 = vld [vmem:[%s6847_s3 + $0x20] sm:$0xff]  ;;  %s6680_s27 = smov 32   ;;  %vm1080_vm1 = vcmask 7168  }
  0x5b   : > { %v6881_v5 = vld [vmem:[%s6847_s3 + $0x28] sm:$0xff]  ;;  %v6888_v6 = vld [vmem:[%s6847_s3 + $0x30] sm:$0xff]  ;;  %v6891_v7 = vld [vmem:[%s6847_s3 + $0x38] sm:$0xff]  ;;  %vm1097_vm2 = vcmask 15360   ;;  %vm1134_vm3 = vcmask 23552   ;;  %s5493_s22 = sshll.u32 %s6843_s19, 7 }
  0x5c   : > { %v6898_v8 = vld [vmem:[%s6847_s3 + $0x40] sm:$0xff]  ;;  %v6901_v9 = vld [vmem:[%s6847_s3 + $0x48] sm:$0xff]  ;;  %v6908_v10 = vld [vmem:[%s6847_s3 + $0x50] sm:$0xff]  ;;  %s10629_s23 = scalar_lea.vmem [#allocation7], %s5493_s22  ;;  %s5613_s28 = sshll.u32 %s6725_s13, 11 }
  0x5d   : > { %v6911_v11 = vld [vmem:[%s6847_s3 + $0x58] sm:$0xff]  ;;  %v6918_v12 = vld [vmem:[%s6847_s3 + $0x60] sm:$0xff]  ;;  %v6921_v13 = vld [vmem:[%s6847_s3 + $0x68] sm:$0xff]  ;;  %s5399_s4 = sshll.u32 %s10629_s23, 4  ;;  %s10803_s6 = scalar_lea.hbm %s10856_s2, %s5613_s28  ;;  %s10805_s4 = int_to_ptr.vmem [resolvable:$true] %s5399_s4 }
  0x5e   : > { %322 = vrot.lane.b32.xlu0 %v6868_v2, %s6678_s15  ;;  %324 = vrot.lane.b32.xlu1 %v6871_v3, %s6678_s15  ;;  %v6928_v14 = vld [vmem:[%s6847_s3 + $0x70] sm:$0xff]  ;;  %v6931_v15 = vld [vmem:[%s6847_s3 + $0x78] sm:$0xff]  ;;  %v7017_v32 = vld [vmem:[#allocation5] sm:$0xff]  ;;  %s5386_s7 = scalar_lea.sflag [#allocation4], %s6843_s19  ;;  %s6600_s18 = scalar_lea.vmem %s10805_s4, 2048 }
  0x5f   : > { %v6938_v16 = vld [vmem:[%s6847_s3 + $0x80] sm:$0xff]  ;;  %v6941_v17 = vld [vmem:[%s6847_s3 + $0x88] sm:$0xff]  ;;  %v6948_v18 = vld [vmem:[%s6847_s3 + $0x90] sm:$0xff]  ;;  %p6601_p4 = scmp.ne.s32.totalorder %s10805_s4, %s6600_s18  ;;  %s6686_s24 = smov [#allocation7]  }
  0x60   : > { %v6951_v19 = vld [vmem:[%s6847_s3 + $0x98] sm:$0xff]  ;;  %v6958_v20 = vld [vmem:[%s6847_s3 + $0xa0] sm:$0xff]  ;;  %v6961_v21 = vld [vmem:[%s6847_s3 + $0xa8] sm:$0xff]  ;;  %s6604_s25 = sshll.u32 %s6686_s24, 4  ;;  %s6605_s25 = int_to_ptr.vmem [resolvable:$false] %s6604_s25 }
  0x61   : > { %v6968_v22 = vld [vmem:[%s6847_s3 + $0xb0] sm:$0xff]  ;;  %v6971_v23 = vld [vmem:[%s6847_s3 + $0xb8] sm:$0xff]  ;;  %v6978_v24 = vld [vmem:[%s6847_s3 + $0xc0] sm:$0xff]  ;;  %p6602_p6 = pnand %p6601_p4, %p6795_p12  ;;  %s6606_s20 = scalar_lea.vmem %s6605_s25, 4096 }
  0x62   : > { %246 = vrot.lane.b32.xlu0 %v6878_v4, %s6678_s15  ;;  %326 = vrot.lane.b32.xlu1 %v6881_v5, %s6678_s15  ;;  %v6981_v25 = vld [vmem:[%s6847_s3 + $0xc8] sm:$0xff]  ;;  %v6988_v26 = vld [vmem:[%s6847_s3 + $0xd0] sm:$0xff]  ;;  %v7027_v37 = vld [vmem:[#allocation5 + $0x18] sm:$0xff]  ;;  %p6607_p10 = scmp.lt.s32.totalorder %s10805_s4, %s6605_s25  ;;  %p6608_p13 = scmp.lt.s32.totalorder %s6606_s20, %s6600_s18 }
  0x63   : > { %v6991_v27 = vld [vmem:[%s6847_s3 + $0xd8] sm:$0xff]  ;;  %v6998_v28 = vld [vmem:[%s6847_s3 + $0xe0] sm:$0xff]  ;;  %v7001_v29 = vld [vmem:[%s6847_s3 + $0xe8] sm:$0xff]  ;;  %p6603_p8 = pneg %p6602_p6 }
  0x64   : > { %v7008_v30 = vld [vmem:[%s6847_s3 + $0xf0] sm:$0xff]  ;;  %v7011_v31 = vld [vmem:[%s6847_s3 + $0xf8] sm:$0xff]  ;;  %v7019_v33 = vld [vmem:[#allocation5 + $0x8] sm:$0xff]  ;;  %p6609_p3 = por %p6608_p13, %p6607_p10 }
  0x65   : > { %v5782_v34 = vpack.c.bf16 %v7019_v33, %v7017_v32  ;;  %v5889_v35 = vpack.i.bf16 %v7019_v33, %v7017_v32  ;;  %v7025_v36 = vld [vmem:[#allocation5 + $0x10] sm:$0xff] }
  0x66   : > { %248 = vrot.lane.b32.xlu0 %v6888_v6, %s6678_s15  ;;  %328 = vrot.lane.b32.xlu1 %v6891_v7, %s6678_s15  ;;  %v5786_v38 = vpack.c.bf16 %v7027_v37, %v7025_v36  ;;  %v5894_v62 = vpack.i.bf16 %v7027_v37, %v7025_v36  ;;  %p6610_p7 = pnand %p6609_p3, %p6603_p8 }
  0x67   : > { %5783 = vmatprep.subr.bf16.mxu0 %v5782_v34  ;;  %5814 = vmatprep.subr.bf16.mxu1 %v5782_v34 }
  0x68   : > { %5785 = vmatpush3.bf16.msra.mxu0 %v5782_v34  ;;  %5816 = vmatpush3.bf16.msra.mxu1 %v5782_v34 }
  0x69   : > { %5787 = vmatprep.subr.bf16.mxu0 %v5786_v38  ;;  %5815 = vmatprep.subr.bf16.mxu1 %v5786_v38 }
  0x6a   : > { %250 = vrot.lane.b32.xlu0 %v6898_v8, %s6678_s15  ;;  %330 = vrot.lane.b32.xlu1 %v6901_v9, %s6678_s15 }
  0x6c   : > { %5789 = vmatpush3.bf16.msra.mxu0 %v5786_v38  ;;  %5817 = vmatpush3.bf16.msra.mxu1 %v5786_v38 }
  0x6e   : > { %252 = vrot.lane.b32.xlu0 %v6908_v10, %s6678_s15  ;;  %332 = vrot.lane.b32.xlu1 %v6911_v11, %s6678_s15 }
  0x72   : > { %254 = vrot.lane.b32.xlu0 %v6918_v12, %s6678_s15  ;;  %334 = vrot.lane.b32.xlu1 %v6921_v13, %s6678_s15 }
  0x76   : > { %256 = vrot.lane.b32.xlu0 %v6928_v14, %s6678_s15  ;;  %336 = vrot.lane.b32.xlu1 %v6931_v15, %s6678_s15 }
  0x7a   : > { %258 = vrot.lane.b32.xlu0 %v6938_v16, %s6678_s15  ;;  %338 = vrot.lane.b32.xlu1 %v6941_v17, %s6678_s15 }
  0x7e   : > { %260 = vrot.lane.b32.xlu0 %v6948_v18, %s6678_s15  ;;  %340 = vrot.lane.b32.xlu1 %v6951_v19, %s6678_s15 }
  0x82   : > { %262 = vrot.lane.b32.xlu0 %v6958_v20, %s6678_s15  ;;  %342 = vrot.lane.b32.xlu1 %v6961_v21, %s6678_s15 }
  0x86   : > { %264 = vrot.lane.b32.xlu0 %v6968_v22, %s6678_s15  ;;  %344 = vrot.lane.b32.xlu1 %v6971_v23, %s6678_s15 }
  0x8a   : > { %266 = vrot.lane.b32.xlu0 %v6978_v24, %s6678_s15  ;;  %346 = vrot.lane.b32.xlu1 %v6981_v25, %s6678_s15 }
  0x8e   : > { %268 = vrot.lane.b32.xlu0 %v6988_v26, %s6678_s15  ;;  %348 = vrot.lane.b32.xlu1 %v6991_v27, %s6678_s15 }
  0x92   : > { %270 = vrot.lane.b32.xlu0 %v6998_v28, %s6678_s15  ;;  %350 = vrot.lane.b32.xlu1 %v7001_v29, %s6678_s15 }
  0x96   : > { %272 = vrot.lane.b32.xlu0 %v7008_v30, %s6678_s15  ;;  %352 = vrot.lane.b32.xlu1 %v7011_v31, %s6678_s15 }
  0xcc   : > { %v7031_v39 = vpop.permute.xlu0 %242  ;;  %v7033_v40 = vpop.permute.xlu1 %244 }
  0xcd   : > { %11014 = vst [vmem:[#allocation11_spill] sm:$0xff] %v7031_v39  ;;  %11015 = vst [vmem:[#allocation12_spill] sm:$0xff] %v7033_v40  ;;  %v7037_v41 = vadd.f32 %v7031_v39, %v6858_v0  ;;  %v7043_v42 = vadd.f32 %v7033_v40, %v6861_v1 }
  0xcf   : > { %402 = vrot.lane.b32.xlu0 %v7037_v41, %s6679_s17 }
  0xd0   : > { %v323_v43 = vpop.permute.xlu0 %322  ;;  %v325_v44 = vpop.permute.xlu1 %324 }
  0xd1   : > { %v7046_v45 = vadd.f32 %v323_v43, %v6868_v2  ;;  %v7053_v46 = vadd.f32 %v325_v44, %v6871_v3 }
  0xd3   : > { %404 = vrot.lane.b32.xlu0 %v7043_v42, %s6679_s17  ;;  %482 = vrot.lane.b32.xlu1 %v7046_v45, %s6679_s17 }
  0xd4   : > { %v7055_v47 = vpop.permute.xlu0 %246  ;;  %v327_v48 = vpop.permute.xlu1 %326 }
  0xd5   : > { %11016 = vst [vmem:[#allocation13_spill] sm:$0xff] %v7055_v47  ;;  %v7059_v49 = vadd.f32 %v7055_v47, %v6878_v4  ;;  %v7066_v50 = vadd.f32 %v327_v48, %v6881_v5 }
  0xd7   : > { %484 = vrot.lane.b32.xlu1 %v7053_v46, %s6679_s17  ;;  %406 = vrot.lane.b32.xlu0 %v7059_v49, %s6679_s17 }
  0xd8   : > { %v7068_v51 = vpop.permute.xlu0 %248  ;;  %v329_v52 = vpop.permute.xlu1 %328 }
  0xd9   : > { %11017 = vst [vmem:[#allocation14_spill] sm:$0xff] %v7068_v51  ;;  %v7072_v53 = vadd.f32 %v7068_v51, %v6888_v6  ;;  %v7079_v54 = vadd.f32 %v329_v52, %v6891_v7 }
  0xdb   : > { %486 = vrot.lane.b32.xlu1 %v7066_v50, %s6679_s17  ;;  %408 = vrot.lane.b32.xlu0 %v7072_v53, %s6679_s17 }
  0xdc   : > { %v7081_v55 = vpop.permute.xlu0 %250  ;;  %v331_v56 = vpop.permute.xlu1 %330 }
  0xdd   : > { %11018 = vst [vmem:[#allocation15_spill] sm:$0xff] %v7081_v55  ;;  %v7085_v57 = vadd.f32 %v7081_v55, %v6898_v8  ;;  %v7092_v58 = vadd.f32 %v331_v56, %v6901_v9 }
  0xdf   : > { %488 = vrot.lane.b32.xlu1 %v7079_v54, %s6679_s17  ;;  %410 = vrot.lane.b32.xlu0 %v7085_v57, %s6679_s17 }
  0xe0   : > { %v7094_v59 = vpop.permute.xlu0 %252  ;;  %v333_v60 = vpop.permute.xlu1 %332 }
  0xe1   : > { %11019 = vst [vmem:[#allocation16_spill] sm:$0xff] %v7094_v59  ;;  %v7098_v61 = vadd.f32 %v7094_v59, %v6908_v10  ;;  %v7107_v63 = vadd.f32 %v333_v60, %v6911_v11 }
  0xe3   : > { %490 = vrot.lane.b32.xlu1 %v7092_v58, %s6679_s17  ;;  %412 = vrot.lane.b32.xlu0 %v7098_v61, %s6679_s17 }
  0xe4   : > { %v7109_v0 = vpop.permute.xlu0 %254  ;;  %v335_v1 = vpop.permute.xlu1 %334 }
  0xe5   : > { %11020 = vst [vmem:[#allocation17_spill] sm:$0xff] %v7109_v0  ;;  %v7113_v2 = vadd.f32 %v7109_v0, %v6918_v12  ;;  %v7120_v3 = vadd.f32 %v335_v1, %v6921_v13 }
  0xe7   : > { %492 = vrot.lane.b32.xlu1 %v7107_v63, %s6679_s17  ;;  %414 = vrot.lane.b32.xlu0 %v7113_v2, %s6679_s17 }
  0xe8   : > { %v7122_v4 = vpop.permute.xlu0 %256  ;;  %v337_v5 = vpop.permute.xlu1 %336 }
  0xe9   : > { %11021 = vst [vmem:[#allocation18_spill] sm:$0xff] %v7122_v4  ;;  %v7126_v6 = vadd.f32 %v7122_v4, %v6928_v14  ;;  %v7133_v7 = vadd.f32 %v337_v5, %v6931_v15 }
  0xeb   : > { %494 = vrot.lane.b32.xlu1 %v7120_v3, %s6679_s17  ;;  %416 = vrot.lane.b32.xlu0 %v7126_v6, %s6679_s17 }
  0xec   : > { %v7135_v8 = vpop.permute.xlu0 %258  ;;  %v339_v9 = vpop.permute.xlu1 %338 }
  0xed   : > { %11022 = vst [vmem:[#allocation19_spill] sm:$0xff] %v7135_v8  ;;  %v7139_v10 = vadd.f32 %v7135_v8, %v6938_v16  ;;  %v7146_v11 = vadd.f32 %v339_v9, %v6941_v17 }
  0xef   : > { %496 = vrot.lane.b32.xlu1 %v7133_v7, %s6679_s17  ;;  %418 = vrot.lane.b32.xlu0 %v7139_v10, %s6679_s17 }
  0xf0   : > { %v7148_v12 = vpop.permute.xlu0 %260  ;;  %v341_v13 = vpop.permute.xlu1 %340 }
  0xf1   : > { %11023 = vst [vmem:[#allocation20_spill] sm:$0xff] %v7148_v12  ;;  %v7152_v14 = vadd.f32 %v7148_v12, %v6948_v18  ;;  %v7159_v15 = vadd.f32 %v341_v13, %v6951_v19 }
  0xf3   : > { %498 = vrot.lane.b32.xlu1 %v7146_v11, %s6679_s17  ;;  %420 = vrot.lane.b32.xlu0 %v7152_v14, %s6679_s17 }
  0xf4   : > { %v7161_v16 = vpop.permute.xlu0 %262  ;;  %v343_v17 = vpop.permute.xlu1 %342 }
  0xf5   : > { %11024 = vst [vmem:[#allocation21_spill] sm:$0xff] %v7161_v16  ;;  %v7165_v34 = vadd.f32 %v7161_v16, %v6958_v20  ;;  %v7172_v18 = vadd.f32 %v343_v17, %v6961_v21 }
  0xf7   : > { %500 = vrot.lane.b32.xlu1 %v7159_v15, %s6679_s17  ;;  %422 = vrot.lane.b32.xlu0 %v7165_v34, %s6679_s17 }
  0xf8   : > { %v7174_v38 = vpop.permute.xlu0 %264  ;;  %v345_v19 = vpop.permute.xlu1 %344 }
  0xf9   : > { %11025 = vst [vmem:[#allocation22_spill] sm:$0xff] %v7174_v38  ;;  %v7178_v43 = vadd.f32 %v7174_v38, %v6968_v22  ;;  %v7185_v20 = vadd.f32 %v345_v19, %v6971_v23 }
  0xfb   : > { %502 = vrot.lane.b32.xlu1 %v7172_v18, %s6679_s17  ;;  %424 = vrot.lane.b32.xlu0 %v7178_v43, %s6679_s17 }
  0xfc   : > { %v7187_v44 = vpop.permute.xlu0 %266  ;;  %v347_v21 = vpop.permute.xlu1 %346 }
  0xfd   : > { %11026 = vst [vmem:[#allocation23_spill] sm:$0xff] %v7187_v44  ;;  %v7191_v48 = vadd.f32 %v7187_v44, %v6978_v24  ;;  %v7198_v22 = vadd.f32 %v347_v21, %v6981_v25 }
  0xff   : > { %504 = vrot.lane.b32.xlu1 %v7185_v20, %s6679_s17  ;;  %426 = vrot.lane.b32.xlu0 %v7191_v48, %s6679_s17 }
 0x100   : > { %v7200_v52 = vpop.permute.xlu0 %268  ;;  %v349_v23 = vpop.permute.xlu1 %348 }
 0x101   : > { %11027 = vst [vmem:[#allocation24_spill] sm:$0xff] %v7200_v52  ;;  %v7204_v56 = vadd.f32 %v7200_v52, %v6988_v26  ;;  %v7211_v24 = vadd.f32 %v349_v23, %v6991_v27 }
 0x103   : > { %506 = vrot.lane.b32.xlu1 %v7198_v22, %s6679_s17  ;;  %428 = vrot.lane.b32.xlu0 %v7204_v56, %s6679_s17 }
 0x104   : > { %v7213_v60 = vpop.permute.xlu0 %270  ;;  %v351_v25 = vpop.permute.xlu1 %350 }
 0x105   : > { %11028 = vst [vmem:[#allocation25_spill] sm:$0xff] %v7213_v60  ;;  %v7217_v1 = vadd.f32 %v7213_v60, %v6998_v28  ;;  %v7224_v26 = vadd.f32 %v351_v25, %v7001_v29 }
 0x107   : > { %508 = vrot.lane.b32.xlu1 %v7211_v24, %s6679_s17  ;;  %430 = vrot.lane.b32.xlu0 %v7217_v1, %s6679_s17 }
 0x108   : > { %v7226_v5 = vpop.permute.xlu0 %272  ;;  %v353_v27 = vpop.permute.xlu1 %352 }
 0x109   : > { %11029 = vst [vmem:[#allocation26_spill] sm:$0xff] %v7226_v5  ;;  %v7230_v9 = vadd.f32 %v7226_v5, %v7008_v30  ;;  %v7237_v28 = vadd.f32 %v353_v27, %v7011_v31 }
 0x10b   : > { %510 = vrot.lane.b32.xlu1 %v7224_v26, %s6679_s17  ;;  %432 = vrot.lane.b32.xlu0 %v7230_v9, %s6679_s17 }
 0x10f   : > { %512 = vrot.lane.b32.xlu1 %v7237_v28, %s6679_s17  ;;  %5895 = vrot.lane.b32.xlu0 %v5894_v62, %s6678_s15 }
 0x113   : > { %5890 = vrot.lane.b32.xlu1 %v5889_v35, %s6678_s15 }
 0x141   : > { %v403_v29 = vpop.permute.xlu0 %402 }
 0x142   : > { %v450_v17 = vadd.f32 %v403_v29, %v7037_v41 }
 0x145   : > { %v483_v30 = vpop.permute.xlu1 %482  ;;  %v405_v13 = vpop.permute.xlu0 %404 }
 0x146   : > { %v530_v31 = vadd.f32 %v483_v30, %v7046_v45  ;;  %v451_v36 = vadd.f32 %v405_v13, %v7043_v42 }
 0x148   : > { %v546_v19 = vadd.f32 %v530_v31, %v450_v17 }
 0x149   : > { %v485_v21 = vpop.permute.xlu1 %484  ;;  %v407_v23 = vpop.permute.xlu0 %406 }
 0x14a   : > { %v7251_v25 = vmul.f32 0.125, %v546_v19  ;;  %v531_v37 = vadd.f32 %v485_v21, %v7053_v46  ;;  %v452_v41 = vadd.f32 %v407_v23, %v7059_v49 }
 0x14c   : > { %v547_v62 = vadd.f32 %v531_v37, %v451_v36  ;;  %2021 = vrot.lane.b32.xlu1 %v7251_v25, %s6680_s27  ;;  %5686 = vmatprep.mubr.msk.f32.mxu0 %vm582_vm0, %v7251_v25 }
 0x14d   : > { %v487_v32 = vpop.permute.xlu1 %486  ;;  %v409_v33 = vpop.permute.xlu0 %408 }
 0x14e   : > { %v7259_v35 = vmul.f32 0.125, %v547_v62  ;;  %v532_v45 = vadd.f32 %v487_v32, %v7066_v50  ;;  %v453_v30 = vadd.f32 %v409_v33, %v7072_v53 }
 0x150   : > { %v548_v27 = vadd.f32 %v532_v45, %v452_v41  ;;  %2023 = vrot.lane.b32.xlu1 %v7259_v35, %s6680_s27  ;;  %5687 = vmatmul.mubr.msk.f32.vlgmr.msra.gmra.mrb[0].mxu0 %vm582_vm0, %v7259_v35 }
 0x151   : > { %v489_v42 = vpop.permute.xlu1 %488  ;;  %v411_v46 = vpop.permute.xlu0 %410 }
 0x152   : > { %v7267_v29 = vmul.f32 0.125, %v548_v27  ;;  %v533_v13 = vadd.f32 %v489_v42, %v7079_v54  ;;  %v454_v19 = vadd.f32 %v411_v46, %v7085_v57 }
 0x154   : > { %v549_v17 = vadd.f32 %v533_v13, %v453_v30  ;;  %2025 = vrot.lane.b32.xlu1 %v7267_v29, %s6680_s27  ;;  %5689 = vmatprep.mubr.msk.f32.mxu0 %vm582_vm0, %v7267_v29 }
 0x155   : > { %v491_v49 = vpop.permute.xlu1 %490  ;;  %v413_v50 = vpop.permute.xlu0 %412 }
 0x156   : > { %v7275_v31 = vmul.f32 0.125, %v549_v17  ;;  %v534_v21 = vadd.f32 %v491_v49, %v7092_v58  ;;  %v455_v37 = vadd.f32 %v413_v50, %v7098_v61 }
 0x158   : > { %v550_v23 = vadd.f32 %v534_v21, %v454_v19  ;;  %2027 = vrot.lane.b32.xlu1 %v7275_v31, %s6680_s27  ;;  %5690 = vmatmul.mubr.msk.f32.gmra.mrb[2].mxu0 %vm582_vm0, %v7275_v31 }
 0x159   : > { %v493_v53 = vpop.permute.xlu1 %492  ;;  %v415_v54 = vpop.permute.xlu0 %414 }
 0x15a   : > { %v7283_v36 = vmul.f32 0.125, %v550_v23  ;;  %v535_v62 = vadd.f32 %v493_v53, %v7107_v63  ;;  %v456_v41 = vadd.f32 %v415_v54, %v7113_v2 }
 0x15c   : > { %v551_v32 = vadd.f32 %v535_v62, %v455_v37  ;;  %2029 = vrot.lane.b32.xlu1 %v7283_v36, %s6680_s27  ;;  %5692 = vmatprep.mubr.msk.f32.mxu0 %vm582_vm0, %v7283_v36 }
 0x15d   : > { %v495_v57 = vpop.permute.xlu1 %494  ;;  %v417_v58 = vpop.permute.xlu0 %416 }
 0x15e   : > { %v7291_v33 = vmul.f32 0.125, %v551_v32  ;;  %v536_v45 = vadd.f32 %v495_v57, %v7120_v3  ;;  %v457_v46 = vadd.f32 %v417_v58, %v7126_v6 }
 0x160   : > { %v552_v27 = vadd.f32 %v536_v45, %v456_v41  ;;  %2031 = vrot.lane.b32.xlu1 %v7291_v33, %s6680_s27  ;;  %5693 = vmatmul.mubr.msk.f32.gmra.mrb[4].mxu0 %vm582_vm0, %v7291_v33 }
 0x161   : > { %v497_v61 = vpop.permute.xlu1 %496  ;;  %v419_v63 = vpop.permute.xlu0 %418 }
 0x162   : > { %v7299_v42 = vmul.f32 0.125, %v552_v27  ;;  %v537_v30 = vadd.f32 %v497_v61, %v7133_v7  ;;  %v458_v49 = vadd.f32 %v419_v63, %v7139_v10  ;;  %v10860_v61 = vlaneseq }
 0x164   : > { %v553_v13 = vadd.f32 %v537_v30, %v457_v46  ;;  %2033 = vrot.lane.b32.xlu1 %v7299_v42, %s6680_s27  ;;  %5695 = vmatprep.mubr.msk.f32.mxu0 %vm582_vm0, %v7299_v42 }
 0x165   : > { %v499_v2 = vpop.permute.xlu1 %498  ;;  %v421_v3 = vpop.permute.xlu0 %420 }
 0x166   : > { %v7307_v17 = vmul.f32 0.125, %v553_v13  ;;  %v538_v50 = vadd.f32 %v499_v2, %v7146_v11  ;;  %v459_v23 = vadd.f32 %v421_v3, %v7152_v14  ;;  %v7348_v2 = vshrl.u32 %v10860_v61, 7 }
 0x168   : > { %v554_v19 = vadd.f32 %v538_v50, %v458_v49  ;;  %2035 = vrot.lane.b32.xlu0 %v7307_v17, %s6680_s27  ;;  %5696 = vmatmul.mubr.msk.f32.gmra.mrb[6].mxu0 %vm582_vm0, %v7307_v17  ;;  %11030 = vst [vmem:[#allocation27_spill] sm:$0xff] %v7348_v2  ;;  %v1116_v16 = vsub.s32 3, %v7348_v2 }
 0x169   : > { %v501_v6 = vpop.permute.xlu1 %500  ;;  %v423_v7 = vpop.permute.xlu0 %422 }
 0x16a   : > { %v7315_v21 = vmul.f32 0.125, %v554_v19  ;;  %v539_v53 = vadd.f32 %v501_v6, %v7159_v15  ;;  %v460_v62 = vadd.f32 %v423_v7, %v7165_v34  ;;  %v878_v6 = vsub.s32 6, %v7348_v2 }
 0x16c   : > { %v555_v54 = vadd.f32 %v539_v53, %v459_v23  ;;  %2037 = vrot.lane.b32.xlu0 %v7315_v21, %s6680_s27  ;;  %5698 = vmatprep.mubr.msk.f32.mxu1 %vm582_vm0, %v7315_v21 }
 0x16d   : > { %v503_v10 = vpop.permute.xlu1 %502  ;;  %v425_v11 = vpop.permute.xlu0 %424 }
 0x16e   : > { %v7323_v37 = vmul.f32 0.125, %v555_v54  ;;  %v540_v32 = vadd.f32 %v503_v10, %v7172_v18  ;;  %v461_v41 = vadd.f32 %v425_v11, %v7178_v43 }
 0x170   : > { %v556_v57 = vadd.f32 %v540_v32, %v460_v62  ;;  %2039 = vrot.lane.b32.xlu0 %v7323_v37, %s6680_s27  ;;  %5699 = vmatmul.mubr.msk.f32.vlgmr.msra.gmra.mrb[0].mxu1 %vm582_vm0, %v7323_v37 }
 0x171   : > { %v505_v14 = vpop.permute.xlu1 %504  ;;  %v427_v15 = vpop.permute.xlu0 %426 }
 0x172   : > { %v7331_v58 = vmul.f32 0.125, %v556_v57  ;;  %v541_v45 = vadd.f32 %v505_v14, %v7185_v20  ;;  %v462_v46 = vadd.f32 %v427_v15, %v7191_v48 }
 0x174   : > { %v557_v27 = vadd.f32 %v541_v45, %v461_v41  ;;  %2041 = vrot.lane.b32.xlu0 %v7331_v58, %s6680_s27  ;;  %5701 = vmatprep.mubr.msk.f32.mxu1 %vm582_vm0, %v7331_v58 }
 0x175   : > { %v507_v34 = vpop.permute.xlu1 %506  ;;  %v429_v18 = vpop.permute.xlu0 %428 }
 0x176   : > { %v7339_v63 = vmul.f32 0.125, %v557_v27  ;;  %v542_v30 = vadd.f32 %v507_v34, %v7198_v22  ;;  %v463_v49 = vadd.f32 %v429_v18, %v7204_v56  ;;  %v7363_v56 = vld [vmem:[#allocation5 + $0x60] sm:$0xff] }
 0x177   : > { %v7370_v10 = vrot.slane %v7363_v56, %v878_v6  ;;  %v7631_v0 = vrot.slane %v7363_v56, %v1116_v16 }
 0x178   : > { %v558_v13 = vadd.f32 %v542_v30, %v462_v46  ;;  %2043 = vrot.lane.b32.xlu0 %v7339_v63, %s6680_s27  ;;  %5702 = vmatmul.mubr.msk.f32.gmra.mrb[2].mxu1 %vm582_vm0, %v7339_v63 }
 0x179   : > { %v509_v43 = vpop.permute.xlu1 %508  ;;  %v431_v20 = vpop.permute.xlu0 %430  ;;  %v881_v32 = vmul.f32 %v7370_v10, %v7259_v35 }
 0x17a   : > { %v7350_v3 = vmul.f32 0.125, %v558_v13  ;;  %v543_v48 = vadd.f32 %v509_v43, %v7211_v24  ;;  %v464_v23 = vadd.f32 %v431_v20, %v7217_v1  ;;  %v885_v13 = vmul.f32 %v7370_v10, %v7291_v33 }
 0x17b   : > { %v887_v20 = vmul.f32 %v7370_v10, %v7307_v17 }
 0x17c   : > { %v559_v50 = vadd.f32 %v543_v48, %v463_v49  ;;  %2045 = vrot.lane.b32.xlu0 %v7350_v3, %s6680_s27  ;;  %5704 = vmatprep.mubr.msk.f32.mxu1 %vm582_vm0, %v7350_v3  ;;  %v911_v43 = vsel %vm582_vm0, %v885_v13, 0.0  ;;  %v889_v48 = vmul.f32 %v7370_v10, %v7323_v37 }
 0x17d   : > { %v511_v22 = vpop.permute.xlu1 %510  ;;  %v433_v19 = vpop.permute.xlu0 %432  ;;  %v917_v49 = vsel %vm582_vm0, %v887_v20, 0.0 }
 0x17e   : > { %v7359_v7 = vmul.f32 0.125, %v559_v50  ;;  %v544_v53 = vadd.f32 %v511_v22, %v7224_v26  ;;  %v465_v1 = vadd.f32 %v433_v19, %v7230_v9  ;;  %v899_v9 = vsel %vm582_vm0, %v881_v32, 0.0 }
 0x17f   : > { %v923_v50 = vsel %vm582_vm0, %v889_v48, 0.0  ;;  %v891_v22 = vmul.f32 %v7370_v10, %v7339_v63 }
 0x180   : > { %v560_v24 = vadd.f32 %v544_v53, %v464_v23  ;;  %2047 = vrot.lane.b32.xlu0 %v7359_v7, %s6680_s27  ;;  %5705 = vmatmul.mubr.msk.f32.gmra.mrb[4].mxu1 %vm582_vm0, %v7359_v7  ;;  %v893_v6 = vmul.f32 %v7370_v10, %v7359_v7  ;;  %v946_v23 = vsub.s32 7, %v7348_v2 }
 0x181   : > { %v513_v54 = vpop.permute.xlu1 %512  ;;  %v5896_v11 = vpop.permute.xlu0 %5895  ;;  %v929_v19 = vsel %vm582_vm0, %v891_v22, 0.0 }
 0x182   : > { %v7372_v62 = vmul.f32 0.125, %v560_v24  ;;  %v545_v26 = vadd.f32 %v513_v54, %v7237_v28  ;;  %v5898_v14 = vunpack.i.h.bf16 %v5896_v11  ;;  %v5897_v15 = vunpack.i.l.bf16 %v5896_v11 }
 0x183   : > { %v883_v28 = vmul.f32 %v7370_v10, %v7275_v31  ;;  %v935_v53 = vsel %vm582_vm0, %v893_v6, 0.0  ;;  %v7411_v54 = vrot.slane %v7363_v56, %v946_v23  ;;  %v880_v11 = vmul.f32 %v7370_v10, %v7251_v25 }
 0x184   : > { %v561_v57 = vadd.f32 %v545_v26, %v465_v1  ;;  %2049 = vrot.lane.b32.xlu0 %v7372_v62, %s6680_s27  ;;  %5707 = vmatprep.mubr.msk.f32.mxu1 %vm582_vm0, %v7372_v62  ;;  %v5794_v46 = vpack.c.bf16 %v5898_v14, %v5897_v15  ;;  %v892_v23 = vmul.f32 %v7370_v10, %v7350_v3 }
 0x185   : > { %v5891_v41 = vpop.permute.xlu1 %5890  ;;  %v905_v30 = vsel %vm582_vm0, %v883_v28, 0.0  ;;  %v949_v26 = vmul.f32 %v7411_v54, %v7259_v35  ;;  %v896_v32 = vsel %vm582_vm0, %v880_v11, 0.0  ;;  %v951_v15 = vmul.f32 %v7411_v54, %v7275_v31 }
 0x186   : > { %v7382_v45 = vmul.f32 0.125, %v561_v57  ;;  %v5893_v27 = vunpack.i.h.bf16 %v5891_v41  ;;  %v5892_v34 = vunpack.i.l.bf16 %v5891_v41  ;;  %v882_v57 = vmul.f32 %v7370_v10, %v7267_v29 }
 0x187   : > { %v967_v14 = vsel %vm582_vm0, %v949_v26, 0.0  ;;  %v10861_v11 = vsub.s32 0, %v7348_v2  ;;  %v894_v26 = vmul.f32 %v7370_v10, %v7372_v62 }
 0x188   : > { %900 = vadd.xlane.f32.xlu1 %v899_v9  ;;  %2051 = vrot.lane.b32.xlu0 %v7382_v45, %s6680_s27  ;;  %v5790_v18 = vpack.c.bf16 %v5893_v27, %v5892_v34  ;;  %v895_v24 = vmul.f32 %v7370_v10, %v7382_v45  ;;  %v902_v41 = vsel %vm582_vm0, %v882_v57, 0.0  ;;  %v884_v27 = vmul.f32 %v7370_v10, %v7283_v36 }
 0x189   : > { %5708 = vmatmul.mubr.msk.f32.gmra.mrb[6].mxu1 %vm582_vm0, %v7382_v45  ;;  %v973_v34 = vsel %vm582_vm0, %v951_v15, 0.0  ;;  %v953_v9 = vmul.f32 %v7411_v54, %v7291_v33 }
 0x18a   : > { %5791 = vmatprep.subr.bf16.mxu1 %v5790_v18  ;;  %v941_v1 = vsel %vm582_vm0, %v895_v24, 0.0  ;;  %v908_v28 = vsel %vm582_vm0, %v884_v27, 0.0  ;;  %v961_v24 = vmul.f32 %v7411_v54, %v7359_v7  ;;  %v948_v27 = vmul.f32 %v7411_v54, %v7251_v25 }
 0x18b   : > { %5793 = vmatpush3.bf16.msra.mxu1 %v5790_v18  ;;  %v886_v18 = vmul.f32 %v7370_v10, %v7299_v42 }
 0x18c   : > { %906 = vadd.xlane.f32.xlu1 %v905_v30  ;;  %5795 = vmatprep.subr.bf16.mxu1 %v5794_v46  ;;  %v955_v30 = vmul.f32 %v7411_v54, %v7307_v17  ;;  %v1003_v57 = vsel %vm582_vm0, %v961_v24, 0.0 }
 0x18d   : > { %v914_v13 = vsel %vm582_vm0, %v886_v18, 0.0 }
 0x18e   : > { %v985_v20 = vsel %vm582_vm0, %v955_v30, 0.0 }
 0x18f   : > { %5797 = vmatpush3.bf16.msra.mxu1 %v5794_v46  ;;  %v979_v46 = vsel %vm582_vm0, %v953_v9, 0.0  ;;  %v964_v9 = vsel %vm582_vm0, %v948_v27, 0.0 }
 0x190   : > { %912 = vadd.xlane.f32.xlu1 %v911_v43  ;;  %v888_v43 = vmul.f32 %v7370_v10, %v7315_v21 }
 0x192   : > { %v920_v48 = vsel %vm582_vm0, %v888_v43, 0.0 }
 0x194   : > { %918 = vadd.xlane.f32.xlu1 %v917_v49  ;;  %v957_v49 = vmul.f32 %v7411_v54, %v7323_v37 }
 0x196   : > { %v991_v22 = vsel %vm582_vm0, %v957_v49, 0.0  ;;  %v954_v49 = vmul.f32 %v7411_v54, %v7299_v42 }
 0x198   : > { %924 = vadd.xlane.f32.xlu1 %v923_v50  ;;  %v890_v50 = vmul.f32 %v7370_v10, %v7331_v58 }
 0x19a   : > { %v926_v6 = vsel %vm582_vm0, %v890_v50, 0.0  ;;  %v982_v50 = vsel %vm582_vm0, %v954_v49, 0.0 }
 0x19c   : > { %930 = vadd.xlane.f32.xlu1 %v929_v19  ;;  %v959_v19 = vmul.f32 %v7411_v54, %v7339_v63 }
 0x1a0   : > { %936 = vadd.xlane.f32.xlu1 %v935_v53  ;;  %v997_v53 = vsel %vm582_vm0, %v959_v19, 0.0 }
 0x1a4   : > { %942 = vadd.xlane.f32.xlu1 %v941_v1  ;;  %v932_v1 = vsel %vm582_vm0, %v892_v23, 0.0  ;;  %v958_v23 = vmul.f32 %v7411_v54, %v7331_v58 }
 0x1a6   : > { %v994_v24 = vsel %vm582_vm0, %v958_v23, 0.0 }
 0x1a7   : > { %897 = vadd.xlane.f32.xlu0 %v896_v32  ;;  %v225_v32 = vld [vmem:[#allocation5 + $0x68] sm:$0xff] }
 0x1a8   : > { %968 = vadd.xlane.f32.xlu1 %v967_v14  ;;  %v963_v14 = vmul.f32 %v7411_v54, %v7382_v45  ;;  %v7463_v15 = vrot.slane %v225_v32, %v10861_v11 }
 0x1aa   : > { %v1009_v10 = vsel %vm582_vm0, %v963_v14, 0.0  ;;  %v1021_v43 = vmul.f32 %v7463_v15, %v7291_v33  ;;  %v1025_v19 = vmul.f32 %v7463_v15, %v7323_v37  ;;  %v1031_v14 = vmul.f32 %v7463_v15, %v7382_v45 }
 0x1ab   : > { %903 = vadd.xlane.f32.xlu0 %v902_v41  ;;  %v938_v41 = vsel %vm582_vm0, %v894_v26, 0.0  ;;  %v1029_v26 = vmul.f32 %v7463_v15, %v7359_v7  ;;  %v1016_v27 = vmul.f32 %v7463_v15, %v7251_v25  ;;  %v1020_v45 = vmul.f32 %v7463_v15, %v7283_v36 }
 0x1ac   : > { %974 = vadd.xlane.f32.xlu1 %v973_v34  ;;  %v1017_v34 = vmul.f32 %v7463_v15, %v7259_v35  ;;  %v1077_v7 = vsel %vm582_vm0, %v1031_v14, 0.0 }
 0x1ad   : > { %v1044_v25 = vsel %vm582_vm0, %v1020_v45, 0.0 }
 0x1ae   : > { %v1035_v18 = vsel %vm582_vm0, %v1017_v34, 0.0 }
 0x1af   : > { %909 = vadd.xlane.f32.xlu0 %v908_v28  ;;  %v950_v28 = vmul.f32 %v7411_v54, %v7267_v29 }
 0x1b0   : > { %980 = vadd.xlane.f32.xlu1 %v979_v46  ;;  %v1019_v46 = vmul.f32 %v7463_v15, %v7275_v31  ;;  %v1047_v31 = vsel %vm582_vm0, %v1021_v43, 0.0 }
 0x1b1   : > { %v970_v30 = vsel %vm582_vm0, %v950_v28, 0.0  ;;  %v1022_v28 = vmul.f32 %v7463_v15, %v7299_v42  ;;  %v1028_v42 = vmul.f32 %v7463_v15, %v7350_v3 }
 0x1b2   : > { %v1041_v35 = vsel %vm582_vm0, %v1019_v46, 0.0 }
 0x1b3   : > { %915 = vadd.xlane.f32.xlu0 %v914_v13  ;;  %v952_v13 = vmul.f32 %v7411_v54, %v7283_v36  ;;  %v1026_v36 = vmul.f32 %v7463_v15, %v7331_v58  ;;  %v1068_v43 = vsel %vm582_vm0, %v1028_v42, 0.0 }
 0x1b4   : > { %986 = vadd.xlane.f32.xlu1 %v985_v20 }
 0x1b5   : > { %v976_v20 = vsel %vm582_vm0, %v952_v13, 0.0 }
 0x1b7   : > { %921 = vadd.xlane.f32.xlu0 %v920_v48  ;;  %v1023_v48 = vmul.f32 %v7463_v15, %v7307_v17  ;;  %v1059_v17 = vsel %vm582_vm0, %v1025_v19, 0.0 }
 0x1b8   : > { %992 = vadd.xlane.f32.xlu1 %v991_v22  ;;  %v956_v22 = vmul.f32 %v7411_v54, %v7315_v21 }
 0x1b9   : > { %v1053_v33 = vsel %vm582_vm0, %v1023_v48, 0.0 }
 0x1bb   : > { %927 = vadd.xlane.f32.xlu0 %v926_v6  ;;  %v988_v6 = vsel %vm582_vm0, %v956_v22, 0.0 }
 0x1bc   : > { %998 = vadd.xlane.f32.xlu1 %v997_v53  ;;  %v1027_v53 = vmul.f32 %v7463_v15, %v7339_v63  ;;  %v1071_v63 = vsel %vm582_vm0, %v1029_v26, 0.0 }
 0x1be   : > { %v1065_v37 = vsel %vm582_vm0, %v1027_v53, 0.0 }
 0x1bf   : > { %933 = vadd.xlane.f32.xlu0 %v932_v1  ;;  %v960_v1 = vmul.f32 %v7411_v54, %v7350_v3 }
 0x1c0   : > { %1004 = vadd.xlane.f32.xlu1 %v1003_v57  ;;  %v962_v57 = vmul.f32 %v7411_v54, %v7372_v62  ;;  %v1018_v54 = vmul.f32 %v7463_v15, %v7267_v29  ;;  %v1024_v29 = vmul.f32 %v7463_v15, %v7315_v21  ;;  %v1030_v21 = vmul.f32 %v7463_v15, %v7372_v62 }
 0x1c1   : > { %v1000_v32 = vsel %vm582_vm0, %v960_v1, 0.0 }
 0x1c2   : > { %v1038_v34 = vsel %vm582_vm0, %v1018_v54, 0.0  ;;  %v1074_v58 = vsel %vm582_vm0, %v1030_v21, 0.0 }
 0x1c3   : > { %939 = vadd.xlane.f32.xlu0 %v938_v41  ;;  %v1006_v41 = vsel %vm582_vm0, %v962_v57, 0.0 }
 0x1c4   : > { %1010 = vadd.xlane.f32.xlu1 %v1009_v10  ;;  %v1032_v10 = vsel %vm582_vm0, %v1016_v27, 0.0 }
 0x1c7   : > { %965 = vadd.xlane.f32.xlu0 %v964_v9  ;;  %v7523_v9 = vpop.permute.xlu1 %2021 }
 0x1c8   : > { %1036 = vadd.xlane.f32.xlu1 %v1035_v18  ;;  %v1050_v18 = vsel %vm582_vm0, %v1022_v28, 0.0 }
 0x1cb   : > { %971 = vadd.xlane.f32.xlu0 %v970_v30  ;;  %v7531_v46 = vpop.permute.xlu1 %2023  ;;  %v1056_v30 = vsel %vm582_vm0, %v1024_v29, 0.0 }
 0x1cc   : > { %1042 = vadd.xlane.f32.xlu1 %v1041_v35  ;;  %v1062_v35 = vsel %vm582_vm0, %v1026_v36, 0.0 }
 0x1cf   : > { %977 = vadd.xlane.f32.xlu0 %v976_v20  ;;  %v7536_v13 = vpop.permute.xlu1 %2025 }
 0x1d0   : > { %1048 = vadd.xlane.f32.xlu1 %v1047_v31 }
 0x1d3   : > { %983 = vadd.xlane.f32.xlu0 %v982_v50  ;;  %v7544_v20 = vpop.permute.xlu1 %2027 }
 0x1d4   : > { %1054 = vadd.xlane.f32.xlu1 %v1053_v33 }
 0x1d7   : > { %989 = vadd.xlane.f32.xlu0 %v988_v6  ;;  %v7549_v31 = vpop.permute.xlu1 %2029 }
 0x1d8   : > { %1060 = vadd.xlane.f32.xlu1 %v1059_v17 }
 0x1da   : > { %v7546_v49 = vpop.permute.xlu0 %2035 }
 0x1db   : > { %995 = vadd.xlane.f32.xlu0 %v994_v24  ;;  %v7553_v50 = vpop.permute.xlu1 %2031 }
 0x1dc   : > { %1066 = vadd.xlane.f32.xlu1 %v1065_v37 }
 0x1de   : > { %v7551_v48 = vpop.permute.xlu0 %2037 }
 0x1df   : > { %1001 = vadd.xlane.f32.xlu0 %v1000_v32  ;;  %v7557_v22 = vpop.permute.xlu1 %2033 }
 0x1e0   : > { %1072 = vadd.xlane.f32.xlu1 %v1071_v63 }
 0x1e2   : > { %v7555_v3 = vpop.permute.xlu0 %2039 }
 0x1e3   : > { %1007 = vadd.xlane.f32.xlu0 %v1006_v41 }
 0x1e4   : > { %1078 = vadd.xlane.f32.xlu1 %v1077_v7 }
 0x1e6   : > { %v7559_v33 = vpop.permute.xlu0 %2041 }
 0x1e7   : > { %1033 = vadd.xlane.f32.xlu0 %v1032_v10 }
 0x1ea   : > { %v7561_v15 = vpop.permute.xlu0 %2043 }
 0x1eb   : > { %1039 = vadd.xlane.f32.xlu0 %v1038_v34 }
 0x1ee   : > { %v7565_v23 = vpop.permute.xlu0 %2045 }
 0x1ef   : > { %1045 = vadd.xlane.f32.xlu0 %v1044_v25 }
 0x1f2   : > { %v7571_v24 = vpop.permute.xlu0 %2047 }
 0x1f3   : > { %1051 = vadd.xlane.f32.xlu0 %v1050_v18 }
 0x1f6   : > { %v7579_v32 = vpop.permute.xlu0 %2049 }
 0x1f7   : > { %1057 = vadd.xlane.f32.xlu0 %v1056_v30 }
 0x1fa   : > { %v7587_v41 = vpop.permute.xlu0 %2051 }
 0x1fb   : > { %1063 = vadd.xlane.f32.xlu0 %v1062_v35 }
 0x1ff   : > { %1069 = vadd.xlane.f32.xlu0 %v1068_v43 }
 0x203   : > { %1075 = vadd.xlane.f32.xlu0 %v1074_v58 }
 0x215   : > { %v901_v62 = vpop.xlane.xlu1 %900 }
 0x219   : > { %v907_v19 = vpop.xlane.xlu1 %906 }
 0x21d   : > { %v7563_v6 = vpop.xlane.xlu1 %912 }
 0x221   : > { %v7567_v17 = vpop.xlane.xlu1 %918 }
 0x222   : > { %11031 = vst [vmem:[#allocation28_spill] sm:$0xff] %v7567_v17 }
 0x223   : > { %v7569_v53 = vpop.f32.mrb[0].mxu0 }
 0x224   : > { %v7573_v1 = vpop.f32.mrb[1].mxu0 }
 0x225   : > { %v7575_v37 = vpop.xlane.xlu1 %924 }
 0x229   : > { %v7577_v26 = vpop.xlane.xlu1 %930 }
 0x22a   : > { %11032 = vst [vmem:[#allocation29_spill] sm:$0xff] %v7577_v26 }
 0x22b   : > { %v7581_v57 = vpop.f32.mrb[2].mxu0 }
 0x22c   : > { %v7583_v63 = vpop.f32.mrb[3].mxu0 }
 0x22d   : > { %v7585_v14 = vpop.xlane.xlu1 %936 }
 0x22e   : > { %11033 = vst [vmem:[#allocation30_spill] sm:$0xff] %v7585_v14 }
 0x231   : > { %v7589_v27 = vpop.xlane.xlu1 %942 }
 0x232   : > { %11034 = vst [vmem:[#allocation31_spill] sm:$0xff] %v7589_v27 }
 0x233   : > { %v7591_v7 = vpop.f32.mrb[4].mxu0 }
 0x234   : > { %v7593_v10 = vpop.f32.mrb[5].mxu0  ;;  %v898_v54 = vpop.xlane.xlu0 %897 }
 0x235   : > { %v969_v34 = vpop.xlane.xlu1 %968 }
 0x236   : > { %v1082_v59 = vsel %vm1080_vm1, %v901_v62, %v969_v34 }
 0x238   : > { %v904_v45 = vpop.xlane.xlu0 %903 }
 0x239   : > { %v975_v25 = vpop.xlane.xlu1 %974 }
 0x23a   : > { %v1084_v14 = vsel %vm1080_vm1, %v907_v19, %v975_v25 }
 0x23b   : > { %v7595_v28 = vpop.f32.mrb[6].mxu0 }
 0x23c   : > { %v7597_v18 = vpop.f32.mrb[7].mxu0  ;;  %v7599_v29 = vpop.xlane.xlu0 %909 }
 0x23d   : > { %v7601_v30 = vpop.xlane.xlu1 %980 }
 0x240   : > { %v7603_v36 = vpop.xlane.xlu0 %915 }
 0x241   : > { %v7605_v35 = vpop.xlane.xlu1 %986 }
 0x242   : > { %11035 = vst [vmem:[#allocation32_spill] sm:$0xff] %v7605_v35 }
 0x243   : > { %v5700_v42 = vpop.f32.mrb[0].mxu1 }
 0x244   : > { %v7607_v43 = vpop.f32.mrb[1].mxu1  ;;  %v7609_v21 = vpop.xlane.xlu0 %921 }
 0x245   : > { %v7611_v58 = vpop.xlane.xlu1 %992 }
 0x248   : > { %v7613_v61 = vpop.xlane.xlu0 %927 }
 0x249   : > { %11036 = vst [vmem:[#allocation33_spill] sm:$0xff] %v7613_v61  ;;  %v7615_v11 = vpop.xlane.xlu1 %998 }
 0x24a   : > { %11037 = vst [vmem:[#allocation34_spill] sm:$0xff] %v7615_v11 }
 0x24b   : > { %v5703_v60 = vpop.f32.mrb[2].mxu1 }
 0x24c   : > { %v7617_v5 = vpop.f32.mrb[3].mxu1  ;;  %v7619_v44 = vpop.xlane.xlu0 %933 }
 0x24d   : > { %11038 = vst [vmem:[#allocation35_spill] sm:$0xff] %v7619_v44  ;;  %v7621_v52 = vpop.xlane.xlu1 %1004 }
 0x24e   : > { %11039 = vst [vmem:[#allocation36_spill] sm:$0xff] %v7621_v52 }
 0x250   : > { %v7624_v38 = vpop.xlane.xlu0 %939 }
 0x251   : > { %11040 = vst [vmem:[#allocation37_spill] sm:$0xff] %v7624_v38  ;;  %v7626_v8 = vpop.xlane.xlu1 %1010 }
 0x252   : > { %11041 = vst [vmem:[#allocation38_spill] sm:$0xff] %v7626_v8 }
 0x253   : > { %v7628_v12 = vpop.f32.mrb[4].mxu1 }
 0x254   : > { %v7633_v4 = vpop.f32.mrb[5].mxu1  ;;  %v966_v55 = vpop.xlane.xlu0 %965 }
 0x255   : > { %v1037_v47 = vpop.xlane.xlu1 %1036 }
 0x256   : > { %v1099_v51 = vsel %vm1097_vm2, %v1082_v59, %v1037_v47 }
 0x257   : > { %v7638_v39 = vadd.f32 %v7631_v0, %v1099_v51 }
 0x258   : > { %v972_v40 = vpop.xlane.xlu0 %971 }
 0x259   : > { %11042 = vst [vmem:[#allocation39_spill] sm:$0xff] %v7638_v39  ;;  %v1043_v52 = vpop.xlane.xlu1 %1042  ;;  %v1138_v16 = vsel %vm1134_vm3, %v7638_v39, -inf  ;;  %v1081_v39 = vsel %vm1080_vm1, %v898_v54, %v966_v55 }
 0x25a   : > { %v1101_v27 = vsel %vm1097_vm2, %v1084_v14, %v1043_v52  ;;  %1139 = vmax.xlane.f32.xlu1 %v1138_v16  ;;  %v11044_v52 = vsub.s32 0, %v7348_v2 }
 0x25b   : > { %v7645_v8 = vadd.f32 %v7631_v0, %v1101_v27 }
 0x25c   : > { %v7647_v62 = vpop.f32.mrb[6].mxu1  ;;  %v7649_v47 = vpop.xlane.xlu0 %977  ;;  %v7664_v14 = vrot.slane %v7363_v56, %v11044_v52 }
 0x25d   : > { %11043 = vst [vmem:[#allocation40_spill] sm:$0xff] %v7645_v8  ;;  %v7651_v59 = vpop.f32.mrb[7].mxu1  ;;  %v1144_v51 = vsel %vm1134_vm3, %v7645_v8, -inf }
 0x25e   : > { %1145 = vmax.xlane.f32.xlu1 %v1144_v51  ;;  %11045 = vst [vmem:[#allocation41_spill] sm:$0xff] %v7664_v14  ;;  %v703_v16 = vadd.f32 %v7569_v53, %v7664_v14  ;;  %v743_v51 = vadd.f32 %v5700_v42, %v7664_v14  ;;  %v1083_v53 = vsel %vm1080_vm1, %v904_v45, %v972_v40 }
 0x25f   : > { %v698_v55 = vadd.f32 %v7573_v1, %v7664_v14  ;;  %v7696_v40 = vadd.f32 %v7581_v57, %v7664_v14  ;;  %v794_v1 = vsub.s32 2, %v7348_v2 }
 0x260   : > { %v7655_v19 = vpop.xlane.xlu0 %983  ;;  %v777_v54 = vmax.f32 %v703_v16, 0.0 }
 0x261   : > { %v7722_v57 = vrot.slane %v7363_v56, %v794_v1 }
 0x263   : > { %11050 = vst [vmem:[#allocation46_spill] sm:$0xff] %v7722_v57  ;;  %v797_v45 = vmul.f32 %v7722_v57, %v777_v54  ;;  %v7741_v54 = vadd.f32 %v7628_v12, %v7664_v14 }
 0x264   : > { %v7657_v34 = vpop.xlane.xlu0 %989 }
 0x268   : > { %v7659_v25 = vpop.xlane.xlu0 %995 }
 0x26c   : > { %v7666_v27 = vpop.xlane.xlu0 %1001 }
 0x26d   : > { %11046 = vst [vmem:[#allocation42_spill] sm:$0xff] %v7666_v27 }
 0x26f   : > { %1607 = vrot.lane.b32.xlu1 %v703_v16, %s6678_s15 }
 0x270   : > { %v7671_v8 = vpop.xlane.xlu0 %1007 }
 0x271   : > { %11047 = vst [vmem:[#allocation43_spill] sm:$0xff] %v7671_v8 }
 0x273   : > { %1623 = vrot.lane.b32.xlu1 %v743_v51, %s6678_s15 }
 0x274   : > { %v1034_v38 = vpop.xlane.xlu0 %1033 }
 0x275   : > { %v1098_v44 = vsel %vm1097_vm2, %v1081_v39, %v1034_v38  ;;  %v738_v38 = vadd.f32 %v7607_v43, %v7664_v14 }
 0x276   : > { %v7678_v52 = vadd.f32 %v7631_v0, %v1098_v44  ;;  %v708_v44 = vadd.f32 %v7583_v63, %v7664_v14  ;;  %v785_v63 = vmax.f32 %v743_v51, 0.0 }
 0x277   : > { %1767 = vrot.lane.b32.xlu1 %v703_v16, %s6680_s27  ;;  %v7733_v16 = vadd.f32 %v7591_v7, %v7664_v14  ;;  %v7750_v7 = vpop.xlane.xlu1 %1048 }
 0x278   : > { %11048 = vst [vmem:[#allocation44_spill] sm:$0xff] %v7678_v52  ;;  %v1040_v27 = vpop.xlane.xlu0 %1039  ;;  %v1135_v8 = vsel %vm1134_vm3, %v7678_v52, -inf  ;;  %v805_v43 = vmul.f32 %v7722_v57, %v785_v63  ;;  %v7762_v63 = vadd.f32 %v7633_v4, %v7664_v14 }
 0x279   : > { %v1100_v42 = vsel %vm1097_vm2, %v1083_v53, %v1040_v27  ;;  %1136 = vmax.xlane.f32.xlu0 %v1135_v8  ;;  %v753_v8 = vadd.f32 %v5703_v60, %v7664_v14  ;;  %v7715_v60 = vadd.f32 %v7617_v5, %v7664_v14  ;;  %v815_v5 = vsel %vm582_vm0, %v797_v45, 0.0 }
 0x27a   : > { %v7686_v17 = vadd.f32 %v7631_v0, %v1100_v42  ;;  %v839_v27 = vsel %vm582_vm0, %v805_v43, 0.0  ;;  %v776_v53 = vmax.f32 %v698_v55, 0.0  ;;  %v784_v42 = vmax.f32 %v738_v38, 0.0 }
 0x27b   : > { %1783 = vrot.lane.b32.xlu1 %v743_v51, %s6680_s27  ;;  %v7756_v12 = vpop.xlane.xlu1 %1054 }
 0x27c   : > { %11049 = vst [vmem:[#allocation45_spill] sm:$0xff] %v7686_v17  ;;  %v1141_v39 = vsel %vm1134_vm3, %v7686_v17, -inf  ;;  %v804_v1 = vmul.f32 %v7722_v57, %v784_v42  ;;  %11051 = vst [vmem:[#allocation47_spill] sm:$0xff] %v7756_v12 }
 0x27d   : > { %1142 = vmax.xlane.f32.xlu0 %v1141_v39  ;;  %v796_v39 = vmul.f32 %v7722_v57, %v776_v53 }
 0x27f   : > { %1765 = vrot.lane.b32.xlu1 %v698_v55, %s6680_s27  ;;  %v812_v51 = vsel %vm582_vm0, %v796_v39, 0.0  ;;  %v7766_v45 = vpop.xlane.xlu1 %1060  ;;  %v7782_v39 = vpop.xlane.xlu0 %1045 }
 0x283   : > { %1611 = vrot.lane.b32.xlu1 %v7696_v40, %s6678_s15 }
 0x287   : > { %1627 = vrot.lane.b32.xlu1 %v753_v8, %s6678_s15 }
 0x28b   : > { %1771 = vrot.lane.b32.xlu1 %v7696_v40, %s6680_s27 }
 0x28f   : > { %1787 = vrot.lane.b32.xlu1 %v753_v8, %s6680_s27 }
 0x293   : > { %1605 = vrot.lane.b32.xlu0 %v698_v55, %s6678_s15  ;;  %v836_v55 = vsel %vm582_vm0, %v804_v1, 0.0  ;;  %v733_v1 = vadd.f32 %v7595_v28, %v7664_v14  ;;  %v773_v28 = vadd.f32 %v7647_v62, %v7664_v14 }
 0x297   : > { %1621 = vrot.lane.b32.xlu0 %v738_v38, %s6678_s15 }
 0x29b   : > { %1781 = vrot.lane.b32.xlu0 %v738_v38, %s6680_s27  ;;  %v7754_v38 = vadd.f32 %v7593_v10, %v7664_v14  ;;  %v7770_v10 = vpop.xlane.xlu1 %1066 }
 0x29c   : > { %11052 = vst [vmem:[#allocation48_spill] sm:$0xff] %v7770_v10 }
 0x29f   : > { %1609 = vrot.lane.b32.xlu0 %v708_v44, %s6678_s15 }
 0x2a3   : > { %1625 = vrot.lane.b32.xlu0 %v7715_v60, %s6678_s15 }
 0x2a7   : > { %1769 = vrot.lane.b32.xlu0 %v708_v44, %s6680_s27 }
 0x2ab   : > { %1785 = vrot.lane.b32.xlu0 %v7715_v60, %s6680_s27 }
 0x2b3   : > { %816 = vadd.xlane.f32.xlu1 %v815_v5  ;;  %v787_v5 = vmax.f32 %v753_v8, 0.0  ;;  %v779_v8 = vmax.f32 %v7696_v40, 0.0 }
 0x2b5   : > { %v807_v43 = vmul.f32 %v7722_v57, %v787_v5  ;;  %v778_v5 = vmax.f32 %v708_v44, 0.0 }
 0x2b7   : > { %840 = vadd.xlane.f32.xlu1 %v839_v27  ;;  %v7775_v27 = vpop.xlane.xlu1 %1072  ;;  %v845_v4 = vsel %vm582_vm0, %v807_v43, 0.0  ;;  %v799_v43 = vmul.f32 %v7722_v57, %v779_v8 }
 0x2b8   : > { %11053 = vst [vmem:[#allocation49_spill] sm:$0xff] %v7775_v27 }
 0x2b9   : > { %v821_v40 = vsel %vm582_vm0, %v799_v43, 0.0 }
 0x2bb   : > { %v7778_v53 = vpop.xlane.xlu1 %1078 }
 0x2bc   : > { %11054 = vst [vmem:[#allocation50_spill] sm:$0xff] %v7778_v53 }
 0x2c8   : > { %1615 = vrot.lane.b32.xlu1 %v7733_v16, %s6678_s15 }
 0x2ca   : > { %813 = vadd.xlane.f32.xlu0 %v812_v51 }
 0x2cc   : > { %1631 = vrot.lane.b32.xlu1 %v7741_v54, %s6678_s15 }
 0x2ce   : > { %837 = vadd.xlane.f32.xlu0 %v836_v55  ;;  %v7789_v55 = vpop.xlane.xlu0 %1051 }
 0x2d0   : > { %1775 = vrot.lane.b32.xlu1 %v7733_v16, %s6680_s27 }
 0x2d2   : > { %v7793_v17 = vpop.xlane.xlu0 %1057 }
 0x2d4   : > { %1791 = vrot.lane.b32.xlu1 %v7741_v54, %s6680_s27 }
 0x2d6   : > { %v7804_v53 = vpop.xlane.xlu0 %1063 }
 0x2d7   : > { %11057 = vst [vmem:[#allocation53_spill] sm:$0xff] %v7804_v53 }
 0x2e4   : > { %1613 = vrot.lane.b32.xlu0 %v7754_v38, %s6678_s15 }
 0x2e7   : > { %v7780_v42 = vpop.xlane.xlu1 %1139 }
 0x2e8   : > { %1629 = vrot.lane.b32.xlu0 %v7762_v63, %s6678_s15  ;;  %11055 = vst [vmem:[#allocation51_spill] sm:$0xff] %v7780_v42  ;;  %v786_v42 = vmax.f32 %v7715_v60, 0.0 }
 0x2ea   : > { %v806_v27 = vmul.f32 %v7722_v57, %v786_v42 }
 0x2eb   : > { %v7785_v51 = vpop.xlane.xlu1 %1145 }
 0x2ec   : > { %1773 = vrot.lane.b32.xlu0 %v7754_v38, %s6680_s27  ;;  %11056 = vst [vmem:[#allocation52_spill] sm:$0xff] %v7785_v51  ;;  %v798_v51 = vmul.f32 %v7722_v57, %v778_v5  ;;  %v842_v60 = vsel %vm582_vm0, %v806_v27, 0.0  ;;  %v7809_v5 = vpop.xlane.xlu0 %1069 }
 0x2ed   : > { %11058 = vst [vmem:[#allocation54_spill] sm:$0xff] %v7809_v5  ;;  %v781_v5 = vmax.f32 %v7733_v16, 0.0 }
 0x2ee   : > { %v818_v8 = vsel %vm582_vm0, %v798_v51, 0.0 }
 0x2f0   : > { %1789 = vrot.lane.b32.xlu0 %v7762_v63, %s6680_s27  ;;  %v7813_v62 = vpop.xlane.xlu0 %1075 }
 0x2f1   : > { %11059 = vst [vmem:[#allocation55_spill] sm:$0xff] %v7813_v62 }
 0x2f8   : > { %846 = vadd.xlane.f32.xlu1 %v845_v4  ;;  %v1608_v4 = vpop.permute.xlu1 %1607 }
 0x2fc   : > { %v1624_v44 = vpop.permute.xlu1 %1623 }
 0x300   : > { %v7807_v43 = vpop.permute.xlu1 %1767 }
 0x304   : > { %v7811_v52 = vpop.permute.xlu1 %1783 }
 0x306   : > { %v7816_v12 = vpop.xlane.xlu0 %1136 }
 0x307   : > { %11060 = vst [vmem:[#allocation56_spill] sm:$0xff] %v7816_v12 }
 0x308   : > { %v7818_v51 = vpop.permute.xlu1 %1765 }
 0x309   : > { %1619 = vrot.lane.b32.xlu1 %v733_v1, %s6678_s15 }
 0x30d   : > { %1779 = vrot.lane.b32.xlu1 %v733_v1, %s6680_s27 }
 0x30f   : > { %822 = vadd.xlane.f32.xlu0 %v821_v40  ;;  %v1587_v40 = vsub.s32 4, %v7348_v2  ;;  %v7831_v2 = vadd.f32 %v7597_v18, %v7664_v14  ;;  %v783_v18 = vmax.f32 %v733_v1, 0.0 }
 0x311   : > { %1795 = vrot.lane.b32.xlu1 %v773_v28, %s6680_s27  ;;  %v7821_v42 = vrot.slane %v7363_v56, %v1587_v40  ;;  %v789_v56 = vmax.f32 %v7741_v54, 0.0  ;;  %v803_v1 = vmul.f32 %v7722_v57, %v783_v18 }
 0x313   : > { %819 = vadd.xlane.f32.xlu0 %v818_v8  ;;  %v7823_v8 = vpop.xlane.xlu0 %1142  ;;  %v1654_v27 = vadd.f32 %v1608_v4, %v7821_v42  ;;  %v1662_v62 = vadd.f32 %v1624_v44, %v7821_v42  ;;  %v7842_v44 = vadd.f32 %v7651_v59, %v7664_v14  ;;  %v809_v35 = vmul.f32 %v7722_v57, %v789_v56 }
 0x314   : > { %11061 = vst [vmem:[#allocation57_spill] sm:$0xff] %v7823_v8  ;;  %v801_v8 = vmul.f32 %v7722_v57, %v781_v5 }
 0x315   : > { %v5511_v10 = vmul.f32 -1.442695, %v1654_v27  ;;  %v5519_v16 = vmul.f32 -1.442695, %v1662_v62  ;;  %v851_v59 = vsel %vm582_vm0, %v809_v35, 0.0 }
 0x316   : > { %v827_v27 = vsel %vm582_vm0, %v801_v8, 0.0 }
 0x317   : > { %843 = vadd.xlane.f32.xlu0 %v842_v60  ;;  %v1612_v60 = vpop.permute.xlu1 %1611  ;;  %v7833_v12 = vpop.permute.xlu0 %1605  ;;  %6090 = vpow2.f32 %v5511_v10 }
 0x318   : > { %v1656_v4 = vadd.f32 %v1612_v60, %v7821_v42  ;;  %6092 = vpow2.f32 %v5519_v16  ;;  %v791_v60 = vmax.f32 %v773_v28, 0.0  ;;  %v833_v16 = vsel %vm582_vm0, %v803_v1, 0.0 }
 0x31a   : > { %v5513_v10 = vmul.f32 -1.442695, %v1656_v4 }
 0x31b   : > { %v1628_v40 = vpop.permute.xlu1 %1627  ;;  %v7846_v54 = vpop.permute.xlu0 %1621 }
 0x31c   : > { %v1664_v5 = vadd.f32 %v1628_v40, %v7821_v42  ;;  %6094 = vpow2.f32 %v5513_v10  ;;  %v811_v40 = vmul.f32 %v7722_v57, %v791_v60 }
 0x31e   : > { %v5521_v8 = vmul.f32 -1.442695, %v1664_v5  ;;  %v857_v18 = vsel %vm582_vm0, %v811_v40, 0.0 }
 0x31f   : > { %v1772_v62 = vpop.permute.xlu1 %1771  ;;  %v7855_v56 = vpop.permute.xlu0 %1781 }
 0x320   : > { %6096 = vpow2.f32 %v5521_v8 }
 0x323   : > { %v1788_v14 = vpop.permute.xlu1 %1787  ;;  %v1610_v10 = vpop.permute.xlu0 %1609 }
 0x327   : > { %v1626_v1 = vpop.permute.xlu0 %1625 }
 0x32b   : > { %v7869_v40 = vpop.permute.xlu0 %1769 }
 0x32d   : > { %1635 = vrot.lane.b32.xlu0 %v773_v28, %s6678_s15 }
 0x331   : > { %1617 = vrot.lane.b32.xlu0 %v7831_v2, %s6678_s15 }
 0x335   : > { %828 = vadd.xlane.f32.xlu1 %v827_v27  ;;  %1633 = vrot.lane.b32.xlu0 %v7842_v44, %s6678_s15  ;;  %v6091_v27 = vpop.eup %6090 }
 0x336   : > { %v1718_v35 = vadd.f32 1.0, %v6091_v27  ;;  %v6093_v28 = vpop.eup %6092 }
 0x337   : > { %v1726_v5 = vadd.f32 1.0, %v6093_v28 }
 0x338   : > { %6098 = vrcp.f32 %v1718_v35 }
 0x339   : > { %852 = vadd.xlane.f32.xlu1 %v851_v59  ;;  %1777 = vrot.lane.b32.xlu0 %v7831_v2, %s6680_s27  ;;  %v6095_v59 = vpop.eup %6094  ;;  %6100 = vrcp.f32 %v1726_v5 }
 0x33a   : > { %v1720_v60 = vadd.f32 1.0, %v6095_v59  ;;  %v7878_v59 = vpop.permute.xlu0 %1785 }
 0x33c   : > { %6102 = vrcp.f32 %v1720_v60 }
 0x33d   : > { %834 = vadd.xlane.f32.xlu1 %v833_v16  ;;  %1793 = vrot.lane.b32.xlu0 %v7842_v44, %s6680_s27  ;;  %v6097_v16 = vpop.eup %6096 }
 0x33e   : > { %v1728_v27 = vadd.f32 1.0, %v6097_v16  ;;  %v788_v16 = vmax.f32 %v7762_v63, 0.0 }
 0x340   : > { %v7861_v4 = vpop.xlane.xlu1 %816 }
 0x341   : > { %11062 = vst [vmem:[#allocation58_spill] sm:$0xff] %v7861_v4  ;;  %858 = vadd.xlane.f32.xlu1 %v857_v18 }
 0x342   : > { %v7867_v61 = vpop.eup %6098 }
 0x343   : > { %v1814_v18 = vmul.f32 %v7867_v61, %v7807_v43  ;;  %v7874_v5 = vpop.eup %6100 }
 0x344   : > { %v7864_v26 = vpop.xlane.xlu1 %840  ;;  %v1822_v60 = vmul.f32 %v7874_v5, %v7811_v52 }
 0x345   : > { %11063 = vst [vmem:[#allocation59_spill] sm:$0xff] %v7864_v26 }
 0x348   : > { %v1616_v11 = vpop.permute.xlu1 %1615 }
 0x349   : > { %v1658_v8 = vadd.f32 %v1616_v11, %v7821_v42  ;;  %v780_v11 = vmax.f32 %v7754_v38, 0.0 }
 0x34b   : > { %v5515_v53 = vmul.f32 -1.442695, %v1658_v8 }
 0x34c   : > { %v1632_v4 = vpop.permute.xlu1 %1631 }
 0x34d   : > { %6104 = vpow2.f32 %v5515_v53  ;;  %v1666_v35 = vadd.f32 %v1632_v4, %v7821_v42  ;;  %v7882_v53 = vpop.eup %6102  ;;  %v1653_v4 = vadd.f32 %v7833_v12, %v7821_v42 }
 0x34e   : > { %6106 = vrcp.f32 %v1728_v27  ;;  %v800_v27 = vmul.f32 %v7722_v57, %v780_v11  ;;  %v1816_v38 = vmul.f32 %v7882_v53, %v1772_v62  ;;  %v808_v11 = vmul.f32 %v7722_v57, %v788_v16 }
 0x34f   : > { %v5523_v28 = vmul.f32 -1.442695, %v1666_v35  ;;  %v5510_v52 = vmul.f32 -1.442695, %v1653_v4 }
 0x351   : > { %6108 = vpow2.f32 %v5523_v28 }
 0x352   : > { %1847 = vrot.lane.b32.xlu1 %v1814_v18, %s6679_s17  ;;  %v1661_v18 = vadd.f32 %v7846_v54, %v7821_v42  ;;  %v1655_v54 = vadd.f32 %v1610_v10, %v7821_v42 }
 0x354   : > { %v5518_v4 = vmul.f32 -1.442695, %v1661_v18  ;;  %v5512_v16 = vmul.f32 -1.442695, %v1655_v54 }
 0x356   : > { %1863 = vrot.lane.b32.xlu1 %v1822_v60, %s6679_s17  ;;  %v782_v60 = vmax.f32 %v7831_v2, 0.0  ;;  %v848_v2 = vsel %vm582_vm0, %v808_v11, 0.0 }
 0x357   : > { %v6105_v43 = vpop.eup %6104  ;;  %v7888_v8 = vpop.xlane.xlu0 %813 }
 0x358   : > { %11064 = vst [vmem:[#allocation60_spill] sm:$0xff] %v7888_v8  ;;  %v1722_v35 = vadd.f32 1.0, %v6105_v43  ;;  %v7892_v28 = vpop.eup %6106  ;;  %v824_v8 = vsel %vm582_vm0, %v800_v27, 0.0 }
 0x359   : > { %v1824_v62 = vmul.f32 %v7892_v28, %v1788_v14  ;;  %v1663_v14 = vadd.f32 %v1626_v1, %v7821_v42 }
 0x35a   : > { %6110 = vrcp.f32 %v1722_v35  ;;  %1851 = vrot.lane.b32.xlu1 %v1816_v38, %s6679_s17  ;;  %v790_v38 = vmax.f32 %v7842_v44, 0.0  ;;  %v802_v35 = vmul.f32 %v7722_v57, %v782_v60 }
 0x35b   : > { %v6109_v12 = vpop.eup %6108  ;;  %v7898_v63 = vpop.xlane.xlu0 %837  ;;  %6112 = vpow2.f32 %v5510_v52 }
 0x35c   : > { %11065 = vst [vmem:[#allocation61_spill] sm:$0xff] %v7898_v63  ;;  %v1730_v43 = vadd.f32 1.0, %v6109_v12  ;;  %825 = vadd.xlane.f32.xlu0 %v824_v8  ;;  %v1776_v8 = vpop.permute.xlu1 %1775  ;;  %v830_v52 = vsel %vm582_vm0, %v802_v35, 0.0  ;;  %v810_v10 = vmul.f32 %v7722_v57, %v790_v38  ;;  %v5520_v12 = vmul.f32 -1.442695, %v1663_v14 }
 0x35e   : > { %6114 = vrcp.f32 %v1730_v43  ;;  %1867 = vrot.lane.b32.xlu1 %v1824_v62, %s6679_s17  ;;  %v854_v1 = vsel %vm582_vm0, %v810_v10, 0.0 }
 0x35f   : > { %v1614_v27 = vpop.permute.xlu0 %1613  ;;  %6116 = vpow2.f32 %v5518_v4 }
 0x360   : > { %849 = vadd.xlane.f32.xlu0 %v848_v2  ;;  %6118 = vpow2.f32 %v5512_v16  ;;  %v1657_v60 = vadd.f32 %v1614_v27, %v7821_v42  ;;  %v1792_v4 = vpop.permute.xlu1 %1791 }
 0x361   : > { %6120 = vpow2.f32 %v5520_v12 }
 0x362   : > { %v5514_v38 = vmul.f32 -1.442695, %v1657_v60 }
 0x363   : > { %v1630_v62 = vpop.permute.xlu0 %1629 }
 0x364   : > { %v7911_v18 = vpop.eup %6110  ;;  %831 = vadd.xlane.f32.xlu0 %v830_v52  ;;  %v1665_v2 = vadd.f32 %v1630_v62, %v7821_v42  ;;  %6122 = vpow2.f32 %v5514_v38 }
 0x365   : > { %v1818_v44 = vmul.f32 %v7911_v18, %v1776_v8  ;;  %v6113_v11 = vpop.eup %6112 }
 0x366   : > { %v1717_v35 = vadd.f32 1.0, %v6113_v11  ;;  %v5522_v16 = vmul.f32 -1.442695, %v1665_v2 }
 0x367   : > { %1855 = vrot.lane.b32.xlu1 %v1818_v44, %s6679_s17 }
 0x368   : > { %v7917_v43 = vpop.eup %6114  ;;  %855 = vadd.xlane.f32.xlu0 %v854_v1  ;;  %6124 = vrcp.f32 %v1717_v35 }
 0x369   : > { %v1826_v54 = vmul.f32 %v7917_v43, %v1792_v4  ;;  %v6117_v27 = vpop.eup %6116  ;;  %6126 = vpow2.f32 %v5522_v16 }
 0x36a   : > { %v1725_v14 = vadd.f32 1.0, %v6117_v27  ;;  %v6119_v8 = vpop.eup %6118 }
 0x36b   : > { %1871 = vrot.lane.b32.xlu1 %v1826_v54, %s6679_s17  ;;  %v1719_v52 = vadd.f32 1.0, %v6119_v8  ;;  %v6121_v10 = vpop.eup %6120 }
 0x36c   : > { %6128 = vrcp.f32 %v1725_v14  ;;  %v1727_v44 = vadd.f32 1.0, %v6121_v10 }
 0x36d   : > { %6130 = vrcp.f32 %v1719_v52 }
 0x36e   : > { %v6123_v1 = vpop.eup %6122  ;;  %6132 = vrcp.f32 %v1727_v44 }
 0x36f   : > { %v1721_v60 = vadd.f32 1.0, %v6123_v1 }
 0x371   : > { %6134 = vrcp.f32 %v1721_v60 }
 0x372   : > { %v7922_v12 = vpop.eup %6124 }
 0x373   : > { %v6127_v11 = vpop.eup %6126  ;;  %v1813_v62 = vmul.f32 %v7922_v12, %v7818_v51 }
 0x374   : > { %v1729_v54 = vadd.f32 1.0, %v6127_v11 }
 0x376   : > { %v7926_v4 = vpop.eup %6128  ;;  %6136 = vrcp.f32 %v1729_v54 }
 0x377   : > { %v1821_v38 = vmul.f32 %v7926_v4, %v7855_v56  ;;  %v7931_v2 = vpop.eup %6130  ;;  %v1774_v56 = vpop.permute.xlu0 %1773 }
 0x378   : > { %v1815_v35 = vmul.f32 %v7931_v2, %v7869_v40  ;;  %v7936_v27 = vpop.eup %6132 }
 0x379   : > { %v1823_v16 = vmul.f32 %v7936_v27, %v7878_v59 }
 0x37b   : > { %v7943_v14 = vpop.eup %6134  ;;  %v1790_v1 = vpop.permute.xlu0 %1789 }
 0x37c   : > { %v1817_v10 = vmul.f32 %v7943_v14, %v1774_v56 }
 0x37e   : > { %1845 = vrot.lane.b32.xlu0 %v1813_v62, %s6679_s17 }
 0x380   : > { %v7948_v44 = vpop.eup %6136 }
 0x381   : > { %v1825_v60 = vmul.f32 %v7948_v44, %v1790_v1 }
 0x382   : > { %1861 = vrot.lane.b32.xlu0 %v1821_v38, %s6679_s17 }
 0x385   : > { %v7938_v51 = vpop.xlane.xlu1 %846 }
 0x386   : > { %11066 = vst [vmem:[#allocation62_spill] sm:$0xff] %v7938_v51  ;;  %1849 = vrot.lane.b32.xlu0 %v1815_v35, %s6679_s17 }
 0x389   : > { %v1620_v8 = vpop.permute.xlu1 %1619 }
 0x38a   : > { %v1660_v52 = vadd.f32 %v1620_v8, %v7821_v42  ;;  %1865 = vrot.lane.b32.xlu0 %v1823_v16, %s6679_s17 }
 0x38c   : > { %v5517_v40 = vmul.f32 -1.442695, %v1660_v52 }
 0x38d   : > { %v1780_v16 = vpop.permute.xlu1 %1779 }
 0x38e   : > { %6138 = vpow2.f32 %v5517_v40  ;;  %1853 = vrot.lane.b32.xlu0 %v1817_v10, %s6679_s17 }
 0x392   : > { %1869 = vrot.lane.b32.xlu0 %v1825_v60, %s6679_s17 }
 0x398   : > { %v6139_v59 = vpop.eup %6138 }
 0x399   : > { %v1724_v11 = vadd.f32 1.0, %v6139_v59 }
 0x39b   : > { %6140 = vrcp.f32 %v1724_v11 }
 0x39c   : > { %v7953_v62 = vpop.xlane.xlu0 %822 }
 0x39d   : > { %11067 = vst [vmem:[#allocation63_spill] sm:$0xff] %v7953_v62 }
 0x3a0   : > { %v7955_v54 = vpop.xlane.xlu0 %819 }
 0x3a1   : > { %11068 = vst [vmem:[#allocation64_spill] sm:$0xff] %v7955_v54  ;;  %v1796_v54 = vpop.permute.xlu1 %1795 }
 0x3a4   : > { %v7957_v38 = vpop.xlane.xlu0 %843 }
 0x3a5   : > { %11069 = vst [vmem:[#allocation65_spill] sm:$0xff] %v7957_v38  ;;  %v7959_v35 = vpop.eup %6140 }
 0x3a6   : > { %v1820_v56 = vmul.f32 %v7959_v35, %v1780_v16 }
 0x3a8   : > { %1859 = vrot.lane.b32.xlu1 %v1820_v56, %s6679_s17  ;;  %v1636_v8 = vpop.permute.xlu0 %1635 }
 0x3a9   : > { %v1668_v52 = vadd.f32 %v1636_v8, %v7821_v42 }
 0x3ab   : > { %v5525_v10 = vmul.f32 -1.442695, %v1668_v52 }
 0x3ac   : > { %v1618_v40 = vpop.permute.xlu0 %1617 }
 0x3ad   : > { %6142 = vpow2.f32 %v5525_v10  ;;  %v1659_v1 = vadd.f32 %v1618_v40, %v7821_v42 }
 0x3af   : > { %v5516_v60 = vmul.f32 -1.442695, %v1659_v1 }
 0x3b0   : > { %v1634_v59 = vpop.permute.xlu0 %1633 }
 0x3b1   : > { %6144 = vpow2.f32 %v5516_v60  ;;  %v1667_v11 = vadd.f32 %v1634_v59, %v7821_v42 }
 0x3b3   : > { %v5524_v38 = vmul.f32 -1.442695, %v1667_v11 }
 0x3b4   : > { %v1778_v60 = vpop.permute.xlu0 %1777 }
 0x3b5   : > { %6146 = vpow2.f32 %v5524_v38 }
 0x3b7   : > { %v6143_v51 = vpop.eup %6142 }
 0x3b8   : > { %v1732_v63 = vadd.f32 1.0, %v6143_v51 }
 0x3ba   : > { %6148 = vrcp.f32 %v1732_v63 }
 0x3bb   : > { %v6145_v16 = vpop.eup %6144 }
 0x3bc   : > { %v1723_v56 = vadd.f32 1.0, %v6145_v16  ;;  %v1794_v16 = vpop.permute.xlu0 %1793 }
 0x3be   : > { %6150 = vrcp.f32 %v1723_v56 }
 0x3bf   : > { %v6147_v8 = vpop.eup %6146 }
 0x3c0   : > { %v1731_v52 = vadd.f32 1.0, %v6147_v8 }
 0x3c2   : > { %6152 = vrcp.f32 %v1731_v52  ;;  %v7966_v10 = vpop.xlane.xlu1 %828 }
 0x3c3   : > { %11070 = vst [vmem:[#allocation66_spill] sm:$0xff] %v7966_v10 }
 0x3c4   : > { %v7968_v40 = vpop.eup %6148 }
 0x3c5   : > { %v1828_v1 = vmul.f32 %v7968_v40, %v1796_v54 }
 0x3c6   : > { %v7971_v59 = vpop.xlane.xlu1 %852 }
 0x3c7   : > { %11071 = vst [vmem:[#allocation67_spill] sm:$0xff] %v7971_v59  ;;  %1875 = vrot.lane.b32.xlu1 %v1828_v1, %s6679_s17 }
 0x3c8   : > { %v7974_v51 = vpop.eup %6150 }
 0x3c9   : > { %v1819_v63 = vmul.f32 %v7974_v51, %v1778_v60 }
 0x3ca   : > { %v7977_v38 = vpop.xlane.xlu1 %834 }
 0x3cb   : > { %11072 = vst [vmem:[#allocation68_spill] sm:$0xff] %v7977_v38  ;;  %1857 = vrot.lane.b32.xlu0 %v1819_v63, %s6679_s17 }
 0x3cc   : > { %v7980_v11 = vpop.eup %6152 }
 0x3cd   : > { %v1827_v56 = vmul.f32 %v7980_v11, %v1794_v16  ;;  %v1085_v16 = vsel %vm1080_vm1, %v7599_v29, %v7649_v47 }
 0x3ce   : > { %v7983_v8 = vpop.xlane.xlu1 %858 }
 0x3cf   : > { %11073 = vst [vmem:[#allocation69_spill] sm:$0xff] %v7983_v8  ;;  %1873 = vrot.lane.b32.xlu0 %v1827_v56, %s6679_s17  ;;  %v1102_v56 = vsel %vm1097_vm2, %v1085_v16, %v7782_v39 }
 0x3d2   : > { %v1848_v54 = vpop.permute.xlu1 %1847 }
 0x3d3   : > { %v1894_v52 = vadd.f32 %v1848_v54, %v7821_v42  ;;  %v7996_v54 = vadd.f32 %v7631_v0, %v1102_v56 }
 0x3d5   : > { %6154 = vtanh.f32 %v1894_v52 }
 0x3d6   : > { %v1864_v1 = vpop.permute.xlu1 %1863 }
 0x3d7   : > { %v1902_v60 = vadd.f32 %v1864_v1, %v7821_v42 }
 0x3d9   : > { %6156 = vtanh.f32 %v1902_v60 }
 0x3da   : > { %v1852_v47 = vpop.permute.xlu1 %1851 }
 0x3db   : > { %v1896_v56 = vadd.f32 %v1852_v47, %v7821_v42 }
 0x3df   : > { %v6155_v59 = vpop.eup %6154 }
 0x3e0   : > { %1959 = vrot.lane.b32.xlu1 %v6155_v59, %s6678_s15  ;;  %v1147_v59 = vsel %vm1134_vm3, %v7996_v54, -inf }
 0x3e3   : > { %v6157_v63 = vpop.eup %6156 }
 0x3e4   : > { %1975 = vrot.lane.b32.xlu1 %v6157_v63, %s6678_s15 }
 0x3e9   : > { %v7998_v52 = vpop.xlane.xlu0 %825 }
 0x3ea   : > { %11074 = vst [vmem:[#allocation70_spill] sm:$0xff] %v7998_v52 }
 0x3ed   : > { %v8000_v1 = vpop.xlane.xlu0 %849 }
 0x3ee   : > { %11075 = vst [vmem:[#allocation71_spill] sm:$0xff] %v8000_v1  ;;  %1148 = vmax.xlane.f32.xlu0 %v1147_v59  ;;  %v1868_v1 = vpop.permute.xlu1 %1867 }
 0x3ef   : > { %v1904_v59 = vadd.f32 %v1868_v1, %v7821_v42 }
 0x3f1   : > { %v8004_v60 = vpop.xlane.xlu0 %831 }
 0x3f2   : > { %11076 = vst [vmem:[#allocation72_spill] sm:$0xff] %v8004_v60 }
 0x3f5   : > { %v8006_v63 = vpop.xlane.xlu0 %855 }
 0x3f6   : > { %11077 = vst [vmem:[#allocation73_spill] sm:$0xff] %v8006_v63 }
 0x3f9   : > { %v1846_v8 = vpop.permute.xlu0 %1845 }
 0x3fa   : > { %v1893_v29 = vadd.f32 %v1846_v8, %v7821_v42 }
 0x3fc   : > { %6158 = vtanh.f32 %v1893_v29 }
 0x3fd   : > { %v1862_v39 = vpop.permute.xlu0 %1861 }
 0x3fe   : > { %v1901_v16 = vadd.f32 %v1862_v39, %v7821_v42  ;;  %v1856_v39 = vpop.permute.xlu1 %1855 }
 0x3ff   : > { %v1898_v1 = vadd.f32 %v1856_v39, %v7821_v42 }
 0x400   : > { %6160 = vtanh.f32 %v1901_v16 }
 0x401   : > { %v1850_v52 = vpop.permute.xlu0 %1849  ;;  %6162 = vtanh.f32 %v1896_v56 }
 0x402   : > { %v1895_v63 = vadd.f32 %v1850_v52, %v7821_v42  ;;  %6164 = vtanh.f32 %v1904_v59  ;;  %v1872_v52 = vpop.permute.xlu1 %1871 }
 0x403   : > { %v1906_v56 = vadd.f32 %v1872_v52, %v7821_v42 }
 0x404   : > { %6166 = vtanh.f32 %v1895_v63 }
 0x405   : > { %v1866_v38 = vpop.permute.xlu0 %1865 }
 0x406   : > { %v6159_v60 = vpop.eup %6158  ;;  %v1903_v47 = vadd.f32 %v1866_v38, %v7821_v42 }
 0x407   : > { %1957 = vrot.lane.b32.xlu1 %v6159_v60, %s6678_s15 }
 0x409   : > { %v1854_v8 = vpop.permute.xlu0 %1853 }
 0x40a   : > { %v6161_v29 = vpop.eup %6160  ;;  %v1897_v10 = vadd.f32 %v1854_v8, %v7821_v42 }
 0x40b   : > { %1973 = vrot.lane.b32.xlu1 %v6161_v29, %s6678_s15  ;;  %v6163_v16 = vpop.eup %6162 }
 0x40c   : > { %6168 = vtanh.f32 %v1897_v10  ;;  %v6165_v60 = vpop.eup %6164 }
 0x40d   : > { %6170 = vtanh.f32 %v1903_v47  ;;  %v1870_v63 = vpop.permute.xlu0 %1869 }
 0x40e   : > { %6172 = vtanh.f32 %v1898_v1  ;;  %v6167_v59 = vpop.eup %6166  ;;  %v1905_v10 = vadd.f32 %v1870_v63, %v7821_v42 }
 0x40f   : > { %1963 = vrot.lane.b32.xlu1 %v6163_v16, %s6678_s15  ;;  %6174 = vtanh.f32 %v1906_v56 }
 0x410   : > { %6176 = vtanh.f32 %v1905_v10 }
 0x413   : > { %1979 = vrot.lane.b32.xlu1 %v6165_v60, %s6678_s15  ;;  %v1087_v60 = vsel %vm1080_vm1, %v7603_v36, %v7655_v19 }
 0x414   : > { %v1104_v56 = vsel %vm1097_vm2, %v1087_v60, %v7789_v55 }
 0x416   : > { %v6169_v8 = vpop.eup %6168 }
 0x417   : > { %1961 = vrot.lane.b32.xlu1 %v6167_v59, %s6678_s15  ;;  %1965 = vrot.lane.b32.xlu0 %v6169_v8, %s6678_s15  ;;  %v6171_v38 = vpop.eup %6170  ;;  %v8036_v59 = vadd.f32 %v7631_v0, %v1104_v56 }
 0x418   : > { %v6173_v47 = vpop.eup %6172 }
 0x419   : > { %v6175_v16 = vpop.eup %6174  ;;  %v1153_v63 = vsel %vm1134_vm3, %v8036_v59, -inf }
 0x41a   : > { %v1860_v29 = vpop.permute.xlu1 %1859  ;;  %v6177_v1 = vpop.eup %6176 }
 0x41b   : > { %1977 = vrot.lane.b32.xlu1 %v6171_v38, %s6678_s15  ;;  %v1900_v39 = vadd.f32 %v1860_v29, %v7821_v42 }
 0x41d   : > { %6178 = vtanh.f32 %v1900_v39 }
 0x41f   : > { %1967 = vrot.lane.b32.xlu1 %v6173_v47, %s6678_s15 }
 0x423   : > { %1983 = vrot.lane.b32.xlu1 %v6175_v16, %s6678_s15  ;;  %v1926_v16 = vsub.f32 1.0, %v7867_v61 }
 0x427   : > { %1981 = vrot.lane.b32.xlu1 %v6177_v1, %s6678_s15  ;;  %v6179_v52 = vpop.eup %6178 }
 0x42b   : > { %1971 = vrot.lane.b32.xlu1 %v6179_v52, %s6678_s15  ;;  %v2070_v52 = vmul.f32 %v7867_v61, %v7531_v46  ;;  %v1086_v61 = vsel %vm1080_vm1, %v7563_v6, %v7601_v30  ;;  %v1933_v6 = vsub.f32 1.0, %v7926_v4  ;;  %v1928_v30 = vsub.f32 1.0, %v7882_v53 }
 0x42c   : > { %v1103_v46 = vsel %vm1097_vm2, %v1086_v61, %v7750_v7  ;;  %v2071_v61 = vmul.f32 %v7931_v2, %v7536_v13 }
 0x436   : > { %1154 = vmax.xlane.f32.xlu0 %v1153_v63 }
 0x439   : > { %v1876_v8 = vpop.permute.xlu1 %1875 }
 0x43a   : > { %v1908_v10 = vadd.f32 %v1876_v8, %v7821_v42  ;;  %v2078_v8 = vmul.f32 %v7874_v5, %v7555_v3 }
 0x43c   : > { %6180 = vtanh.f32 %v1908_v10 }
 0x43d   : > { %v1858_v38 = vpop.permute.xlu0 %1857 }
 0x43e   : > { %v1899_v29 = vadd.f32 %v1858_v38, %v7821_v42 }
 0x440   : > { %6182 = vtanh.f32 %v1899_v29  ;;  %v8066_v29 = vadd.f32 %v7631_v0, %v1103_v46 }
 0x441   : > { %v1874_v39 = vpop.permute.xlu0 %1873 }
 0x442   : > { %v1907_v36 = vadd.f32 %v1874_v39, %v7821_v42  ;;  %v1934_v42 = vsub.f32 1.0, %v7874_v5  ;;  %v1150_v3 = vsel %vm1134_vm3, %v8066_v29, -inf  ;;  %v1925_v39 = vsub.f32 1.0, %v7922_v12 }
 0x444   : > { %6184 = vtanh.f32 %v1907_v36 }
 0x446   : > { %v6181_v19 = vpop.eup %6180 }
 0x447   : > { %1987 = vrot.lane.b32.xlu1 %v6181_v19, %s6678_s15 }
 0x44a   : > { %v6183_v55 = vpop.eup %6182 }
 0x44b   : > { %1969 = vrot.lane.b32.xlu1 %v6183_v55, %s6678_s15  ;;  %v2069_v55 = vmul.f32 %v7922_v12, %v7523_v9  ;;  %v1936_v9 = vsub.f32 1.0, %v7892_v28 }
 0x44e   : > { %v6185_v47 = vpop.eup %6184 }
 0x44f   : > { %1985 = vrot.lane.b32.xlu1 %v6185_v47, %s6678_s15 }
 0x452   : > { %v1960_v1 = vpop.permute.xlu1 %1959 }
 0x453   : > { %v2006_v60 = vmul.f32 %v1960_v1, %v1926_v16  ;;  %v2072_v1 = vmul.f32 %v7882_v53, %v7544_v20 }
 0x455   : > { %v8049_v56 = vadd.f32 %v2070_v52, %v2006_v60  ;;  %v2077_v60 = vmul.f32 %v7926_v4, %v7551_v48  ;;  %v1927_v48 = vsub.f32 1.0, %v7931_v2 }
 0x456   : > { %v1976_v63 = vpop.permute.xlu1 %1975 }
 0x457   : > { %v2014_v10 = vmul.f32 %v1976_v63, %v1934_v42  ;;  %2119 = vrot.lane.b32.xlu0 %v8049_v56, %s6678_s15 }
 0x459   : > { %v8056_v38 = vadd.f32 %v2078_v8, %v2014_v10  ;;  %v2080_v8 = vmul.f32 %v7892_v28, %v7561_v15  ;;  %v1935_v28 = vsub.f32 1.0, %v7936_v27 }
 0x45b   : > { %2135 = vrot.lane.b32.xlu0 %v8056_v38, %s6678_s15 }
 0x473   : > { %1151 = vmax.xlane.f32.xlu1 %v1150_v3 }
 0x479   : > { %v1958_v5 = vpop.permute.xlu1 %1957 }
 0x47a   : > { %v2005_v19 = vmul.f32 %v1958_v5, %v1925_v39  ;;  %v1929_v39 = vsub.f32 1.0, %v7943_v14 }
 0x47b   : > { %v8097_v53 = vpop.xlane.xlu0 %1148 }
 0x47c   : > { %v8075_v47 = vadd.f32 %v2069_v55, %v2005_v19  ;;  %v1930_v55 = vsub.f32 1.0, %v7911_v18 }
 0x47d   : > { %v1974_v36 = vpop.permute.xlu1 %1973 }
 0x47e   : > { %v2013_v16 = vmul.f32 %v1974_v36, %v1933_v6  ;;  %v2079_v36 = vmul.f32 %v7936_v27, %v7559_v33 }
 0x480   : > { %v8086_v63 = vadd.f32 %v2077_v60, %v2013_v16  ;;  %v2082_v60 = vmul.f32 %v7917_v43, %v7571_v24 }
 0x481   : > { %v1964_v7 = vpop.permute.xlu1 %1963 }
 0x482   : > { %v2008_v52 = vmul.f32 %v1964_v7, %v1928_v30  ;;  %v2073_v30 = vmul.f32 %v7943_v14, %v7549_v31  ;;  %v2074_v7 = vmul.f32 %v7911_v18, %v7553_v50  ;;  %v1937_v50 = vsub.f32 1.0, %v7948_v44 }
 0x483   : > { %v2081_v14 = vmul.f32 %v7948_v44, %v7565_v23  ;;  %v1940_v23 = vsub.f32 1.0, %v7968_v40 }
 0x484   : > { %v8081_v42 = vadd.f32 %v2072_v1, %v2008_v52  ;;  %2117 = vrot.lane.b32.xlu1 %v8075_v47, %s6678_s15  ;;  %v1938_v1 = vsub.f32 1.0, %v7917_v43  ;;  %v1932_v43 = vsub.f32 1.0, %v7959_v35 }
 0x485   : > { %v1980_v12 = vpop.permute.xlu1 %1979 }
 0x486   : > { %v2016_v10 = vmul.f32 %v1980_v12, %v1936_v9  ;;  %2123 = vrot.lane.b32.xlu0 %v8081_v42, %s6678_s15 }
 0x488   : > { %v8092_v20 = vadd.f32 %v2080_v8, %v2016_v10  ;;  %2133 = vrot.lane.b32.xlu1 %v8086_v63, %s6678_s15  ;;  %v2076_v10 = vmul.f32 %v7959_v35, %v7546_v49  ;;  %v1931_v49 = vsub.f32 1.0, %v7974_v51 }
 0x489   : > { %v1962_v4 = vpop.permute.xlu1 %1961  ;;  %v1966_v3 = vpop.permute.xlu0 %1965 }
 0x48a   : > { %11078 = vst [vmem:[#allocation74_spill] sm:$0xff] %v8092_v20  ;;  %v2007_v46 = vmul.f32 %v1962_v4, %v1927_v48  ;;  %2139 = vrot.lane.b32.xlu0 %v8092_v20, %s6678_s15  ;;  %v2009_v13 = vmul.f32 %v1966_v3, %v1929_v39  ;;  %v2075_v3 = vmul.f32 %v7974_v51, %v7557_v22 }
 0x48b   : > { %v1089_v22 = vsel %vm1080_vm1, %v7609_v21, %v7657_v34  ;;  %v11085_v34 = vld [vmem:[#allocation53_spill] sm:$0xff] }
 0x48c   : > { %v8103_v15 = vadd.f32 %v2071_v61, %v2007_v46  ;;  %v8120_v33 = vadd.f32 %v2073_v30, %v2009_v13  ;;  %v2084_v61 = vmul.f32 %v7968_v40, %v7587_v41  ;;  %v2083_v41 = vmul.f32 %v7980_v11, %v7579_v32  ;;  %v11084_v30 = vld [vmem:[#allocation33_spill] sm:$0xff] }
 0x48d   : > { %v1978_v5 = vpop.permute.xlu1 %1977  ;;  %v1106_v51 = vsel %vm1097_vm2, %v1089_v22, %v7793_v17  ;;  %v1090_v32 = vsel %vm1080_vm1, %v7575_v37, %v7611_v58  ;;  %v1091_v21 = vsel %vm1080_vm1, %v11084_v30, %v7659_v25  ;;  %v11086_v37 = vld [vmem:[#allocation34_spill] sm:$0xff]  ;;  %v11087_v58 = vld [vmem:[#allocation29_spill] sm:$0xff] }
 0x48e   : > { %v2015_v19 = vmul.f32 %v1978_v5, %v1935_v28  ;;  %2121 = vrot.lane.b32.xlu1 %v8103_v15, %s6678_s15  ;;  %v11105_v30 = vld [vmem:[#allocation38_spill] sm:$0xff] }
 0x490   : > { %v8111_v2 = vadd.f32 %v2079_v36, %v2015_v19  ;;  %v1939_v36 = vsub.f32 1.0, %v7980_v11  ;;  %v8179_v11 = vadd.f32 %v7631_v0, %v1106_v51 }
 0x491   : > { %v1968_v6 = vpop.permute.xlu1 %1967 }
 0x492   : > { %11079 = vst [vmem:[#allocation75_spill] sm:$0xff] %v8111_v2  ;;  %v2010_v16 = vmul.f32 %v1968_v6, %v1930_v55  ;;  %2137 = vrot.lane.b32.xlu1 %v8111_v2, %s6678_s15  ;;  %v1107_v55 = vsel %vm1097_vm2, %v1090_v32, %v7766_v45  ;;  %v1159_v17 = vsel %vm1134_vm3, %v8179_v11, -inf  ;;  %v11103_v32 = vlaneseq }
 0x493   : > { %v8184_v6 = vadd.f32 %v7631_v0, %v1107_v55 }
 0x494   : > { %v8122_v27 = vadd.f32 %v2074_v7, %v2010_v16  ;;  %v1108_v7 = vsel %vm1097_vm2, %v1091_v21, %v11085_v34  ;;  %v1092_v16 = vsel %vm1080_vm1, %v11087_v58, %v11086_v37  ;;  %v8239_v55 = vand.u32 127, %v11103_v32  ;;  %v11106_v21 = vld [vmem:[#allocation31_spill] sm:$0xff]  ;;  %v11108_v37 = vld [vmem:[#allocation50_spill] sm:$0xff] }
 0x495   : > { %v1984_v52 = vpop.permute.xlu1 %1983  ;;  %v8197_v45 = vadd.f32 %v7631_v0, %v1108_v7 }
 0x496   : > { %v2018_v9 = vmul.f32 %v1984_v52, %v1938_v1  ;;  %2127 = vrot.lane.b32.xlu0 %v8122_v27, %s6678_s15  ;;  %2125 = vrot.lane.b32.xlu1 %v8120_v33, %s6678_s15  ;;  %v1162_v1 = vsel %vm1134_vm3, %v8184_v6, -inf  ;;  %v11088_v52 = vld [vmem:[#allocation32_spill] sm:$0xff]  ;;  %11104 = vst [vmem:[#allocation29_spill] sm:$0xff] %v8239_v55 }
 0x498   : > { %v8131_v31 = vadd.f32 %v2082_v60, %v2018_v9  ;;  %v11089_v60 = vld [vmem:[#allocation28_spill] sm:$0xff] }
 0x499   : > { %v1982_v18 = vpop.permute.xlu1 %1981  ;;  %v1088_v25 = vsel %vm1080_vm1, %v11089_v60, %v11088_v52  ;;  %v11090_v9 = vld [vmem:[#allocation48_spill] sm:$0xff] }
 0x49a   : > { %11080 = vst [vmem:[#allocation76_spill] sm:$0xff] %v8131_v31  ;;  %v2017_v12 = vmul.f32 %v1982_v18, %v1937_v50  ;;  %2143 = vrot.lane.b32.xlu0 %v8131_v31, %s6678_s15  ;;  %v1109_v50 = vsel %vm1097_vm2, %v1092_v16, %v11090_v9  ;;  %v11091_v18 = vld [vmem:[#allocation47_spill] sm:$0xff] }
 0x49c   : > { %v8138_v24 = vadd.f32 %v2081_v14, %v2017_v12  ;;  %v1105_v14 = vsel %vm1097_vm2, %v1088_v25, %v11091_v18  ;;  %v8209_v12 = vadd.f32 %v7631_v0, %v1109_v50  ;;  %v11110_v18 = vld [vmem:[#allocation41_spill] sm:$0xff] }
 0x49d   : > { %v1972_v8 = vpop.permute.xlu1 %1971 }
 0x49e   : > { %11081 = vst [vmem:[#allocation77_spill] sm:$0xff] %v8138_v24  ;;  %v2012_v48 = vmul.f32 %v1972_v8, %v1932_v43  ;;  %2141 = vrot.lane.b32.xlu1 %v8138_v24, %s6678_s15  ;;  %11092 = vst [vmem:[#allocation33_spill] sm:$0xff] %v8209_v12  ;;  %v11093_v43 = vld [vmem:[#allocation42_spill] sm:$0xff]  ;;  %v11094_v8 = vld [vmem:[#allocation35_spill] sm:$0xff] }
 0x4a0   : > { %v8145_v4 = vadd.f32 %v2076_v10, %v2012_v48  ;;  %v1093_v10 = vsel %vm1080_vm1, %v11094_v8, %v11093_v43  ;;  %v1165_v48 = vsel %vm1134_vm3, %v8197_v45, -inf }
 0x4a2   : > { %2131 = vrot.lane.b32.xlu0 %v8145_v4, %s6678_s15 }
 0x4b9   : > { %v1988_v44 = vpop.permute.xlu1 %1987 }
 0x4ba   : > { %v2020_v46 = vmul.f32 %v1988_v44, %v1940_v23  ;;  %v8217_v23 = vadd.f32 %v7631_v0, %v1105_v14  ;;  %v11095_v44 = vld [vmem:[#allocation54_spill] sm:$0xff] }
 0x4bc   : > { %v8152_v28 = vadd.f32 %v2084_v61, %v2020_v46  ;;  %v1110_v61 = vsel %vm1097_vm2, %v1093_v10, %v11095_v44  ;;  %v11096_v46 = vld [vmem:[#allocation56_spill] sm:$0xff]  ;;  %v1156_v51 = vsel %vm1134_vm3, %v8217_v23, -inf }
 0x4bd   : > { %v1970_v35 = vpop.permute.xlu1 %1969 }
 0x4be   : > { %11082 = vst [vmem:[#allocation78_spill] sm:$0xff] %v8152_v28  ;;  %v2011_v5 = vmul.f32 %v1970_v35, %v1931_v49  ;;  %2147 = vrot.lane.b32.xlu0 %v8152_v28, %s6678_s15  ;;  %v11097_v49 = vld [vmem:[#allocation44_spill] sm:$0xff] }
 0x4bf   : > { %v8223_v35 = vsub.f32 %v11097_v49, %v11096_v46 }
 0x4c0   : > { %v8159_v39 = vadd.f32 %v2075_v3, %v2011_v5  ;;  %v11099_v3 = vld [vmem:[#allocation43_spill] sm:$0xff]  ;;  %v11100_v5 = vld [vmem:[#allocation37_spill] sm:$0xff] }
 0x4c1   : > { %v1986_v19 = vpop.permute.xlu1 %1985  ;;  %11098 = vst [vmem:[#allocation53_spill] sm:$0xff] %v8223_v35  ;;  %vm1201_vm4 = vcmp.eq.f32.partialorder %v8223_v35, 0.0 }
 0x4c2   : > { %v2019_v40 = vmul.f32 %v1986_v19, %v1939_v36  ;;  %2129 = vrot.lane.b32.xlu1 %v8159_v39, %s6678_s15  ;;  %v1095_v36 = vsel %vm1080_vm1, %v11100_v5, %v11099_v3  ;;  %v8229_v19 = vadd.f32 %v7631_v0, %v1110_v61  ;;  %v1217_v16 = vsel %vm1201_vm4, %v8239_v55, 3 }
 0x4c3   : > { %v1233_v60 = vsel %vm1134_vm3, %v1217_v16, 2147483647  ;;  %v8262_v14 = vpop.xlane.xlu0 %1154 }
 0x4c4   : > { %v8166_v13 = vadd.f32 %v2083_v41, %v2019_v40  ;;  %11101 = vst [vmem:[#allocation34_spill] sm:$0xff] %v8229_v19  ;;  %v1168_v41 = vsel %vm1134_vm3, %v8209_v12, -inf  ;;  %v11102_v40 = vld [vmem:[#allocation55_spill] sm:$0xff]  ;;  %v1171_v7 = vsel %vm1134_vm3, %v8229_v19, -inf  ;;  %v1235_v25 = vshra.s32 %v1233_v60, 16 }
 0x4c5   : > { %v1112_v22 = vsel %vm1097_vm2, %v1095_v36, %v11102_v40  ;;  %v11112_v40 = vld [vmem:[#allocation30_spill] sm:$0xff] }
 0x4c6   : > { %11083 = vst [vmem:[#allocation79_spill] sm:$0xff] %v8166_v13  ;;  %2145 = vrot.lane.b32.xlu1 %v8166_v13, %s6678_s15  ;;  %v8245_v34 = vadd.f32 %v7631_v0, %v1112_v22  ;;  %v1237_v50 = vcvt.s32.f32 %v1235_v25 }
 0x4c8   : > { %11107 = vst [vmem:[#allocation32_spill] sm:$0xff] %v8245_v34  ;;  %v1177_v52 = vsel %vm1134_vm3, %v8245_v34, -inf }
 0x4c9   : > { %v2120_v8 = vpop.permute.xlu0 %2119 }
 0x4dd   : > { %1160 = vmax.xlane.f32.xlu0 %v1159_v17  ;;  %v1096_v17 = vsel %vm1080_vm1, %v11106_v21, %v11105_v30 }
 0x4de   : > { %v1113_v58 = vsel %vm1097_vm2, %v1096_v17, %v11108_v37 }
 0x4e1   : > { %1163 = vmax.xlane.f32.xlu0 %v1162_v1  ;;  %v8253_v1 = vadd.f32 %v7631_v0, %v1113_v58 }
 0x4e3   : > { %11109 = vst [vmem:[#allocation28_spill] sm:$0xff] %v8253_v1  ;;  %v1180_v9 = vsel %vm1134_vm3, %v8253_v1, -inf  ;;  %v11129_v1 = vld [vmem:[#allocation40_spill] sm:$0xff] }
 0x4e5   : > { %1166 = vmax.xlane.f32.xlu0 %v1165_v48  ;;  %v2136_v48 = vpop.permute.xlu0 %2135 }
 0x4e9   : > { %1169 = vmax.xlane.f32.xlu0 %v1168_v41  ;;  %v11111_v41 = vld [vmem:[#allocation36_spill] sm:$0xff] }
 0x4ea   : > { %1157 = vmax.xlane.f32.xlu1 %v1156_v51  ;;  %v1094_v22 = vsel %vm1080_vm1, %v11112_v40, %v11111_v41  ;;  %v11113_v51 = vld [vmem:[#allocation49_spill] sm:$0xff] }
 0x4eb   : > { %v1111_v32 = vsel %vm1097_vm2, %v1094_v22, %v11113_v51 }
 0x4ec   : > { %v8278_v30 = vadd.f32 %v7631_v0, %v1111_v32 }
 0x4ed   : > { %1172 = vmax.xlane.f32.xlu0 %v1171_v7 }
 0x4ee   : > { %11114 = vst [vmem:[#allocation48_spill] sm:$0xff] %v8278_v30  ;;  %v1174_v21 = vsel %vm1134_vm3, %v8278_v30, -inf }
 0x4f1   : > { %1178 = vmax.xlane.f32.xlu0 %v1177_v52 }
 0x4f5   : > { %1181 = vmax.xlane.f32.xlu0 %v1180_v9 }
 0x4f8   : > { %v2124_v61 = vpop.permute.xlu0 %2123 }
 0x4f9   : > { %1238 = vmin.xlane.f32.xlu0 %v1237_v50 }
 0x4fb   : > { %2166 = vrot.lane.b32.xlu1 %v11110_v18, %s6678_s15 }
 0x4fc   : > { %v2140_v3 = vpop.permute.xlu0 %2139 }
 0x500   : > { %v8264_v43 = vpop.xlane.xlu1 %1151 }
 0x504   : > { %v2118_v10 = vpop.permute.xlu1 %2117 }
 0x505   : > { %5718 = vmatprep.mubr.msk.f32.mxu1 %vm582_vm0, %v2118_v10  ;;  %v11117_v10 = vld [vmem:[#allocation39_spill] sm:$0xff] }
 0x506   : > { %5719 = vmatmul.mubr.msk.f32.vlgmr.msra.gmra.mrb[8].mxu1 %vm582_vm0, %v2120_v8  ;;  %v11116_v8 = vld [vmem:[#allocation51_spill] sm:$0xff] }
 0x508   : > { %v2134_v44 = vpop.permute.xlu1 %2133  ;;  %v2128_v36 = vpop.permute.xlu0 %2127 }
 0x50c   : > { %v2122_v46 = vpop.permute.xlu1 %2121  ;;  %v2144_v7 = vpop.permute.xlu0 %2143 }
 0x50d   : > { %5721 = vmatprep.mubr.msk.f32.mxu1 %vm582_vm0, %v2122_v46 }
 0x50e   : > { %5722 = vmatmul.mubr.msk.f32.gmra.mrb[10].mxu1 %vm582_vm0, %v2124_v61 }
 0x510   : > { %v2138_v49 = vpop.permute.xlu1 %2137 }
 0x514   : > { %v2126_v5 = vpop.permute.xlu1 %2125  ;;  %v2132_v58 = vpop.permute.xlu0 %2131 }
 0x515   : > { %5724 = vmatprep.mubr.msk.f32.mxu1 %vm582_vm0, %v2126_v5 }
 0x516   : > { %5725 = vmatmul.mubr.msk.f32.gmra.mrb[12].mxu1 %vm582_vm0, %v2128_v36 }
 0x518   : > { %v2142_v17 = vpop.permute.xlu1 %2141 }
 0x51f   : > { %1175 = vmax.xlane.f32.xlu1 %v1174_v21 }
 0x530   : > { %v2148_v16 = vpop.permute.xlu0 %2147 }
 0x534   : > { %v2130_v37 = vpop.permute.xlu1 %2129 }
 0x535   : > { %5727 = vmatprep.mubr.msk.f32.mxu1 %vm582_vm0, %v2130_v37 }
 0x536   : > { %5728 = vmatmul.mubr.msk.f32.gmra.mrb[14].mxu1 %vm582_vm0, %v2132_v58 }
 0x537   : > { %5730 = vmatprep.mubr.msk.f32.mxu1 %vm582_vm0, %v2134_v44 }
 0x538   : > { %v2146_v0 = vpop.permute.xlu1 %2145 }
 0x53a   : > { %5731 = vmatmul.mubr.msk.f32.gmra.mrb[16].mxu1 %vm582_vm0, %v2136_v48  ;;  %v8302_v48 = vsub.f32 %v11117_v10, %v11116_v8  ;;  %v11123_v8 = vld [vmem:[#allocation57_spill] sm:$0xff] }
 0x53b   : > { %5733 = vmatprep.mubr.msk.f32.mxu1 %vm582_vm0, %v2138_v49  ;;  %v11124_v10 = vld [vmem:[#allocation45_spill] sm:$0xff] }
 0x53c   : > { %11118 = vst [vmem:[#allocation42_spill] sm:$0xff] %v8302_v48  ;;  %vm1202_vm5 = vcmp.eq.f32.partialorder %v8302_v48, 0.0 }
 0x53d   : > { %v1218_v46 = vsel %vm1202_vm5, %v8239_v55, 3 }
 0x53e   : > { %5734 = vmatmul.mubr.msk.f32.gmra.mrb[18].mxu1 %vm582_vm0, %v2140_v3  ;;  %v1234_v3 = vand.u32 65535, %v1233_v60  ;;  %v1248_v5 = vsel %vm1134_vm3, %v1218_v46, 2147483647  ;;  %v8338_v46 = vsub.f32 %v11124_v10, %v11123_v8 }
 0x53f   : > { %5736 = vmatprep.mubr.msk.f32.mxu1 %vm582_vm0, %v2142_v17  ;;  %v1250_v40 = vshra.s32 %v1248_v5, 16  ;;  %v1249_v57 = vand.u32 65535, %v1248_v5  ;;  %v8367_v5 = vsub.f32 %v7996_v54, %v8097_v53 }
 0x540   : > { %v1236_v41 = vcvt.s32.f32 %v1234_v3  ;;  %11125 = vst [vmem:[#allocation43_spill] sm:$0xff] %v8338_v46  ;;  %vm1203_vm7 = vcmp.eq.f32.partialorder %v8338_v46, 0.0 }
 0x541   : > { %v1252_v51 = vcvt.s32.f32 %v1250_v40  ;;  %v1219_v26 = vsel %vm1203_vm7, %v8239_v55, 3  ;;  %v1251_v35 = vcvt.s32.f32 %v1249_v57  ;;  %11131 = vst [vmem:[#allocation31_spill] sm:$0xff] %v8367_v5  ;;  %vm1205_vm10 = vcmp.eq.f32.partialorder %v8367_v5, 0.0 }
 0x542   : > { %5737 = vmatmul.mubr.msk.f32.gmra.mrb[20].mxu1 %vm582_vm0, %v2144_v7  ;;  %v1263_v10 = vsel %vm1134_vm3, %v1219_v26, 2147483647 }
 0x543   : > { %5739 = vmatprep.mubr.msk.f32.mxu1 %vm582_vm0, %v2146_v0  ;;  %v1265_v46 = vshra.s32 %v1263_v10, 16 }
 0x546   : > { %5740 = vmatmul.mubr.msk.f32.gmra.mrb[22].mxu1 %vm582_vm0, %v2148_v16 }
 0x56a   : > { %v8292_v52 = vpop.xlane.xlu0 %1160 }
 0x56e   : > { %v8294_v25 = vpop.xlane.xlu0 %1163 }
 0x572   : > { %v8296_v9 = vpop.xlane.xlu0 %1166 }
 0x576   : > { %v8298_v18 = vpop.xlane.xlu0 %1169 }
 0x577   : > { %11115 = vst [vmem:[#allocation47_spill] sm:$0xff] %v8298_v18 }
 0x57a   : > { %v8304_v44 = vpop.xlane.xlu0 %1172 }
 0x57b   : > { %11119 = vst [vmem:[#allocation35_spill] sm:$0xff] %v8304_v44 }
 0x57e   : > { %v8307_v61 = vpop.xlane.xlu0 %1178 }
 0x57f   : > { %11120 = vst [vmem:[#allocation54_spill] sm:$0xff] %v8307_v61  ;;  %v11128_v61 = vld [vmem:[#allocation52_spill] sm:$0xff] }
 0x582   : > { %v8310_v49 = vpop.xlane.xlu0 %1181 }
 0x583   : > { %11121 = vst [vmem:[#allocation56_spill] sm:$0xff] %v8310_v49  ;;  %v8362_v49 = vsub.f32 %v11129_v1, %v11128_v61 }
 0x585   : > { %11130 = vst [vmem:[#allocation38_spill] sm:$0xff] %v8362_v49  ;;  %vm1204_vm9 = vcmp.eq.f32.partialorder %v8362_v49, 0.0 }
 0x586   : > { %v8313_v36 = vpop.xlane.xlu0 %1238  ;;  %v1220_v26 = vsel %vm1204_vm9, %v8239_v55, 3 }
 0x587   : > { %11122 = vst [vmem:[#allocation44_spill] sm:$0xff] %v8313_v36  ;;  %vm1240_vm6 = vcmp.eq.f32.partialorder %v1237_v50, %v8313_v36 }
 0x588   : > { %v1241_v22 = vsel %vm1240_vm6, %v1236_v41, inf }
 0x589   : > { %1242 = vmin.xlane.f32.xlu0 %v1241_v22 }
 0x58d   : > { %1253 = vmin.xlane.f32.xlu0 %v1252_v51 }
 0x5d9   : > { %v8316_v32 = vpop.f32.mrb[8].mxu1 }
 0x5da   : > { %v8318_v21 = vpop.f32.mrb[9].mxu1 }
 0x5e1   : > { %v8320_v17 = vpop.f32.mrb[10].mxu1 }
 0x5e2   : > { %v8322_v7 = vpop.f32.mrb[11].mxu1 }
 0x5e9   : > { %v8324_v60 = vpop.f32.mrb[12].mxu1 }
 0x5ea   : > { %v8326_v37 = vpop.f32.mrb[13].mxu1 }
 0x609   : > { %v8328_v58 = vpop.f32.mrb[14].mxu1 }
 0x60a   : > { %v8330_v50 = vpop.f32.mrb[15].mxu1 }
 0x60d   : > { %v8332_v0 = vpop.f32.mrb[16].mxu1 }
 0x60e   : > { %v8334_v16 = vpop.f32.mrb[17].mxu1 }
 0x611   : > { %v8340_v3 = vpop.f32.mrb[18].mxu1 }
 0x612   : > { %v8342_v41 = vpop.f32.mrb[19].mxu1 }
 0x615   : > { %v8345_v40 = vpop.f32.mrb[20].mxu1 }
 0x616   : > { %v8347_v22 = vpop.xlane.xlu0 %1242  ;;  %v8349_v62 = vpop.f32.mrb[21].mxu1 }
 0x617   : > { %11126 = vst [vmem:[#allocation37_spill] sm:$0xff] %v8347_v22  ;;  %v1267_v22 = vcvt.s32.f32 %v1265_v46 }
 0x619   : > { %v8352_v36 = vpop.f32.mrb[22].mxu1 }
 0x61a   : > { %v8354_v48 = vpop.xlane.xlu0 %1253  ;;  %v8356_v8 = vpop.f32.mrb[23].mxu1 }
 0x61b   : > { %11127 = vst [vmem:[#allocation55_spill] sm:$0xff] %v8354_v48  ;;  %vm1255_vm8 = vcmp.eq.f32.partialorder %v1252_v51, %v8354_v48  ;;  %v1221_v51 = vsel %vm1205_vm10, %v8239_v55, 3 }
 0x61c   : > { %v1256_v34 = vsel %vm1255_vm8, %v1251_v35, inf  ;;  %v1264_v35 = vand.u32 65535, %v1263_v10  ;;  %v1293_v54 = vsel %vm1134_vm3, %v1221_v51, 2147483647  ;;  %v8381_v10 = vsub.f32 %v8066_v29, %v8264_v43 }
 0x61d   : > { %1257 = vmin.xlane.f32.xlu0 %v1256_v34  ;;  %v1278_v34 = vsel %vm1134_vm3, %v1220_v26, 2147483647  ;;  %v1295_v49 = vshra.s32 %v1293_v54, 16  ;;  %v1158_v26 = vpop.xlane.xlu1 %1157 }
 0x61e   : > { %v1266_v1 = vcvt.s32.f32 %v1264_v35  ;;  %v1280_v61 = vshra.s32 %v1278_v34, 16  ;;  %11134 = vst [vmem:[#allocation36_spill] sm:$0xff] %v8381_v10  ;;  %vm1206_vm12 = vcmp.eq.f32.partialorder %v8381_v10, 0.0  ;;  %v8385_v35 = vsub.f32 %v8217_v23, %v1158_v26 }
 0x61f   : > { %v1297_v5 = vcvt.s32.f32 %v1295_v49 }
 0x620   : > { %v1282_v53 = vcvt.s32.f32 %v1280_v61  ;;  %11135 = vst [vmem:[#allocation30_spill] sm:$0xff] %v8385_v35  ;;  %vm1208_vm13 = vcmp.eq.f32.partialorder %v8385_v35, 0.0  ;;  %v1294_v61 = vand.u32 65535, %v1293_v54  ;;  %v8622_v35 = vld [vmem:[%s6847_s3 + $0xf0] sm:$0xff] }
 0x621   : > { %1268 = vmin.xlane.f32.xlu0 %v1267_v22  ;;  %11162 = vst [vmem:[#allocation98_spill] sm:$0xff] %v8622_v35 }
 0x622   : > { %v1296_v26 = vcvt.s32.f32 %v1294_v61 }
 0x6aa   : > { %v8371_v57 = vpop.xlane.xlu0 %1257 }
 0x6ab   : > { %11132 = vst [vmem:[#allocation50_spill] sm:$0xff] %v8371_v57  ;;  %v1224_v57 = vsel %vm1208_vm13, %v8239_v55, 3  ;;  %vm3422_vm13 = vcmask 31744  }
 0x6ae   : > { %v8375_v46 = vpop.xlane.xlu0 %1268 }
 0x6af   : > { %11133 = vst [vmem:[#allocation41_spill] sm:$0xff] %v8375_v46  ;;  %vm1270_vm11 = vcmp.eq.f32.partialorder %v1267_v22, %v8375_v46  ;;  %v1338_v46 = vsel %vm1134_vm3, %v1224_v57, 2147483647 }
 0x6b0   : > { %v1271_v48 = vsel %vm1270_vm11, %v1266_v1, inf  ;;  %v1279_v1 = vand.u32 65535, %v1278_v34  ;;  %v1340_v54 = vshra.s32 %v1338_v46, 16 }
 0x6b1   : > { %1272 = vmin.xlane.f32.xlu0 %v1271_v48  ;;  %v1222_v48 = vsel %vm1206_vm12, %v8239_v55, 3 }
 0x6b2   : > { %v1281_v49 = vcvt.s32.f32 %v1279_v1  ;;  %v1308_v43 = vsel %vm1134_vm3, %v1222_v48, 2147483647  ;;  %v8404_v48 = vsub.f32 %v8036_v59, %v8262_v14 }
 0x6b3   : > { %v1310_v34 = vshra.s32 %v1308_v43, 16  ;;  %v1309_v61 = vand.u32 65535, %v1308_v43  ;;  %v8425_v43 = vsub.f32 %v8184_v6, %v8294_v25 }
 0x6b4   : > { %11139 = vst [vmem:[#allocation57_spill] sm:$0xff] %v8404_v48  ;;  %vm1207_vm4 = vcmp.eq.f32.partialorder %v8404_v48, 0.0 }
 0x6b5   : > { %1283 = vmin.xlane.f32.xlu0 %v1282_v53  ;;  %v1312_v1 = vcvt.s32.f32 %v1310_v34  ;;  %v1223_v57 = vsel %vm1207_vm4, %v8239_v55, 3  ;;  %11145 = vst [vmem:[#allocation82_spill] sm:$0xff] %v8425_v43  ;;  %vm1210_vm7 = vcmp.eq.f32.partialorder %v8425_v43, 0.0  ;;  %v6521_v43 = vld [vmem:[#allocation5 + $0x60] sm:$0xff] }
 0x6b9   : > { %1298 = vmin.xlane.f32.xlu0 %v1297_v5 }
 0x73e   : > { %v8387_v22 = vpop.xlane.xlu0 %1272 }
 0x73f   : > { %11136 = vst [vmem:[#allocation49_spill] sm:$0xff] %v8387_v22 }
 0x742   : > { %v8391_v51 = vpop.xlane.xlu0 %1283 }
 0x743   : > { %11137 = vst [vmem:[#allocation51_spill] sm:$0xff] %v8391_v51  ;;  %vm1285_vm14 = vcmp.eq.f32.partialorder %v1282_v53, %v8391_v51  ;;  %v1342_v53 = vcvt.s32.f32 %v1340_v54  ;;  %v1311_v54 = vcvt.s32.f32 %v1309_v61 }
 0x744   : > { %v1286_v29 = vsel %vm1285_vm14, %v1281_v49, inf  ;;  %v8400_v49 = vpop.permute.xlu1 %2166 }
 0x745   : > { %1287 = vmin.xlane.f32.xlu1 %v1286_v29  ;;  %v2288_v19 = vadd.f32 %v8326_v37, %v8400_v49  ;;  %v8657_v37 = vadd.f32 %v8342_v41, %v8400_v49  ;;  %v8671_v41 = vadd.f32 %v8356_v8, %v8400_v49 }
 0x746   : > { %v8396_v23 = vpop.xlane.xlu0 %1298 }
 0x747   : > { %11138 = vst [vmem:[#allocation39_spill] sm:$0xff] %v8396_v23  ;;  %vm1300_vm15 = vcmp.eq.f32.partialorder %v1297_v5, %v8396_v23 }
 0x748   : > { %v1301_v22 = vsel %vm1300_vm15, %v1296_v26, inf  ;;  %v8406_v29 = vpop.xlane.xlu1 %1175  ;;  %v1323_v26 = vsel %vm1134_vm3, %v1223_v57, 2147483647 }
 0x749   : > { %1302 = vmin.xlane.f32.xlu1 %v1301_v22  ;;  %11140 = vst [vmem:[#allocation45_spill] sm:$0xff] %v8406_v29  ;;  %v1325_v59 = vshra.s32 %v1323_v26, 16  ;;  %v1324_v61 = vand.u32 65535, %v1323_v26  ;;  %v1226_v26 = vsel %vm1210_vm7, %v8239_v55, 3 }
 0x74b   : > { %v1327_v23 = vcvt.s32.f32 %v1325_v59 }
 0x74d   : > { %1313 = vmin.xlane.f32.xlu1 %v1312_v1 }
 0x751   : > { %1343 = vmin.xlane.f32.xlu1 %v1342_v53 }
 0x7d2   : > { %v8409_v5 = vpop.xlane.xlu1 %1287 }
 0x7d3   : > { %11141 = vst [vmem:[#allocation52_spill] sm:$0xff] %v8409_v5  ;;  %v8420_v5 = vsub.f32 %v8179_v11, %v8292_v52  ;;  %v1326_v52 = vcvt.s32.f32 %v1324_v61  ;;  %v1368_v61 = vsel %vm1134_vm3, %v1226_v26, 2147483647  ;;  %v8459_v26 = vld [vmem:[%s6847_s3 + $0x20] sm:$0xff] }
 0x7d5   : > { %11144 = vst [vmem:[#allocation81_spill] sm:$0xff] %v8420_v5  ;;  %vm1209_vm6 = vcmp.eq.f32.partialorder %v8420_v5, 0.0 }
 0x7d6   : > { %v8412_v22 = vpop.xlane.xlu1 %1302 }
 0x7d7   : > { %11142 = vst [vmem:[#allocation40_spill] sm:$0xff] %v8412_v22  ;;  %v8496_v22 = vadd.f32 %v8320_v17, %v8400_v49  ;;  %v8514_v17 = vadd.f32 %v8332_v0, %v8400_v49  ;;  %v8532_v0 = vadd.f32 %v8352_v36, %v8400_v49 }
 0x7da   : > { %v8415_v34 = vpop.xlane.xlu1 %1313 }
 0x7db   : > { %11143 = vst [vmem:[#allocation80_spill] sm:$0xff] %v8415_v34  ;;  %vm1315_vm5 = vcmp.eq.f32.partialorder %v1312_v1, %v8415_v34  ;;  %v1225_v1 = vsel %vm1209_vm6, %v8239_v55, 3  ;;  %v8502_v34 = vadd.f32 %v8324_v60, %v8400_v49  ;;  %v8520_v60 = vadd.f32 %v8340_v3, %v8400_v49 }
 0x7dc   : > { %v1316_v14 = vsel %vm1315_vm5, %v1311_v54, inf  ;;  %v8433_v54 = vsub.f32 %v8197_v45, %v8296_v9  ;;  %v1353_v25 = vsel %vm1134_vm3, %v1225_v1, 2147483647  ;;  %v1370_v1 = vshra.s32 %v1368_v61, 16 }
 0x7dd   : > { %1317 = vmin.xlane.f32.xlu0 %v1316_v14  ;;  %v1339_v14 = vand.u32 65535, %v1338_v46  ;;  %v1355_v9 = vshra.s32 %v1353_v25, 16  ;;  %v1354_v51 = vand.u32 65535, %v1353_v25  ;;  %v8549_v25 = vld [vmem:[%s6847_s3 + $0x10] sm:$0xff] }
 0x7de   : > { %11147 = vst [vmem:[#allocation84_spill] sm:$0xff] %v8433_v54  ;;  %v8435_v59 = vpop.xlane.xlu1 %1343  ;;  %vm1211_vm10 = vcmp.eq.f32.partialorder %v8433_v54, 0.0 }
 0x7df   : > { %11148 = vst [vmem:[#allocation85_spill] sm:$0xff] %v8435_v59  ;;  %vm1345_vm9 = vcmp.eq.f32.partialorder %v1342_v53, %v8435_v59  ;;  %v1341_v45 = vcvt.s32.f32 %v1339_v14  ;;  %v1227_v46 = vsel %vm1211_vm10, %v8239_v55, 3  ;;  %v1372_v53 = vcvt.s32.f32 %v1370_v1  ;;  %v8479_v1 = vld [vmem:[%s6847_s3 + $0xa0] sm:$0xff] }
 0x7e0   : > { %11153 = vst [vmem:[#allocation90_spill] sm:$0xff] %v8479_v1  ;;  %v8490_v59 = vadd.f32 %v8318_v21, %v8400_v49  ;;  %v8508_v21 = vadd.f32 %v8328_v58, %v8400_v49  ;;  %v8526_v58 = vadd.f32 %v8345_v40, %v8400_v49  ;;  %v1356_v40 = vcvt.s32.f32 %v1354_v51  ;;  %v8558_v51 = vld [vmem:[%s6847_s3 + $0x30] sm:$0xff] }
 0x7e1   : > { %1328 = vmin.xlane.f32.xlu0 %v1327_v23 }
 0x86a   : > { %v8427_v57 = vpop.xlane.xlu0 %1317 }
 0x86b   : > { %11146 = vst [vmem:[#allocation83_spill] sm:$0xff] %v8427_v57  ;;  %v1346_v57 = vsel %vm1345_vm9, %v1341_v45, inf  ;;  %v8464_v45 = vld [vmem:[%s6847_s3 + $0x40] sm:$0xff] }
 0x86e   : > { %v8437_v11 = vpop.xlane.xlu0 %1328 }
 0x86f   : > { %11149 = vst [vmem:[#allocation86_spill] sm:$0xff] %v8437_v11  ;;  %vm1330_vm8 = vcmp.eq.f32.partialorder %v1327_v23, %v8437_v11  ;;  %v1357_v23 = vcvt.s32.f32 %v1355_v9  ;;  %v8469_v9 = vld [vmem:[%s6847_s3 + $0x60] sm:$0xff] }
 0x870   : > { %v1331_v6 = vsel %vm1330_vm8, %v1326_v52, inf  ;;  %v8447_v52 = vsel %vm1134_vm3, %v1227_v46, 2147483647  ;;  %v8474_v46 = vld [vmem:[%s6847_s3 + $0x80] sm:$0xff] }
 0x871   : > { %1332 = vmin.xlane.f32.xlu0 %v1331_v6  ;;  %11150 = vst [vmem:[#allocation87_spill] sm:$0xff] %v8447_v52  ;;  %v1385_v14 = vshra.s32 %v8447_v52, 16  ;;  %11152 = vst [vmem:[#allocation89_spill] sm:$0xff] %v8474_v46  ;;  %v6513_v11 = vld [vmem:[%s6847_s3 + $0xe0] sm:$0xff]  ;;  %v1369_v52 = vand.u32 65535, %v1368_v61  ;;  %v8585_v61 = vld [vmem:[%s6847_s3 + $0x90] sm:$0xff] }
 0x873   : > { %v8450_v6 = vcvt.s32.f32 %v1385_v14  ;;  %v6512_v14 = vld [vmem:[%s6847_s3 + $0xc0] sm:$0xff]  ;;  %v1371_v5 = vcvt.s32.f32 %v1369_v52 }
 0x875   : > { %1347 = vmin.xlane.f32.xlu0 %v1346_v57  ;;  %11151 = vst [vmem:[#allocation88_spill] sm:$0xff] %v8450_v6  ;;  %v8454_v57 = vld [vmem:[%s6847_s3] sm:$0xff] }
 0x879   : > { %1358 = vmin.xlane.f32.xlu0 %v1357_v23 }
 0x87d   : > { %1373 = vmin.xlane.f32.xlu0 %v1372_v53 }
 0x881   : > { %1388 = vmin.xlane.f32.xlu0 %v8450_v6 }
 0x897   : > { %3198 = vrot.lane.b32.xlu0 %v8454_v57, %s6679_s17 }
 0x89b   : > { %3202 = vrot.lane.b32.xlu0 %v8459_v26, %s6679_s17 }
 0x89f   : > { %3206 = vrot.lane.b32.xlu0 %v8464_v45, %s6679_s17 }
 0x8a3   : > { %3210 = vrot.lane.b32.xlu0 %v8469_v9, %s6679_s17 }
 0x8a7   : > { %3214 = vrot.lane.b32.xlu0 %v8474_v46, %s6679_s17 }
 0x8ab   : > { %3218 = vrot.lane.b32.xlu0 %v8479_v1, %s6679_s17 }
 0x8af   : > { %3222 = vrot.lane.b32.xlu0 %v6512_v14, %s6679_s17 }
 0x8b3   : > { %2794 = vrot.lane.b32.xlu0 %v6513_v11, %s6680_s27 }
 0x8b7   : > { %3226 = vrot.lane.b32.xlu0 %v6513_v11, %s6679_s17 }
 0x8bb   : > { %2478 = vrot.lane.b32.xlu0 %v8490_v59, %s6679_s17 }
 0x8bf   : > { %2484 = vrot.lane.b32.xlu0 %v8496_v22, %s6679_s17 }
 0x8c3   : > { %2488 = vrot.lane.b32.xlu0 %v8502_v34, %s6679_s17 }
 0x8c7   : > { %2492 = vrot.lane.b32.xlu0 %v8508_v21, %s6679_s17 }
 0x8cb   : > { %2496 = vrot.lane.b32.xlu0 %v8514_v17, %s6679_s17 }
 0x8cf   : > { %2500 = vrot.lane.b32.xlu0 %v8520_v60, %s6679_s17 }
 0x8d3   : > { %2504 = vrot.lane.b32.xlu0 %v8526_v58, %s6679_s17 }
 0x8d7   : > { %2508 = vrot.lane.b32.xlu0 %v8532_v0, %s6679_s17 }
 0x8fe   : > { %v8536_v3 = vpop.xlane.xlu0 %1332 }
 0x8ff   : > { %11154 = vst [vmem:[#allocation91_spill] sm:$0xff] %v8536_v3 }
 0x902   : > { %v8538_v11 = vpop.xlane.xlu0 %1347 }
 0x903   : > { %11155 = vst [vmem:[#allocation92_spill] sm:$0xff] %v8538_v11 }
 0x906   : > { %v8540_v6 = vpop.xlane.xlu0 %1358 }
 0x907   : > { %11156 = vst [vmem:[#allocation93_spill] sm:$0xff] %v8540_v6  ;;  %vm1360_vm11 = vcmp.eq.f32.partialorder %v1357_v23, %v8540_v6  ;;  %v11161_v6 = vld [vmem:[#allocation27_spill] sm:$0xff] }
 0x908   : > { %v1361_v54 = vsel %vm1360_vm11, %v1356_v40, inf  ;;  %v2348_v11 = vsub.s32 5, %v11161_v6  ;;  %v2273_v6 = vadd.f32 %v8316_v32, %v8400_v49 }
 0x909   : > { %1362 = vmin.xlane.f32.xlu1 %v1361_v54  ;;  %v8576_v54 = vld [vmem:[%s6847_s3 + $0x70] sm:$0xff] }
 0x90a   : > { %v8543_v36 = vpop.xlane.xlu0 %1373  ;;  %v8619_v48 = vrot.slane %v6521_v43, %v2348_v11 }
 0x90b   : > { %11157 = vst [vmem:[#allocation94_spill] sm:$0xff] %v8543_v36  ;;  %vm1375_vm12 = vcmp.eq.f32.partialorder %v1372_v53, %v8543_v36  ;;  %v8598_v53 = vld [vmem:[%s6847_s3 + $0xb0] sm:$0xff] }
 0x90c   : > { %v1376_v3 = vsel %vm1375_vm12, %v1371_v5, inf  ;;  %v8567_v5 = vld [vmem:[%s6847_s3 + $0x50] sm:$0xff]  ;;  %11159 = vst [vmem:[#allocation96_spill] sm:$0xff] %v8598_v53  ;;  %v2353_v43 = vadd.f32 %v8619_v48, %v8496_v22  ;;  %v2298_v22 = vadd.f32 %v8330_v50, %v8400_v49  ;;  %v8665_v50 = vadd.f32 %v8349_v62, %v8400_v49 }
 0x90d   : > { %1377 = vmin.xlane.f32.xlu1 %v1376_v3  ;;  %v8610_v36 = vld [vmem:[%s6847_s3 + $0xd0] sm:$0xff]  ;;  %v2351_v24 = vadd.f32 %v8619_v48, %v2273_v6 }
 0x90e   : > { %v8591_v23 = vpop.xlane.xlu0 %1388  ;;  %11160 = vst [vmem:[#allocation97_spill] sm:$0xff] %v8610_v36  ;;  %v5545_v29 = vmul.f32 -1.442695, %v2353_v43 }
 0x90f   : > { %11158 = vst [vmem:[#allocation95_spill] sm:$0xff] %v8591_v23 }
 0x912   : > { %v8595_v52 = vpop.permute.xlu0 %3198 }
 0x916   : > { %v8604_v3 = vpop.permute.xlu0 %3202 }
 0x91a   : > { %v8607_v40 = vpop.permute.xlu0 %3206 }
 0x91e   : > { %2766 = vrot.lane.b32.xlu1 %v8454_v57, %s6680_s27  ;;  %v8617_v23 = vpop.permute.xlu0 %3210 }
 0x922   : > { %2768 = vrot.lane.b32.xlu1 %v8549_v25, %s6680_s27  ;;  %v8628_v10 = vpop.permute.xlu0 %3214 }
 0x923   : > { %11163 = vst [vmem:[#allocation99_spill] sm:$0xff] %v8628_v10 }
 0x926   : > { %3200 = vrot.lane.b32.xlu1 %v8549_v25, %s6679_s17  ;;  %v8637_v11 = vpop.permute.xlu0 %3218 }
 0x927   : > { %11164 = vst [vmem:[#allocation100_spill] sm:$0xff] %v8637_v11 }
 0x92a   : > { %2770 = vrot.lane.b32.xlu1 %v8459_v26, %s6680_s27  ;;  %v8644_v32 = vpop.permute.xlu0 %3222 }
 0x92b   : > { %11165 = vst [vmem:[#allocation101_spill] sm:$0xff] %v8644_v32 }
 0x92e   : > { %2772 = vrot.lane.b32.xlu1 %v8558_v51, %s6680_s27 }
 0x932   : > { %3204 = vrot.lane.b32.xlu1 %v8558_v51, %s6679_s17 }
 0x936   : > { %2774 = vrot.lane.b32.xlu1 %v8464_v45, %s6680_s27 }
 0x93a   : > { %2776 = vrot.lane.b32.xlu1 %v8567_v5, %s6680_s27 }
 0x93e   : > { %3208 = vrot.lane.b32.xlu1 %v8567_v5, %s6679_s17 }
 0x942   : > { %2778 = vrot.lane.b32.xlu1 %v8469_v9, %s6680_s27 }
 0x946   : > { %2780 = vrot.lane.b32.xlu1 %v8576_v54, %s6680_s27 }
 0x94a   : > { %3212 = vrot.lane.b32.xlu1 %v8576_v54, %s6679_s17 }
 0x94e   : > { %2782 = vrot.lane.b32.xlu1 %v8474_v46, %s6680_s27  ;;  %v2354_v46 = vadd.f32 %v8619_v48, %v2288_v19 }
 0x952   : > { %2784 = vrot.lane.b32.xlu1 %v8585_v61, %s6680_s27 }
 0x956   : > { %3216 = vrot.lane.b32.xlu1 %v8585_v61, %s6679_s17 }
 0x95a   : > { %2786 = vrot.lane.b32.xlu1 %v8479_v1, %s6680_s27  ;;  %v5543_v1 = vmul.f32 -1.442695, %v2351_v24  ;;  %v2356_v24 = vadd.f32 %v8619_v48, %v2298_v22 }
 0x95e   : > { %2788 = vrot.lane.b32.xlu1 %v8598_v53, %s6680_s27 }
 0x962   : > { %3220 = vrot.lane.b32.xlu1 %v8598_v53, %s6679_s17  ;;  %v2355_v53 = vadd.f32 %v8619_v48, %v8502_v34  ;;  %v2359_v34 = vadd.f32 %v8619_v48, %v8514_v17 }
 0x964   : > { %v5547_v20 = vmul.f32 -1.442695, %v2355_v53 }
 0x966   : > { %2790 = vrot.lane.b32.xlu1 %v6512_v14, %s6680_s27  ;;  %v2350_v14 = vadd.f32 %v8619_v48, %v8490_v59  ;;  %v2278_v59 = vadd.f32 %v8322_v7, %v8400_v49  ;;  %v2308_v7 = vadd.f32 %v8334_v16, %v8400_v49 }
 0x968   : > { %v5542_v30 = vmul.f32 -1.442695, %v2350_v14  ;;  %v2352_v31 = vadd.f32 %v8619_v48, %v2278_v59 }
 0x96a   : > { %2792 = vrot.lane.b32.xlu1 %v8610_v36, %s6680_s27  ;;  %6186 = vpow2.f32 %v5542_v30  ;;  %v8650_v30 = vpop.permute.xlu0 %2794  ;;  %v5544_v10 = vmul.f32 -1.442695, %v2352_v31  ;;  %v5548_v31 = vmul.f32 -1.442695, %v2356_v24 }
 0x96b   : > { %6188 = vpow2.f32 %v5545_v29  ;;  %11166 = vst [vmem:[#allocation102_spill] sm:$0xff] %v8650_v30 }
 0x96e   : > { %3224 = vrot.lane.b32.xlu1 %v8610_v36, %s6679_s17  ;;  %v8659_v12 = vpop.permute.xlu0 %3226 }
 0x96f   : > { %11167 = vst [vmem:[#allocation103_spill] sm:$0xff] %v8659_v12 }
 0x972   : > { %2796 = vrot.lane.b32.xlu1 %v8622_v35, %s6680_s27  ;;  %v2479_v16 = vpop.permute.xlu0 %2478 }
 0x974   : > { %v6187_v14 = vpop.eup %6186 }
 0x975   : > { %v2414_v43 = vadd.f32 1.0, %v6187_v14  ;;  %v6189_v29 = vpop.eup %6188 }
 0x976   : > { %3228 = vrot.lane.b32.xlu1 %v8622_v35, %s6679_s17  ;;  %v2417_v44 = vadd.f32 1.0, %v6189_v29  ;;  %v2485_v62 = vpop.permute.xlu0 %2484 }
 0x977   : > { %6190 = vrcp.f32 %v2414_v43 }
 0x978   : > { %6192 = vrcp.f32 %v2417_v44 }
 0x979   : > { %6194 = vpow2.f32 %v5543_v1 }
 0x97a   : > { %2480 = vrot.lane.b32.xlu1 %v2273_v6, %s6679_s17  ;;  %6196 = vpow2.f32 %v5544_v10  ;;  %v5546_v6 = vmul.f32 -1.442695, %v2354_v46  ;;  %v2361_v10 = vadd.f32 %v8619_v48, %v8520_v60  ;;  %v2362_v60 = vadd.f32 %v8619_v48, %v8665_v50 }
 0x97b   : > { %6198 = vpow2.f32 %v5547_v20 }
 0x97c   : > { %6200 = vpow2.f32 %v5546_v6  ;;  %v5553_v6 = vmul.f32 -1.442695, %v2361_v10 }
 0x97e   : > { %2482 = vrot.lane.b32.xlu1 %v2278_v59, %s6679_s17 }
 0x981   : > { %v8677_v43 = vpop.eup %6190 }
 0x982   : > { %2486 = vrot.lane.b32.xlu1 %v2288_v19, %s6679_s17  ;;  %v2526_v29 = vmul.f32 %v8677_v43, %v2479_v16  ;;  %v8683_v44 = vpop.eup %6192  ;;  %v2358_v19 = vadd.f32 %v8619_v48, %v2308_v7 }
 0x983   : > { %v2529_v55 = vmul.f32 %v8683_v44, %v2485_v62  ;;  %v6195_v1 = vpop.eup %6194 }
 0x984   : > { %v5550_v20 = vmul.f32 -1.442695, %v2358_v19  ;;  %v2415_v17 = vadd.f32 1.0, %v6195_v1  ;;  %v6197_v53 = vpop.eup %6196 }
 0x986   : > { %2490 = vrot.lane.b32.xlu1 %v2298_v22, %s6679_s17  ;;  %v6199_v22 = vpop.eup %6198 }
 0x987   : > { %v2419_v19 = vadd.f32 1.0, %v6199_v22  ;;  %v2489_v22 = vpop.permute.xlu0 %2488 }
 0x98a   : > { %2494 = vrot.lane.b32.xlu1 %v2308_v7, %s6679_s17  ;;  %v2363_v7 = vadd.f32 %v8619_v48, %v8526_v58  ;;  %v5554_v58 = vmul.f32 -1.442695, %v2362_v60 }
 0x98c   : > { %v5555_v1 = vmul.f32 -1.442695, %v2363_v7 }
 0x98e   : > { %2498 = vrot.lane.b32.xlu1 %v8657_v37, %s6679_s17 }
 0x992   : > { %2502 = vrot.lane.b32.xlu1 %v8665_v50, %s6679_s17 }
 0x996   : > { %v8673_v14 = vpop.xlane.xlu1 %1362  ;;  %2506 = vrot.lane.b32.xlu1 %v8671_v41, %s6679_s17 }
 0x997   : > { %11168 = vst [vmem:[#allocation104_spill] sm:$0xff] %v8673_v14 }
 0x99a   : > { %v8680_v18 = vpop.xlane.xlu1 %1377  ;;  %2558 = vrot.lane.b32.xlu1 %v2526_v29, %s6679_s17 }
 0x99b   : > { %11169 = vst [vmem:[#allocation105_spill] sm:$0xff] %v8680_v18 }
 0x99e   : > { %v8686_v8 = vpop.permute.xlu1 %2766  ;;  %2564 = vrot.lane.b32.xlu1 %v2529_v55, %s6679_s17 }
 0x9a2   : > { %v8689_v49 = vpop.permute.xlu1 %2768 }
 0x9a6   : > { %v8691_v14 = vpop.permute.xlu1 %3200 }
 0x9aa   : > { %v8693_v12 = vpop.permute.xlu1 %2770 }
 0x9ae   : > { %v8695_v16 = vpop.permute.xlu1 %2772 }
 0x9b2   : > { %v8697_v30 = vpop.permute.xlu1 %3204 }
 0x9b6   : > { %v8699_v18 = vpop.permute.xlu1 %2774 }
 0x9ba   : > { %v8701_v29 = vpop.permute.xlu1 %2776 }
 0x9be   : > { %v8703_v35 = vpop.permute.xlu1 %3208 }
 0x9c2   : > { %v8705_v62 = vpop.permute.xlu1 %2778 }
 0x9c6   : > { %v8707_v13 = vpop.permute.xlu1 %2780 }
 0x9ca   : > { %v8709_v55 = vpop.permute.xlu1 %3212 }
 0x9ce   : > { %v8711_v32 = vpop.permute.xlu1 %2782 }
 0x9cf   : > { %11170 = vst [vmem:[#allocation106_spill] sm:$0xff] %v8711_v32 }
 0x9d2   : > { %v8713_v28 = vpop.permute.xlu1 %2784 }
 0x9d6   : > { %v8715_v36 = vpop.permute.xlu1 %3216 }
 0x9d7   : > { %11171 = vst [vmem:[#allocation107_spill] sm:$0xff] %v8715_v36  ;;  %v2357_v36 = vadd.f32 %v8619_v48, %v8508_v21  ;;  %v5551_v21 = vmul.f32 -1.442695, %v2359_v34  ;;  %v2416_v34 = vadd.f32 1.0, %v6197_v53 }
 0x9d9   : > { %v5549_v59 = vmul.f32 -1.442695, %v2357_v36  ;;  %v2360_v36 = vadd.f32 %v8619_v48, %v8657_v37 }
 0x9da   : > { %v8718_v11 = vpop.permute.xlu1 %2786 }
 0x9db   : > { %11172 = vst [vmem:[#allocation108_spill] sm:$0xff] %v8718_v11  ;;  %6202 = vpow2.f32 %v5549_v59  ;;  %v5552_v59 = vmul.f32 -1.442695, %v2360_v36 }
 0x9dc   : > { %6204 = vpow2.f32 %v5548_v31  ;;  %v6201_v31 = vpop.eup %6200 }
 0x9dd   : > { %6206 = vpow2.f32 %v5551_v21  ;;  %v2365_v21 = vadd.f32 %v8619_v48, %v8532_v0  ;;  %v2418_v36 = vadd.f32 1.0, %v6201_v31 }
 0x9de   : > { %v8723_v2 = vpop.permute.xlu1 %2788  ;;  %6208 = vpow2.f32 %v5550_v20  ;;  %v2364_v20 = vadd.f32 %v8619_v48, %v8671_v41 }
 0x9df   : > { %6210 = vrcp.f32 %v2415_v17  ;;  %v5557_v53 = vmul.f32 -1.442695, %v2365_v21 }
 0x9e0   : > { %6212 = vpow2.f32 %v5553_v6  ;;  %v5556_v7 = vmul.f32 -1.442695, %v2364_v20 }
 0x9e1   : > { %6214 = vpow2.f32 %v5552_v59 }
 0x9e2   : > { %v8728_v32 = vpop.permute.xlu1 %3220  ;;  %6216 = vrcp.f32 %v2416_v34 }
 0x9e3   : > { %11173 = vst [vmem:[#allocation109_spill] sm:$0xff] %v8728_v32  ;;  %6218 = vrcp.f32 %v2419_v19 }
 0x9e4   : > { %6220 = vpow2.f32 %v5555_v1  ;;  %v2493_v1 = vpop.permute.xlu0 %2492 }
 0x9e5   : > { %v6203_v37 = vpop.eup %6202  ;;  %6222 = vpow2.f32 %v5554_v58 }
 0x9e6   : > { %v8733_v11 = vpop.permute.xlu1 %2790  ;;  %v6205_v50 = vpop.eup %6204  ;;  %v2421_v17 = vadd.f32 1.0, %v6203_v37  ;;  %6224 = vrcp.f32 %v2418_v36 }
 0x9e7   : > { %11174 = vst [vmem:[#allocation110_spill] sm:$0xff] %v8733_v11  ;;  %v6207_v0 = vpop.eup %6206 }
 0x9e8   : > { %v6209_v59 = vpop.eup %6208  ;;  %6226 = vrcp.f32 %v2421_v17  ;;  %v2423_v34 = vadd.f32 1.0, %v6207_v0 }
 0x9e9   : > { %v8756_v60 = vpop.eup %6210  ;;  %6228 = vpow2.f32 %v5557_v53  ;;  %v2422_v37 = vadd.f32 1.0, %v6209_v59  ;;  %v2497_v59 = vpop.permute.xlu0 %2496 }
 0x9ea   : > { %v8738_v46 = vpop.permute.xlu1 %2792  ;;  %6230 = vpow2.f32 %v5556_v7  ;;  %v6213_v19 = vpop.eup %6212 }
 0x9eb   : > { %11175 = vst [vmem:[#allocation111_spill] sm:$0xff] %v8738_v46  ;;  %v6215_v21 = vpop.eup %6214 }
 0x9ec   : > { %v8760_v58 = vpop.eup %6216  ;;  %v2424_v7 = vadd.f32 1.0, %v6215_v21 }
 0x9ed   : > { %v8762_v36 = vpop.eup %6218 }
 0x9ee   : > { %v8744_v24 = vpop.permute.xlu1 %3224  ;;  %v6221_v53 = vpop.eup %6220 }
 0x9ef   : > { %11176 = vst [vmem:[#allocation112_spill] sm:$0xff] %v8744_v24  ;;  %v6223_v0 = vpop.eup %6222  ;;  %v2531_v24 = vmul.f32 %v8762_v36, %v2489_v22 }
 0x9f2   : > { %v8750_v10 = vpop.permute.xlu1 %2796 }
 0x9f3   : > { %11177 = vst [vmem:[#allocation113_spill] sm:$0xff] %v8750_v10  ;;  %v2420_v10 = vadd.f32 1.0, %v6205_v50  ;;  %v2425_v50 = vadd.f32 1.0, %v6213_v19 }
 0x9f5   : > { %6232 = vrcp.f32 %v2420_v10  ;;  %v8766_v10 = vpop.eup %6224 }
 0x9f6   : > { %v8754_v6 = vpop.permute.xlu1 %3228  ;;  %6234 = vrcp.f32 %v2423_v34 }
 0x9f7   : > { %11178 = vst [vmem:[#allocation114_spill] sm:$0xff] %v8754_v6  ;;  %6236 = vrcp.f32 %v2422_v37  ;;  %v2427_v6 = vadd.f32 1.0, %v6221_v53 }
 0x9f8   : > { %6238 = vrcp.f32 %v2425_v50 }
 0x9f9   : > { %6240 = vrcp.f32 %v2424_v7 }
 0x9fa   : > { %v2481_v41 = vpop.permute.xlu1 %2480  ;;  %6242 = vrcp.f32 %v2427_v6 }
 0x9fb   : > { %v2527_v31 = vmul.f32 %v8756_v60, %v2481_v41 }
 0x9fd   : > { %2560 = vrot.lane.b32.xlu0 %v2527_v31, %s6679_s17  ;;  %v8768_v31 = vpop.eup %6226 }
 0x9fe   : > { %v2483_v20 = vpop.permute.xlu1 %2482  ;;  %v6229_v19 = vpop.eup %6228  ;;  %v2533_v50 = vmul.f32 %v8768_v31, %v2493_v1 }
 0x9ff   : > { %v2528_v17 = vmul.f32 %v8760_v58, %v2483_v20  ;;  %v2426_v20 = vadd.f32 1.0, %v6223_v0  ;;  %v6231_v37 = vpop.eup %6230  ;;  %v2429_v11 = vadd.f32 1.0, %v6229_v19 }
 0xa00   : > { %v8774_v21 = vpop.eup %6232  ;;  %v2428_v22 = vadd.f32 1.0, %v6231_v37 }
 0xa01   : > { %2562 = vrot.lane.b32.xlu1 %v2528_v17, %s6679_s17  ;;  %6244 = vrcp.f32 %v2426_v20  ;;  %v8778_v46 = vpop.eup %6234 }
 0xa02   : > { %v2487_v41 = vpop.permute.xlu1 %2486  ;;  %v8782_v7 = vpop.eup %6236  ;;  %6246 = vrcp.f32 %v2429_v11  ;;  %v2535_v6 = vmul.f32 %v8778_v46, %v2497_v59 }
 0xa03   : > { %v2530_v34 = vmul.f32 %v8766_v10, %v2487_v41  ;;  %v2501_v41 = vpop.permute.xlu0 %2500  ;;  %6248 = vrcp.f32 %v2428_v22  ;;  %v8786_v1 = vpop.eup %6238 }
 0xa04   : > { %v2537_v37 = vmul.f32 %v8786_v1, %v2501_v41 }
 0xa05   : > { %2566 = vrot.lane.b32.xlu0 %v2530_v34, %s6679_s17  ;;  %2568 = vrot.lane.b32.xlu1 %v2531_v24, %s6679_s17  ;;  %v8790_v34 = vpop.eup %6240 }
 0xa06   : > { %v2491_v17 = vpop.permute.xlu1 %2490  ;;  %v8794_v11 = vpop.eup %6242 }
 0xa07   : > { %v2532_v53 = vmul.f32 %v8774_v21, %v2491_v17  ;;  %v2505_v19 = vpop.permute.xlu0 %2504 }
 0xa09   : > { %2570 = vrot.lane.b32.xlu0 %v2532_v53, %s6679_s17  ;;  %2572 = vrot.lane.b32.xlu1 %v2533_v50, %s6679_s17  ;;  %v2539_v53 = vmul.f32 %v8794_v11, %v2505_v19 }
 0xa0a   : > { %v2495_v24 = vpop.permute.xlu1 %2494 }
 0xa0b   : > { %v2534_v0 = vmul.f32 %v8782_v7, %v2495_v24  ;;  %v8798_v59 = vpop.eup %6244  ;;  %v2509_v24 = vpop.permute.xlu0 %2508 }
 0xa0c   : > { %11179 = vst [vmem:[#allocation115_spill] sm:$0xff] %v8798_v59 }
 0xa0d   : > { %2574 = vrot.lane.b32.xlu0 %v2534_v0, %s6679_s17  ;;  %2576 = vrot.lane.b32.xlu1 %v2535_v6, %s6679_s17  ;;  %v8802_v6 = vpop.eup %6246 }
 0xa0e   : > { %v2499_v20 = vpop.permute.xlu1 %2498  ;;  %11180 = vst [vmem:[#allocation116_spill] sm:$0xff] %v8802_v6  ;;  %v8806_v41 = vpop.eup %6248 }
 0xa0f   : > { %v2536_v17 = vmul.f32 %v8790_v34, %v2499_v20  ;;  %11181 = vst [vmem:[#allocation117_spill] sm:$0xff] %v8806_v41  ;;  %v2541_v20 = vmul.f32 %v8802_v6, %v2509_v24 }
 0xa11   : > { %2578 = vrot.lane.b32.xlu0 %v2536_v17, %s6679_s17  ;;  %2580 = vrot.lane.b32.xlu1 %v2537_v37, %s6679_s17 }
 0xa12   : > { %v2503_v50 = vpop.permute.xlu1 %2502 }
 0xa13   : > { %v2538_v22 = vmul.f32 %v8798_v59, %v2503_v50 }
 0xa15   : > { %2582 = vrot.lane.b32.xlu0 %v2538_v22, %s6679_s17  ;;  %2584 = vrot.lane.b32.xlu1 %v2539_v53, %s6679_s17 }
 0xa16   : > { %v2507_v0 = vpop.permute.xlu1 %2506 }
 0xa17   : > { %v2540_v37 = vmul.f32 %v8806_v41, %v2507_v0 }
 0xa19   : > { %2586 = vrot.lane.b32.xlu0 %v2540_v37, %s6679_s17  ;;  %2588 = vrot.lane.b32.xlu1 %v2541_v20, %s6679_s17 }
 0xa1a   : > { %v2559_v19 = vpop.permute.xlu1 %2558 }
 0xa1b   : > { %v2606_v17 = vadd.f32 %v2559_v19, %v8619_v48 }
 0xa1d   : > { %6250 = vtanh.f32 %v2606_v17 }
 0xa1e   : > { %v2565_v22 = vpop.permute.xlu1 %2564 }
 0xa1f   : > { %v2609_v32 = vadd.f32 %v2565_v22, %v8619_v48 }
 0xa27   : > { %v6251_v50 = vpop.eup %6250 }
 0xa28   : > { %2670 = vrot.lane.b32.xlu1 %v6251_v50, %s6678_s15 }
 0xa6f   : > { %v2561_v53 = vpop.permute.xlu0 %2560 }
 0xa70   : > { %v2607_v59 = vadd.f32 %v2561_v53, %v8619_v48 }
 0xa72   : > { %6252 = vtanh.f32 %v2607_v59 }
 0xa73   : > { %v2563_v24 = vpop.permute.xlu1 %2562  ;;  %6254 = vtanh.f32 %v2609_v32 }
 0xa74   : > { %v2608_v0 = vadd.f32 %v2563_v24, %v8619_v48 }
 0xa76   : > { %6256 = vtanh.f32 %v2608_v0 }
 0xa77   : > { %v2569_v20 = vpop.permute.xlu1 %2568  ;;  %v2567_v37 = vpop.permute.xlu0 %2566 }
 0xa78   : > { %v2611_v19 = vadd.f32 %v2569_v20, %v8619_v48  ;;  %v2610_v17 = vadd.f32 %v2567_v37, %v8619_v48 }
 0xa7a   : > { %6258 = vtanh.f32 %v2611_v19 }
 0xa7b   : > { %v2573_v41 = vpop.permute.xlu1 %2572  ;;  %6260 = vtanh.f32 %v2610_v17  ;;  %v2571_v6 = vpop.permute.xlu0 %2570 }
 0xa7c   : > { %v6253_v50 = vpop.eup %6252  ;;  %v2613_v59 = vadd.f32 %v2573_v41, %v8619_v48  ;;  %v2612_v32 = vadd.f32 %v2571_v6, %v8619_v48 }
 0xa7d   : > { %2672 = vrot.lane.b32.xlu0 %v6253_v50, %s6678_s15  ;;  %v6255_v53 = vpop.eup %6254 }
 0xa7e   : > { %6262 = vtanh.f32 %v2613_v59 }
 0xa7f   : > { %v2577_v24 = vpop.permute.xlu1 %2576  ;;  %6264 = vtanh.f32 %v2612_v32  ;;  %v2575_v37 = vpop.permute.xlu0 %2574 }
 0xa80   : > { %v6257_v22 = vpop.eup %6256  ;;  %v2615_v20 = vadd.f32 %v2577_v24, %v8619_v48  ;;  %v2614_v41 = vadd.f32 %v2575_v37, %v8619_v48 }
 0xa81   : > { %2676 = vrot.lane.b32.xlu0 %v6255_v53, %s6678_s15  ;;  %2674 = vrot.lane.b32.xlu1 %v6257_v22, %s6678_s15 }
 0xa82   : > { %6266 = vtanh.f32 %v2615_v20 }
 0xa83   : > { %v2581_v17 = vpop.permute.xlu1 %2580  ;;  %6268 = vtanh.f32 %v2614_v41  ;;  %v2579_v53 = vpop.permute.xlu0 %2578 }
 0xa84   : > { %v6259_v0 = vpop.eup %6258  ;;  %v2617_v6 = vadd.f32 %v2581_v17, %v8619_v48  ;;  %v2616_v22 = vadd.f32 %v2579_v53, %v8619_v48 }
 0xa85   : > { %2680 = vrot.lane.b32.xlu0 %v6259_v0, %s6678_s15  ;;  %v6261_v19 = vpop.eup %6260 }
 0xa86   : > { %6270 = vtanh.f32 %v2617_v6 }
 0xa87   : > { %v2585_v32 = vpop.permute.xlu1 %2584  ;;  %6272 = vtanh.f32 %v2616_v22  ;;  %v2583_v20 = vpop.permute.xlu0 %2582 }
 0xa88   : > { %v6263_v50 = vpop.eup %6262  ;;  %v2619_v0 = vadd.f32 %v2585_v32, %v8619_v48 }
 0xa89   : > { %2678 = vrot.lane.b32.xlu0 %v6261_v19, %s6678_s15  ;;  %v6265_v59 = vpop.eup %6264  ;;  %v2618_v19 = vadd.f32 %v2583_v20, %v8619_v48 }
 0xa8a   : > { %6274 = vtanh.f32 %v2619_v0 }
 0xa8b   : > { %v2589_v41 = vpop.permute.xlu1 %2588  ;;  %6276 = vtanh.f32 %v2618_v19  ;;  %v2587_v6 = vpop.permute.xlu0 %2586  ;;  %v2639_v19 = vsub.f32 1.0, %v8756_v60 }
 0xa8c   : > { %v6267_v24 = vpop.eup %6266 }
 0xa8d   : > { %2684 = vrot.lane.b32.xlu0 %v6263_v50, %s6678_s15  ;;  %v6269_v37 = vpop.eup %6268  ;;  %v2621_v50 = vadd.f32 %v2589_v41, %v8619_v48 }
 0xa8f   : > { %6278 = vtanh.f32 %v2621_v50 }
 0xa90   : > { %v6271_v17 = vpop.eup %6270 }
 0xa91   : > { %2682 = vrot.lane.b32.xlu0 %v6265_v59, %s6678_s15  ;;  %v6273_v53 = vpop.eup %6272  ;;  %v2620_v59 = vadd.f32 %v2587_v6, %v8619_v48  ;;  %v2734_v6 = vmul.f32 %v8677_v43, %v8075_v47 }
 0xa93   : > { %6280 = vtanh.f32 %v2620_v59 }
 0xa94   : > { %v6275_v22 = vpop.eup %6274 }
 0xa95   : > { %2688 = vrot.lane.b32.xlu0 %v6267_v24, %s6678_s15  ;;  %v6277_v32 = vpop.eup %6276 }
 0xa99   : > { %2686 = vrot.lane.b32.xlu0 %v6269_v37, %s6678_s15  ;;  %v6279_v24 = vpop.eup %6278  ;;  %v2638_v37 = vsub.f32 1.0, %v8677_v43 }
 0xa9a   : > { %v2671_v20 = vpop.permute.xlu1 %2670 }
 0xa9b   : > { %v2718_v41 = vmul.f32 %v2671_v20, %v2638_v37 }
 0xa9d   : > { %2692 = vrot.lane.b32.xlu0 %v6271_v17, %s6678_s15  ;;  %v6281_v0 = vpop.eup %6280  ;;  %v2735_v17 = vmul.f32 %v8756_v60, %v8049_v56  ;;  %v8852_v59 = vadd.f32 %v2734_v6, %v2718_v41  ;;  %v2641_v60 = vsub.f32 1.0, %v8683_v44 }
 0xa9f   : > { %11183 = vst [vmem:[#allocation119_spill] sm:$0xff] %v8852_v59  ;;  %v2814_v47 = vmul.f32 %v8686_v8, %v8852_v59  ;;  %v2640_v8 = vsub.f32 1.0, %v8760_v58 }
 0xaa1   : > { %2690 = vrot.lane.b32.xlu0 %v6273_v53, %s6678_s15 }
 0xaa5   : > { %2696 = vrot.lane.b32.xlu0 %v6275_v22, %s6678_s15 }
 0xaa9   : > { %2694 = vrot.lane.b32.xlu0 %v6277_v32, %s6678_s15 }
 0xaad   : > { %2700 = vrot.lane.b32.xlu0 %v6279_v24, %s6678_s15  ;;  %v11184_v24 = vld [vmem:[#allocation12_spill] sm:$0xff] }
 0xab1   : > { %2698 = vrot.lane.b32.xlu0 %v6281_v0, %s6678_s15  ;;  %v11185_v0 = vld [vmem:[#allocation11_spill] sm:$0xff] }
 0xab2   : > { %v3070_v20 = vmul.f32 %v8852_v59, %v11185_v0 }
 0xaef   : > { %v2673_v48 = vpop.permute.xlu0 %2672 }
 0xaf0   : > { %v2719_v50 = vmul.f32 %v2673_v48, %v2639_v19  ;;  %v2737_v19 = vmul.f32 %v8683_v44, %v8081_v42 }
 0xaf2   : > { %v8850_v53 = vadd.f32 %v2735_v17, %v2719_v50  ;;  %v2942_v17 = vmul.f32 %v8454_v57, %v8852_v59  ;;  %v2736_v50 = vmul.f32 %v8760_v58, %v8103_v15 }
 0xaf3   : > { %v2677_v43 = vpop.permute.xlu0 %2676  ;;  %v2675_v37 = vpop.permute.xlu1 %2674 }
 0xaf4   : > { %11182 = vst [vmem:[#allocation118_spill] sm:$0xff] %v8850_v53  ;;  %v2943_v22 = vmul.f32 %v8549_v25, %v8850_v53  ;;  %v2815_v32 = vmul.f32 %v8689_v49, %v8850_v53  ;;  %v3071_v56 = vmul.f32 %v8850_v53, %v11184_v24  ;;  %v2721_v25 = vmul.f32 %v2677_v43, %v2641_v60 }
 0xaf5   : > { %v3247_v49 = vmul.f32 %v8691_v14, %v8850_v53  ;;  %v2720_v41 = vmul.f32 %v2675_v37, %v2640_v8  ;;  %v3246_v14 = vmul.f32 %v8595_v52, %v8852_v59  ;;  %v11188_v52 = vld [vmem:[#allocation14_spill] sm:$0xff]  ;;  %v2642_v43 = vsub.f32 1.0, %v8766_v10  ;;  %v11191_v37 = vld [vmem:[#allocation15_spill] sm:$0xff] }
 0xaf6   : > { %2976 = vrot.lane.b32.xlu1 %v2943_v22, %s6678_s15  ;;  %2848 = vrot.lane.b32.xlu0 %v2815_v32, %s6678_s15  ;;  %v8876_v48 = vadd.f32 %v2737_v19, %v2721_v25  ;;  %v2643_v22 = vsub.f32 1.0, %v8762_v36  ;;  %v11189_v32 = vld [vmem:[#allocation13_spill] sm:$0xff] }
 0xaf7   : > { %v8886_v42 = vadd.f32 %v2736_v50, %v2720_v41  ;;  %v2681_v57 = vpop.permute.xlu0 %2680  ;;  %v2741_v41 = vmul.f32 %v8768_v31, %v8145_v4 }
 0xaf8   : > { %11186 = vst [vmem:[#allocation12_spill] sm:$0xff] %v8876_v48  ;;  %v2945_v44 = vmul.f32 %v8558_v51, %v8876_v48  ;;  %v2817_v6 = vmul.f32 %v8695_v16, %v8876_v48  ;;  %v3073_v15 = vmul.f32 %v8876_v48, %v11188_v52  ;;  %v2723_v51 = vmul.f32 %v2681_v57, %v2643_v22  ;;  %v11193_v52 = vld [vmem:[#allocation17_spill] sm:$0xff] }
 0xaf9   : > { %11187 = vst [vmem:[#allocation11_spill] sm:$0xff] %v8886_v42  ;;  %v2816_v58 = vmul.f32 %v8693_v12, %v8886_v42  ;;  %v3249_v16 = vmul.f32 %v8697_v30, %v8876_v48  ;;  %v3072_v24 = vmul.f32 %v8886_v42, %v11189_v32  ;;  %v2944_v25 = vmul.f32 %v8459_v26, %v8886_v42 }
 0xafa   : > { %3104 = vrot.lane.b32.xlu1 %v3071_v56, %s6678_s15  ;;  %2846 = vrot.lane.b32.xlu0 %v2814_v47, %s6678_s15  ;;  %v2739_v47 = vmul.f32 %v8762_v36, %v8122_v27  ;;  %v3248_v30 = vmul.f32 %v8604_v3, %v8886_v42  ;;  %v11190_v3 = vld [vmem:[#allocation16_spill] sm:$0xff]  ;;  %v2647_v57 = vsub.f32 1.0, %v8778_v46  ;;  %v2743_v22 = vmul.f32 %v8778_v46, %v8056_v38 }
 0xafb   : > { %v2679_v56 = vpop.permute.xlu0 %2678 }
 0xafc   : > { %v8910_v12 = vadd.f32 %v2739_v47, %v2723_v51  ;;  %v2722_v60 = vmul.f32 %v2679_v56, %v2642_v43  ;;  %v2646_v51 = vsub.f32 1.0, %v8782_v7  ;;  %v2649_v43 = vsub.f32 1.0, %v8786_v1 }
 0xafe   : > { %3280 = vrot.lane.b32.xlu1 %v3247_v49, %s6678_s15  ;;  %3102 = vrot.lane.b32.xlu0 %v3070_v20, %s6678_s15  ;;  %v2738_v49 = vmul.f32 %v8766_v10, %v8120_v33  ;;  %v2947_v36 = vmul.f32 %v8567_v5, %v8910_v12  ;;  %v2819_v0 = vmul.f32 %v8701_v29, %v8910_v12  ;;  %v2645_v20 = vsub.f32 1.0, %v8768_v31 }
 0xaff   : > { %v2685_v26 = vpop.permute.xlu0 %2684  ;;  %v3075_v33 = vmul.f32 %v8910_v12, %v11190_v3  ;;  %v3251_v29 = vmul.f32 %v8703_v35, %v8910_v12 }
 0xb00   : > { %v8920_v27 = vadd.f32 %v2738_v49, %v2722_v60  ;;  %v2725_v5 = vmul.f32 %v2685_v26, %v2645_v20  ;;  %v2648_v26 = vsub.f32 1.0, %v8790_v34 }
 0xb02   : > { %2974 = vrot.lane.b32.xlu1 %v2942_v17, %s6678_s15  ;;  %3278 = vrot.lane.b32.xlu0 %v3246_v14, %s6678_s15  ;;  %v2818_v10 = vmul.f32 %v8699_v18, %v8920_v27  ;;  %v3074_v19 = vmul.f32 %v8920_v27, %v11191_v37  ;;  %v2644_v17 = vsub.f32 1.0, %v8774_v21  ;;  %v8944_v18 = vadd.f32 %v2741_v41, %v2725_v5  ;;  %v11203_v5 = vld [vmem:[#allocation99_spill] sm:$0xff] }
 0xb03   : > { %v2683_v8 = vpop.permute.xlu0 %2682  ;;  %v2946_v50 = vmul.f32 %v8464_v45, %v8920_v27  ;;  %v3250_v35 = vmul.f32 %v8607_v40, %v8920_v27  ;;  %v11192_v40 = vld [vmem:[#allocation18_spill] sm:$0xff]  ;;  %v11204_v37 = vld [vmem:[#allocation75_spill] sm:$0xff] }
 0xb04   : > { %v2724_v14 = vmul.f32 %v2683_v8, %v2644_v17  ;;  %v2949_v31 = vmul.f32 %v8576_v54, %v8944_v18  ;;  %v11206_v8 = vld [vmem:[#allocation96_spill] sm:$0xff] }
 0xb06   : > { %2980 = vrot.lane.b32.xlu1 %v2945_v44, %s6678_s15  ;;  %2852 = vrot.lane.b32.xlu0 %v2817_v6, %s6678_s15  ;;  %v2740_v44 = vmul.f32 %v8774_v21, %v8159_v39  ;;  %v2821_v6 = vmul.f32 %v8707_v13, %v8944_v18  ;;  %v3077_v39 = vmul.f32 %v8944_v18, %v11192_v40  ;;  %v11210_v40 = vld [vmem:[#allocation21_spill] sm:$0xff] }
 0xb07   : > { %v2689_v45 = vpop.permute.xlu0 %2688  ;;  %v3253_v13 = vmul.f32 %v8709_v55, %v8944_v18 }
 0xb08   : > { %v8954_v4 = vadd.f32 %v2740_v44, %v2724_v14  ;;  %v2727_v54 = vmul.f32 %v2689_v45, %v2647_v57  ;;  %v11211_v57 = vld [vmem:[#allocation76_spill] sm:$0xff] }
 0xb0a   : > { %3108 = vrot.lane.b32.xlu1 %v3073_v15, %s6678_s15  ;;  %2850 = vrot.lane.b32.xlu0 %v2816_v58, %s6678_s15  ;;  %v2820_v21 = vmul.f32 %v8705_v62, %v8954_v4  ;;  %v3076_v15 = vmul.f32 %v8954_v4, %v11193_v52  ;;  %v8978_v62 = vadd.f32 %v2743_v22, %v2727_v54  ;;  %v11214_v22 = vld [vmem:[#allocation90_spill] sm:$0xff] }
 0xb0b   : > { %v2687_v58 = vpop.permute.xlu0 %2686  ;;  %v2948_v32 = vmul.f32 %v8469_v9, %v8954_v4  ;;  %v3252_v55 = vmul.f32 %v8617_v23, %v8954_v4  ;;  %v11196_v23 = vld [vmem:[#allocation20_spill] sm:$0xff]  ;;  %v2747_v54 = vmul.f32 %v8794_v11, %v11211_v57 }
 0xb0c   : > { %11194 = vst [vmem:[#allocation14_spill] sm:$0xff] %v8978_v62  ;;  %v2951_v46 = vmul.f32 %v8585_v61, %v8978_v62  ;;  %v2823_v56 = vmul.f32 %v8713_v28, %v8978_v62  ;;  %v11198_v28 = vld [vmem:[#allocation107_spill] sm:$0xff] }
 0xb0d   : > { %v3255_v60 = vmul.f32 %v11198_v28, %v8978_v62  ;;  %v11222_v28 = vld [vmem:[#allocation116_spill] sm:$0xff] }
 0xb0e   : > { %3284 = vrot.lane.b32.xlu1 %v3249_v16, %s6678_s15  ;;  %3106 = vrot.lane.b32.xlu0 %v3072_v24, %s6678_s15  ;;  %v2726_v16 = vmul.f32 %v2687_v58, %v2646_v51  ;;  %v2742_v24 = vmul.f32 %v8782_v7, %v8086_v63  ;;  %v3079_v63 = vmul.f32 %v8978_v62, %v11196_v23  ;;  %v11197_v7 = vld [vmem:[#allocation106_spill] sm:$0xff] }
 0xb0f   : > { %v2693_v9 = vpop.permute.xlu0 %2692 }
 0xb10   : > { %v8988_v38 = vadd.f32 %v2742_v24, %v2726_v16  ;;  %v2729_v61 = vmul.f32 %v2693_v9, %v2649_v43  ;;  %v11215_v16 = vld [vmem:[#allocation100_spill] sm:$0xff]  ;;  %v11219_v9 = vld [vmem:[#allocation111_spill] sm:$0xff]  ;;  %v11221_v43 = vld [vmem:[#allocation110_spill] sm:$0xff] }
 0xb12   : > { %2978 = vrot.lane.b32.xlu1 %v2944_v25, %s6678_s15  ;;  %3282 = vrot.lane.b32.xlu0 %v3248_v30, %s6678_s15  ;;  %11195 = vst [vmem:[#allocation13_spill] sm:$0xff] %v8988_v38  ;;  %v2822_v47 = vmul.f32 %v11197_v7, %v8988_v38  ;;  %v11199_v25 = vld [vmem:[#allocation19_spill] sm:$0xff]  ;;  %v11220_v7 = vld [vmem:[#allocation24_spill] sm:$0xff] }
 0xb13   : > { %v3078_v30 = vmul.f32 %v8988_v38, %v11199_v25  ;;  %v2691_v49 = vpop.permute.xlu0 %2690 }
 0xb16   : > { %2984 = vrot.lane.b32.xlu1 %v2947_v36, %s6678_s15  ;;  %2856 = vrot.lane.b32.xlu0 %v2819_v0, %s6678_s15  ;;  %v11200_v36 = vld [vmem:[#allocation74_spill] sm:$0xff] }
 0xb17   : > { %v2745_v0 = vmul.f32 %v8786_v1, %v11200_v36  ;;  %v2697_v14 = vpop.permute.xlu0 %2696  ;;  %v11224_v36 = vld [vmem:[#allocation23_spill] sm:$0xff] }
 0xb19   : > { %v9012_v3 = vadd.f32 %v2745_v0, %v2729_v61 }
 0xb1a   : > { %3112 = vrot.lane.b32.xlu1 %v3075_v33, %s6678_s15  ;;  %2854 = vrot.lane.b32.xlu0 %v2818_v10, %s6678_s15  ;;  %v2728_v33 = vmul.f32 %v2691_v49, %v2648_v26  ;;  %v11202_v10 = vld [vmem:[#allocation89_spill] sm:$0xff] }
 0xb1b   : > { %11201 = vst [vmem:[#allocation16_spill] sm:$0xff] %v9012_v3  ;;  %v2950_v20 = vmul.f32 %v11202_v10, %v8988_v38  ;;  %v2953_v41 = vmul.f32 %v11206_v8, %v9012_v3  ;;  %v2825_v17 = vmul.f32 %v8723_v2, %v9012_v3  ;;  %v11209_v2 = vld [vmem:[#allocation109_spill] sm:$0xff] }
 0xb1c   : > { %v3257_v45 = vmul.f32 %v11209_v2, %v9012_v3 }
 0xb1e   : > { %3288 = vrot.lane.b32.xlu1 %v3251_v29, %s6678_s15  ;;  %3110 = vrot.lane.b32.xlu0 %v3074_v19, %s6678_s15  ;;  %v3254_v29 = vmul.f32 %v11203_v5, %v8988_v38  ;;  %v2744_v19 = vmul.f32 %v8790_v34, %v11204_v37 }
 0xb20   : > { %v9022_v1 = vadd.f32 %v2744_v19, %v2728_v33  ;;  %v11225_v33 = vld [vmem:[#allocation78_spill] sm:$0xff]  ;;  %v6523_v19 = vld [vmem:[%s6847_s3 + $0xc0] sm:$0xff] }
 0xb21   : > { %v2749_v10 = vmul.f32 %v11222_v28, %v11225_v33 }
 0xb22   : > { %2982 = vrot.lane.b32.xlu1 %v2946_v50, %s6678_s15  ;;  %3286 = vrot.lane.b32.xlu0 %v3250_v35, %s6678_s15  ;;  %11205 = vst [vmem:[#allocation15_spill] sm:$0xff] %v9022_v1  ;;  %v11207_v50 = vld [vmem:[#allocation22_spill] sm:$0xff]  ;;  %v11208_v35 = vld [vmem:[#allocation108_spill] sm:$0xff]  ;;  %v2952_v51 = vmul.f32 %v11214_v22, %v9022_v1  ;;  %v11236_v22 = vld [vmem:[#allocation25_spill] sm:$0xff] }
 0xb23   : > { %v3081_v34 = vmul.f32 %v9012_v3, %v11207_v50  ;;  %v2824_v44 = vmul.f32 %v11208_v35, %v9022_v1  ;;  %v11231_v35 = vld [vmem:[#allocation98_spill] sm:$0xff] }
 0xb26   : > { %2988 = vrot.lane.b32.xlu1 %v2949_v31, %s6678_s15  ;;  %2860 = vrot.lane.b32.xlu0 %v2821_v6, %s6678_s15  ;;  %v2651_v31 = vsub.f32 1.0, %v8794_v11 }
 0xb28   : > { %v2731_v6 = vmul.f32 %v2697_v14, %v2651_v31  ;;  %v11229_v14 = vld [vmem:[#allocation79_spill] sm:$0xff]  ;;  %v11232_v31 = vld [vmem:[#allocation113_spill] sm:$0xff] }
 0xb2a   : > { %3116 = vrot.lane.b32.xlu1 %v3077_v39, %s6678_s15  ;;  %2858 = vrot.lane.b32.xlu0 %v2820_v21, %s6678_s15  ;;  %v3080_v39 = vmul.f32 %v9022_v1, %v11210_v40  ;;  %v2695_v21 = vpop.permute.xlu0 %2694  ;;  %v11233_v40 = vld [vmem:[#allocation26_spill] sm:$0xff] }
 0xb2e   : > { %3292 = vrot.lane.b32.xlu1 %v3253_v13, %s6678_s15  ;;  %3114 = vrot.lane.b32.xlu0 %v3076_v15, %s6678_s15  ;;  %v11212_v13 = vld [vmem:[#allocation115_spill] sm:$0xff]  ;;  %v9046_v15 = vadd.f32 %v2747_v54, %v2731_v6 }
 0xb2f   : > { %v2650_v52 = vsub.f32 1.0, %v11212_v13 }
 0xb30   : > { %11213 = vst [vmem:[#allocation18_spill] sm:$0xff] %v9046_v15  ;;  %v2827_v23 = vmul.f32 %v11219_v9, %v9046_v15 }
 0xb31   : > { %v2730_v58 = vmul.f32 %v2695_v21, %v2650_v52  ;;  %v11234_v21 = vld [vmem:[#allocation102_spill] sm:$0xff] }
 0xb32   : > { %2986 = vrot.lane.b32.xlu1 %v2948_v32, %s6678_s15  ;;  %3290 = vrot.lane.b32.xlu0 %v3252_v55, %s6678_s15  ;;  %v3256_v32 = vmul.f32 %v11215_v16, %v9022_v1  ;;  %v11216_v55 = vld [vmem:[#allocation77_spill] sm:$0xff]  ;;  %v11235_v52 = vld [vmem:[#allocation114_spill] sm:$0xff] }
 0xb33   : > { %v2746_v24 = vmul.f32 %v11212_v13, %v11216_v55  ;;  %v6524_v55 = vld [vmem:[%s6847_s3 + $0xe0] sm:$0xff] }
 0xb35   : > { %v9056_v11 = vadd.f32 %v2746_v24, %v2730_v58 }
 0xb36   : > { %2992 = vrot.lane.b32.xlu1 %v2951_v46, %s6678_s15  ;;  %2864 = vrot.lane.b32.xlu0 %v2823_v56, %s6678_s15  ;;  %v11218_v46 = vld [vmem:[#allocation97_spill] sm:$0xff] }
 0xb37   : > { %11217 = vst [vmem:[#allocation17_spill] sm:$0xff] %v9056_v11  ;;  %v2955_v56 = vmul.f32 %v11218_v46, %v9046_v15  ;;  %v2826_v61 = vmul.f32 %v11221_v43, %v9056_v11  ;;  %v3082_v0 = vmul.f32 %v9056_v11, %v11224_v36  ;;  %v2954_v8 = vmul.f32 %v6523_v19, %v9056_v11  ;;  %v11237_v46 = vld [vmem:[#allocation103_spill] sm:$0xff] }
 0xb3a   : > { %3120 = vrot.lane.b32.xlu1 %v3079_v63, %s6678_s15  ;;  %2862 = vrot.lane.b32.xlu0 %v2822_v47, %s6678_s15  ;;  %v2701_v63 = vpop.permute.xlu0 %2700  ;;  %v3083_v47 = vmul.f32 %v9046_v15, %v11220_v7 }
 0xb3e   : > { %3296 = vrot.lane.b32.xlu1 %v3255_v60, %s6678_s15  ;;  %3118 = vrot.lane.b32.xlu0 %v3078_v30, %s6678_s15  ;;  %v2653_v60 = vsub.f32 1.0, %v11222_v28  ;;  %v11223_v30 = vld [vmem:[#allocation112_spill] sm:$0xff]  ;;  %v2699_v26 = vpop.permute.xlu0 %2698 }
 0xb3f   : > { %v3259_v49 = vmul.f32 %v11223_v30, %v9046_v15 }
 0xb40   : > { %v2733_v25 = vmul.f32 %v2701_v63, %v2653_v60 }
 0xb42   : > { %2990 = vrot.lane.b32.xlu1 %v2950_v20, %s6678_s15  ;;  %3294 = vrot.lane.b32.xlu0 %v3254_v29, %s6678_s15  ;;  %v11226_v20 = vld [vmem:[#allocation117_spill] sm:$0xff]  ;;  %v9080_v29 = vadd.f32 %v2749_v10, %v2733_v25 }
 0xb43   : > { %v2652_v5 = vsub.f32 1.0, %v11226_v20  ;;  %v2748_v50 = vmul.f32 %v11226_v20, %v11229_v14 }
 0xb44   : > { %11227 = vst [vmem:[#allocation20_spill] sm:$0xff] %v9080_v29  ;;  %v2829_v6 = vmul.f32 %v11232_v31, %v9080_v29  ;;  %v3261_v58 = vmul.f32 %v11235_v52, %v9080_v29 }
 0xb45   : > { %v2732_v37 = vmul.f32 %v2699_v26, %v2652_v5 }
 0xb46   : > { %2996 = vrot.lane.b32.xlu1 %v2953_v41, %s6678_s15  ;;  %2868 = vrot.lane.b32.xlu0 %v2825_v17, %s6678_s15  ;;  %v11228_v41 = vld [vmem:[#allocation101_spill] sm:$0xff] }
 0xb47   : > { %v3258_v17 = vmul.f32 %v11228_v41, %v9056_v11 }
 0xb4a   : > { %3124 = vrot.lane.b32.xlu1 %v3081_v34, %s6678_s15  ;;  %2866 = vrot.lane.b32.xlu0 %v2824_v44, %s6678_s15  ;;  %v9090_v34 = vadd.f32 %v2748_v50, %v2732_v37  ;;  %v2957_v44 = vmul.f32 %v11231_v35, %v9080_v29 }
 0xb4c   : > { %11230 = vst [vmem:[#allocation106_spill] sm:$0xff] %v9090_v34  ;;  %v2828_v57 = vmul.f32 %v11234_v21, %v9090_v34  ;;  %v2956_v24 = vmul.f32 %v6524_v55, %v9090_v34 }
 0xb4e   : > { %3300 = vrot.lane.b32.xlu1 %v3257_v45, %s6678_s15  ;;  %3122 = vrot.lane.b32.xlu0 %v3080_v39, %s6678_s15  ;;  %v3085_v39 = vmul.f32 %v9080_v29, %v11233_v40 }
 0xb52   : > { %2994 = vrot.lane.b32.xlu1 %v2952_v51, %s6678_s15  ;;  %3298 = vrot.lane.b32.xlu0 %v3256_v32, %s6678_s15  ;;  %v3084_v51 = vmul.f32 %v9090_v34, %v11236_v22 }
 0xb56   : > { %3000 = vrot.lane.b32.xlu1 %v2955_v56, %s6678_s15  ;;  %2872 = vrot.lane.b32.xlu0 %v2827_v23, %s6678_s15  ;;  %v3260_v56 = vmul.f32 %v11237_v46, %v9090_v34 }
 0xb5a   : > { %3128 = vrot.lane.b32.xlu1 %v3083_v47, %s6678_s15  ;;  %2870 = vrot.lane.b32.xlu0 %v2826_v61, %s6678_s15 }
 0xb5e   : > { %3304 = vrot.lane.b32.xlu1 %v3259_v49, %s6678_s15  ;;  %3126 = vrot.lane.b32.xlu0 %v3082_v0, %s6678_s15 }
 0xb62   : > { %2998 = vrot.lane.b32.xlu1 %v2954_v8, %s6678_s15  ;;  %3302 = vrot.lane.b32.xlu0 %v3258_v17, %s6678_s15 }
 0xb66   : > { %3004 = vrot.lane.b32.xlu1 %v2957_v44, %s6678_s15  ;;  %2876 = vrot.lane.b32.xlu0 %v2829_v6, %s6678_s15 }
 0xb68   : > { %v2849_v2 = vpop.permute.xlu0 %2848  ;;  %v2977_v45 = vpop.permute.xlu1 %2976 }
 0xb69   : > { %v2897_v10 = vsel %vm582_vm0, %v2849_v2, 0.0  ;;  %v3025_v37 = vsel %vm582_vm0, %v2977_v45, 0.0 }
 0xb6a   : > { %3132 = vrot.lane.b32.xlu1 %v3085_v39, %s6678_s15  ;;  %2874 = vrot.lane.b32.xlu0 %v2828_v57, %s6678_s15 }
 0xb6c   : > { %v2847_v54 = vpop.permute.xlu0 %2846  ;;  %v3105_v13 = vpop.permute.xlu1 %3104 }
 0xb6d   : > { %v3153_v17 = vsel %vm582_vm0, %v3105_v13, 0.0  ;;  %v2894_v6 = vsel %vm582_vm0, %v2847_v54, 0.0 }
 0xb6e   : > { %3308 = vrot.lane.b32.xlu1 %v3261_v58, %s6678_s15  ;;  %3130 = vrot.lane.b32.xlu0 %v3084_v51, %s6678_s15 }
 0xb70   : > { %v3103_v16 = vpop.permute.xlu0 %3102  ;;  %v3281_v32 = vpop.permute.xlu1 %3280 }
 0xb71   : > { %v3150_v14 = vsel %vm582_vm0, %v3103_v16, 0.0  ;;  %v3329_v50 = vsel %vm582_vm0, %v3281_v32, 0.0 }
 0xb72   : > { %3002 = vrot.lane.b32.xlu1 %v2956_v24, %s6678_s15  ;;  %3306 = vrot.lane.b32.xlu0 %v3260_v56, %s6678_s15 }
 0xb74   : > { %v3279_v9 = vpop.permute.xlu0 %3278  ;;  %v2975_v23 = vpop.permute.xlu1 %2974 }
 0xb75   : > { %v3022_v19 = vsel %vm582_vm0, %v2975_v23, 0.0  ;;  %v3326_v44 = vsel %vm582_vm0, %v3279_v9, 0.0 }
 0xb78   : > { %v2853_v63 = vpop.permute.xlu0 %2852  ;;  %v2981_v7 = vpop.permute.xlu1 %2980 }
 0xb79   : > { %v2903_v2 = vsel %vm582_vm0, %v2853_v63, 0.0  ;;  %v3031_v39 = vsel %vm582_vm0, %v2981_v7, 0.0 }
 0xb7c   : > { %v2851_v47 = vpop.permute.xlu0 %2850  ;;  %v3109_v43 = vpop.permute.xlu1 %3108 }
 0xb7d   : > { %v2900_v21 = vsel %vm582_vm0, %v2851_v47, 0.0  ;;  %v3159_v57 = vsel %vm582_vm0, %v3109_v43, 0.0 }
 0xb80   : > { %v3107_v61 = vpop.permute.xlu0 %3106  ;;  %v3285_v28 = vpop.permute.xlu1 %3284 }
 0xb81   : > { %v3156_v52 = vsel %vm582_vm0, %v3107_v61, 0.0  ;;  %v3335_v54 = vsel %vm582_vm0, %v3285_v28, 0.0 }
 0xb84   : > { %v3283_v60 = vpop.permute.xlu0 %3282  ;;  %v2979_v25 = vpop.permute.xlu1 %2978 }
 0xb85   : > { %v3332_v22 = vsel %vm582_vm0, %v3283_v60, 0.0  ;;  %v3028_v32 = vsel %vm582_vm0, %v2979_v25, 0.0 }
 0xb88   : > { %v2857_v30 = vpop.permute.xlu0 %2856  ;;  %v2985_v49 = vpop.permute.xlu1 %2984 }
 0xb89   : > { %v2909_v55 = vsel %vm582_vm0, %v2857_v30, 0.0  ;;  %v3037_v24 = vsel %vm582_vm0, %v2985_v49, 0.0 }
 0xb8c   : > { %v2855_v36 = vpop.permute.xlu0 %2854  ;;  %v3113_v0 = vpop.permute.xlu1 %3112 }
 0xb8d   : > { %v2906_v56 = vsel %vm582_vm0, %v2855_v36, 0.0  ;;  %v3165_v23 = vsel %vm582_vm0, %v3113_v0, 0.0 }
 0xb90   : > { %v3111_v26 = vpop.permute.xlu0 %3110  ;;  %v3289_v33 = vpop.permute.xlu1 %3288 }
 0xb91   : > { %2898 = vadd.xlane.f32.xlu0 %v2897_v10  ;;  %v3162_v63 = vsel %vm582_vm0, %v3111_v26, 0.0  ;;  %v3341_v43 = vsel %vm582_vm0, %v3289_v33, 0.0 }
 0xb94   : > { %v3287_v20 = vpop.permute.xlu0 %3286  ;;  %v2983_v5 = vpop.permute.xlu1 %2982 }
 0xb95   : > { %3026 = vadd.xlane.f32.xlu0 %v3025_v37  ;;  %v3338_v61 = vsel %vm582_vm0, %v3287_v20, 0.0  ;;  %v3034_v28 = vsel %vm582_vm0, %v2983_v5, 0.0 }
 0xb96   : > { %3023 = vadd.xlane.f32.xlu1 %v3022_v19 }
 0xb98   : > { %v2861_v8 = vpop.permute.xlu0 %2860  ;;  %v2989_v41 = vpop.permute.xlu1 %2988 }
 0xb99   : > { %3154 = vadd.xlane.f32.xlu0 %v3153_v17  ;;  %v2915_v25 = vsel %vm582_vm0, %v2861_v8, 0.0  ;;  %v3043_v49 = vsel %vm582_vm0, %v2989_v41, 0.0 }
 0xb9a   : > { %3151 = vadd.xlane.f32.xlu1 %v3150_v14 }
 0xb9c   : > { %v3117_v35 = vpop.permute.xlu1 %3116  ;;  %v2859_v31 = vpop.permute.xlu0 %2858 }
 0xb9d   : > { %3330 = vadd.xlane.f32.xlu0 %v3329_v50  ;;  %v2912_v36 = vsel %vm582_vm0, %v2859_v31, 0.0  ;;  %v3171_v33 = vsel %vm582_vm0, %v3117_v35, 0.0 }
 0xb9e   : > { %3327 = vadd.xlane.f32.xlu1 %v3326_v44 }
 0xba0   : > { %v3293_v45 = vpop.permute.xlu1 %3292  ;;  %v3115_v40 = vpop.permute.xlu0 %3114 }
 0xba1   : > { %2895 = vadd.xlane.f32.xlu0 %v2894_v6  ;;  %v3168_v10 = vsel %vm582_vm0, %v3115_v40, 0.0  ;;  %v3347_v20 = vsel %vm582_vm0, %v3293_v45, 0.0 }
 0xba2   : > { %2904 = vadd.xlane.f32.xlu1 %v2903_v2 }
 0xba4   : > { %v2987_v13 = vpop.permute.xlu1 %2986  ;;  %v3291_v58 = vpop.permute.xlu0 %3290 }
 0xba5   : > { %3032 = vadd.xlane.f32.xlu0 %v3031_v39  ;;  %v3344_v37 = vsel %vm582_vm0, %v3291_v58, 0.0  ;;  %v3040_v8 = vsel %vm582_vm0, %v2987_v13, 0.0 }
 0xba6   : > { %2901 = vadd.xlane.f32.xlu1 %v2900_v21 }
 0xba8   : > { %v2993_v51 = vpop.permute.xlu1 %2992  ;;  %v2865_v16 = vpop.permute.xlu0 %2864 }
 0xba9   : > { %3160 = vadd.xlane.f32.xlu0 %v3159_v57  ;;  %v2921_v41 = vsel %vm582_vm0, %v2865_v16, 0.0  ;;  %v3049_v50 = vsel %vm582_vm0, %v2993_v51, 0.0 }
 0xbaa   : > { %3157 = vadd.xlane.f32.xlu1 %v3156_v52 }
 0xbac   : > { %v3121_v46 = vpop.permute.xlu1 %3120  ;;  %v2863_v9 = vpop.permute.xlu0 %2862 }
 0xbad   : > { %3336 = vadd.xlane.f32.xlu0 %v3335_v54  ;;  %v2918_v35 = vsel %vm582_vm0, %v2863_v9, 0.0  ;;  %v3177_v44 = vsel %vm582_vm0, %v3121_v46, 0.0 }
 0xbae   : > { %3333 = vadd.xlane.f32.xlu1 %v3332_v22 }
 0xbb0   : > { %v3297_v7 = vpop.permute.xlu1 %3296  ;;  %v3119_v47 = vpop.permute.xlu0 %3118 }
 0xbb1   : > { %3029 = vadd.xlane.f32.xlu0 %v3028_v32  ;;  %v3174_v6 = vsel %vm582_vm0, %v3119_v47, 0.0  ;;  %v3353_v45 = vsel %vm582_vm0, %v3297_v7, 0.0 }
 0xbb2   : > { %2910 = vadd.xlane.f32.xlu1 %v2909_v55 }
 0xbb4   : > { %v2991_v60 = vpop.permute.xlu1 %2990  ;;  %v3295_v30 = vpop.permute.xlu0 %3294 }
 0xbb5   : > { %3038 = vadd.xlane.f32.xlu0 %v3037_v24  ;;  %v3350_v40 = vsel %vm582_vm0, %v3295_v30, 0.0  ;;  %v3046_v57 = vsel %vm582_vm0, %v2991_v60, 0.0 }
 0xbb6   : > { %2907 = vadd.xlane.f32.xlu1 %v2906_v56 }
 0xbb8   : > { %v2997_v0 = vpop.permute.xlu1 %2996  ;;  %v2869_v26 = vpop.permute.xlu0 %2868 }
 0xbb9   : > { %3166 = vadd.xlane.f32.xlu0 %v3165_v23  ;;  %v2927_v13 = vsel %vm582_vm0, %v2869_v26, 0.0  ;;  %v3055_v52 = vsel %vm582_vm0, %v2997_v0, 0.0 }
 0xbba   : > { %3163 = vadd.xlane.f32.xlu1 %v3162_v63 }
 0xbbc   : > { %v3125_v5 = vpop.permute.xlu1 %3124  ;;  %v2867_v19 = vpop.permute.xlu0 %2866 }
 0xbbd   : > { %3342 = vadd.xlane.f32.xlu0 %v3341_v43  ;;  %v2924_v54 = vsel %vm582_vm0, %v2867_v19, 0.0  ;;  %v3183_v51 = vsel %vm582_vm0, %v3125_v5, 0.0 }
 0xbbe   : > { %3339 = vadd.xlane.f32.xlu1 %v3338_v61 }
 0xbc0   : > { %v3301_v17 = vpop.permute.xlu1 %3300  ;;  %v3123_v14 = vpop.permute.xlu0 %3122 }
 0xbc1   : > { %3035 = vadd.xlane.f32.xlu0 %v3034_v28  ;;  %v3180_v16 = vsel %vm582_vm0, %v3123_v14, 0.0  ;;  %v3359_v24 = vsel %vm582_vm0, %v3301_v17, 0.0 }
 0xbc2   : > { %2916 = vadd.xlane.f32.xlu1 %v2915_v25 }
 0xbc4   : > { %v2995_v31 = vpop.permute.xlu1 %2994  ;;  %v3299_v2 = vpop.permute.xlu0 %3298 }
 0xbc5   : > { %3044 = vadd.xlane.f32.xlu0 %v3043_v49  ;;  %v3356_v46 = vsel %vm582_vm0, %v3299_v2, 0.0  ;;  %v3052_v56 = vsel %vm582_vm0, %v2995_v31, 0.0 }
 0xbc6   : > { %2913 = vadd.xlane.f32.xlu1 %v2912_v36 }
 0xbc8   : > { %v3001_v39 = vpop.permute.xlu1 %3000  ;;  %v2873_v21 = vpop.permute.xlu0 %2872 }
 0xbc9   : > { %3172 = vadd.xlane.f32.xlu0 %v3171_v33  ;;  %v2933_v23 = vsel %vm582_vm0, %v2873_v21, 0.0  ;;  %v3061_v7 = vsel %vm582_vm0, %v3001_v39, 0.0 }
 0xbca   : > { %3169 = vadd.xlane.f32.xlu1 %v3168_v10 }
 0xbcc   : > { %v3129_v58 = vpop.permute.xlu1 %3128  ;;  %v2871_v22 = vpop.permute.xlu0 %2870 }
 0xbcd   : > { %3348 = vadd.xlane.f32.xlu0 %v3347_v20  ;;  %v2930_v47 = vsel %vm582_vm0, %v2871_v22, 0.0  ;;  %v3189_v28 = vsel %vm582_vm0, %v3129_v58, 0.0 }
 0xbce   : > { %3345 = vadd.xlane.f32.xlu1 %v3344_v37 }
 0xbd0   : > { %v3305_v32 = vpop.permute.xlu1 %3304  ;;  %v3127_v55 = vpop.permute.xlu0 %3126 }
 0xbd1   : > { %3041 = vadd.xlane.f32.xlu0 %v3040_v8  ;;  %v3186_v60 = vsel %vm582_vm0, %v3127_v55, 0.0  ;;  %v3365_v25 = vsel %vm582_vm0, %v3305_v32, 0.0 }
 0xbd2   : > { %2922 = vadd.xlane.f32.xlu1 %v2921_v41 }
 0xbd4   : > { %v2999_v9 = vpop.permute.xlu1 %2998  ;;  %v3303_v63 = vpop.permute.xlu0 %3302 }
 0xbd5   : > { %3050 = vadd.xlane.f32.xlu0 %v3049_v50  ;;  %v3362_v49 = vsel %vm582_vm0, %v3303_v63, 0.0  ;;  %v3058_v0 = vsel %vm582_vm0, %v2999_v9, 0.0 }
 0xbd6   : > { %2919 = vadd.xlane.f32.xlu1 %v2918_v35 }
 0xbd8   : > { %v3005_v43 = vpop.permute.xlu1 %3004  ;;  %v2877_v61 = vpop.permute.xlu0 %2876 }
 0xbd9   : > { %3178 = vadd.xlane.f32.xlu0 %v3177_v44  ;;  %v2939_v26 = vsel %vm582_vm0, %v2877_v61, 0.0  ;;  %v3067_v20 = vsel %vm582_vm0, %v3005_v43, 0.0 }
 0xbda   : > { %3175 = vadd.xlane.f32.xlu1 %v3174_v6 }
 0xbdc   : > { %v3133_v30 = vpop.permute.xlu1 %3132  ;;  %v2875_v36 = vpop.permute.xlu0 %2874 }
 0xbdd   : > { %3354 = vadd.xlane.f32.xlu0 %v3353_v45  ;;  %v2936_v5 = vsel %vm582_vm0, %v2875_v36, 0.0  ;;  %v3195_v37 = vsel %vm582_vm0, %v3133_v30, 0.0 }
 0xbde   : > { %3351 = vadd.xlane.f32.xlu1 %v3350_v40 }
 0xbe0   : > { %v3309_v33 = vpop.permute.xlu1 %3308  ;;  %v3131_v10 = vpop.permute.xlu0 %3130 }
 0xbe1   : > { %3047 = vadd.xlane.f32.xlu0 %v3046_v57  ;;  %v3192_v8 = vsel %vm582_vm0, %v3131_v10, 0.0  ;;  %v3371_v50 = vsel %vm582_vm0, %v3309_v33, 0.0 }
 0xbe2   : > { %2928 = vadd.xlane.f32.xlu1 %v2927_v13 }
 0xbe4   : > { %v3003_v19 = vpop.permute.xlu1 %3002  ;;  %v3307_v41 = vpop.permute.xlu0 %3306 }
 0xbe5   : > { %3056 = vadd.xlane.f32.xlu0 %v3055_v52  ;;  %v3064_v17 = vsel %vm582_vm0, %v3003_v19, 0.0  ;;  %v3368_v14 = vsel %vm582_vm0, %v3307_v41, 0.0 }
 0xbe6   : > { %2925 = vadd.xlane.f32.xlu1 %v2924_v54 }
 0xbe9   : > { %3184 = vadd.xlane.f32.xlu0 %v3183_v51 }
 0xbea   : > { %3181 = vadd.xlane.f32.xlu1 %v3180_v16 }
 0xbed   : > { %3360 = vadd.xlane.f32.xlu0 %v3359_v24 }
 0xbee   : > { %3357 = vadd.xlane.f32.xlu1 %v3356_v46 }
 0xbf1   : > { %3053 = vadd.xlane.f32.xlu0 %v3052_v56 }
 0xbf2   : > { %2934 = vadd.xlane.f32.xlu1 %v2933_v23 }
 0xbf5   : > { %3062 = vadd.xlane.f32.xlu0 %v3061_v7 }
 0xbf6   : > { %2931 = vadd.xlane.f32.xlu1 %v2930_v47 }
 0xbf9   : > { %3190 = vadd.xlane.f32.xlu0 %v3189_v28 }
 0xbfa   : > { %3187 = vadd.xlane.f32.xlu1 %v3186_v60 }
 0xbfd   : > { %3366 = vadd.xlane.f32.xlu0 %v3365_v25 }
 0xbfe   : > { %3363 = vadd.xlane.f32.xlu1 %v3362_v49 }
 0xc01   : > { %3059 = vadd.xlane.f32.xlu0 %v3058_v0 }
 0xc02   : > { %2940 = vadd.xlane.f32.xlu1 %v2939_v26 }
 0xc05   : > { %3068 = vadd.xlane.f32.xlu0 %v3067_v20 }
 0xc06   : > { %2937 = vadd.xlane.f32.xlu1 %v2936_v5 }
 0xc09   : > { %3196 = vadd.xlane.f32.xlu0 %v3195_v37 }
 0xc0a   : > { %3193 = vadd.xlane.f32.xlu1 %v3192_v8 }
 0xc0d   : > { %3065 = vadd.xlane.f32.xlu0 %v3064_v17 }
 0xc0e   : > { %3369 = vadd.xlane.f32.xlu1 %v3368_v14 }
 0xc11   : > { %3372 = vadd.xlane.f32.xlu0 %v3371_v50 }
 0xc1e   : > { %v2899_v35 = vpop.xlane.xlu0 %2898 }
 0xc22   : > { %v3027_v44 = vpop.xlane.xlu0 %3026 }
 0xc23   : > { %v3024_v31 = vpop.xlane.xlu1 %3023  ;;  %v3375_v45 = vsel %vm1080_vm1, %v2899_v35, %v3027_v44 }
 0xc26   : > { %v3155_v6 = vpop.xlane.xlu0 %3154 }
 0xc27   : > { %v3152_v2 = vpop.xlane.xlu1 %3151  ;;  %v3391_v40 = vsel %vm1097_vm2, %v3375_v45, %v3155_v6 }
 0xc2a   : > { %v3331_v39 = vpop.xlane.xlu0 %3330 }
 0xc2b   : > { %v9183_v21 = vsel %vm1134_vm3, %v3391_v40, %v3331_v39  ;;  %v3328_v57 = vpop.xlane.xlu1 %3327 }
 0xc2c   : > { %v3426_v13 = vsel %vm3422_vm13, %v9183_v21, -inf }
 0xc2d   : > { %3427 = vmax.xlane.f32.xlu0 %v3426_v13 }
 0xc2e   : > { %v2896_v52 = vpop.xlane.xlu0 %2895 }
 0xc2f   : > { %v3374_v58 = vsel %vm1080_vm1, %v2896_v52, %v3024_v31  ;;  %v2905_v54 = vpop.xlane.xlu1 %2904 }
 0xc30   : > { %v3390_v22 = vsel %vm1097_vm2, %v3374_v58, %v3152_v2 }
 0xc31   : > { %v9190_v51 = vsel %vm1134_vm3, %v3390_v22, %v3328_v57 }
 0xc32   : > { %v3033_v16 = vpop.xlane.xlu0 %3032  ;;  %v3423_v32 = vsel %vm3422_vm13, %v9190_v51, -inf }
 0xc33   : > { %3424 = vmax.xlane.f32.xlu1 %v3423_v32  ;;  %v2902_v55 = vpop.xlane.xlu1 %2901  ;;  %v3377_v56 = vsel %vm1080_vm1, %v2905_v54, %v3033_v16 }
 0xc36   : > { %v3161_v24 = vpop.xlane.xlu0 %3160 }
 0xc37   : > { %v3158_v46 = vpop.xlane.xlu1 %3157  ;;  %v3393_v9 = vsel %vm1097_vm2, %v3377_v56, %v3161_v24 }
 0xc3a   : > { %v3337_v23 = vpop.xlane.xlu0 %3336 }
 0xc3b   : > { %v9197_v63 = vsel %vm1134_vm3, %v3393_v9, %v3337_v23  ;;  %v3334_v7 = vpop.xlane.xlu1 %3333 }
 0xc3c   : > { %v3432_v47 = vsel %vm3422_vm13, %v9197_v63, -inf }
 0xc3d   : > { %3433 = vmax.xlane.f32.xlu0 %v3432_v47 }
 0xc3e   : > { %v3030_v43 = vpop.xlane.xlu0 %3029 }
 0xc3f   : > { %v3376_v61 = vsel %vm1080_vm1, %v2902_v55, %v3030_v43  ;;  %v2911_v28 = vpop.xlane.xlu1 %2910 }
 0xc40   : > { %v3392_v60 = vsel %vm1097_vm2, %v3376_v61, %v3158_v46 }
 0xc41   : > { %v9204_v25 = vsel %vm1134_vm3, %v3392_v60, %v3334_v7 }
 0xc42   : > { %v3039_v30 = vpop.xlane.xlu0 %3038  ;;  %v3429_v49 = vsel %vm3422_vm13, %v9204_v25, -inf }
 0xc43   : > { %3430 = vmax.xlane.f32.xlu1 %v3429_v49  ;;  %v2908_v36 = vpop.xlane.xlu1 %2907  ;;  %v3379_v33 = vsel %vm1080_vm1, %v2911_v28, %v3039_v30 }
 0xc46   : > { %v3167_v0 = vpop.xlane.xlu0 %3166 }
 0xc47   : > { %v3164_v26 = vpop.xlane.xlu1 %3163  ;;  %v3395_v10 = vsel %vm1097_vm2, %v3379_v33, %v3167_v0 }
 0xc4a   : > { %v3343_v20 = vpop.xlane.xlu0 %3342 }
 0xc4b   : > { %v9211_v5 = vsel %vm1134_vm3, %v3395_v10, %v3343_v20  ;;  %v3340_v37 = vpop.xlane.xlu1 %3339 }
 0xc4c   : > { %v3438_v19 = vsel %vm3422_vm13, %v9211_v5, -inf }
 0xc4d   : > { %3439 = vmax.xlane.f32.xlu0 %v3438_v19 }
 0xc4e   : > { %v3036_v8 = vpop.xlane.xlu0 %3035 }
 0xc4f   : > { %v3378_v41 = vsel %vm1080_vm1, %v2908_v36, %v3036_v8  ;;  %v2917_v17 = vpop.xlane.xlu1 %2916 }
 0xc50   : > { %v3394_v14 = vsel %vm1097_vm2, %v3378_v41, %v3164_v26 }
 0xc51   : > { %v9218_v50 = vsel %vm1134_vm3, %v3394_v14, %v3340_v37 }
 0xc52   : > { %v3045_v35 = vpop.xlane.xlu0 %3044  ;;  %v3435_v44 = vsel %vm3422_vm13, %v9218_v50, -inf }
 0xc53   : > { %3436 = vmax.xlane.f32.xlu1 %v3435_v44  ;;  %v2914_v31 = vpop.xlane.xlu1 %2913  ;;  %v3381_v45 = vsel %vm1080_vm1, %v2917_v17, %v3045_v35 }
 0xc56   : > { %v3173_v6 = vpop.xlane.xlu0 %3172 }
 0xc57   : > { %v3170_v2 = vpop.xlane.xlu1 %3169  ;;  %v3397_v40 = vsel %vm1097_vm2, %v3381_v45, %v3173_v6 }
 0xc5a   : > { %v3349_v39 = vpop.xlane.xlu0 %3348 }
 0xc5b   : > { %v9225_v57 = vsel %vm1134_vm3, %v3397_v40, %v3349_v39  ;;  %v3346_v13 = vpop.xlane.xlu1 %3345 }
 0xc5c   : > { %v3444_v52 = vsel %vm3422_vm13, %v9225_v57, -inf }
 0xc5d   : > { %3445 = vmax.xlane.f32.xlu0 %v3444_v52 }
 0xc5e   : > { %v3042_v58 = vpop.xlane.xlu0 %3041 }
 0xc5f   : > { %v3380_v54 = vsel %vm1080_vm1, %v2914_v31, %v3042_v58  ;;  %v2923_v22 = vpop.xlane.xlu1 %2922 }
 0xc60   : > { %v3396_v16 = vsel %vm1097_vm2, %v3380_v54, %v3170_v2 }
 0xc61   : > { %v9232_v32 = vsel %vm1134_vm3, %v3396_v16, %v3346_v13 }
 0xc62   : > { %v3051_v55 = vpop.xlane.xlu0 %3050  ;;  %v3441_v24 = vsel %vm3422_vm13, %v9232_v32, -inf }
 0xc63   : > { %3442 = vmax.xlane.f32.xlu1 %v3441_v24  ;;  %v2920_v46 = vpop.xlane.xlu1 %2919  ;;  %v3383_v23 = vsel %vm1080_vm1, %v2923_v22, %v3051_v55 }
 0xc66   : > { %v3179_v56 = vpop.xlane.xlu0 %3178 }
 0xc67   : > { %v3176_v9 = vpop.xlane.xlu1 %3175  ;;  %v3399_v7 = vsel %vm1097_vm2, %v3383_v23, %v3179_v56 }
 0xc6a   : > { %v3355_v47 = vpop.xlane.xlu0 %3354 }
 0xc6b   : > { %v9239_v43 = vsel %vm1134_vm3, %v3399_v7, %v3355_v47  ;;  %v3352_v61 = vpop.xlane.xlu1 %3351 }
 0xc6c   : > { %v3450_v28 = vsel %vm3422_vm13, %v9239_v43, -inf }
 0xc6d   : > { %3451 = vmax.xlane.f32.xlu0 %v3450_v28 }
 0xc6e   : > { %v3048_v60 = vpop.xlane.xlu0 %3047 }
 0xc6f   : > { %v3382_v30 = vsel %vm1080_vm1, %v2920_v46, %v3048_v60  ;;  %v2929_v49 = vpop.xlane.xlu1 %2928 }
 0xc70   : > { %v3398_v36 = vsel %vm1097_vm2, %v3382_v30, %v3176_v9 }
 0xc71   : > { %v9246_v0 = vsel %vm1134_vm3, %v3398_v36, %v3352_v61 }
 0xc72   : > { %v3057_v26 = vpop.xlane.xlu0 %3056  ;;  %v3447_v33 = vsel %vm3422_vm13, %v9246_v0, -inf }
 0xc73   : > { %3448 = vmax.xlane.f32.xlu1 %v3447_v33  ;;  %v2926_v10 = vpop.xlane.xlu1 %2925  ;;  %v3385_v19 = vsel %vm1080_vm1, %v2929_v49, %v3057_v26 }
 0xc76   : > { %v3185_v20 = vpop.xlane.xlu0 %3184 }
 0xc77   : > { %v3182_v37 = vpop.xlane.xlu1 %3181  ;;  %v3401_v8 = vsel %vm1097_vm2, %v3385_v19, %v3185_v20 }
 0xc7a   : > { %v3361_v41 = vpop.xlane.xlu0 %3360 }
 0xc7b   : > { %v9253_v17 = vsel %vm1134_vm3, %v3401_v8, %v3361_v41  ;;  %v3358_v14 = vpop.xlane.xlu1 %3357 }
 0xc7c   : > { %v3456_v35 = vsel %vm3422_vm13, %v9253_v17, -inf }
 0xc7d   : > { %3457 = vmax.xlane.f32.xlu0 %v3456_v35 }
 0xc7e   : > { %v3054_v44 = vpop.xlane.xlu0 %3053 }
 0xc7f   : > { %v3384_v31 = vsel %vm1080_vm1, %v2926_v10, %v3054_v44  ;;  %v2935_v6 = vpop.xlane.xlu1 %2934 }
 0xc80   : > { %v3400_v2 = vsel %vm1097_vm2, %v3384_v31, %v3182_v37 }
 0xc81   : > { %v9260_v45 = vsel %vm1134_vm3, %v3400_v2, %v3358_v14 }
 0xc82   : > { %v3063_v40 = vpop.xlane.xlu0 %3062  ;;  %v3453_v39 = vsel %vm3422_vm13, %v9260_v45, -inf }
 0xc83   : > { %3454 = vmax.xlane.f32.xlu1 %v3453_v39  ;;  %v2932_v13 = vpop.xlane.xlu1 %2931  ;;  %v3387_v54 = vsel %vm1080_vm1, %v2935_v6, %v3063_v40  ;;  %v11238_v6 = vld [vmem:[#allocation29_spill] sm:$0xff] }
 0xc86   : > { %v3191_v52 = vpop.xlane.xlu0 %3190 }
 0xc87   : > { %v3188_v58 = vpop.xlane.xlu1 %3187  ;;  %v3403_v22 = vsel %vm1097_vm2, %v3387_v54, %v3191_v52 }
 0xc8a   : > { %v3367_v16 = vpop.xlane.xlu0 %3366 }
 0xc8b   : > { %v9267_v55 = vsel %vm1134_vm3, %v3403_v22, %v3367_v16  ;;  %v3364_v24 = vpop.xlane.xlu1 %3363 }
 0xc8c   : > { %v3462_v46 = vsel %vm3422_vm13, %v9267_v55, -inf }
 0xc8d   : > { %3463 = vmax.xlane.f32.xlu0 %v3462_v46 }
 0xc8e   : > { %v3060_v56 = vpop.xlane.xlu0 %3059 }
 0xc8f   : > { %v3386_v9 = vsel %vm1080_vm1, %v2932_v13, %v3060_v56  ;;  %v2941_v23 = vpop.xlane.xlu1 %2940 }
 0xc90   : > { %v3402_v7 = vsel %vm1097_vm2, %v3386_v9, %v3188_v58 }
 0xc91   : > { %v9274_v47 = vsel %vm1134_vm3, %v3402_v7, %v3364_v24 }
 0xc92   : > { %v3069_v61 = vpop.xlane.xlu0 %3068  ;;  %v3459_v28 = vsel %vm3422_vm13, %v9274_v47, -inf }
 0xc93   : > { %3460 = vmax.xlane.f32.xlu1 %v3459_v28  ;;  %v2938_v60 = vpop.xlane.xlu1 %2937  ;;  %v3389_v20 = vsel %vm1080_vm1, %v2941_v23, %v3069_v61 }
 0xc96   : > { %v3197_v30 = vpop.xlane.xlu0 %3196 }
 0xc97   : > { %v3194_v49 = vpop.xlane.xlu1 %3193  ;;  %v3405_v19 = vsel %vm1097_vm2, %v3389_v20, %v3197_v30 }
 0xc9a   : > { %v3066_v36 = vpop.xlane.xlu0 %3065 }
 0xc9b   : > { %v3388_v26 = vsel %vm1080_vm1, %v2938_v60, %v3066_v36  ;;  %v3370_v33 = vpop.xlane.xlu1 %3369 }
 0xc9c   : > { %v3404_v10 = vsel %vm1097_vm2, %v3388_v26, %v3194_v49 }
 0xc9d   : > { %v9282_v37 = vsel %vm1134_vm3, %v3404_v10, %v3370_v33 }
 0xc9e   : > { %v3373_v8 = vpop.xlane.xlu0 %3372  ;;  %v3465_v41 = vsel %vm3422_vm13, %v9282_v37, -inf }
 0xc9f   : > { %v9288_v14 = vsel %vm1134_vm3, %v3405_v19, %v3373_v8  ;;  %3466 = vmax.xlane.f32.xlu1 %v3465_v41 }
 0xca0   : > { %v3468_v35 = vsel %vm3422_vm13, %v9288_v14, -inf }
 0xca1   : > { %3469 = vmax.xlane.f32.xlu0 %v3468_v35 }
 0xcba   : > { %v3428_v44 = vpop.xlane.xlu0 %3427 }
 0xcbb   : > { %v9293_v31 = vsub.f32 %v9183_v21, %v3428_v44 }
 0xcbd   : > { %vm3488_vm1 = vcmp.eq.f32.partialorder %v9293_v31, 0.0 }
 0xcbe   : > { %v3504_v2 = vsel %vm3488_vm1, %v11238_v6, 4 }
 0xcbf   : > { %v9298_v40 = vsel %vm3422_vm13, %v3504_v2, 2147483647 }
 0xcc0   : > { %v3425_v39 = vpop.xlane.xlu1 %3424  ;;  %v3536_v13 = vshra.s32 %v9298_v40, 16 }
 0xcc1   : > { %v9302_v52 = vsub.f32 %v9190_v51, %v3425_v39 }
 0xcc2   : > { %v9304_v58 = vcvt.s32.f32 %v3536_v13 }
 0xcc3   : > { %vm3487_vm2 = vcmp.eq.f32.partialorder %v9302_v52, 0.0 }
 0xcc4   : > { %v3503_v21 = vsel %vm3487_vm2, %v11238_v6, 4  ;;  %3539 = vmin.xlane.f32.xlu0 %v9304_v58 }
 0xcc5   : > { %v9310_v54 = vsel %vm3422_vm13, %v3503_v21, 2147483647 }
 0xcc6   : > { %v3521_v22 = vshra.s32 %v9310_v54, 16 }
 0xcc8   : > { %v9313_v16 = vcvt.s32.f32 %v3521_v22 }
 0xcca   : > { %v3434_v24 = vpop.xlane.xlu0 %3433  ;;  %3524 = vmin.xlane.f32.xlu1 %v9313_v16 }
 0xccb   : > { %v9317_v51 = vsub.f32 %v9197_v63, %v3434_v24 }
 0xccd   : > { %vm3490_vm14 = vcmp.eq.f32.partialorder %v9317_v51, 0.0 }
 0xcce   : > { %v3506_v46 = vsel %vm3490_vm14, %v11238_v6, 4 }
 0xccf   : > { %v9322_v56 = vsel %vm3422_vm13, %v3506_v46, 2147483647 }
 0xcd0   : > { %v3431_v9 = vpop.xlane.xlu1 %3430  ;;  %v3566_v23 = vshra.s32 %v9322_v56, 16 }
 0xcd1   : > { %v9326_v7 = vsub.f32 %v9204_v25, %v3431_v9 }
 0xcd2   : > { %v9328_v61 = vcvt.s32.f32 %v3566_v23 }
 0xcd3   : > { %vm3489_vm15 = vcmp.eq.f32.partialorder %v9326_v7, 0.0 }
 0xcd4   : > { %v3505_v63 = vsel %vm3489_vm15, %v11238_v6, 4  ;;  %3569 = vmin.xlane.f32.xlu0 %v9328_v61 }
 0xcd5   : > { %v9334_v28 = vsel %vm3422_vm13, %v3505_v63, 2147483647 }
 0xcd6   : > { %v3551_v60 = vshra.s32 %v9334_v28, 16 }
 0xcd8   : > { %v9337_v30 = vcvt.s32.f32 %v3551_v60 }
 0xcda   : > { %v3440_v49 = vpop.xlane.xlu0 %3439  ;;  %3554 = vmin.xlane.f32.xlu1 %v9337_v30 }
 0xcdb   : > { %v9341_v25 = vsub.f32 %v9211_v5, %v3440_v49 }
 0xcdd   : > { %vm3492_vm4 = vcmp.eq.f32.partialorder %v9341_v25, 0.0 }
 0xcde   : > { %v3508_v36 = vsel %vm3492_vm4, %v11238_v6, 4 }
 0xcdf   : > { %v9346_v26 = vsel %vm3422_vm13, %v3508_v36, 2147483647 }
 0xce0   : > { %v3437_v33 = vpop.xlane.xlu1 %3436  ;;  %v3596_v10 = vshra.s32 %v9346_v26, 16 }
 0xce1   : > { %v9350_v20 = vsub.f32 %v9218_v50, %v3437_v33 }
 0xce2   : > { %v9352_v19 = vcvt.s32.f32 %v3596_v10 }
 0xce3   : > { %vm3491_vm5 = vcmp.eq.f32.partialorder %v9350_v20, 0.0 }
 0xce4   : > { %v3507_v5 = vsel %vm3491_vm5, %v11238_v6, 4  ;;  %3599 = vmin.xlane.f32.xlu0 %v9352_v19 }
 0xce5   : > { %v9358_v8 = vsel %vm3422_vm13, %v3507_v5, 2147483647 }
 0xce6   : > { %v3581_v41 = vshra.s32 %v9358_v8, 16 }
 0xce8   : > { %v9361_v35 = vcvt.s32.f32 %v3581_v41 }
 0xcea   : > { %v3446_v44 = vpop.xlane.xlu0 %3445  ;;  %3584 = vmin.xlane.f32.xlu1 %v9361_v35 }
 0xceb   : > { %v9365_v50 = vsub.f32 %v9225_v57, %v3446_v44 }
 0xced   : > { %vm3494_vm6 = vcmp.eq.f32.partialorder %v9365_v50, 0.0 }
 0xcee   : > { %v3510_v2 = vsel %vm3494_vm6, %v11238_v6, 4 }
 0xcef   : > { %v9370_v39 = vsel %vm3422_vm13, %v3510_v2, 2147483647 }
 0xcf0   : > { %v3443_v13 = vpop.xlane.xlu1 %3442  ;;  %v3626_v21 = vshra.s32 %v9370_v39, 16 }
 0xcf1   : > { %v9374_v22 = vsub.f32 %v9232_v32, %v3443_v13 }
 0xcf2   : > { %v9376_v24 = vcvt.s32.f32 %v3626_v21 }
 0xcf3   : > { %vm3493_vm7 = vcmp.eq.f32.partialorder %v9374_v22, 0.0 }
 0xcf4   : > { %v3509_v57 = vsel %vm3493_vm7, %v11238_v6, 4  ;;  %3629 = vmin.xlane.f32.xlu0 %v9376_v24 }
 0xcf5   : > { %v9382_v46 = vsel %vm3422_vm13, %v3509_v57, 2147483647 }
 0xcf6   : > { %v3611_v9 = vshra.s32 %v9382_v46, 16 }
 0xcf8   : > { %v9385_v23 = vcvt.s32.f32 %v3611_v9 }
 0xcfa   : > { %v3452_v63 = vpop.xlane.xlu0 %3451  ;;  %3614 = vmin.xlane.f32.xlu1 %v9385_v23 }
 0xcfb   : > { %v9389_v32 = vsub.f32 %v9239_v43, %v3452_v63 }
 0xcfd   : > { %vm3496_vm8 = vcmp.eq.f32.partialorder %v9389_v32, 0.0 }
 0xcfe   : > { %v3512_v60 = vsel %vm3496_vm8, %v11238_v6, 4 }
 0xcff   : > { %v9394_v49 = vsel %vm3422_vm13, %v3512_v60, 2147483647 }
 0xd00   : > { %v3449_v36 = vpop.xlane.xlu1 %3448  ;;  %v3656_v33 = vshra.s32 %v9394_v49, 16 }
 0xd01   : > { %v9398_v10 = vsub.f32 %v9246_v0, %v3449_v36 }
 0xd02   : > { %v9400_v5 = vcvt.s32.f32 %v3656_v33 }
 0xd03   : > { %vm3495_vm9 = vcmp.eq.f32.partialorder %v9398_v10, 0.0 }
 0xd04   : > { %v3511_v43 = vsel %vm3495_vm9, %v11238_v6, 4  ;;  %3659 = vmin.xlane.f32.xlu0 %v9400_v5 }
 0xd05   : > { %v9406_v41 = vsel %vm3422_vm13, %v3511_v43, 2147483647 }
 0xd06   : > { %v3641_v44 = vshra.s32 %v9406_v41, 16 }
 0xd08   : > { %v9409_v2 = vcvt.s32.f32 %v3641_v44 }
 0xd0a   : > { %v3458_v13 = vpop.xlane.xlu0 %3457  ;;  %3644 = vmin.xlane.f32.xlu1 %v9409_v2 }
 0xd0b   : > { %v9413_v0 = vsub.f32 %v9253_v17, %v3458_v13 }
 0xd0d   : > { %vm3498_vm10 = vcmp.eq.f32.partialorder %v9413_v0, 0.0 }
 0xd0e   : > { %v3514_v21 = vsel %vm3498_vm10, %v11238_v6, 4 }
 0xd0f   : > { %v9418_v57 = vsel %vm3422_vm13, %v3514_v21, 2147483647 }
 0xd10   : > { %v3455_v9 = vpop.xlane.xlu1 %3454  ;;  %v3686_v63 = vshra.s32 %v9418_v57, 16 }
 0xd11   : > { %v9422_v60 = vsub.f32 %v9260_v45, %v3455_v9 }
 0xd12   : > { %v9424_v36 = vcvt.s32.f32 %v3686_v63 }
 0xd13   : > { %vm3497_vm11 = vcmp.eq.f32.partialorder %v9422_v60, 0.0 }
 0xd14   : > { %v3513_v17 = vsel %vm3497_vm11, %v11238_v6, 4  ;;  %3689 = vmin.xlane.f32.xlu0 %v9424_v36 }
 0xd15   : > { %v9430_v33 = vsel %vm3422_vm13, %v3513_v17, 2147483647 }
 0xd16   : > { %v3671_v43 = vshra.s32 %v9430_v33, 16 }
 0xd18   : > { %v9433_v44 = vcvt.s32.f32 %v3671_v43 }
 0xd1a   : > { %v3464_v13 = vpop.xlane.xlu0 %3463  ;;  %3674 = vmin.xlane.f32.xlu1 %v9433_v44 }
 0xd1b   : > { %v9437_v45 = vsub.f32 %v9267_v55, %v3464_v13 }
 0xd1d   : > { %vm3500_vm12 = vcmp.eq.f32.partialorder %v9437_v45, 0.0 }
 0xd1e   : > { %v3516_v21 = vsel %vm3500_vm12, %v11238_v6, 4 }
 0xd1f   : > { %v9442_v9 = vsel %vm3422_vm13, %v3516_v21, 2147483647 }
 0xd20   : > { %v3461_v63 = vpop.xlane.xlu1 %3460  ;;  %v3716_v17 = vshra.s32 %v9442_v9, 16 }
 0xd21   : > { %v9446_v29 = vsub.f32 %v9274_v47, %v3461_v63 }
 0xd22   : > { %v9448_v43 = vcvt.s32.f32 %v3716_v17 }
 0xd23   : > { %11239 = vst [vmem:[#allocation107_spill] sm:$0xff] %v9446_v29  ;;  %vm3499_vm1 = vcmp.eq.f32.partialorder %v9446_v29, 0.0 }
 0xd24   : > { %v3515_v55 = vsel %vm3499_vm1, %v11238_v6, 4  ;;  %3719 = vmin.xlane.f32.xlu0 %v9448_v43 }
 0xd25   : > { %v9454_v13 = vsel %vm3422_vm13, %v3515_v55, 2147483647 }
 0xd26   : > { %v3701_v21 = vshra.s32 %v9454_v13, 16 }
 0xd28   : > { %v9457_v34 = vcvt.s32.f32 %v3701_v21 }
 0xd2a   : > { %3704 = vmin.xlane.f32.xlu1 %v9457_v34 }
 0xd2c   : > { %v3467_v15 = vpop.xlane.xlu1 %3466 }
 0xd2d   : > { %v9461_v47 = vsub.f32 %v9282_v37, %v3467_v15 }
 0xd2e   : > { %v3470_v63 = vpop.xlane.xlu0 %3469 }
 0xd2f   : > { %11240 = vst [vmem:[#allocation19_spill] sm:$0xff] %v9461_v47  ;;  %vm3501_vm2 = vcmp.eq.f32.partialorder %v9461_v47, 0.0  ;;  %v9465_v17 = vsub.f32 %v9288_v14, %v3470_v63 }
 0xd30   : > { %v3517_v11 = vsel %vm3501_vm2, %v11238_v6, 4 }
 0xd31   : > { %11241 = vst [vmem:[#allocation74_spill] sm:$0xff] %v9465_v17  ;;  %vm3502_vm14 = vcmp.eq.f32.partialorder %v9465_v17, 0.0  ;;  %v9470_v55 = vsel %vm3422_vm13, %v3517_v11, 2147483647  ;;  %v3535_v11 = vand.u32 65535, %v9298_v40  ;;  %v3565_v40 = vand.u32 65535, %v9322_v56 }
 0xd32   : > { %v3518_v21 = vsel %vm3502_vm14, %v11238_v6, 4  ;;  %v3731_v3 = vshra.s32 %v9470_v55, 16  ;;  %v6681_v56 = vmov 2  }
 0xd33   : > { %v9475_v15 = vsel %vm3422_vm13, %v3518_v21, 2147483647  ;;  %v3537_v47 = vcvt.s32.f32 %v3535_v11  ;;  %v3567_v11 = vcvt.s32.f32 %v3565_v40  ;;  %5905 = vset.pattern.permute.xlu0 %v6681_v56  ;;  %v3580_v40 = vand.u32 65535, %v9358_v8 }
 0xd34   : > { %v9477_v37 = vcvt.s32.f32 %v3731_v3  ;;  %v3746_v1 = vshra.s32 %v9475_v15, 16  ;;  %v3520_v3 = vand.u32 65535, %v9310_v54  ;;  %v3550_v54 = vand.u32 65535, %v9334_v28 }
 0xd35   : > { %v3610_v8 = vand.u32 65535, %v9382_v46  ;;  %v3640_v46 = vand.u32 65535, %v9406_v41  ;;  %v3670_v41 = vand.u32 65535, %v9430_v33  ;;  %v3700_v33 = vand.u32 65535, %v9454_v13 }
 0xd36   : > { %3734 = vmin.xlane.f32.xlu1 %v9477_v37  ;;  %v9481_v14 = vcvt.s32.f32 %v3746_v1  ;;  %v3522_v62 = vcvt.s32.f32 %v3520_v3  ;;  %v6682_v3 = vmov 1  }
 0xd37   : > { %5899 = vset.pattern.permute.xlu1 %v6682_v3 }
 0xd38   : > { %3749 = vmin.xlane.f32.xlu0 %v9481_v14 }
 0xd51   : > { %v9485_v63 = vpop.xlane.xlu0 %3539 }
 0xd52   : > { %vm3541_vm15 = vcmp.eq.f32.partialorder %v9304_v58, %v9485_v63 }
 0xd53   : > { %v3542_v21 = vsel %vm3541_vm15, %v3537_v47, inf }
 0xd54   : > { %3543 = vmin.xlane.f32.xlu0 %v3542_v21  ;;  %v3552_v21 = vcvt.s32.f32 %v3550_v54 }
 0xd57   : > { %v9490_v17 = vpop.xlane.xlu1 %3524 }
 0xd58   : > { %vm3526_vm4 = vcmp.eq.f32.partialorder %v9313_v16, %v9490_v17  ;;  %v3595_v16 = vand.u32 65535, %v9346_v26 }
 0xd59   : > { %v3527_v1 = vsel %vm3526_vm4, %v3522_v62, inf }
 0xd5a   : > { %3528 = vmin.xlane.f32.xlu1 %v3527_v1  ;;  %v3597_v28 = vcvt.s32.f32 %v3595_v16  ;;  %v3612_v16 = vcvt.s32.f32 %v3610_v8 }
 0xd61   : > { %v9495_v29 = vpop.xlane.xlu0 %3569 }
 0xd62   : > { %vm3571_vm5 = vcmp.eq.f32.partialorder %v9328_v61, %v9495_v29 }
 0xd63   : > { %v3572_v58 = vsel %vm3571_vm5, %v3567_v11, inf  ;;  %v3582_v11 = vcvt.s32.f32 %v3580_v40 }
 0xd64   : > { %3573 = vmin.xlane.f32.xlu0 %v3572_v58  ;;  %v3625_v58 = vand.u32 65535, %v9370_v39  ;;  %v3655_v39 = vand.u32 65535, %v9394_v49  ;;  %v3685_v49 = vand.u32 65535, %v9418_v57  ;;  %v3715_v57 = vand.u32 65535, %v9442_v9 }
 0xd65   : > { %v3730_v9 = vand.u32 65535, %v9470_v55  ;;  %v3546_v55 = vcvt.f32.s32 %v9485_v63 }
 0xd67   : > { %v9500_v47 = vpop.xlane.xlu1 %3554 }
 0xd68   : > { %vm3556_vm6 = vcmp.eq.f32.partialorder %v9337_v30, %v9500_v47 }
 0xd69   : > { %v3557_v62 = vsel %vm3556_vm6, %v3552_v21, inf  ;;  %v3627_v21 = vcvt.s32.f32 %v3625_v58  ;;  %v3687_v58 = vcvt.s32.f32 %v3685_v49  ;;  %v3547_v49 = vshll.u32 %v3546_v55, 16 }
 0xd6a   : > { %3558 = vmin.xlane.f32.xlu1 %v3557_v62 }
 0xd71   : > { %v9507_v61 = vpop.xlane.xlu0 %3599 }
 0xd72   : > { %vm3601_vm7 = vcmp.eq.f32.partialorder %v9352_v19, %v9507_v61 }
 0xd73   : > { %v3602_v1 = vsel %vm3601_vm7, %v3597_v28, inf }
 0xd74   : > { %3603 = vmin.xlane.f32.xlu0 %v3602_v1  ;;  %v3657_v1 = vcvt.s32.f32 %v3655_v39  ;;  %v3702_v39 = vcvt.s32.f32 %v3700_v33 }
 0xd77   : > { %v9512_v30 = vpop.xlane.xlu1 %3584 }
 0xd78   : > { %vm3586_vm8 = vcmp.eq.f32.partialorder %v9361_v35, %v9512_v30 }
 0xd79   : > { %v3587_v26 = vsel %vm3586_vm8, %v3582_v11, inf  ;;  %v3642_v11 = vcvt.s32.f32 %v3640_v46  ;;  %v3732_v46 = vcvt.s32.f32 %v3730_v9  ;;  %v6684_v9 = vmov 3  }
 0xd7a   : > { %3588 = vmin.xlane.f32.xlu1 %v3587_v26 }
 0xd81   : > { %v9517_v54 = vpop.xlane.xlu0 %3629 }
 0xd82   : > { %vm3631_vm9 = vcmp.eq.f32.partialorder %v9376_v24, %v9517_v54 }
 0xd83   : > { %v3632_v19 = vsel %vm3631_vm9, %v3627_v21, inf }
 0xd84   : > { %3633 = vmin.xlane.f32.xlu0 %v3632_v19  ;;  %v3672_v19 = vcvt.s32.f32 %v3670_v41 }
 0xd87   : > { %v9522_v62 = vpop.xlane.xlu1 %3614 }
 0xd88   : > { %vm3616_vm10 = vcmp.eq.f32.partialorder %v9385_v23, %v9522_v62 }
 0xd89   : > { %v3617_v35 = vsel %vm3616_vm10, %v3612_v16, inf  ;;  %v3717_v16 = vcvt.s32.f32 %v3715_v57 }
 0xd8a   : > { %3618 = vmin.xlane.f32.xlu1 %v3617_v35 }
 0xd91   : > { %v9527_v28 = vpop.xlane.xlu0 %3659 }
 0xd92   : > { %vm3661_vm11 = vcmp.eq.f32.partialorder %v9400_v5, %v9527_v28 }
 0xd93   : > { %v3662_v24 = vsel %vm3661_vm11, %v3657_v1, inf  ;;  %v3745_v1 = vand.u32 65535, %v9475_v15 }
 0xd94   : > { %3663 = vmin.xlane.f32.xlu0 %v3662_v24 }
 0xd97   : > { %v9532_v40 = vpop.xlane.xlu1 %3644 }
 0xd98   : > { %vm3646_vm12 = vcmp.eq.f32.partialorder %v9409_v2, %v9532_v40 }
 0xd99   : > { %v3647_v23 = vsel %vm3646_vm12, %v3642_v11, inf  ;;  %v3747_v11 = vcvt.s32.f32 %v3745_v1  ;;  %v6685_v1 = vmov 0  }
 0xd9a   : > { %3648 = vmin.xlane.f32.xlu1 %v3647_v23 }
 0xda1   : > { %v9537_v26 = vpop.xlane.xlu0 %3689 }
 0xda2   : > { %vm3691_vm1 = vcmp.eq.f32.partialorder %v9424_v36, %v9537_v26 }
 0xda3   : > { %v3692_v5 = vsel %vm3691_vm1, %v3687_v58, inf  ;;  %v3531_v58 = vcvt.f32.s32 %v9490_v17  ;;  %v3576_v17 = vcvt.f32.s32 %v9495_v29 }
 0xda4   : > { %3693 = vmin.xlane.f32.xlu0 %v3692_v5 }
 0xda5   : > { %v3532_v41 = vshll.u32 %v3531_v58, 16 }
 0xda7   : > { %v9542_v21 = vpop.xlane.xlu1 %3674 }
 0xda8   : > { %vm3676_vm2 = vcmp.eq.f32.partialorder %v9433_v44, %v9542_v21 }
 0xda9   : > { %v3677_v2 = vsel %vm3676_vm2, %v3672_v19, inf }
 0xdaa   : > { %3678 = vmin.xlane.f32.xlu1 %v3677_v2 }
 0xdb1   : > { %v9547_v8 = vpop.xlane.xlu0 %3719 }
 0xdb2   : > { %vm3721_vm14 = vcmp.eq.f32.partialorder %v9448_v43, %v9547_v8 }
 0xdb3   : > { %v3722_v36 = vsel %vm3721_vm14, %v3717_v16, inf }
 0xdb4   : > { %3723 = vmin.xlane.f32.xlu0 %v3722_v36 }
 0xdb7   : > { %v9552_v35 = vpop.xlane.xlu1 %3704 }
 0xdb8   : > { %vm3706_vm15 = vcmp.eq.f32.partialorder %v9457_v34, %v9552_v35 }
 0xdb9   : > { %v3707_v44 = vsel %vm3706_vm15, %v3702_v39, inf  ;;  %v3577_v39 = vshll.u32 %v3576_v17, 16 }
 0xdba   : > { %3708 = vmin.xlane.f32.xlu1 %v3707_v44  ;;  %v3561_v44 = vcvt.f32.s32 %v9500_v47 }
 0xdc3   : > { %v9558_v24 = vpop.xlane.xlu1 %3734 }
 0xdc4   : > { %vm3736_vm4 = vcmp.eq.f32.partialorder %v9477_v37, %v9558_v24 }
 0xdc5   : > { %v9562_v43 = vpop.xlane.xlu0 %3749  ;;  %v3737_v13 = vsel %vm3736_vm4, %v3732_v46, inf }
 0xdc6   : > { %3738 = vmin.xlane.f32.xlu1 %v3737_v13  ;;  %vm3751_vm5 = vcmp.eq.f32.partialorder %v9481_v14, %v9562_v43  ;;  %v6683_v14 = vmov 0.0  }
 0xdc7   : > { %v3752_v34 = vsel %vm3751_vm5, %v3747_v11, inf  ;;  %v3562_v11 = vshll.u32 %v3561_v44, 16 }
 0xdc8   : > { %3753 = vmin.xlane.f32.xlu0 %v3752_v34 }
 0xde1   : > { %v3544_v23 = vpop.xlane.xlu0 %3543 }
 0xde2   : > { %v3545_v15 = vcvt.f32.s32 %v3544_v23 }
 0xde4   : > { %v9568_v5 = vadd.s32 %v3547_v49, %v3545_v15  ;;  %v3606_v15 = vcvt.f32.s32 %v9507_v61 }
 0xde6   : > { %11242 = vst [vmem:[#allocation89_spill] sm:$0xff] %v9568_v5  ;;  %vm3760_vm6 = vcmp.eq.s32.totalorder %v11238_v6, %v9568_v5 }
 0xde7   : > { %v3529_v37 = vpop.xlane.xlu1 %3528  ;;  %v5559_v63 = vsel %vm3760_vm6, 1.0, %v6683_v14 }
 0xde8   : > { %v3530_v19 = vcvt.f32.s32 %v3529_v37  ;;  %v3607_v37 = vshll.u32 %v3606_v15, 16 }
 0xdea   : > { %v9572_v2 = vadd.s32 %v3532_v41, %v3530_v19  ;;  %v3591_v41 = vcvt.f32.s32 %v9512_v30 }
 0xdec   : > { %11243 = vst [vmem:[#allocation99_spill] sm:$0xff] %v9572_v2  ;;  %vm3759_vm7 = vcmp.eq.s32.totalorder %v11238_v6, %v9572_v2 }
 0xded   : > { %v5558_v57 = vsel %vm3759_vm7, 1.0, %v6683_v14 }
 0xdee   : > { %v5906_v16 = vpack.i.bf16 %v5559_v63, %v5558_v57  ;;  %v3592_v57 = vshll.u32 %v3591_v41, 16 }
 0xdf0   : > { %5907 = vperm.xlu0 %5905, %v5906_v16   ;;  %5901 = vperm.xlu1 %5899, %v5906_v16  }
 0xdf1   : > { %v3574_v36 = vpop.xlane.xlu0 %3573 }
 0xdf2   : > { %v3575_v33 = vcvt.f32.s32 %v3574_v36 }
 0xdf4   : > { %5911 = vset.pattern.permute.xlu1 %v6684_v9  ;;  %5941 = vset.pattern.permute.xlu0 %v6685_v1  ;;  %v9582_v46 = vadd.s32 %v3577_v39, %v3575_v33  ;;  %v3636_v33 = vcvt.f32.s32 %v9517_v54 }
 0xdf5   : > { %5913 = vperm.xlu1 %5911, %v5906_v16  }
 0xdf6   : > { %11244 = vst [vmem:[#allocation75_spill] sm:$0xff] %v9582_v46  ;;  %vm3762_vm8 = vcmp.eq.s32.totalorder %v11238_v6, %v9582_v46 }
 0xdf7   : > { %v3559_v13 = vpop.xlane.xlu1 %3558  ;;  %v5561_v47 = vsel %vm3762_vm8, 1.0, %v6683_v14 }
 0xdf8   : > { %v3560_v34 = vcvt.f32.s32 %v3559_v13  ;;  %v3637_v13 = vshll.u32 %v3636_v33, 16 }
 0xdf9   : > { %5917 = vset.pattern.permute.xlu1 %v6685_v1 }
 0xdfa   : > { %v9587_v29 = vadd.s32 %v3562_v11, %v3560_v34  ;;  %5919 = vperm.xlu1 %5917, %v5906_v16   ;;  %v3621_v11 = vcvt.f32.s32 %v9522_v62 }
 0xdfc   : > { %11245 = vst [vmem:[#allocation96_spill] sm:$0xff] %v9587_v29  ;;  %vm3761_vm9 = vcmp.eq.s32.totalorder %v11238_v6, %v9587_v29 }
 0xdfd   : > { %v5560_v55 = vsel %vm3761_vm9, 1.0, %v6683_v14  ;;  %vm4531_vm9 = vcmask 523264  }
 0xdfe   : > { %5923 = vset.pattern.permute.xlu1 %v6682_v3  ;;  %v5942_v23 = vpack.i.bf16 %v5561_v47, %v5560_v55  ;;  %v3622_v55 = vshll.u32 %v3621_v11, 16 }
 0xe00   : > { %5943 = vperm.xlu0 %5941, %v5942_v23   ;;  %5925 = vperm.xlu1 %5923, %v5942_v23  }
 0xe01   : > { %v3604_v49 = vpop.xlane.xlu0 %3603 }
 0xe02   : > { %v3605_v58 = vcvt.f32.s32 %v3604_v49 }
 0xe04   : > { %5929 = vset.pattern.permute.xlu1 %v6681_v56  ;;  %5977 = vset.pattern.permute.xlu0 %v6681_v56  ;;  %v9598_v19 = vadd.s32 %v3607_v37, %v3605_v58  ;;  %v3666_v58 = vcvt.f32.s32 %v9527_v28 }
 0xe05   : > { %5931 = vperm.xlu1 %5929, %v5942_v23  }
 0xe06   : > { %11246 = vst [vmem:[#allocation22_spill] sm:$0xff] %v9598_v19  ;;  %vm3764_vm10 = vcmp.eq.s32.totalorder %v11238_v6, %v9598_v19 }
 0xe07   : > { %v3589_v63 = vpop.xlane.xlu1 %3588  ;;  %v5563_v30 = vsel %vm3764_vm10, 1.0, %v6683_v14 }
 0xe08   : > { %v3590_v16 = vcvt.f32.s32 %v3589_v63  ;;  %v3667_v63 = vshll.u32 %v3666_v58, 16 }
 0xe09   : > { %5935 = vset.pattern.permute.xlu1 %v6684_v9 }
 0xe0a   : > { %v9603_v61 = vadd.s32 %v3592_v57, %v3590_v16  ;;  %5937 = vperm.xlu1 %5935, %v5942_v23   ;;  %v3651_v57 = vcvt.f32.s32 %v9532_v40 }
 0xe0c   : > { %11247 = vst [vmem:[#allocation108_spill] sm:$0xff] %v9603_v61  ;;  %vm3763_vm11 = vcmp.eq.s32.totalorder %v11238_v6, %v9603_v61 }
 0xe0d   : > { %v5562_v17 = vsel %vm3763_vm11, 1.0, %v6683_v14 }
 0xe0e   : > { %5947 = vset.pattern.permute.xlu1 %v6682_v3  ;;  %v5948_v36 = vpack.i.bf16 %v5563_v30, %v5562_v17  ;;  %v3652_v17 = vshll.u32 %v3651_v57, 16 }
 0xe10   : > { %5949 = vperm.xlu1 %5947, %v5948_v36  }
 0xe11   : > { %v3634_v39 = vpop.xlane.xlu0 %3633 }
 0xe12   : > { %v3635_v44 = vcvt.f32.s32 %v3634_v39 }
 0xe14   : > { %5953 = vset.pattern.permute.xlu1 %v6681_v56  ;;  %v9613_v34 = vadd.s32 %v3637_v13, %v3635_v44  ;;  %v3696_v44 = vcvt.f32.s32 %v9537_v26 }
 0xe15   : > { %5955 = vperm.xlu1 %5953, %v5948_v36  }
 0xe16   : > { %11248 = vst [vmem:[#allocation109_spill] sm:$0xff] %v9613_v34  ;;  %vm3766_vm12 = vcmp.eq.s32.totalorder %v11238_v6, %v9613_v34 }
 0xe17   : > { %v3619_v47 = vpop.xlane.xlu1 %3618  ;;  %v5565_v62 = vsel %vm3766_vm12, 1.0, %v6683_v14 }
 0xe18   : > { %v3620_v23 = vcvt.f32.s32 %v3619_v47  ;;  %v3697_v47 = vshll.u32 %v3696_v44, 16 }
 0xe19   : > { %5959 = vset.pattern.permute.xlu1 %v6684_v9 }
 0xe1a   : > { %v9618_v54 = vadd.s32 %v3622_v55, %v3620_v23  ;;  %5961 = vperm.xlu1 %5959, %v5948_v36   ;;  %v3681_v55 = vcvt.f32.s32 %v9542_v21 }
 0xe1c   : > { %11249 = vst [vmem:[#allocation21_spill] sm:$0xff] %v9618_v54  ;;  %vm3765_vm1 = vcmp.eq.s32.totalorder %v11238_v6, %v9618_v54  ;;  %v9837_v54 = vld [vmem:[%s6847_s3 + $0xe0] sm:$0xff] }
 0xe1d   : > { %v5564_v15 = vsel %vm3765_vm1, 1.0, %v6683_v14  ;;  %11263 = vst [vmem:[#allocation117_spill] sm:$0xff] %v9837_v54 }
 0xe1e   : > { %5965 = vset.pattern.permute.xlu1 %v6685_v1  ;;  %v5978_v49 = vpack.i.bf16 %v5565_v62, %v5564_v15  ;;  %v3682_v15 = vshll.u32 %v3681_v55, 16 }
 0xe1f   : > { %5967 = vperm.xlu1 %5965, %v5948_v36  }
 0xe20   : > { %5979 = vperm.xlu0 %5977, %v5978_v49  }
 0xe21   : > { %v3664_v37 = vpop.xlane.xlu0 %3663 }
 0xe22   : > { %v3665_v41 = vcvt.f32.s32 %v3664_v37 }
 0xe23   : > { %5971 = vset.pattern.permute.xlu1 %v6682_v3 }
 0xe24   : > { %5983 = vset.pattern.permute.xlu0 %v6684_v9  ;;  %5973 = vperm.xlu1 %5971, %v5978_v49   ;;  %v9629_v16 = vadd.s32 %v3667_v63, %v3665_v41  ;;  %v3726_v41 = vcvt.f32.s32 %v9547_v8 }
 0xe25   : > { %5985 = vperm.xlu0 %5983, %v5978_v49  }
 0xe26   : > { %11250 = vst [vmem:[#allocation76_spill] sm:$0xff] %v9629_v16  ;;  %vm3768_vm2 = vcmp.eq.s32.totalorder %v11238_v6, %v9629_v16 }
 0xe27   : > { %v3649_v30 = vpop.xlane.xlu1 %3648  ;;  %v5567_v40 = vsel %vm3768_vm2, 1.0, %v6683_v14 }
 0xe28   : > { %v3650_v33 = vcvt.f32.s32 %v3649_v30  ;;  %v3727_v30 = vshll.u32 %v3726_v41, 16 }
 0xe29   : > { %5989 = vset.pattern.permute.xlu0 %v6685_v1 }
 0xe2a   : > { %v9634_v28 = vadd.s32 %v3652_v17, %v3650_v33  ;;  %5991 = vperm.xlu0 %5989, %v5978_v49   ;;  %v3711_v17 = vcvt.f32.s32 %v9552_v35 }
 0xe2c   : > { %11251 = vst [vmem:[#allocation115_spill] sm:$0xff] %v9634_v28  ;;  %vm3767_vm14 = vcmp.eq.s32.totalorder %v11238_v6, %v9634_v28 }
 0xe2d   : > { %v5566_v36 = vsel %vm3767_vm14, 1.0, %v6683_v14 }
 0xe2e   : > { %6006 = vset.pattern.permute.xlu0 %v6684_v9  ;;  %v6007_v39 = vpack.i.bf16 %v5567_v40, %v5566_v36  ;;  %v3712_v36 = vshll.u32 %v3711_v17, 16 }
 0xe30   : > { %6008 = vperm.xlu0 %6006, %v6007_v39   ;;  %5996 = vperm.xlu1 %5971, %v6007_v39  }
 0xe31   : > { %v3694_v13 = vpop.xlane.xlu0 %3693 }
 0xe32   : > { %v3695_v11 = vcvt.f32.s32 %v3694_v13  ;;  %v3741_v13 = vcvt.f32.s32 %v9558_v24 }
 0xe34   : > { %6000 = vset.pattern.permute.xlu1 %v6681_v56  ;;  %6036 = vset.pattern.permute.xlu0 %v6685_v1  ;;  %v9645_v23 = vadd.s32 %v3697_v47, %v3695_v11  ;;  %v3756_v11 = vcvt.f32.s32 %v9562_v43  ;;  %v3742_v55 = vshll.u32 %v3741_v13, 16  ;;  %v220_v13 = vld [vmem:[#allocation5 + $0x40] sm:$0xff] }
 0xe35   : > { %6002 = vperm.xlu1 %6000, %v6007_v39  }
 0xe36   : > { %11252 = vst [vmem:[#allocation90_spill] sm:$0xff] %v9645_v23  ;;  %vm3770_vm15 = vcmp.eq.s32.totalorder %v11238_v6, %v9645_v23 }
 0xe37   : > { %v3679_v62 = vpop.xlane.xlu1 %3678  ;;  %v5569_v21 = vsel %vm3770_vm15, 1.0, %v6683_v14 }
 0xe38   : > { %v3680_v49 = vcvt.f32.s32 %v3679_v62 }
 0xe39   : > { %6012 = vset.pattern.permute.xlu1 %v6685_v1 }
 0xe3a   : > { %v9650_v26 = vadd.s32 %v3682_v15, %v3680_v49  ;;  %6014 = vperm.xlu1 %6012, %v6007_v39   ;;  %v3757_v49 = vshll.u32 %v3756_v11, 16  ;;  %v221_v11 = vld [vmem:[#allocation5 + $0x48] sm:$0xff] }
 0xe3c   : > { %11253 = vst [vmem:[#allocation100_spill] sm:$0xff] %v9650_v26  ;;  %vm3769_vm4 = vcmp.eq.s32.totalorder %v11238_v6, %v9650_v26 }
 0xe3d   : > { %v5568_v58 = vsel %vm3769_vm4, 1.0, %v6683_v14 }
 0xe3e   : > { %6018 = vset.pattern.permute.xlu1 %v6682_v3  ;;  %v6037_v37 = vpack.i.bf16 %v5569_v21, %v5568_v58 }
 0xe40   : > { %6038 = vperm.xlu0 %6036, %v6037_v37   ;;  %6020 = vperm.xlu1 %6018, %v6037_v37  }
 0xe41   : > { %v3724_v63 = vpop.xlane.xlu0 %3723 }
 0xe42   : > { %v3725_v57 = vcvt.f32.s32 %v3724_v63  ;;  %v216_v63 = vld [vmem:[#allocation5 + $0x20] sm:$0xff] }
 0xe44   : > { %6024 = vset.pattern.permute.xlu1 %v6681_v56  ;;  %6042 = vset.pattern.permute.xlu0 %v6682_v3  ;;  %v9661_v33 = vadd.s32 %v3727_v30, %v3725_v57  ;;  %v217_v57 = vld [vmem:[#allocation5 + $0x28] sm:$0xff] }
 0xe45   : > { %6026 = vperm.xlu1 %6024, %v6037_v37   ;;  %v5798_v30 = vpack.c.bf16 %v217_v57, %v216_v63 }
 0xe46   : > { %11254 = vst [vmem:[#allocation77_spill] sm:$0xff] %v9661_v33  ;;  %vm3772_vm5 = vcmp.eq.s32.totalorder %v11238_v6, %v9661_v33 }
 0xe47   : > { %v3709_v40 = vpop.xlane.xlu1 %3708  ;;  %v5571_v35 = vsel %vm3772_vm5, 1.0, %v6683_v14  ;;  %5799 = vmatprep.subr.bf16.mxu0 %v5798_v30 }
 0xe48   : > { %v3710_v39 = vcvt.f32.s32 %v3709_v40  ;;  %5801 = vmatpush3.bf16.msra.mxu0 %v5798_v30  ;;  %v218_v40 = vld [vmem:[#allocation5 + $0x30] sm:$0xff] }
 0xe49   : > { %6030 = vset.pattern.permute.xlu1 %v6684_v9 }
 0xe4a   : > { %v9666_v8 = vadd.s32 %v3712_v36, %v3710_v39  ;;  %6032 = vperm.xlu1 %6030, %v6037_v37   ;;  %v219_v36 = vld [vmem:[#allocation5 + $0x38] sm:$0xff] }
 0xe4c   : > { %11255 = vst [vmem:[#allocation97_spill] sm:$0xff] %v9666_v8  ;;  %vm3771_vm6 = vcmp.eq.s32.totalorder %v11238_v6, %v9666_v8 }
 0xe4d   : > { %v5570_v3 = vsel %vm3771_vm6, 1.0, %v6683_v14  ;;  %vm5301_vm6 = vcmask 269312  }
 0xe4e   : > { %6048 = vset.pattern.permute.xlu1 %v6681_v56  ;;  %v6049_v44 = vpack.i.bf16 %v5571_v35, %v5570_v3  ;;  %v5802_v3 = vpack.c.bf16 %v219_v36, %v218_v40 }
 0xe50   : > { %6050 = vperm.xlu1 %6048, %v6049_v44   ;;  %6044 = vperm.xlu0 %6042, %v6049_v44  }
 0xe51   : > { %5803 = vmatprep.subr.bf16.mxu0 %v5802_v3 }
 0xe52   : > { %5805 = vmatpush3.bf16.msra.mxu0 %v5802_v3 }
 0xe53   : > { %v3739_v47 = vpop.xlane.xlu1 %3738 }
 0xe54   : > { %v3740_v62 = vcvt.f32.s32 %v3739_v47  ;;  %6054 = vset.pattern.permute.xlu1 %v6684_v9  ;;  %v5806_v47 = vpack.c.bf16 %v221_v11, %v220_v13 }
 0xe55   : > { %v3754_v15 = vpop.xlane.xlu0 %3753  ;;  %6056 = vperm.xlu1 %6054, %v6049_v44  }
 0xe56   : > { %v9676_v21 = vadd.s32 %v3742_v55, %v3740_v62  ;;  %v3755_v58 = vcvt.f32.s32 %v3754_v15  ;;  %5807 = vmatprep.subr.bf16.mxu0 %v5806_v47 }
 0xe57   : > { %5809 = vmatpush3.bf16.msra.mxu0 %v5806_v47 }
 0xe58   : > { %11256 = vst [vmem:[#allocation111_spill] sm:$0xff] %v9676_v21  ;;  %vm3773_vm7 = vcmp.eq.s32.totalorder %v11238_v6, %v9676_v21  ;;  %v9680_v37 = vadd.s32 %v3757_v49, %v3755_v58  ;;  %v222_v49 = vld [vmem:[#allocation5 + $0x50] sm:$0xff]  ;;  %v223_v58 = vld [vmem:[#allocation5 + $0x58] sm:$0xff] }
 0xe59   : > { %6060 = vset.pattern.permute.xlu1 %v6685_v1  ;;  %v5572_v24 = vsel %vm3773_vm7, 1.0, %v6683_v14  ;;  %vm5318_vm7 = vcmask 277504  }
 0xe5a   : > { %11257 = vst [vmem:[#allocation24_spill] sm:$0xff] %v9680_v37  ;;  %vm3774_vm8 = vcmp.eq.s32.totalorder %v11238_v6, %v9680_v37  ;;  %6062 = vperm.xlu1 %6060, %v6049_v44  }
 0xe5b   : > { %v5573_v43 = vsel %vm3774_vm8, 1.0, %v6683_v14  ;;  %vm5335_vm8 = vcmask 285696  }
 0xe5c   : > { %v6066_v41 = vpack.i.bf16 %v5573_v43, %v5572_v24  ;;  %v5810_v24 = vpack.c.bf16 %v223_v58, %v222_v49 }
 0xe5e   : > { %6077 = vset.pattern.permute.xlu1 %v6684_v9  ;;  %6067 = vperm.xlu0 %6042, %v6066_v41  }
 0xe5f   : > { %6079 = vperm.xlu1 %6077, %v6066_v41   ;;  %5811 = vmatprep.subr.bf16.mxu0 %v5810_v24 }
 0xe60   : > { %5813 = vmatpush3.bf16.msra.mxu0 %v5810_v24  ;;  %v9725_v24 = vld [vmem:[%s6847_s3 + $0x50] sm:$0xff] }
 0xe62   : > { %6071 = vset.pattern.permute.xlu0 %v6681_v56  ;;  %v9692_v56 = vld [vmem:[%s6847_s3 + $0x10] sm:$0xff] }
 0xe63   : > { %6073 = vperm.xlu0 %6071, %v6066_v41  }
 0xe67   : > { %6083 = vset.pattern.permute.xlu0 %v6685_v1 }
 0xe68   : > { %6085 = vperm.xlu0 %6083, %v6066_v41   ;;  %v9701_v41 = vld [vmem:[%s6847_s3] sm:$0xff] }
 0xe6c   : > { %6089 = vset.pattern.permute.xlu0 %v6684_v9 }
 0xe6f   : > { %v5908_v17 = vpop.permute.xlu0 %5907  ;;  %v5902_v14 = vpop.permute.xlu1 %5901 }
 0xe70   : > { %v5910_v39 = vunpack.i.h.bf16 %v5908_v17  ;;  %v5904_v35 = vunpack.i.h.bf16 %v5902_v14  ;;  %v5903_v62 = vunpack.i.l.bf16 %v5902_v14  ;;  %v5909_v43 = vunpack.i.l.bf16 %v5908_v17 }
 0xe72   : > { %v4256_v44 = vmul.f32 %v9692_v56, %v5910_v39  ;;  %v4096_v1 = vmul.f32 %v9692_v56, %v5904_v35  ;;  %v4095_v63 = vmul.f32 %v9701_v41, %v5903_v62  ;;  %v4255_v30 = vmul.f32 %v9701_v41, %v5909_v43  ;;  %v9710_v39 = vld [vmem:[%s6847_s3 + $0x30] sm:$0xff]  ;;  %v9721_v62 = vld [vmem:[%s6847_s3 + $0x20] sm:$0xff] }
 0xe74   : > { %4289 = vrot.lane.b32.xlu1 %v4256_v44, %s6679_s17  ;;  %v5914_v9 = vpop.permute.xlu1 %5913  ;;  %4129 = vrot.lane.b32.xlu0 %v4096_v1, %s6678_s15 }
 0xe75   : > { %v5916_v55 = vunpack.i.h.bf16 %v5914_v9  ;;  %v5915_v14 = vunpack.i.l.bf16 %v5914_v9 }
 0xe77   : > { %v4416_v15 = vmul.f32 %v9692_v56, %v5916_v55  ;;  %v4415_v35 = vmul.f32 %v9701_v41, %v5915_v14 }
 0xe79   : > { %4449 = vrot.lane.b32.xlu1 %v4416_v15, %s6680_s27  ;;  %v9704_v57 = vpop.permute.xlu1 %5919 }
 0xe7a   : > { %v5921_v29 = vunpack.i.l.bf16 %v9704_v57 }
 0xe7d   : > { %4127 = vrot.lane.b32.xlu1 %v4095_v63, %s6678_s15 }
 0xe7f   : > { %v5926_v40 = vpop.permute.xlu1 %5925 }
 0xe80   : > { %v5928_v36 = vunpack.i.h.bf16 %v5926_v40  ;;  %v5927_v9 = vunpack.i.l.bf16 %v5926_v40 }
 0xe81   : > { %4287 = vrot.lane.b32.xlu1 %v4255_v30, %s6679_s17 }
 0xe82   : > { %v4098_v17 = vmul.f32 %v9710_v39, %v5928_v36  ;;  %v4097_v15 = vmul.f32 %v9721_v62, %v5927_v9  ;;  %v9743_v9 = vld [vmem:[%s6847_s3 + $0x40] sm:$0xff] }
 0xe84   : > { %v5932_v3 = vpop.permute.xlu1 %5931  ;;  %4133 = vrot.lane.b32.xlu0 %v4098_v17, %s6678_s15 }
 0xe85   : > { %v5934_v44 = vunpack.i.h.bf16 %v5932_v3  ;;  %4447 = vrot.lane.b32.xlu1 %v4415_v35, %s6680_s27  ;;  %v5933_v49 = vunpack.i.l.bf16 %v5932_v3 }
 0xe87   : > { %v4258_v1 = vmul.f32 %v9710_v39, %v5934_v44  ;;  %v4257_v63 = vmul.f32 %v9721_v62, %v5933_v49 }
 0xe89   : > { %v5938_v13 = vpop.permute.xlu1 %5937  ;;  %4293 = vrot.lane.b32.xlu0 %v4258_v1, %s6679_s17 }
 0xe8a   : > { %v5940_v11 = vunpack.i.h.bf16 %v5938_v13  ;;  %v5939_v30 = vunpack.i.l.bf16 %v5938_v13  ;;  %v9737_v13 = vpop.permute.xlu0 %5943 }
 0xe8c   : > { %v4418_v47 = vmul.f32 %v9710_v39, %v5940_v11  ;;  %v4417_v17 = vmul.f32 %v9721_v62, %v5939_v30 }
 0xe8e   : > { %4453 = vrot.lane.b32.xlu0 %v4418_v47, %s6680_s27 }
 0xe8f   : > { %v5950_v55 = vpop.permute.xlu1 %5949 }
 0xe90   : > { %v5952_v58 = vunpack.i.h.bf16 %v5950_v55  ;;  %v5951_v44 = vunpack.i.l.bf16 %v5950_v55 }
 0xe92   : > { %v4100_v43 = vmul.f32 %v9725_v24, %v5952_v58  ;;  %4131 = vrot.lane.b32.xlu0 %v4097_v15, %s6678_s15  ;;  %v4099_v47 = vmul.f32 %v9743_v9, %v5951_v44 }
 0xe94   : > { %v5956_v14 = vpop.permute.xlu1 %5955  ;;  %4137 = vrot.lane.b32.xlu1 %v4100_v43, %s6678_s15 }
 0xe95   : > { %v5958_v40 = vunpack.i.h.bf16 %v5956_v14  ;;  %v5957_v15 = vunpack.i.l.bf16 %v5956_v14 }
 0xe96   : > { %4291 = vrot.lane.b32.xlu0 %v4257_v63, %s6679_s17 }
 0xe97   : > { %v4260_v36 = vmul.f32 %v9725_v24, %v5958_v40  ;;  %v4259_v43 = vmul.f32 %v9743_v9, %v5957_v15  ;;  %v9749_v40 = vld [vmem:[%s6847_s3 + $0x70] sm:$0xff] }
 0xe99   : > { %v5962_v35 = vpop.permute.xlu1 %5961  ;;  %4297 = vrot.lane.b32.xlu1 %v4260_v36, %s6679_s17 }
 0xe9a   : > { %v5964_v3 = vunpack.i.h.bf16 %v5962_v35  ;;  %4451 = vrot.lane.b32.xlu0 %v4417_v17, %s6680_s27  ;;  %v5963_v55 = vunpack.i.l.bf16 %v5962_v35 }
 0xe9c   : > { %v4420_v1 = vmul.f32 %v9725_v24, %v5964_v3  ;;  %v4419_v14 = vmul.f32 %v9743_v9, %v5963_v55  ;;  %v9763_v55 = vld [vmem:[%s6847_s3 + $0x60] sm:$0xff] }
 0xe9e   : > { %v9739_v11 = vpop.permute.xlu1 %5967  ;;  %4457 = vrot.lane.b32.xlu1 %v4420_v1, %s6680_s27 }
 0xe9f   : > { %v5980_v49 = vpop.permute.xlu0 %5979 }
 0xea0   : > { %v5982_v30 = vunpack.i.h.bf16 %v5980_v49 }
 0xea2   : > { %4135 = vrot.lane.b32.xlu1 %v4099_v47, %s6678_s15  ;;  %v4262_v3 = vmul.f32 %v9749_v40, %v5982_v30  ;;  %v9767_v30 = vld [vmem:[%s6847_s3 + $0x90] sm:$0xff] }
 0xea3   : > { %v5974_v58 = vpop.permute.xlu1 %5973 }
 0xea4   : > { %v5976_v63 = vunpack.i.h.bf16 %v5974_v58  ;;  %v5986_v17 = vpop.permute.xlu0 %5985  ;;  %v5975_v35 = vunpack.i.l.bf16 %v5974_v58 }
 0xea5   : > { %v5988_v44 = vunpack.i.h.bf16 %v5986_v17 }
 0xea6   : > { %v4102_v36 = vmul.f32 %v9749_v40, %v5976_v63  ;;  %4295 = vrot.lane.b32.xlu1 %v4259_v43, %s6679_s17  ;;  %v5981_v63 = vunpack.i.l.bf16 %v5980_v49 }
 0xea7   : > { %v4422_v1 = vmul.f32 %v9749_v40, %v5988_v44 }
 0xea8   : > { %4141 = vrot.lane.b32.xlu0 %v4102_v36, %s6678_s15  ;;  %v4101_v36 = vmul.f32 %v9763_v55, %v5975_v35  ;;  %v4261_v44 = vmul.f32 %v9763_v55, %v5981_v63 }
 0xea9   : > { %v9759_v15 = vpop.permute.xlu0 %5991 }
 0xeaa   : > { %4455 = vrot.lane.b32.xlu1 %v4419_v14, %s6680_s27 }
 0xeac   : > { %4301 = vrot.lane.b32.xlu0 %v4262_v3, %s6679_s17 }
 0xeaf   : > { %v5997_v47 = vpop.permute.xlu1 %5996  ;;  %v6009_v21 = vpop.permute.xlu0 %6008 }
 0xeb0   : > { %v5999_v43 = vunpack.i.h.bf16 %v5997_v47  ;;  %4461 = vrot.lane.b32.xlu0 %v4422_v1, %s6680_s27  ;;  %v5987_v1 = vunpack.i.l.bf16 %v5986_v17  ;;  %v6011_v49 = vunpack.i.h.bf16 %v6009_v21  ;;  %v5998_v8 = vunpack.i.l.bf16 %v5997_v47  ;;  %v9783_v17 = vld [vmem:[%s6847_s3 + $0x80] sm:$0xff] }
 0xeb2   : > { %v4104_v14 = vmul.f32 %v9767_v30, %v5999_v43  ;;  %v4421_v35 = vmul.f32 %v9763_v55, %v5987_v1  ;;  %v4424_v43 = vmul.f32 %v9767_v30, %v6011_v49  ;;  %v4103_v63 = vmul.f32 %v9783_v17, %v5998_v8 }
 0xeb3   : > { %v6010_v49 = vunpack.i.l.bf16 %v6009_v21 }
 0xeb4   : > { %v6003_v3 = vpop.permute.xlu1 %6002  ;;  %4139 = vrot.lane.b32.xlu0 %v4101_v36, %s6678_s15  ;;  %4145 = vrot.lane.b32.xlu1 %v4104_v14, %s6678_s15 }
 0xeb5   : > { %v6005_v58 = vunpack.i.h.bf16 %v6003_v3  ;;  %v6004_v14 = vunpack.i.l.bf16 %v6003_v3 }
 0xeb7   : > { %v4264_v37 = vmul.f32 %v9767_v30, %v6005_v58 }
 0xeb8   : > { %4299 = vrot.lane.b32.xlu0 %v4261_v44, %s6679_s17 }
 0xeb9   : > { %4305 = vrot.lane.b32.xlu1 %v4264_v37, %s6679_s17  ;;  %v9778_v36 = vpop.permute.xlu1 %6014  ;;  %v9788_v37 = vld [vmem:[%s6847_s3 + $0xb0] sm:$0xff] }
 0xebc   : > { %4459 = vrot.lane.b32.xlu0 %v4421_v35, %s6680_s27  ;;  %v4263_v35 = vmul.f32 %v9783_v17, %v6004_v14 }
 0xebd   : > { %4465 = vrot.lane.b32.xlu1 %v4424_v43, %s6680_s27  ;;  %v9795_v43 = vld [vmem:[%s6847_s3 + $0xa0] sm:$0xff] }
 0xebe   : > { %11258 = vst [vmem:[#allocation110_spill] sm:$0xff] %v9795_v43 }
 0xebf   : > { %v6021_v58 = vpop.permute.xlu1 %6020  ;;  %v9802_v14 = vpop.permute.xlu0 %6038 }
 0xec0   : > { %v6023_v44 = vunpack.i.h.bf16 %v6021_v58  ;;  %v6022_v1 = vunpack.i.l.bf16 %v6021_v58 }
 0xec1   : > { %4143 = vrot.lane.b32.xlu1 %v4103_v63, %s6678_s15  ;;  %v4423_v63 = vmul.f32 %v9783_v17, %v6010_v49 }
 0xec2   : > { %v4106_v47 = vmul.f32 %v9788_v37, %v6023_v44  ;;  %v4105_v8 = vmul.f32 %v9795_v43, %v6022_v1 }
 0xec4   : > { %v6027_v33 = vpop.permute.xlu1 %6026  ;;  %4149 = vrot.lane.b32.xlu0 %v4106_v47, %s6678_s15 }
 0xec5   : > { %4303 = vrot.lane.b32.xlu1 %v4263_v35, %s6679_s17  ;;  %v6028_v3 = vunpack.i.l.bf16 %v6027_v33  ;;  %v6029_v26 = vunpack.i.h.bf16 %v6027_v33 }
 0xec7   : > { %v4265_v21 = vmul.f32 %v9795_v43, %v6028_v3  ;;  %v4266_v44 = vmul.f32 %v9788_v37, %v6029_v26 }
 0xec8   : > { %4147 = vrot.lane.b32.xlu0 %v4105_v8, %s6678_s15 }
 0xec9   : > { %v6033_v58 = vpop.permute.xlu1 %6032  ;;  %4463 = vrot.lane.b32.xlu1 %v4423_v63, %s6680_s27  ;;  %v9810_v63 = vld [vmem:[%s6847_s3 + $0xd0] sm:$0xff] }
 0xeca   : > { %v6035_v47 = vunpack.i.h.bf16 %v6033_v58  ;;  %v6034_v1 = vunpack.i.l.bf16 %v6033_v58  ;;  %11259 = vst [vmem:[#allocation116_spill] sm:$0xff] %v9810_v63 }
 0xecc   : > { %4307 = vrot.lane.b32.xlu0 %v4265_v21, %s6679_s17  ;;  %v4426_v33 = vmul.f32 %v9788_v37, %v6035_v47  ;;  %v4425_v26 = vmul.f32 %v9795_v43, %v6034_v1 }
 0xecd   : > { %4309 = vrot.lane.b32.xlu1 %v4266_v44, %s6679_s17  ;;  %v9817_v44 = vld [vmem:[%s6847_s3 + $0xc0] sm:$0xff] }
 0xece   : > { %11260 = vst [vmem:[#allocation112_spill] sm:$0xff] %v9817_v44 }
 0xecf   : > { %v6045_v49 = vpop.permute.xlu0 %6044  ;;  %v6051_v35 = vpop.permute.xlu1 %6050 }
 0xed0   : > { %v6047_v8 = vunpack.i.h.bf16 %v6045_v49  ;;  %v6046_v23 = vunpack.i.l.bf16 %v6045_v49  ;;  %v6053_v28 = vunpack.i.h.bf16 %v6051_v35  ;;  %v6052_v47 = vunpack.i.l.bf16 %v6051_v35  ;;  %v9831_v35 = vld [vmem:[%s6847_s3 + $0xf0] sm:$0xff] }
 0xed1   : > { %4469 = vrot.lane.b32.xlu1 %v4426_v33, %s6680_s27  ;;  %11262 = vst [vmem:[#allocation78_spill] sm:$0xff] %v9831_v35 }
 0xed2   : > { %v4108_v3 = vmul.f32 %v9810_v63, %v6047_v8  ;;  %v4107_v58 = vmul.f32 %v9817_v44, %v6046_v23  ;;  %v4268_v33 = vmul.f32 %v9810_v63, %v6053_v28  ;;  %v4267_v1 = vmul.f32 %v9817_v44, %v6052_v47 }
 0xed4   : > { %v6057_v21 = vpop.permute.xlu1 %6056  ;;  %4153 = vrot.lane.b32.xlu0 %v4108_v3, %s6678_s15 }
 0xed5   : > { %4467 = vrot.lane.b32.xlu1 %v4425_v26, %s6680_s27  ;;  %v6059_v16 = vunpack.i.h.bf16 %v6057_v21  ;;  %v6058_v8 = vunpack.i.l.bf16 %v6057_v21 }
 0xed7   : > { %v4428_v49 = vmul.f32 %v9810_v63, %v6059_v16  ;;  %v4427_v28 = vmul.f32 %v9817_v44, %v6058_v8 }
 0xed8   : > { %4151 = vrot.lane.b32.xlu0 %v4107_v58, %s6678_s15 }
 0xed9   : > { %4313 = vrot.lane.b32.xlu1 %v4268_v33, %s6679_s17  ;;  %v9825_v3 = vpop.permute.xlu1 %6062 }
 0xeda   : > { %11261 = vst [vmem:[#allocation23_spill] sm:$0xff] %v9825_v3 }
 0xedc   : > { %4311 = vrot.lane.b32.xlu0 %v4267_v1, %s6679_s17 }
 0xedd   : > { %v6068_v26 = vpop.permute.xlu0 %6067  ;;  %4473 = vrot.lane.b32.xlu1 %v4428_v49, %s6680_s27 }
 0xede   : > { %v6070_v23 = vunpack.i.h.bf16 %v6068_v26  ;;  %v6069_v33 = vunpack.i.l.bf16 %v6068_v26  ;;  %v6080_v16 = vpop.permute.xlu1 %6079 }
 0xedf   : > { %v6082_v34 = vunpack.i.h.bf16 %v6080_v16  ;;  %v6081_v26 = vunpack.i.l.bf16 %v6080_v16 }
 0xee0   : > { %v4110_v58 = vmul.f32 %v9831_v35, %v6070_v23  ;;  %v4109_v1 = vmul.f32 %v9837_v54, %v6069_v33 }
 0xee1   : > { %4471 = vrot.lane.b32.xlu1 %v4427_v28, %s6680_s27  ;;  %v4430_v19 = vmul.f32 %v9831_v35, %v6082_v34 }
 0xee2   : > { %v6074_v47 = vpop.permute.xlu0 %6073  ;;  %4157 = vrot.lane.b32.xlu0 %v4110_v58, %s6678_s15  ;;  %v5922_v58 = vunpack.i.h.bf16 %v9704_v57 }
 0xee3   : > { %v6076_v21 = vunpack.i.h.bf16 %v6074_v47  ;;  %v6075_v49 = vunpack.i.l.bf16 %v6074_v47  ;;  %v4429_v47 = vmul.f32 %v9837_v54, %v6081_v26  ;;  %v11265_v26 = vld [vmem:[#allocation47_spill] sm:$0xff] }
 0xee5   : > { %v4270_v8 = vmul.f32 %v9831_v35, %v6076_v21  ;;  %v4269_v28 = vmul.f32 %v9837_v54, %v6075_v49  ;;  %v11266_v54 = vld [vmem:[#allocation33_spill] sm:$0xff] }
 0xee6   : > { %v4290_v61 = vpop.permute.xlu1 %4289  ;;  %4155 = vrot.lane.b32.xlu0 %v4109_v1, %s6678_s15  ;;  %v4016_v1 = vmul.f32 %v9692_v56, %v5922_v58  ;;  %v9857_v56 = vsub.f32 %v11266_v54, %v11265_v26  ;;  %v11270_v54 = vld [vmem:[#allocation48_spill] sm:$0xff] }
 0xee7   : > { %v9842_v23 = vpop.permute.xlu0 %6085  ;;  %4317 = vrot.lane.b32.xlu1 %v4270_v8, %s6679_s17  ;;  %v4015_v8 = vmul.f32 %v9701_v41, %v5921_v29 }
 0xee8   : > { %11264 = vst [vmem:[#allocation101_spill] sm:$0xff] %v9842_v23  ;;  %vm1212_vm10 = vcmp.eq.f32.partialorder %v9857_v56, 0.0 }
 0xeea   : > { %4315 = vrot.lane.b32.xlu0 %v4269_v28, %s6679_s17 }
 0xeeb   : > { %v4450_v33 = vpop.permute.xlu1 %4449  ;;  %4477 = vrot.lane.b32.xlu1 %v4430_v19, %s6680_s27  ;;  %v4130_v21 = vpop.permute.xlu0 %4129 }
 0xeec   : > { %v4176_v16 = vadd.f32 %v4130_v21, %v4016_v1 }
 0xeee   : > { %4475 = vrot.lane.b32.xlu0 %v4429_v47, %s6680_s27  ;;  %v4336_v46 = vadd.f32 %v4290_v61, %v4176_v16  ;;  %v11267_v61 = vld [vmem:[#allocation35_spill] sm:$0xff]  ;;  %v11272_v47 = vld [vmem:[#allocation28_spill] sm:$0xff]  ;;  %v11273_v16 = vld [vmem:[#allocation54_spill] sm:$0xff] }
 0xeef   : > { %v4128_v49 = vpop.permute.xlu1 %4127 }
 0xef0   : > { %v4175_v2 = vadd.f32 %v4128_v49, %v4015_v8  ;;  %v4496_v35 = vadd.f32 %v4450_v33, %v4336_v46  ;;  %v11269_v46 = vld [vmem:[#allocation45_spill] sm:$0xff]  ;;  %v11274_v49 = vld [vmem:[#allocation32_spill] sm:$0xff] }
 0xef1   : > { %v9872_v33 = vsub.f32 %v11270_v54, %v11269_v46  ;;  %v9882_v8 = vsub.f32 %v11274_v49, %v11273_v16 }
 0xef2   : > { %v4512_v29 = vsel %vm582_vm0, %v4496_v35, %v8850_v53  ;;  %v1228_v35 = vsel %vm1212_vm10, %v11238_v6, 3 }
 0xef3   : > { %v4288_v34 = vpop.permute.xlu1 %4287  ;;  %vm1214_vm12 = vcmp.eq.f32.partialorder %v9872_v33, 0.0  ;;  %vm1215_vm2 = vcmp.eq.f32.partialorder %v9882_v8, 0.0 }
 0xef4   : > { %v4335_v28 = vadd.f32 %v4288_v34, %v4175_v2  ;;  %v11268_v2 = vld [vmem:[#allocation34_spill] sm:$0xff]  ;;  %v5946_v34 = vunpack.i.h.bf16 %v9737_v13 }
 0xef5   : > { %v9866_v41 = vsub.f32 %v11268_v2, %v11267_v61  ;;  %v1230_v2 = vsel %vm1214_vm12, %v11238_v6, 3 }
 0xef6   : > { %v4134_v5 = vpop.permute.xlu0 %4133  ;;  %v4018_v46 = vmul.f32 %v9710_v39, %v5946_v34  ;;  %v9907_v63 = vsel %vm1134_vm3, %v1230_v2, 2147483647  ;;  %v1231_v39 = vsel %vm1215_vm2, %v11238_v6, 3 }
 0xef7   : > { %v4448_v19 = vpop.permute.xlu1 %4447  ;;  %vm1213_vm11 = vcmp.eq.f32.partialorder %v9866_v41, 0.0  ;;  %v1430_v2 = vshra.s32 %v9907_v63, 16 }
 0xef8   : > { %v4495_v23 = vadd.f32 %v4448_v19, %v4335_v28  ;;  %v1229_v28 = vsel %vm1213_vm11, %v11238_v6, 3  ;;  %v5945_v19 = vunpack.i.l.bf16 %v9737_v13  ;;  %v11276_v13 = vld [vmem:[#allocation42_spill] sm:$0xff] }
 0xefa   : > { %v4511_v57 = vsel %vm582_vm0, %v4495_v23, %v8852_v59  ;;  %v11271_v23 = vld [vmem:[#allocation56_spill] sm:$0xff]  ;;  %v4178_v59 = vadd.f32 %v4134_v5, %v4018_v46 }
 0xefb   : > { %v4294_v58 = vpop.permute.xlu0 %4293  ;;  %5758 = vmatprep.mubr.msk.f32.mxu0 %vm4531_vm9, %v4511_v57  ;;  %v9877_v21 = vsub.f32 %v11272_v47, %v11271_v23  ;;  %v9890_v57 = vsel %vm1134_vm3, %v1228_v35, 2147483647  ;;  %v9899_v23 = vsel %vm1134_vm3, %v1229_v28, 2147483647  ;;  %v1475_v47 = vmul.f32 1.442695, %v11276_v13 }
 0xefc   : > { %5759 = vmatmul.mubr.msk.f32.vlgmr.msra.gmra.mrb[8].mxu0 %vm4531_vm9, %v4512_v29  ;;  %v11275_v29 = vld [vmem:[#allocation53_spill] sm:$0xff]  ;;  %v4017_v35 = vmul.f32 %v9721_v62, %v5945_v19  ;;  %v1400_v49 = vshra.s32 %v9890_v57, 16  ;;  %v1415_v28 = vshra.s32 %v9899_v23, 16  ;;  %v11278_v13 = vld [vmem:[#allocation43_spill] sm:$0xff]  ;;  %v4338_v43 = vadd.f32 %v4294_v58, %v4178_v59 }
 0xefd   : > { %vm1216_vm1 = vcmp.eq.f32.partialorder %v9877_v21, 0.0  ;;  %v1473_v61 = vmul.f32 1.442695, %v11275_v29  ;;  %v11277_v29 = vld [vmem:[#allocation38_spill] sm:$0xff]  ;;  %v1477_v3 = vmul.f32 1.442695, %v11278_v13 }
 0xefe   : > { %v1232_v16 = vsel %vm1216_vm1, %v11238_v6, 3  ;;  %v1479_v53 = vmul.f32 1.442695, %v11277_v29  ;;  %v9915_v5 = vcvt.s32.f32 %v1400_v49  ;;  %v9919_v6 = vsel %vm1134_vm3, %v1231_v39, 2147483647  ;;  %v11280_v58 = vld [vmem:[#allocation31_spill] sm:$0xff] }
 0xeff   : > { %6282 = vpow2.f32 %v1473_v61  ;;  %v9913_v62 = vsel %vm1134_vm3, %v1232_v16, 2147483647  ;;  %v9923_v59 = vcvt.s32.f32 %v1415_v28  ;;  %v11281_v39 = vld [vmem:[#allocation30_spill] sm:$0xff]  ;;  %v5970_v28 = vunpack.i.h.bf16 %v9739_v11 }
 0xf00   : > { %v4454_v1 = vpop.permute.xlu0 %4453  ;;  %6284 = vpow2.f32 %v1475_v47  ;;  %v1481_v47 = vmul.f32 1.442695, %v11280_v58  ;;  %v11284_v58 = vld [vmem:[#allocation82_spill] sm:$0xff] }
 0xf01   : > { %6286 = vpow2.f32 %v1479_v53  ;;  %v4498_v61 = vadd.f32 %v4454_v1, %v4338_v43  ;;  %v9930_v43 = vcvt.s32.f32 %v1430_v2  ;;  %v1445_v1 = vshra.s32 %v9919_v6, 16  ;;  %v11283_v2 = vld [vmem:[#allocation57_spill] sm:$0xff] }
 0xf02   : > { %6288 = vpow2.f32 %v1477_v3  ;;  %v1487_v3 = vmul.f32 1.442695, %v11281_v39  ;;  %v11285_v39 = vld [vmem:[#allocation81_spill] sm:$0xff] }
 0xf03   : > { %v4514_v49 = vsel %vm582_vm0, %v4498_v61, %v8876_v48  ;;  %v9945_v61 = vcvt.s32.f32 %v1445_v1 }
 0xf04   : > { %v4132_v26 = vpop.permute.xlu0 %4131 }
 0xf05   : > { %v4177_v34 = vadd.f32 %v4132_v26, %v4017_v35  ;;  %v11279_v26 = vld [vmem:[#allocation36_spill] sm:$0xff] }
 0xf06   : > { %v9896_v54 = vpop.permute.xlu1 %4137  ;;  %v1483_v35 = vmul.f32 1.442695, %v11279_v26  ;;  %v5969_v26 = vunpack.i.l.bf16 %v9739_v11 }
 0xf08   : > { %v4292_v44 = vpop.permute.xlu0 %4291  ;;  %6290 = vpow2.f32 %v1483_v35  ;;  %v4019_v11 = vmul.f32 %v9743_v9, %v5969_v26 }
 0xf09   : > { %v4337_v19 = vadd.f32 %v4292_v44, %v4177_v34  ;;  %v1460_v44 = vshra.s32 %v9913_v62, 16  ;;  %6292 = vpow2.f32 %v1481_v47 }
 0xf0a   : > { %6294 = vpow2.f32 %v1487_v3  ;;  %v1495_v3 = vmul.f32 1.442695, %v9857_v56  ;;  %v1499_v56 = vmul.f32 1.442695, %v9872_v33 }
 0xf0b   : > { %v4298_v29 = vpop.permute.xlu1 %4297  ;;  %v9939_v34 = vcvt.s32.f32 %v1460_v44 }
 0xf0c   : > { %v4452_v46 = vpop.permute.xlu0 %4451 }
 0xf0d   : > { %v4497_v13 = vadd.f32 %v4452_v46, %v4337_v19  ;;  %1403 = vmin.xlane.f32.xlu0 %v9915_v5  ;;  %11282 = vst [vmem:[#allocation79_spill] sm:$0xff] %v9939_v34  ;;  %v6283_v19 = vpop.eup %6282  ;;  %v1485_v46 = vmul.f32 1.442695, %v11283_v2  ;;  %v1489_v2 = vmul.f32 1.442695, %v11285_v39  ;;  %v11286_v39 = vld [vmem:[#allocation84_spill] sm:$0xff] }
 0xf0e   : > { %v1505_v47 = vsel %vm1134_vm3, %v6283_v19, 0.0  ;;  %v1493_v9 = vmul.f32 1.442695, %v11286_v39 }
 0xf0f   : > { %1418 = vmin.xlane.f32.xlu1 %v9923_v59  ;;  %v4513_v53 = vsel %vm582_vm0, %v4497_v13, %v8886_v42  ;;  %v6285_v13 = vpop.eup %6284  ;;  %6296 = vpow2.f32 %v1485_v46 }
 0xf10   : > { %5761 = vmatprep.mubr.msk.f32.mxu0 %vm4531_vm9, %v4513_v53  ;;  %v4458_v16 = vpop.permute.xlu1 %4457  ;;  %v1491_v53 = vmul.f32 1.442695, %v11284_v58  ;;  %v6287_v44 = vpop.eup %6286  ;;  %v1508_v58 = vsel %vm1134_vm3, %v6285_v13, 0.0 }
 0xf11   : > { %1433 = vmin.xlane.f32.xlu0 %v9930_v43  ;;  %5762 = vmatmul.mubr.msk.f32.gmra.mrb[10].mxu0 %vm4531_vm9, %v4514_v49  ;;  %v4020_v49 = vmul.f32 %v9725_v24, %v5970_v28  ;;  %v6289_v1 = vpop.eup %6288  ;;  %v1514_v19 = vsel %vm1134_vm3, %v6287_v44, 0.0  ;;  %v1497_v44 = vmul.f32 1.442695, %v9866_v41 }
 0xf12   : > { %6298 = vpow2.f32 %v1491_v53  ;;  %v6291_v46 = vpop.eup %6290 }
 0xf13   : > { %1463 = vmin.xlane.f32.xlu1 %v9939_v34  ;;  %v4180_v42 = vadd.f32 %v9896_v54, %v4020_v49  ;;  %6300 = vpow2.f32 %v1489_v2  ;;  %v1511_v49 = vsel %vm1134_vm3, %v6289_v1, 0.0  ;;  %v6293_v13 = vpop.eup %6292  ;;  %v1503_v2 = vmul.f32 1.442695, %v9877_v21 }
 0xf14   : > { %v4136_v35 = vpop.permute.xlu1 %4135  ;;  %6302 = vpow2.f32 %v1495_v3  ;;  %v6295_v53 = vpop.eup %6294  ;;  %v5994_v3 = vunpack.i.h.bf16 %v9759_v15  ;;  %v3809_v21 = vmul.f32 1.442695, %v9293_v31  ;;  %v3813_v31 = vmul.f32 1.442695, %v9317_v51 }
 0xf15   : > { %1448 = vmin.xlane.f32.xlu0 %v9945_v61  ;;  %v4179_v34 = vadd.f32 %v4136_v35, %v4019_v11  ;;  %v4340_v24 = vadd.f32 %v4298_v29, %v4180_v42  ;;  %v1520_v29 = vsel %vm1134_vm3, %v6291_v46, 0.0  ;;  %6304 = vpow2.f32 %v1493_v9 }
 0xf16   : > { %6306 = vpow2.f32 %v1499_v56  ;;  %v1526_v41 = vsel %vm1134_vm3, %v6295_v53, 0.0  ;;  %v5993_v46 = vunpack.i.l.bf16 %v9759_v15  ;;  %v3817_v51 = vmul.f32 1.442695, %v9341_v25 }
 0xf17   : > { %1506 = vadd.xlane.f32.xlu1 %v1505_v47  ;;  %v4500_v47 = vadd.f32 %v4458_v16, %v4340_v24  ;;  %v1517_v16 = vsel %vm1134_vm3, %v6293_v13, 0.0  ;;  %6308 = vpow2.f32 %v1497_v44  ;;  %v6017_v25 = vunpack.i.h.bf16 %v9778_v36 }
 0xf18   : > { %v4296_v48 = vpop.permute.xlu1 %4295  ;;  %6310 = vpow2.f32 %v1503_v2  ;;  %v4021_v15 = vmul.f32 %v9763_v55, %v5993_v46 }
 0xf19   : > { %1509 = vadd.xlane.f32.xlu0 %v1508_v58  ;;  %v4339_v26 = vadd.f32 %v4296_v48, %v4179_v34  ;;  %v4516_v33 = vsel %vm582_vm0, %v4500_v47, %v8910_v12  ;;  %v6297_v34 = vpop.eup %6296  ;;  %v1501_v58 = vmul.f32 1.442695, %v9882_v8  ;;  %v3807_v8 = vmul.f32 1.442695, %v9302_v52 }
 0xf1a   : > { %v4142_v28 = vpop.permute.xlu0 %4141  ;;  %v1523_v24 = vsel %vm1134_vm3, %v6297_v34, 0.0  ;;  %v3811_v52 = vmul.f32 1.442695, %v9326_v7  ;;  %v3815_v7 = vmul.f32 1.442695, %v9350_v20 }
 0xf1b   : > { %1515 = vadd.xlane.f32.xlu1 %v1514_v19  ;;  %6312 = vpow2.f32 %v1501_v58 }
 0xf1c   : > { %v4456_v54 = vpop.permute.xlu1 %4455  ;;  %v6299_v1 = vpop.eup %6298  ;;  %6314 = vpow2.f32 %v3809_v21 }
 0xf1d   : > { %v4499_v35 = vadd.f32 %v4456_v54, %v4339_v26  ;;  %1512 = vadd.xlane.f32.xlu0 %v1511_v49  ;;  %v6301_v19 = vpop.eup %6300  ;;  %v1532_v26 = vsel %vm1134_vm3, %v6299_v1, 0.0  ;;  %v4022_v54 = vmul.f32 %v9749_v40, %v5994_v3  ;;  %6316 = vpow2.f32 %v3807_v8 }
 0xf1e   : > { %v4302_v42 = vpop.permute.xlu0 %4301  ;;  %v6303_v47 = vpop.eup %6302  ;;  %v1529_v49 = vsel %vm1134_vm3, %v6301_v19, 0.0  ;;  %6318 = vpow2.f32 %v3813_v31  ;;  %v6016_v19 = vunpack.i.l.bf16 %v9778_v36  ;;  %v3825_v36 = vmul.f32 1.442695, %v9389_v32 }
 0xf1f   : > { %1521 = vadd.xlane.f32.xlu1 %v1520_v29  ;;  %v4515_v48 = vsel %vm582_vm0, %v4499_v35, %v8920_v27  ;;  %v6305_v13 = vpop.eup %6304  ;;  %v4182_v56 = vadd.f32 %v4142_v28, %v4022_v54  ;;  %v1538_v29 = vsel %vm1134_vm3, %v6303_v47, 0.0  ;;  %6320 = vpow2.f32 %v3811_v52 }
 0xf20   : > { %5764 = vmatprep.mubr.msk.f32.mxu0 %vm4531_vm9, %v4515_v48  ;;  %v6307_v53 = vpop.eup %6306  ;;  %6322 = vpow2.f32 %v3817_v51  ;;  %v4024_v8 = vmul.f32 %v9767_v30, %v6017_v25  ;;  %v4023_v54 = vmul.f32 %v9783_v17, %v6016_v19  ;;  %v3829_v30 = vmul.f32 1.442695, %v9413_v0 }
 0xf21   : > { %1518 = vadd.xlane.f32.xlu0 %v1517_v16  ;;  %5765 = vmatmul.mubr.msk.f32.gmra.mrb[12].mxu0 %vm4531_vm9, %v4516_v33  ;;  %v4342_v48 = vadd.f32 %v4302_v42, %v4182_v56  ;;  %v1535_v16 = vsel %vm1134_vm3, %v6305_v13, 0.0  ;;  %v6309_v33 = vpop.eup %6308  ;;  %v1544_v2 = vsel %vm1134_vm3, %v6307_v53, 0.0  ;;  %6324 = vpow2.f32 %v3815_v7 }
 0xf22   : > { %v4462_v11 = vpop.permute.xlu0 %4461  ;;  %v1541_v42 = vsel %vm1134_vm3, %v6309_v33, 0.0  ;;  %v3833_v0 = vmul.f32 1.442695, %v9437_v45 }
 0xf23   : > { %1527 = vadd.xlane.f32.xlu1 %v1526_v41  ;;  %v4502_v28 = vadd.f32 %v4462_v11, %v4342_v48  ;;  %v6311_v41 = vpop.eup %6310 }
 0xf24   : > { %v1550_v20 = vsel %vm1134_vm3, %v6311_v41, 0.0  ;;  %v11287_v41 = vld [vmem:[#allocation107_spill] sm:$0xff] }
 0xf25   : > { %1524 = vadd.xlane.f32.xlu0 %v1523_v24  ;;  %v6313_v3 = vpop.eup %6312  ;;  %v3821_v24 = vmul.f32 1.442695, %v9365_v50  ;;  %v4518_v21 = vsel %vm582_vm0, %v4502_v28, %v8944_v18  ;;  %v6040_v28 = vunpack.i.l.bf16 %v9802_v14  ;;  %v3831_v7 = vmul.f32 1.442695, %v11287_v41 }
 0xf26   : > { %v4140_v39 = vpop.permute.xlu0 %4139  ;;  %v9976_v9 = vpop.permute.xlu1 %4145 }
 0xf27   : > { %1533 = vadd.xlane.f32.xlu1 %v1532_v26  ;;  %v4181_v44 = vadd.f32 %v4140_v39, %v4021_v15  ;;  %v6315_v46 = vpop.eup %6314  ;;  %v3819_v39 = vmul.f32 1.442695, %v9374_v22  ;;  %v1547_v26 = vsel %vm1134_vm3, %v6313_v3, 0.0  ;;  %6326 = vpow2.f32 %v3821_v24  ;;  %v11289_v3 = vld [vmem:[#allocation74_spill] sm:$0xff] }
 0xf28   : > { %v6317_v47 = vpop.eup %6316  ;;  %v3842_v13 = vsel %vm3422_vm13, %v6315_v46, 0.0  ;;  %v3823_v22 = vmul.f32 1.442695, %v9398_v10  ;;  %v4184_v15 = vadd.f32 %v9976_v9, %v4024_v8  ;;  %v3827_v10 = vmul.f32 1.442695, %v9422_v60 }
 0xf29   : > { %1530 = vadd.xlane.f32.xlu0 %v1529_v49  ;;  %v6319_v31 = vpop.eup %6318  ;;  %6328 = vpow2.f32 %v3819_v39  ;;  %v3837_v24 = vmul.f32 1.442695, %v11289_v3  ;;  %v11291_v39 = vld [vmem:[#allocation19_spill] sm:$0xff] }
 0xf2a   : > { %v4300_v35 = vpop.permute.xlu0 %4299  ;;  %v6321_v32 = vpop.eup %6320  ;;  %6330 = vpow2.f32 %v3825_v36  ;;  %v3848_v52 = vsel %vm3422_vm13, %v6319_v31, 0.0 }
 0xf2b   : > { %1539 = vadd.xlane.f32.xlu1 %v1538_v29  ;;  %v4306_v40 = vpop.permute.xlu1 %4305  ;;  %v4341_v55 = vadd.f32 %v4300_v35, %v4181_v44  ;;  %v3839_v29 = vsel %vm3422_vm13, %v6317_v47, 0.0  ;;  %v6323_v44 = vpop.eup %6322  ;;  %6332 = vpow2.f32 %v3823_v22  ;;  %v3845_v51 = vsel %vm3422_vm13, %v6321_v32, 0.0 }
 0xf2c   : > { %v4344_v53 = vadd.f32 %v4306_v40, %v4184_v15  ;;  %6334 = vpow2.f32 %v3829_v30  ;;  %v6041_v40 = vunpack.i.h.bf16 %v9802_v14  ;;  %v11292_v30 = vld [vmem:[#allocation23_spill] sm:$0xff] }
 0xf2d   : > { %1536 = vadd.xlane.f32.xlu0 %v1535_v16  ;;  %6336 = vpow2.f32 %v3827_v10  ;;  %v11293_v10 = vld [vmem:[#allocation15_spill] sm:$0xff] }
 0xf2e   : > { %v4460_v34 = vpop.permute.xlu0 %4459  ;;  %6338 = vpow2.f32 %v3833_v0  ;;  %v4026_v25 = vmul.f32 %v9788_v37, %v6041_v40  ;;  %v11295_v40 = vld [vmem:[#allocation116_spill] sm:$0xff] }
 0xf2f   : > { %v4501_v1 = vadd.f32 %v4460_v34, %v4341_v55  ;;  %1545 = vadd.xlane.f32.xlu1 %v1544_v2  ;;  %v4466_v58 = vpop.permute.xlu1 %4465  ;;  %v6325_v55 = vpop.eup %6324  ;;  %v3854_v34 = vsel %vm3422_vm13, %v6323_v44, 0.0  ;;  %6340 = vpow2.f32 %v3831_v7 }
 0xf30   : > { %v4504_v48 = vadd.f32 %v4466_v58, %v4344_v53  ;;  %v11288_v58 = vld [vmem:[#allocation14_spill] sm:$0xff]  ;;  %v3851_v14 = vsel %vm3422_vm13, %v6325_v55, 0.0  ;;  %6342 = vpow2.f32 %v3837_v24  ;;  %v6065_v53 = vunpack.i.h.bf16 %v11292_v30 }
 0xf31   : > { %1542 = vadd.xlane.f32.xlu0 %v1541_v42  ;;  %v4517_v11 = vsel %vm582_vm0, %v4501_v1, %v8954_v4  ;;  %v6327_v2 = vpop.eup %6326 }
 0xf32   : > { %5767 = vmatprep.mubr.msk.f32.mxu0 %vm4531_vm9, %v4517_v11  ;;  %v4520_v45 = vsel %vm582_vm0, %v4504_v48, %v11288_v58  ;;  %v11290_v11 = vld [vmem:[#allocation110_spill] sm:$0xff] }
 0xf33   : > { %1551 = vadd.xlane.f32.xlu1 %v1550_v20  ;;  %5768 = vmatmul.mubr.msk.f32.gmra.mrb[14].mxu0 %vm4531_vm9, %v4518_v21  ;;  %v4144_v50 = vpop.permute.xlu1 %4143  ;;  %v6329_v42 = vpop.eup %6328  ;;  %v4025_v19 = vmul.f32 %v11290_v11, %v6040_v28  ;;  %v3860_v21 = vsel %vm3422_vm13, %v6327_v2, 0.0  ;;  %v4028_v28 = vmul.f32 %v11295_v40, %v6065_v53  ;;  %v11304_v53 = vld [vmem:[#allocation117_spill] sm:$0xff] }
 0xf34   : > { %v4183_v35 = vadd.f32 %v4144_v50, %v4023_v54  ;;  %v6331_v46 = vpop.eup %6330  ;;  %v3835_v50 = vmul.f32 1.442695, %v11291_v39  ;;  %v3857_v8 = vsel %vm3422_vm13, %v6329_v42, 0.0 }
 0xf35   : > { %1548 = vadd.xlane.f32.xlu0 %v1547_v26  ;;  %v6333_v54 = vpop.eup %6332  ;;  %v3866_v22 = vsel %vm3422_vm13, %v6331_v46, 0.0 }
 0xf36   : > { %v4150_v49 = vpop.permute.xlu0 %4149  ;;  %v6335_v15 = vpop.eup %6334  ;;  %6344 = vpow2.f32 %v3835_v50 }
 0xf37   : > { %3843 = vadd.xlane.f32.xlu1 %v3842_v13  ;;  %v4304_v56 = vpop.permute.xlu1 %4303  ;;  %v4186_v26 = vadd.f32 %v4150_v49, %v4026_v25  ;;  %v3863_v49 = vsel %vm3422_vm13, %v6333_v54, 0.0  ;;  %v6337_v32 = vpop.eup %6336  ;;  %v3872_v44 = vsel %vm3422_vm13, %v6335_v15, 0.0  ;;  %v11302_v15 = vld [vmem:[#allocation18_spill] sm:$0xff] }
 0xf38   : > { %v4343_v17 = vadd.f32 %v4304_v56, %v4183_v35  ;;  %v3869_v55 = vsel %vm3422_vm13, %v6337_v32, 0.0  ;;  %v11303_v32 = vld [vmem:[#allocation78_spill] sm:$0xff] }
 0xf39   : > { %3840 = vadd.xlane.f32.xlu0 %v3839_v29 }
 0xf3a   : > { %v4148_v16 = vpop.permute.xlu0 %4147 }
 0xf3b   : > { %3849 = vadd.xlane.f32.xlu1 %v3848_v52  ;;  %v4464_v9 = vpop.permute.xlu1 %4463  ;;  %v4185_v36 = vadd.f32 %v4148_v16, %v4025_v19  ;;  %v11297_v19 = vld [vmem:[#allocation87_spill] sm:$0xff] }
 0xf3c   : > { %v4503_v33 = vadd.f32 %v4464_v9, %v4343_v17  ;;  %v6064_v17 = vunpack.i.l.bf16 %v11292_v30  ;;  %v6339_v9 = vpop.eup %6338 }
 0xf3d   : > { %3846 = vadd.xlane.f32.xlu0 %v3845_v51  ;;  %v6341_v0 = vpop.eup %6340  ;;  %v3878_v2 = vsel %vm3422_vm13, %v6339_v9, 0.0 }
 0xf3e   : > { %v4519_v60 = vsel %vm582_vm0, %v4503_v33, %v8988_v38  ;;  %v4308_v20 = vpop.permute.xlu0 %4307  ;;  %v11294_v33 = vld [vmem:[#allocation16_spill] sm:$0xff]  ;;  %v6343_v41 = vpop.eup %6342  ;;  %v3875_v42 = vsel %vm3422_vm13, %v6341_v0, 0.0 }
 0xf3f   : > { %3855 = vadd.xlane.f32.xlu1 %v3854_v34  ;;  %5770 = vmatprep.mubr.msk.f32.mxu0 %vm4531_vm9, %v4519_v60  ;;  %v4310_v1 = vpop.permute.xlu1 %4309  ;;  %v4345_v37 = vadd.f32 %v4308_v20, %v4185_v36  ;;  %v11296_v34 = vld [vmem:[#allocation112_spill] sm:$0xff]  ;;  %v3884_v11 = vsel %vm3422_vm13, %v6343_v41, 0.0  ;;  %v1384_v20 = vand.u32 65535, %v11297_v19  ;;  %v1399_v41 = vand.u32 65535, %v9890_v57 }
 0xf40   : > { %5771 = vmatmul.mubr.msk.f32.gmra.mrb[16].mxu0 %vm4531_vm9, %v4520_v45  ;;  %v4346_v13 = vadd.f32 %v4310_v1, %v4186_v26  ;;  %v4027_v60 = vmul.f32 %v11296_v34, %v6064_v17  ;;  %v6345_v3 = vpop.eup %6344  ;;  %v11299_v36 = vld [vmem:[#allocation88_spill] sm:$0xff] }
 0xf41   : > { %3852 = vadd.xlane.f32.xlu0 %v3851_v14  ;;  %v3881_v26 = vsel %vm3422_vm13, %v6345_v3, 0.0  ;;  %v6541_v3 = vld [vmem:[#allocation5 + $0x60] sm:$0xff] }
 0xf43   : > { %3861 = vadd.xlane.f32.xlu1 %v3860_v21  ;;  %v4470_v47 = vpop.permute.xlu1 %4469 }
 0xf44   : > { %v4506_v56 = vadd.f32 %v4470_v47, %v4346_v13  ;;  %v11298_v47 = vld [vmem:[#allocation95_spill] sm:$0xff]  ;;  %v11301_v13 = vld [vmem:[#allocation17_spill] sm:$0xff] }
 0xf45   : > { %3858 = vadd.xlane.f32.xlu0 %v3857_v8  ;;  %vm1390_vm3 = vcmp.eq.f32.partialorder %v11299_v36, %v11298_v47  ;;  %v11300_v8 = vld [vmem:[#allocation101_spill] sm:$0xff] }
 0xf46   : > { %v4154_v31 = vpop.permute.xlu0 %4153  ;;  %v4522_v51 = vsel %vm582_vm0, %v4506_v56, %v11294_v33  ;;  %v6088_v54 = vunpack.i.h.bf16 %v11300_v8 }
 0xf47   : > { %3867 = vadd.xlane.f32.xlu1 %v3866_v22  ;;  %v4468_v35 = vpop.permute.xlu1 %4467  ;;  %v4188_v7 = vadd.f32 %v4154_v31, %v4028_v28  ;;  %v1386_v31 = vcvt.s32.f32 %v1384_v20  ;;  %v6087_v22 = vunpack.i.l.bf16 %v11300_v8  ;;  %v11305_v28 = vld [vmem:[#allocation106_spill] sm:$0xff] }
 0xf48   : > { %v4505_v29 = vadd.f32 %v4468_v35, %v4345_v37  ;;  %v4030_v30 = vmul.f32 %v11303_v32, %v6088_v54 }
 0xf49   : > { %3864 = vadd.xlane.f32.xlu0 %v3863_v49  ;;  %v4029_v17 = vmul.f32 %v11304_v53, %v6087_v22 }
 0xf4a   : > { %v4152_v52 = vpop.permute.xlu0 %4151  ;;  %v4521_v48 = vsel %vm582_vm0, %v4505_v29, %v11293_v10  ;;  %v1391_v29 = vsel %vm1390_vm3, %v1386_v31, inf }
 0xf4b   : > { %3873 = vadd.xlane.f32.xlu1 %v3872_v44  ;;  %5773 = vmatprep.mubr.msk.f32.mxu0 %vm4531_vm9, %v4521_v48  ;;  %v4314_v16 = vpop.permute.xlu1 %4313  ;;  %v4187_v14 = vadd.f32 %v4152_v52, %v4027_v60  ;;  %v11306_v60 = vld [vmem:[#allocation20_spill] sm:$0xff] }
 0xf4c   : > { %5774 = vmatmul.mubr.msk.f32.gmra.mrb[18].mxu0 %vm4531_vm9, %v4522_v51  ;;  %v4348_v24 = vadd.f32 %v4314_v16, %v4188_v7 }
 0xf4d   : > { %3870 = vadd.xlane.f32.xlu0 %v3869_v55 }
 0xf4e   : > { %v4312_v1 = vpop.permute.xlu0 %4311 }
 0xf4f   : > { %3879 = vadd.xlane.f32.xlu1 %v3878_v2  ;;  %v4474_v45 = vpop.permute.xlu1 %4473  ;;  %v4347_v25 = vadd.f32 %v4312_v1, %v4187_v14  ;;  %v1401_v1 = vcvt.s32.f32 %v1399_v41  ;;  %v11308_v14 = vld [vmem:[#allocation27_spill] sm:$0xff] }
 0xf50   : > { %v4508_v21 = vadd.f32 %v4474_v45, %v4348_v24 }
 0xf51   : > { %3876 = vadd.xlane.f32.xlu0 %v3875_v42  ;;  %v4529_v42 = vsub.s32 1, %v11308_v14 }
 0xf52   : > { %v4524_v56 = vsel %vm582_vm0, %v4508_v21, %v11302_v15 }
 0xf53   : > { %3885 = vadd.xlane.f32.xlu1 %v3884_v11  ;;  %v4472_v46 = vpop.permute.xlu1 %4471  ;;  %v10075_v24 = vrot.slane %v6541_v3, %v4529_v42 }
 0xf54   : > { %v4507_v39 = vadd.f32 %v4472_v46, %v4347_v25  ;;  %v4158_v50 = vpop.permute.xlu0 %4157 }
 0xf55   : > { %3882 = vadd.xlane.f32.xlu0 %v3881_v26  ;;  %v4190_v52 = vadd.f32 %v4158_v50, %v4030_v30 }
 0xf56   : > { %v4523_v37 = vsel %vm582_vm0, %v4507_v39, %v11301_v13 }
 0xf57   : > { %5776 = vmatprep.mubr.msk.f32.mxu0 %vm4531_vm9, %v4523_v37 }
 0xf58   : > { %v4156_v35 = vpop.permute.xlu0 %4155  ;;  %5777 = vmatmul.mubr.msk.f32.gmra.mrb[20].mxu0 %vm4531_vm9, %v4524_v56 }
 0xf59   : > { %1392 = vmin.xlane.f32.xlu0 %v1391_v29  ;;  %v4318_v49 = vpop.permute.xlu1 %4317  ;;  %v4189_v48 = vadd.f32 %v4156_v35, %v4029_v17 }
 0xf5a   : > { %v4350_v16 = vadd.f32 %v4318_v49, %v4190_v52 }
 0xf5c   : > { %v4316_v44 = vpop.permute.xlu0 %4315 }
 0xf5d   : > { %v4478_v9 = vpop.permute.xlu1 %4477  ;;  %v4349_v51 = vadd.f32 %v4316_v44, %v4189_v48 }
 0xf5e   : > { %v4510_v55 = vadd.f32 %v4478_v9, %v4350_v16 }
 0xf60   : > { %v4476_v0 = vpop.permute.xlu0 %4475  ;;  %v4526_v2 = vsel %vm582_vm0, %v4510_v55, %v11306_v60 }
 0xf61   : > { %v4509_v40 = vadd.f32 %v4476_v0, %v4349_v51 }
 0xf63   : > { %v4525_v34 = vsel %vm582_vm0, %v4509_v40, %v11305_v28 }
 0xf64   : > { %5779 = vmatprep.mubr.msk.f32.mxu0 %vm4531_vm9, %v4525_v34 }
 0xf65   : > { %5780 = vmatmul.mubr.msk.f32.gmra.mrb[22].mxu0 %vm4531_vm9, %v4526_v2  ;;  %vm5352_vm9 = vcmask 293888  }
 0xf9a   : > { %v10070_v7 = vpop.xlane.xlu0 %1403 }
 0xf9b   : > { %11307 = vst [vmem:[#allocation98_spill] sm:$0xff] %v10070_v7  ;;  %vm1405_vm13 = vcmp.eq.f32.partialorder %v9915_v5, %v10070_v7 }
 0xf9c   : > { %v1406_v45 = vsel %vm1405_vm13, %v1401_v1, inf  ;;  %v10089_v20 = vpop.xlane.xlu1 %1418 }
 0xf9d   : > { %1407 = vmin.xlane.f32.xlu1 %v1406_v45  ;;  %11309 = vst [vmem:[#allocation113_spill] sm:$0xff] %v10089_v20  ;;  %vm1420_vm14 = vcmp.eq.f32.partialorder %v9923_v59, %v10089_v20 }
 0xf9e   : > { %v10087_v5 = vpop.xlane.xlu0 %1433 }
 0xf9f   : > { %vm1435_vm15 = vcmp.eq.f32.partialorder %v9930_v43, %v10087_v5 }
 0xfa0   : > { %v10097_v46 = vpop.xlane.xlu1 %1463 }
 0xfa2   : > { %v10095_v21 = vpop.xlane.xlu0 %1448 }
 0xfa3   : > { %vm1450_vm4 = vcmp.eq.f32.partialorder %v9945_v61, %v10095_v21 }
 0xfa4   : > { %v10101_v50 = vpop.xlane.xlu1 %1506 }
 0xfa5   : > { %11311 = vst [vmem:[#allocation102_spill] sm:$0xff] %v10101_v50 }
 0xfa6   : > { %v10099_v39 = vpop.xlane.xlu0 %1509 }
 0xfa7   : > { %11310 = vst [vmem:[#allocation26_spill] sm:$0xff] %v10099_v39 }
 0xfa8   : > { %v10113_v31 = vpop.xlane.xlu1 %1515 }
 0xfa9   : > { %11313 = vst [vmem:[#allocation25_spill] sm:$0xff] %v10113_v31 }
 0xfaa   : > { %v10109_v37 = vpop.xlane.xlu0 %1512 }
 0xfab   : > { %11312 = vst [vmem:[#allocation114_spill] sm:$0xff] %v10109_v37 }
 0xfac   : > { %v10123_v56 = vpop.xlane.xlu1 %1521 }
 0xfad   : > { %11315 = vst [vmem:[#allocation29_spill] sm:$0xff] %v10123_v56 }
 0xfae   : > { %v10121_v22 = vpop.xlane.xlu0 %1518 }
 0xfaf   : > { %11314 = vst [vmem:[#allocation103_spill] sm:$0xff] %v10121_v22 }
 0xfb0   : > { %v10127_v29 = vpop.xlane.xlu1 %1527 }
 0xfb1   : > { %11317 = vst [vmem:[#allocation33_spill] sm:$0xff] %v10127_v29 }
 0xfb2   : > { %v10125_v35 = vpop.xlane.xlu0 %1524 }
 0xfb3   : > { %11316 = vst [vmem:[#allocation47_spill] sm:$0xff] %v10125_v35 }
 0xfb4   : > { %v10141_v52 = vpop.xlane.xlu1 %1533 }
 0xfb5   : > { %11319 = vst [vmem:[#allocation34_spill] sm:$0xff] %v10141_v52 }
 0xfb6   : > { %v10139_v17 = vpop.xlane.xlu0 %1530 }
 0xfb7   : > { %11318 = vst [vmem:[#allocation35_spill] sm:$0xff] %v10139_v17 }
 0xfb8   : > { %v10149_v48 = vpop.xlane.xlu1 %1539 }
 0xfb9   : > { %11321 = vst [vmem:[#allocation48_spill] sm:$0xff] %v10149_v48 }
 0xfba   : > { %v10147_v44 = vpop.xlane.xlu0 %1536 }
 0xfbb   : > { %11320 = vst [vmem:[#allocation45_spill] sm:$0xff] %v10147_v44 }
 0xfbc   : > { %v10153_v16 = vpop.xlane.xlu1 %1545 }
 0xfbd   : > { %11323 = vst [vmem:[#allocation28_spill] sm:$0xff] %v10153_v16 }
 0xfbe   : > { %v10151_v9 = vpop.xlane.xlu0 %1542 }
 0xfbf   : > { %11322 = vst [vmem:[#allocation56_spill] sm:$0xff] %v10151_v9 }
 0xfc0   : > { %v10167_v2 = vpop.xlane.xlu1 %1551 }
 0xfc1   : > { %11325 = vst [vmem:[#allocation32_spill] sm:$0xff] %v10167_v2 }
 0xfc2   : > { %v10165_v34 = vpop.xlane.xlu0 %1548 }
 0xfc3   : > { %11324 = vst [vmem:[#allocation54_spill] sm:$0xff] %v10165_v34 }
 0xfc4   : > { %v10175_v1 = vpop.xlane.xlu1 %3843 }
 0xfc5   : > { %11327 = vst [vmem:[#allocation42_spill] sm:$0xff] %v10175_v1 }
 0xfc6   : > { %v10173_v41 = vpop.xlane.xlu0 %3840 }
 0xfc7   : > { %11326 = vst [vmem:[#allocation53_spill] sm:$0xff] %v10173_v41 }
 0xfcf   : > { %v5760_v25 = vpop.f32.mrb[8].mxu0 }
 0xfd0   : > { %v10078_v11 = vadd.f32 %v5760_v25, %v10075_v24  ;;  %v4646_v19 = vpop.f32.mrb[9].mxu0  ;;  %v10185_v25 = vpop.xlane.xlu0 %3846 }
 0xfd1   : > { %v10081_v57 = vadd.f32 %v4646_v19, %v10075_v24  ;;  %11328 = vst [vmem:[#allocation38_spill] sm:$0xff] %v10185_v25  ;;  %v10189_v19 = vpop.xlane.xlu1 %3849 }
 0xfd2   : > { %4903 = vrot.lane.b32.xlu1 %v10078_v11, %s6680_s27  ;;  %11329 = vst [vmem:[#allocation43_spill] sm:$0xff] %v10189_v19  ;;  %v5591_v34 = vmul.f32 -1.442695, %v10078_v11 }
 0xfd3   : > { %4901 = vrot.lane.b32.xlu0 %v10081_v57, %s6680_s27  ;;  %v5590_v2 = vmul.f32 -1.442695, %v10081_v57 }
 0xfd4   : > { %6346 = vpow2.f32 %v5591_v34 }
 0xfd5   : > { %6348 = vpow2.f32 %v5590_v2 }
 0xfd6   : > { %4839 = vrot.lane.b32.xlu1 %v10078_v11, %s6678_s15 }
 0xfd7   : > { %4837 = vrot.lane.b32.xlu0 %v10081_v57, %s6678_s15 }
 0xfde   : > { %v6347_v2 = vpop.eup %6346 }
 0xfdf   : > { %v4774_v48 = vadd.f32 1.0, %v6347_v2 }
 0xfe1   : > { %6350 = vrcp.f32 %v4774_v48 }
 0xfe4   : > { %v5763_v26 = vpop.f32.mrb[10].mxu0 }
 0xfe5   : > { %v10104_v36 = vadd.f32 %v5763_v26, %v10075_v24  ;;  %v4656_v8 = vpop.f32.mrb[11].mxu0  ;;  %v10195_v26 = vpop.xlane.xlu0 %3852 }
 0xfe6   : > { %v10107_v54 = vadd.f32 %v4656_v8, %v10075_v24  ;;  %11330 = vst [vmem:[#allocation36_spill] sm:$0xff] %v10195_v26  ;;  %v10197_v8 = vpop.xlane.xlu1 %3855 }
 0xfe7   : > { %4907 = vrot.lane.b32.xlu1 %v10104_v36, %s6680_s27  ;;  %11331 = vst [vmem:[#allocation31_spill] sm:$0xff] %v10197_v8 }
 0xfe8   : > { %4905 = vrot.lane.b32.xlu0 %v10107_v54, %s6680_s27 }
 0xfeb   : > { %4843 = vrot.lane.b32.xlu1 %v10104_v36, %s6678_s15 }
 0xfec   : > { %4841 = vrot.lane.b32.xlu0 %v10107_v54, %s6678_s15 }
 0xff4   : > { %v5766_v49 = vpop.f32.mrb[12].mxu0 }
 0xff5   : > { %v10130_v32 = vadd.f32 %v5766_v49, %v10075_v24  ;;  %v4666_v30 = vpop.f32.mrb[13].mxu0 }
 0xff6   : > { %v10133_v53 = vadd.f32 %v4666_v30, %v10075_v24 }
 0xff7   : > { %4911 = vrot.lane.b32.xlu1 %v10130_v32, %s6680_s27 }
 0xff8   : > { %4909 = vrot.lane.b32.xlu0 %v10133_v53, %s6680_s27 }
 0xffb   : > { %4847 = vrot.lane.b32.xlu1 %v10130_v32, %s6678_s15 }
 0xffc   : > { %4845 = vrot.lane.b32.xlu0 %v10133_v53, %s6678_s15 }
0x1006   : > { %v5769_v51 = vpop.f32.mrb[14].mxu0 }
0x1007   : > { %v10156_v55 = vadd.f32 %v5769_v51, %v10075_v24  ;;  %v4676_v0 = vpop.f32.mrb[15].mxu0 }
0x1008   : > { %v10159_v40 = vadd.f32 %v4676_v0, %v10075_v24 }
0x1009   : > { %4915 = vrot.lane.b32.xlu1 %v10156_v55, %s6680_s27 }
0x100a   : > { %4913 = vrot.lane.b32.xlu0 %v10159_v40, %s6680_s27 }
0x100d   : > { %4851 = vrot.lane.b32.xlu1 %v10156_v55, %s6678_s15 }
0x100e   : > { %4849 = vrot.lane.b32.xlu0 %v10159_v40, %s6678_s15 }
0x1013   : > { %v5772_v45 = vpop.f32.mrb[16].mxu0 }
0x1014   : > { %v10178_v14 = vadd.f32 %v5772_v45, %v10075_v24  ;;  %v4686_v42 = vpop.f32.mrb[17].mxu0  ;;  %v10207_v45 = vpop.xlane.xlu0 %3858 }
0x1015   : > { %v10181_v3 = vadd.f32 %v4686_v42, %v10075_v24  ;;  %11332 = vst [vmem:[#allocation30_spill] sm:$0xff] %v10207_v45  ;;  %v10211_v42 = vpop.xlane.xlu1 %3861 }
0x1016   : > { %4919 = vrot.lane.b32.xlu1 %v10178_v14, %s6680_s27  ;;  %11333 = vst [vmem:[#allocation57_spill] sm:$0xff] %v10211_v42 }
0x1017   : > { %4917 = vrot.lane.b32.xlu0 %v10181_v3, %s6680_s27  ;;  %v5598_v8 = vmul.f32 -1.442695, %v10181_v3 }
0x101a   : > { %4855 = vrot.lane.b32.xlu1 %v10178_v14, %s6678_s15 }
0x101b   : > { %4853 = vrot.lane.b32.xlu0 %v10181_v3, %s6678_s15 }
0x101f   : > { %v5775_v49 = vpop.f32.mrb[18].mxu0 }
0x1020   : > { %v10200_v30 = vadd.f32 %v5775_v49, %v10075_v24  ;;  %v4696_v51 = vpop.f32.mrb[19].mxu0  ;;  %v10219_v49 = vpop.xlane.xlu0 %3864 }
0x1021   : > { %v10203_v0 = vadd.f32 %v4696_v51, %v10075_v24  ;;  %11334 = vst [vmem:[#allocation82_spill] sm:$0xff] %v10219_v49  ;;  %v10221_v51 = vpop.xlane.xlu1 %3867 }
0x1022   : > { %4923 = vrot.lane.b32.xlu1 %v10200_v30, %s6680_s27  ;;  %11335 = vst [vmem:[#allocation81_spill] sm:$0xff] %v10221_v51  ;;  %v5601_v1 = vmul.f32 -1.442695, %v10200_v30 }
0x1023   : > { %4921 = vrot.lane.b32.xlu0 %v10203_v0, %s6680_s27  ;;  %v5600_v31 = vmul.f32 -1.442695, %v10203_v0 }
0x1024   : > { %v10231_v44 = vpop.xlane.xlu0 %3870 }
0x1025   : > { %11336 = vst [vmem:[#allocation84_spill] sm:$0xff] %v10231_v44  ;;  %v10235_v34 = vpop.xlane.xlu1 %3873 }
0x1026   : > { %4859 = vrot.lane.b32.xlu1 %v10200_v30, %s6678_s15  ;;  %11337 = vst [vmem:[#allocation107_spill] sm:$0xff] %v10235_v34  ;;  %v5593_v34 = vmul.f32 -1.442695, %v10104_v36 }
0x1027   : > { %4857 = vrot.lane.b32.xlu0 %v10203_v0, %s6678_s15 }
0x1029   : > { %v10243_v17 = vpop.xlane.xlu1 %3879 }
0x102a   : > { %11339 = vst [vmem:[#allocation110_spill] sm:$0xff] %v10243_v17  ;;  %v5595_v17 = vmul.f32 -1.442695, %v10130_v32 }
0x102b   : > { %v5778_v9 = vpop.f32.mrb[20].mxu0 }
0x102c   : > { %v10224_v16 = vadd.f32 %v5778_v9, %v10075_v24  ;;  %v4706_v47 = vpop.f32.mrb[21].mxu0  ;;  %v6349_v9 = vpop.eup %6348 }
0x102d   : > { %v10227_v7 = vadd.f32 %v4706_v47, %v10075_v24  ;;  %v10241_v47 = vpop.xlane.xlu0 %3876  ;;  %v4773_v49 = vadd.f32 1.0, %v6349_v9  ;;  %v10257_v2 = vpop.xlane.xlu1 %3885 }
0x102e   : > { %4927 = vrot.lane.b32.xlu1 %v10224_v16, %s6680_s27  ;;  %11338 = vst [vmem:[#allocation74_spill] sm:$0xff] %v10241_v47  ;;  %v5592_v47 = vmul.f32 -1.442695, %v10107_v54  ;;  %11341 = vst [vmem:[#allocation23_spill] sm:$0xff] %v10257_v2  ;;  %v10269_v48 = vpop.eup %6350 }
0x102f   : > { %4925 = vrot.lane.b32.xlu0 %v10227_v7, %s6680_s27  ;;  %6352 = vrcp.f32 %v4773_v49 }
0x1030   : > { %6354 = vpow2.f32 %v5593_v34 }
0x1031   : > { %v10252_v35 = vpop.xlane.xlu0 %3882  ;;  %6356 = vpow2.f32 %v5592_v47 }
0x1032   : > { %4863 = vrot.lane.b32.xlu1 %v10224_v16, %s6678_s15  ;;  %11340 = vst [vmem:[#allocation19_spill] sm:$0xff] %v10252_v35  ;;  %6358 = vpow2.f32 %v5595_v17 }
0x1033   : > { %4861 = vrot.lane.b32.xlu0 %v10227_v7, %s6678_s15 }
0x1038   : > { %v5781_v44 = vpop.f32.mrb[22].mxu0 }
0x1039   : > { %v10246_v52 = vadd.f32 %v5781_v44, %v10075_v24  ;;  %v4716_v51 = vpop.f32.mrb[23].mxu0  ;;  %v10267_v44 = vpop.xlane.xlu0 %1392 }
0x103a   : > { %v10250_v45 = vadd.f32 %v4716_v51, %v10075_v24  ;;  %v10263_v24 = vpop.xlane.xlu1 %1407  ;;  %11343 = vst [vmem:[#allocation112_spill] sm:$0xff] %v10267_v44  ;;  %v10271_v51 = vpop.eup %6352  ;;  %v5594_v44 = vmul.f32 -1.442695, %v10133_v53 }
0x103b   : > { %4931 = vrot.lane.b32.xlu1 %v10246_v52, %s6680_s27  ;;  %11342 = vst [vmem:[#allocation116_spill] sm:$0xff] %v10263_v24  ;;  %v6355_v47 = vpop.eup %6354 }
0x103c   : > { %4929 = vrot.lane.b32.xlu0 %v10250_v45, %s6680_s27  ;;  %v6357_v2 = vpop.eup %6356  ;;  %v4776_v24 = vadd.f32 1.0, %v6355_v47  ;;  %6360 = vpow2.f32 %v5594_v44 }
0x103d   : > { %v4775_v22 = vadd.f32 1.0, %v6357_v2 }
0x103e   : > { %6362 = vrcp.f32 %v4776_v24  ;;  %v5596_v24 = vmul.f32 -1.442695, %v10159_v40 }
0x103f   : > { %4867 = vrot.lane.b32.xlu1 %v10246_v52, %s6678_s15  ;;  %6364 = vrcp.f32 %v4775_v22  ;;  %v5597_v22 = vmul.f32 -1.442695, %v10156_v55 }
0x1040   : > { %4865 = vrot.lane.b32.xlu0 %v10250_v45, %s6678_s15 }
0x1044   : > { %v4904_v49 = vpop.permute.xlu1 %4903 }
0x1045   : > { %v4950_v9 = vmul.f32 %v10269_v48, %v4904_v49  ;;  %v4902_v35 = vpop.permute.xlu0 %4901 }
0x1046   : > { %v4949_v34 = vmul.f32 %v10271_v51, %v4902_v35  ;;  %v6359_v35 = vpop.eup %6358 }
0x1047   : > { %4983 = vrot.lane.b32.xlu1 %v4950_v9, %s6679_s17  ;;  %v6361_v9 = vpop.eup %6360  ;;  %v4778_v37 = vadd.f32 1.0, %v6359_v35 }
0x1048   : > { %4981 = vrot.lane.b32.xlu0 %v4949_v34, %s6679_s17  ;;  %v10279_v49 = vpop.permute.xlu1 %4839  ;;  %v10283_v29 = vpop.eup %6362  ;;  %v4777_v2 = vadd.f32 1.0, %v6361_v9 }
0x1049   : > { %v10281_v26 = vpop.permute.xlu0 %4837  ;;  %v10285_v42 = vpop.eup %6364  ;;  %6366 = vrcp.f32 %v4778_v37 }
0x104a   : > { %6368 = vrcp.f32 %v4777_v2 }
0x104b   : > { %6370 = vpow2.f32 %v5597_v22 }
0x104c   : > { %6372 = vpow2.f32 %v5596_v24 }
0x1059   : > { %v4908_v34 = vpop.permute.xlu1 %4907 }
0x105a   : > { %v4952_v25 = vmul.f32 %v10283_v29, %v4908_v34  ;;  %v4906_v47 = vpop.permute.xlu0 %4905  ;;  %v10297_v34 = vpop.eup %6366 }
0x105b   : > { %v4951_v17 = vmul.f32 %v10285_v42, %v4906_v47  ;;  %v10299_v9 = vpop.eup %6368  ;;  %v5599_v47 = vmul.f32 -1.442695, %v10178_v14 }
0x105c   : > { %4987 = vrot.lane.b32.xlu1 %v4952_v25, %s6679_s17  ;;  %v6371_v25 = vpop.eup %6370 }
0x105d   : > { %4985 = vrot.lane.b32.xlu0 %v4951_v17, %s6679_s17  ;;  %v10293_v44 = vpop.permute.xlu1 %4843  ;;  %v6373_v2 = vpop.eup %6372  ;;  %v4780_v24 = vadd.f32 1.0, %v6371_v25  ;;  %6374 = vpow2.f32 %v5599_v47 }
0x105e   : > { %v10295_v35 = vpop.permute.xlu0 %4841  ;;  %v4779_v39 = vadd.f32 1.0, %v6373_v2  ;;  %6376 = vpow2.f32 %v5598_v8  ;;  %v4888_v43 = vsub.f32 %v10104_v36, %v10293_v44 }
0x105f   : > { %6378 = vrcp.f32 %v4780_v24 }
0x1060   : > { %6380 = vrcp.f32 %v4779_v39 }
0x1061   : > { %6382 = vpow2.f32 %v5601_v1  ;;  %v5603_v1 = vmul.f32 -1.442695, %v10224_v16 }
0x1062   : > { %6384 = vpow2.f32 %v5600_v31  ;;  %v5602_v31 = vmul.f32 -1.442695, %v10227_v7 }
0x1067   : > { %v6375_v19 = vpop.eup %6374 }
0x1068   : > { %v6377_v50 = vpop.eup %6376 }
0x1069   : > { %v4912_v56 = vpop.permute.xlu1 %4911  ;;  %v10313_v47 = vpop.eup %6378  ;;  %v4781_v25 = vadd.f32 1.0, %v6377_v50 }
0x106a   : > { %v4954_v17 = vmul.f32 %v10297_v34, %v4912_v56  ;;  %v4910_v37 = vpop.permute.xlu0 %4909  ;;  %v10315_v8 = vpop.eup %6380 }
0x106b   : > { %v4953_v22 = vmul.f32 %v10299_v9, %v4910_v37 }
0x106c   : > { %4991 = vrot.lane.b32.xlu1 %v4954_v17, %s6679_s17  ;;  %v4782_v17 = vadd.f32 1.0, %v6375_v19  ;;  %v6383_v19 = vpop.eup %6382 }
0x106d   : > { %4989 = vrot.lane.b32.xlu0 %v4953_v22, %s6679_s17  ;;  %v10309_v56 = vpop.permute.xlu1 %4847  ;;  %v6385_v50 = vpop.eup %6384 }
0x106e   : > { %v10311_v41 = vpop.permute.xlu0 %4845  ;;  %6386 = vrcp.f32 %v4782_v17 }
0x106f   : > { %6388 = vrcp.f32 %v4781_v25 }
0x1070   : > { %6390 = vpow2.f32 %v5603_v1  ;;  %v5605_v1 = vmul.f32 -1.442695, %v10246_v52 }
0x1071   : > { %6392 = vpow2.f32 %v5602_v31 }
0x1078   : > { %v10327_v17 = vpop.eup %6386 }
0x1079   : > { %11344 = vst [vmem:[#allocation87_spill] sm:$0xff] %v10327_v17  ;;  %v10329_v25 = vpop.eup %6388 }
0x107a   : > { %11345 = vst [vmem:[#allocation88_spill] sm:$0xff] %v10329_v25  ;;  %v6391_v31 = vpop.eup %6390 }
0x107b   : > { %v4916_v37 = vpop.permute.xlu1 %4915 }
0x107c   : > { %v4956_v39 = vmul.f32 %v10313_v47, %v4916_v37  ;;  %v4914_v2 = vpop.permute.xlu0 %4913  ;;  %v4784_v37 = vadd.f32 1.0, %v6383_v19  ;;  %v5604_v19 = vmul.f32 -1.442695, %v10250_v45 }
0x107d   : > { %v4955_v22 = vmul.f32 %v10315_v8, %v4914_v2  ;;  %v4783_v2 = vadd.f32 1.0, %v6385_v50  ;;  %v6393_v50 = vpop.eup %6392 }
0x107e   : > { %4995 = vrot.lane.b32.xlu1 %v4956_v39, %s6679_s17  ;;  %6394 = vrcp.f32 %v4784_v37  ;;  %v4785_v37 = vadd.f32 1.0, %v6393_v50 }
0x107f   : > { %4993 = vrot.lane.b32.xlu0 %v4955_v22, %s6679_s17  ;;  %v10323_v24 = vpop.permute.xlu1 %4851  ;;  %6396 = vrcp.f32 %v4783_v2 }
0x1080   : > { %v10325_v28 = vpop.permute.xlu0 %4849  ;;  %6398 = vpow2.f32 %v5605_v1 }
0x1081   : > { %6400 = vpow2.f32 %v5604_v19 }
0x1088   : > { %v4920_v39 = vpop.permute.xlu1 %4919 }
0x1089   : > { %v4958_v22 = vmul.f32 %v10327_v17, %v4920_v39  ;;  %v4918_v60 = vpop.permute.xlu0 %4917  ;;  %v4786_v39 = vadd.f32 1.0, %v6391_v31 }
0x108a   : > { %v4957_v13 = vmul.f32 %v10329_v25, %v4918_v60  ;;  %v10341_v60 = vpop.eup %6394 }
0x108b   : > { %4999 = vrot.lane.b32.xlu1 %v4958_v22, %s6679_s17  ;;  %11346 = vst [vmem:[#allocation101_spill] sm:$0xff] %v10341_v60  ;;  %v10343_v22 = vpop.eup %6396  ;;  %6402 = vrcp.f32 %v4786_v39 }
0x108c   : > { %4997 = vrot.lane.b32.xlu0 %v4957_v13, %s6679_s17  ;;  %v10337_v15 = vpop.permute.xlu1 %4855  ;;  %11347 = vst [vmem:[#allocation78_spill] sm:$0xff] %v10343_v22  ;;  %6404 = vrcp.f32 %v4785_v37  ;;  %v6399_v31 = vpop.eup %6398 }
0x108d   : > { %v10339_v10 = vpop.permute.xlu0 %4853  ;;  %v6401_v19 = vpop.eup %6400  ;;  %v4788_v58 = vadd.f32 1.0, %v6399_v31 }
0x108e   : > { %v4787_v17 = vadd.f32 1.0, %v6401_v19 }
0x108f   : > { %6406 = vrcp.f32 %v4788_v58  ;;  %v1414_v58 = vand.u32 65535, %v9899_v23  ;;  %v4886_v23 = vsub.f32 %v10078_v11, %v10279_v49  ;;  %v4890_v11 = vsub.f32 %v10130_v32, %v10309_v56 }
0x1090   : > { %6408 = vrcp.f32 %v4787_v17  ;;  %v4891_v56 = vsub.f32 %v10159_v40, %v10325_v28 }
0x1091   : > { %v1416_v17 = vcvt.s32.f32 %v1414_v58 }
0x1094   : > { %v4924_v2 = vpop.permute.xlu1 %4923 }
0x1095   : > { %v4960_v13 = vmul.f32 %v10341_v60, %v4924_v2  ;;  %v4922_v33 = vpop.permute.xlu0 %4921  ;;  %v10353_v25 = vpop.eup %6402 }
0x1096   : > { %v4959_v38 = vmul.f32 %v10343_v22, %v4922_v33  ;;  %11348 = vst [vmem:[#allocation117_spill] sm:$0xff] %v10353_v25  ;;  %v10355_v60 = vpop.eup %6404 }
0x1097   : > { %5003 = vrot.lane.b32.xlu1 %v4960_v13, %s6679_s17  ;;  %11349 = vst [vmem:[#allocation27_spill] sm:$0xff] %v10355_v60 }
0x1098   : > { %5001 = vrot.lane.b32.xlu0 %v4959_v38, %s6679_s17  ;;  %v10349_v1 = vpop.permute.xlu1 %4859 }
0x1099   : > { %v10351_v50 = vpop.permute.xlu0 %4857  ;;  %v10365_v31 = vpop.eup %6406  ;;  %v4896_v40 = vsub.f32 %v10200_v30, %v10349_v1 }
0x109a   : > { %v10367_v22 = vpop.eup %6408 }
0x109b   : > { %11350 = vst [vmem:[#allocation120_spill] sm:$0xff] %v10367_v22 }
0x10a0   : > { %v4928_v2 = vpop.permute.xlu1 %4927 }
0x10a1   : > { %v4962_v33 = vmul.f32 %v10353_v25, %v4928_v2  ;;  %v4926_v39 = vpop.permute.xlu0 %4925 }
0x10a2   : > { %v4961_v37 = vmul.f32 %v10355_v60, %v4926_v39 }
0x10a3   : > { %5007 = vrot.lane.b32.xlu1 %v4962_v33, %s6679_s17  ;;  %v1429_v33 = vand.u32 65535, %v9907_v63  ;;  %v4885_v63 = vsub.f32 %v10081_v57, %v10281_v26  ;;  %v4889_v57 = vsub.f32 %v10133_v53, %v10311_v41  ;;  %v4892_v41 = vsub.f32 %v10156_v55, %v10323_v24 }
0x10a4   : > { %5005 = vrot.lane.b32.xlu0 %v4961_v37, %s6679_s17  ;;  %v10361_v38 = vpop.permute.xlu1 %4863 }
0x10a5   : > { %v10363_v13 = vpop.permute.xlu0 %4861 }
0x10a6   : > { %v4897_v30 = vsub.f32 %v10227_v7, %v10363_v13 }
0x10ad   : > { %v4932_v19 = vpop.permute.xlu1 %4931 }
0x10ae   : > { %v4964_v2 = vmul.f32 %v10365_v31, %v4932_v19  ;;  %v4930_v25 = vpop.permute.xlu0 %4929  ;;  %v1421_v19 = vsel %vm1420_vm14, %v1416_v17, inf  ;;  %v4887_v17 = vsub.f32 %v10107_v54, %v10295_v35 }
0x10af   : > { %v4963_v39 = vmul.f32 %v10367_v22, %v4930_v25  ;;  %v1431_v25 = vcvt.s32.f32 %v1429_v33 }
0x10b0   : > { %5011 = vrot.lane.b32.xlu1 %v4964_v2, %s6679_s17 }
0x10b1   : > { %5009 = vrot.lane.b32.xlu0 %v4963_v39, %s6679_s17  ;;  %v10377_v37 = vpop.permute.xlu1 %4867  ;;  %v1436_v22 = vsel %vm1435_vm15, %v1431_v25, inf }
0x10b2   : > { %v10379_v60 = vpop.permute.xlu0 %4865 }
0x10b9   : > { %v4984_v2 = vpop.permute.xlu1 %4983 }
0x10ba   : > { %v4982_v39 = vpop.permute.xlu0 %4981  ;;  %v5030_v59 = vadd.f32 %v4984_v2, %v4886_v23 }
0x10bb   : > { %v5029_v58 = vadd.f32 %v4982_v39, %v4885_v63 }
0x10bc   : > { %6410 = vtanh.f32 %v5030_v59  ;;  %v4894_v59 = vsub.f32 %v10178_v14, %v10337_v15  ;;  %v4895_v15 = vsub.f32 %v10203_v0, %v10351_v50 }
0x10bd   : > { %6412 = vtanh.f32 %v5029_v58 }
0x10c6   : > { %v6411_v35 = vpop.eup %6410 }
0x10c7   : > { %v6413_v36 = vpop.eup %6412 }
0x10cf   : > { %v4986_v20 = vpop.permute.xlu0 %4985 }
0x10d0   : > { %1422 = vmin.xlane.f32.xlu0 %v1421_v19  ;;  %v4988_v19 = vpop.permute.xlu1 %4987  ;;  %v5031_v33 = vadd.f32 %v4986_v20, %v4887_v17  ;;  %v4893_v17 = vsub.f32 %v10181_v3, %v10339_v10 }
0x10d1   : > { %v5032_v25 = vadd.f32 %v4988_v19, %v4888_v43 }
0x10d2   : > { %6414 = vtanh.f32 %v5031_v33 }
0x10d3   : > { %6416 = vtanh.f32 %v5032_v25 }
0x10d4   : > { %1437 = vmin.xlane.f32.xlu1 %v1436_v22 }
0x10dc   : > { %v6415_v20 = vpop.eup %6414 }
0x10dd   : > { %v6417_v44 = vpop.eup %6416 }
0x10de   : > { %v4992_v26 = vpop.permute.xlu1 %4991 }
0x10df   : > { %v5034_v49 = vadd.f32 %v4992_v26, %v4890_v11  ;;  %v4990_v22 = vpop.permute.xlu0 %4989 }
0x10e0   : > { %v5033_v54 = vadd.f32 %v4990_v22, %v4889_v57  ;;  %v4898_v57 = vsub.f32 %v10224_v16, %v10361_v38  ;;  %v4899_v16 = vsub.f32 %v10250_v45, %v10379_v60 }
0x10e2   : > { %6418 = vtanh.f32 %v5033_v54  ;;  %v4900_v54 = vsub.f32 %v10246_v52, %v10377_v37  ;;  %v1444_v52 = vand.u32 65535, %v9919_v6  ;;  %v1459_v37 = vand.u32 65535, %v9913_v62 }
0x10e3   : > { %6420 = vtanh.f32 %v5034_v49  ;;  %v5064_v62 = vsub.f32 1.0, %v10283_v29 }
0x10e4   : > { %v1446_v45 = vcvt.s32.f32 %v1444_v52  ;;  %v11357_v52 = vld [vmem:[#allocation88_spill] sm:$0xff] }
0x10e5   : > { %5095 = vrot.lane.b32.xlu1 %v6411_v35, %s6678_s15 }
0x10e6   : > { %5093 = vrot.lane.b32.xlu0 %v6413_v36, %s6678_s15  ;;  %v1451_v60 = vsel %vm1450_vm4, %v1446_v45, inf  ;;  %v5069_v45 = vsub.f32 1.0, %v11357_v52 }
0x10e9   : > { %5097 = vrot.lane.b32.xlu1 %v6415_v20, %s6678_s15 }
0x10ea   : > { %5099 = vrot.lane.b32.xlu0 %v6417_v44, %s6678_s15 }
0x10ec   : > { %v6419_v32 = vpop.eup %6418 }
0x10ed   : > { %v6421_v53 = vpop.eup %6420  ;;  %5101 = vrot.lane.b32.xlu1 %v6419_v32, %s6678_s15 }
0x10ee   : > { %5103 = vrot.lane.b32.xlu0 %v6421_v53, %s6678_s15  ;;  %v11351_v53 = vld [vmem:[#allocation79_spill] sm:$0xff] }
0x10ef   : > { %vm1465_vm5 = vcmp.eq.f32.partialorder %v11351_v53, %v10097_v46 }
0x10f0   : > { %v4996_v2 = vpop.permute.xlu1 %4995 }
0x10f1   : > { %v5036_v39 = vadd.f32 %v4996_v2, %v4892_v41  ;;  %v4994_v23 = vpop.permute.xlu0 %4993  ;;  %v1461_v41 = vcvt.s32.f32 %v1459_v37 }
0x10f2   : > { %v5035_v63 = vadd.f32 %v4994_v23, %v4891_v56 }
0x10f3   : > { %6422 = vtanh.f32 %v5036_v39  ;;  %v1466_v56 = vsel %vm1465_vm5, %v1461_v41, inf  ;;  %v5061_v39 = vsub.f32 1.0, %v10271_v51 }
0x10f4   : > { %6424 = vtanh.f32 %v5035_v63  ;;  %v11352_v63 = vld [vmem:[#allocation119_spill] sm:$0xff] }
0x10f5   : > { %v5157_v61 = vmul.f32 %v10271_v51, %v11352_v63 }
0x10fd   : > { %v6423_v58 = vpop.eup %6422  ;;  %v5000_v19 = vpop.permute.xlu1 %4999 }
0x10fe   : > { %v6425_v43 = vpop.eup %6424  ;;  %v5038_v33 = vadd.f32 %v5000_v19, %v4894_v59  ;;  %v4998_v55 = vpop.permute.xlu0 %4997  ;;  %5107 = vrot.lane.b32.xlu0 %v6423_v58, %s6678_s15 }
0x10ff   : > { %v5037_v28 = vadd.f32 %v4998_v55, %v4893_v17  ;;  %5105 = vrot.lane.b32.xlu1 %v6425_v43, %s6678_s15  ;;  %v5062_v17 = vsub.f32 1.0, %v10269_v48 }
0x1100   : > { %6426 = vtanh.f32 %v5038_v33  ;;  %v11353_v33 = vld [vmem:[#allocation12_spill] sm:$0xff] }
0x1101   : > { %6428 = vtanh.f32 %v5037_v28  ;;  %v5160_v55 = vmul.f32 %v10283_v29, %v11353_v33  ;;  %v5162_v29 = vmul.f32 %v10297_v34, %v8910_v12  ;;  %v5068_v12 = vsub.f32 1.0, %v10313_v47 }
0x1109   : > { %v5004_v14 = vpop.permute.xlu1 %5003 }
0x110a   : > { %v6427_v24 = vpop.eup %6426  ;;  %v5040_v10 = vadd.f32 %v5004_v14, %v4896_v40  ;;  %v5002_v3 = vpop.permute.xlu0 %5001  ;;  %v11354_v40 = vld [vmem:[#allocation118_spill] sm:$0xff] }
0x110b   : > { %v6429_v25 = vpop.eup %6428  ;;  %v5039_v11 = vadd.f32 %v5002_v3, %v4895_v15  ;;  %5111 = vrot.lane.b32.xlu0 %v6427_v24, %s6678_s15  ;;  %v5158_v15 = vmul.f32 %v10269_v48, %v11354_v40  ;;  %v5063_v3 = vsub.f32 1.0, %v10285_v42 }
0x110c   : > { %6430 = vtanh.f32 %v5040_v10  ;;  %5109 = vrot.lane.b32.xlu1 %v6429_v25, %s6678_s15  ;;  %v5066_v10 = vsub.f32 1.0, %v10297_v34 }
0x110d   : > { %6432 = vtanh.f32 %v5039_v11  ;;  %v11355_v11 = vld [vmem:[#allocation11_spill] sm:$0xff] }
0x1115   : > { %v5008_v1 = vpop.permute.xlu1 %5007 }
0x1116   : > { %v6431_v0 = vpop.eup %6430  ;;  %v5042_v50 = vadd.f32 %v5008_v1, %v4898_v57  ;;  %v5006_v26 = vpop.permute.xlu0 %5005  ;;  %v5159_v57 = vmul.f32 %v10285_v42, %v11355_v11 }
0x1117   : > { %v6433_v49 = vpop.eup %6432  ;;  %v5041_v22 = vadd.f32 %v5006_v26, %v4897_v30  ;;  %5115 = vrot.lane.b32.xlu0 %v6431_v0, %s6678_s15  ;;  %v5065_v26 = vsub.f32 1.0, %v10299_v9 }
0x1118   : > { %6434 = vtanh.f32 %v5042_v50  ;;  %5113 = vrot.lane.b32.xlu1 %v6433_v49, %s6678_s15 }
0x1119   : > { %6436 = vtanh.f32 %v5041_v22  ;;  %v5161_v22 = vmul.f32 %v10299_v9, %v8920_v27 }
0x1122   : > { %v6435_v35 = vpop.eup %6434  ;;  %v5012_v7 = vpop.permute.xlu1 %5011 }
0x1123   : > { %v6437_v38 = vpop.eup %6436  ;;  %v5044_v13 = vadd.f32 %v5012_v7, %v4900_v54  ;;  %v5010_v36 = vpop.permute.xlu0 %5009  ;;  %5119 = vrot.lane.b32.xlu0 %v6435_v35, %s6678_s15  ;;  %v5067_v35 = vsub.f32 1.0, %v10315_v8 }
0x1124   : > { %v5043_v20 = vadd.f32 %v5010_v36, %v4899_v16  ;;  %5117 = vrot.lane.b32.xlu1 %v6437_v38, %s6678_s15  ;;  %v5164_v16 = vmul.f32 %v10313_v47, %v8944_v18  ;;  %v11358_v18 = vld [vmem:[#allocation14_spill] sm:$0xff] }
0x1125   : > { %6438 = vtanh.f32 %v5044_v13  ;;  %v5163_v13 = vmul.f32 %v10315_v8, %v8954_v4  ;;  %v11359_v4 = vld [vmem:[#allocation13_spill] sm:$0xff] }
0x1126   : > { %6440 = vtanh.f32 %v5043_v20  ;;  %v11356_v20 = vld [vmem:[#allocation87_spill] sm:$0xff]  ;;  %v5165_v8 = vmul.f32 %v11357_v52, %v11359_v4  ;;  %v11375_v52 = vld [vmem:[#allocation60_spill] sm:$0xff]  ;;  %v11378_v4 = vld [vmem:[#allocation37_spill] sm:$0xff] }
0x1127   : > { %v5166_v47 = vmul.f32 %v11356_v20, %v11358_v18  ;;  %v11376_v18 = vld [vmem:[#allocation63_spill] sm:$0xff] }
0x112f   : > { %v6439_v44 = vpop.eup %6438 }
0x1130   : > { %v6441_v32 = vpop.eup %6440  ;;  %5123 = vrot.lane.b32.xlu0 %v6439_v44, %s6678_s15  ;;  %v5070_v44 = vsub.f32 1.0, %v11356_v20  ;;  %v11373_v20 = vld [vmem:[#allocation58_spill] sm:$0xff] }
0x1131   : > { %5121 = vrot.lane.b32.xlu1 %v6441_v32, %s6678_s15 }
0x114f   : > { %1452 = vmin.xlane.f32.xlu0 %v1451_v60 }
0x1155   : > { %1467 = vmin.xlane.f32.xlu1 %v1466_v56 }
0x115d   : > { %v10437_v2 = vpop.xlane.xlu0 %1422 }
0x1161   : > { %v5094_v23 = vpop.permute.xlu0 %5093  ;;  %v10440_v6 = vpop.xlane.xlu1 %1437 }
0x1162   : > { %v5141_v59 = vmul.f32 %v5094_v23, %v5061_v39  ;;  %v11360_v39 = vld [vmem:[#allocation101_spill] sm:$0xff] }
0x1163   : > { %v5072_v23 = vsub.f32 1.0, %v11360_v39 }
0x1164   : > { %v5173_v58 = vadd.f32 %v5157_v61, %v5141_v59  ;;  %v11361_v61 = vld [vmem:[#allocation78_spill] sm:$0xff] }
0x1165   : > { %v5100_v19 = vpop.permute.xlu0 %5099  ;;  %v5096_v43 = vpop.permute.xlu1 %5095  ;;  %v5071_v59 = vsub.f32 1.0, %v11361_v61 }
0x1166   : > { %v5144_v28 = vmul.f32 %v5100_v19, %v5064_v62  ;;  %v5142_v14 = vmul.f32 %v5096_v43, %v5062_v17  ;;  %5237 = vrot.lane.b32.xlu0 %v5173_v58, %s6678_s15  ;;  %v11362_v58 = vld [vmem:[#allocation16_spill] sm:$0xff]  ;;  %v11363_v43 = vld [vmem:[#allocation15_spill] sm:$0xff] }
0x1167   : > { %v5168_v62 = vmul.f32 %v11360_v39, %v11362_v58  ;;  %v5167_v33 = vmul.f32 %v11361_v61, %v11363_v43  ;;  %v11382_v61 = vld [vmem:[#allocation41_spill] sm:$0xff]  ;;  %v11385_v43 = vld [vmem:[#allocation50_spill] sm:$0xff] }
0x1168   : > { %v5176_v24 = vadd.f32 %v5160_v55, %v5144_v28  ;;  %v5174_v51 = vadd.f32 %v5158_v15, %v5142_v14  ;;  %v11364_v15 = vld [vmem:[#allocation117_spill] sm:$0xff] }
0x1169   : > { %v5104_v25 = vpop.permute.xlu0 %5103  ;;  %v5098_v30 = vpop.permute.xlu1 %5097  ;;  %v5074_v14 = vsub.f32 1.0, %v11364_v15  ;;  %v11383_v58 = vld [vmem:[#allocation53_spill] sm:$0xff] }
0x116a   : > { %v5146_v1 = vmul.f32 %v5104_v25, %v5066_v10  ;;  %v5143_v0 = vmul.f32 %v5098_v30, %v5063_v3  ;;  %5243 = vrot.lane.b32.xlu0 %v5176_v24, %s6678_s15  ;;  %5239 = vrot.lane.b32.xlu1 %v5174_v51, %s6678_s15  ;;  %v11365_v51 = vld [vmem:[#allocation27_spill] sm:$0xff]  ;;  %v11366_v3 = vld [vmem:[#allocation18_spill] sm:$0xff]  ;;  %v11367_v30 = vld [vmem:[#allocation17_spill] sm:$0xff]  ;;  %6442 = vlog2.f32 %v11383_v58 }
0x116b   : > { %v5073_v10 = vsub.f32 1.0, %v11365_v51  ;;  %v5170_v25 = vmul.f32 %v11364_v15, %v11366_v3  ;;  %v11390_v3 = vld [vmem:[#allocation102_spill] sm:$0xff]  ;;  %v11405_v58 = vld [vmem:[#allocation29_spill] sm:$0xff] }
0x116c   : > { %v5178_v48 = vadd.f32 %v5162_v29, %v5146_v1  ;;  %v5175_v50 = vadd.f32 %v5159_v57, %v5143_v0  ;;  %v5169_v29 = vmul.f32 %v11365_v51, %v11367_v30  ;;  %v11389_v51 = vld [vmem:[#allocation39_spill] sm:$0xff]  ;;  %6444 = vlog2.f32 %v11390_v3 }
0x116d   : > { %v5102_v49 = vpop.permute.xlu1 %5101 }
0x116e   : > { %v5145_v54 = vmul.f32 %v5102_v49, %v5065_v26  ;;  %5247 = vrot.lane.b32.xlu0 %v5178_v48, %s6678_s15  ;;  %5241 = vrot.lane.b32.xlu1 %v5175_v50, %s6678_s15  ;;  %v5076_v50 = vsub.f32 1.0, %v10365_v31  ;;  %v11368_v49 = vld [vmem:[#allocation120_spill] sm:$0xff] }
0x1170   : > { %v5177_v42 = vadd.f32 %v5161_v22, %v5145_v54  ;;  %v5108_v34 = vpop.permute.xlu0 %5107  ;;  %v5075_v22 = vsub.f32 1.0, %v11368_v49  ;;  %v11369_v54 = vld [vmem:[#allocation20_spill] sm:$0xff] }
0x1171   : > { %v5148_v7 = vmul.f32 %v5108_v34, %v5068_v12  ;;  %v5106_v38 = vpop.permute.xlu1 %5105  ;;  %v5172_v12 = vmul.f32 %v10365_v31, %v11369_v54  ;;  %v11374_v31 = vld [vmem:[#allocation59_spill] sm:$0xff] }
0x1172   : > { %v5147_v27 = vmul.f32 %v5106_v38, %v5067_v35  ;;  %5245 = vrot.lane.b32.xlu1 %v5177_v42, %s6678_s15  ;;  %v11370_v35 = vld [vmem:[#allocation106_spill] sm:$0xff] }
0x1173   : > { %v5180_v9 = vadd.f32 %v5164_v16, %v5148_v7  ;;  %v5171_v16 = vmul.f32 %v11368_v49, %v11370_v35  ;;  %v11397_v35 = vld [vmem:[#allocation25_spill] sm:$0xff] }
0x1174   : > { %v5179_v36 = vadd.f32 %v5163_v13, %v5147_v27  ;;  %v11371_v27 = vld [vmem:[#allocation44_spill] sm:$0xff] }
0x1175   : > { %5251 = vrot.lane.b32.xlu0 %v5180_v9, %s6678_s15  ;;  %v1245_v9 = vcvt.f32.s32 %v11371_v27  ;;  %v11399_v27 = vld [vmem:[#allocation42_spill] sm:$0xff] }
0x1176   : > { %5249 = vrot.lane.b32.xlu1 %v5179_v36, %s6678_s15  ;;  %v11372_v36 = vld [vmem:[#allocation46_spill] sm:$0xff] }
0x117d   : > { %v5112_v32 = vpop.permute.xlu0 %5111 }
0x117e   : > { %v5150_v60 = vmul.f32 %v5112_v32, %v5070_v44  ;;  %v5110_v37 = vpop.permute.xlu1 %5109  ;;  %v10508_v44 = vadd.f32 %v11373_v20, %v11372_v36  ;;  %v10512_v32 = vadd.f32 %v11374_v31, %v11372_v36  ;;  %v11400_v31 = vld [vmem:[#allocation86_spill] sm:$0xff] }
0x117f   : > { %v5149_v53 = vmul.f32 %v5110_v37, %v5069_v45  ;;  %v10516_v45 = vadd.f32 %v11375_v52, %v11372_v36  ;;  %v1335_v52 = vcvt.f32.s32 %v11400_v31 }
0x1180   : > { %v5182_v41 = vadd.f32 %v5166_v47, %v5150_v60  ;;  %v10520_v47 = vadd.f32 %v11376_v18, %v11372_v36  ;;  %v11377_v60 = vld [vmem:[#allocation64_spill] sm:$0xff]  ;;  %v11401_v18 = vld [vmem:[#allocation26_spill] sm:$0xff] }
0x1181   : > { %v5181_v56 = vadd.f32 %v5165_v8, %v5149_v53  ;;  %v10524_v37 = vadd.f32 %v11377_v60, %v11372_v36  ;;  %v1244_v8 = vcvt.f32.s32 %v11378_v4  ;;  %v11379_v53 = vld [vmem:[#allocation55_spill] sm:$0xff] }
0x1182   : > { %5255 = vrot.lane.b32.xlu0 %v5182_v41, %s6678_s15  ;;  %v1260_v41 = vcvt.f32.s32 %v11379_v53 }
0x1183   : > { %5253 = vrot.lane.b32.xlu1 %v5181_v56, %s6678_s15  ;;  %v11380_v56 = vld [vmem:[#allocation66_spill] sm:$0xff] }
0x1184   : > { %v10530_v39 = vadd.f32 %v11380_v56, %v11372_v36 }
0x1189   : > { %v5116_v63 = vpop.permute.xlu0 %5115 }
0x118a   : > { %v5152_v17 = vmul.f32 %v5116_v63, %v5072_v23  ;;  %v5114_v19 = vpop.permute.xlu1 %5113  ;;  %v11381_v23 = vld [vmem:[#allocation68_spill] sm:$0xff] }
0x118b   : > { %v5151_v55 = vmul.f32 %v5114_v19, %v5071_v59  ;;  %v10534_v63 = vadd.f32 %v11381_v23, %v11372_v36  ;;  %v1275_v59 = vcvt.f32.s32 %v11382_v61  ;;  %v1246_v19 = vshll.u32 %v1245_v9, 16  ;;  %v11404_v61 = vld [vmem:[#allocation91_spill] sm:$0xff] }
0x118c   : > { %v5184_v28 = vadd.f32 %v5168_v62, %v5152_v17  ;;  %v11384_v62 = vld [vmem:[#allocation70_spill] sm:$0xff] }
0x118d   : > { %v5183_v40 = vadd.f32 %v5167_v33, %v5151_v55  ;;  %v10540_v17 = vadd.f32 %v11384_v62, %v11372_v36  ;;  %v1259_v33 = vcvt.f32.s32 %v11385_v43  ;;  %v11386_v55 = vld [vmem:[#allocation51_spill] sm:$0xff]  ;;  %v6443_v62 = vpop.eup %6442  ;;  %v11406_v43 = vld [vmem:[#allocation94_spill] sm:$0xff] }
0x118e   : > { %5259 = vrot.lane.b32.xlu0 %v5184_v28, %s6678_s15  ;;  %v1290_v28 = vcvt.f32.s32 %v11386_v55  ;;  %v11407_v55 = vld [vmem:[#allocation104_spill] sm:$0xff]  ;;  %v6445_v3 = vpop.eup %6444 }
0x118f   : > { %5257 = vrot.lane.b32.xlu1 %v5183_v40, %s6678_s15  ;;  %v11387_v40 = vld [vmem:[#allocation72_spill] sm:$0xff]  ;;  %v1554_v31 = vmul.f32 0.6931472, %v6445_v3 }
0x1190   : > { %v10546_v15 = vadd.f32 %v11387_v40, %v11372_v36  ;;  %v11408_v40 = vld [vmem:[#allocation38_spill] sm:$0xff] }
0x1195   : > { %v5120_v24 = vpop.permute.xlu0 %5119 }
0x1196   : > { %v5154_v11 = vmul.f32 %v5120_v24, %v5074_v14  ;;  %v5118_v57 = vpop.permute.xlu1 %5117  ;;  %v11388_v14 = vld [vmem:[#allocation49_spill] sm:$0xff] }
0x1197   : > { %v5153_v1 = vmul.f32 %v5118_v57, %v5073_v10  ;;  %v1274_v24 = vcvt.f32.s32 %v11388_v14  ;;  %v1305_v10 = vcvt.f32.s32 %v11389_v51  ;;  %v11391_v57 = vld [vmem:[#allocation52_spill] sm:$0xff]  ;;  %v1336_v51 = vshll.u32 %v1335_v52, 16 }
0x1198   : > { %v5186_v0 = vadd.f32 %v5170_v25, %v5154_v11  ;;  %v10551_v25 = vadd.s32 %v1246_v19, %v1244_v8  ;;  %v1261_v11 = vshll.u32 %v1260_v41, 16  ;;  %v1289_v30 = vcvt.f32.s32 %v11391_v57  ;;  %v11402_v8 = vld [vmem:[#allocation93_spill] sm:$0xff]  ;;  %v11403_v41 = vld [vmem:[#allocation31_spill] sm:$0xff] }
0x1199   : > { %v5185_v48 = vadd.f32 %v5169_v29, %v5153_v1  ;;  %v11392_v29 = vld [vmem:[#allocation80_spill] sm:$0xff]  ;;  %v1365_v53 = vcvt.f32.s32 %v11402_v8 }
0x119a   : > { %5263 = vrot.lane.b32.xlu0 %v5186_v0, %s6678_s15  ;;  %v1320_v1 = vcvt.f32.s32 %v11392_v29  ;;  %v1276_v0 = vshll.u32 %v1275_v59, 16  ;;  %v10558_v54 = vadd.s32 %v1261_v11, %v1259_v33  ;;  %v5189_v56 = vcvt.s32.f32 %v10551_v25  ;;  %v11417_v8 = vld [vmem:[#allocation96_spill] sm:$0xff]  ;;  %v11426_v11 = vld [vmem:[#allocation82_spill] sm:$0xff] }
0x119b   : > { %5261 = vrot.lane.b32.xlu1 %v5185_v48, %s6678_s15  ;;  %v11393_v48 = vld [vmem:[#allocation40_spill] sm:$0xff]  ;;  %v1334_v59 = vcvt.f32.s32 %v11404_v61  ;;  %v1380_v33 = vcvt.f32.s32 %v11406_v43  ;;  %v1366_v57 = vshll.u32 %v1365_v53, 16  ;;  %v5207_v53 = vcvt.s32.f32 %v11417_v8 }
0x119c   : > { %v1321_v20 = vshll.u32 %v1320_v1, 16  ;;  %v5190_v14 = vcvt.s32.f32 %v10558_v54  ;;  %v11430_v8 = vld [vmem:[#allocation84_spill] sm:$0xff] }
0x119d   : > { %v10591_v1 = vadd.s32 %v1336_v51, %v1334_v59  ;;  %v11419_v59 = vld [vmem:[#allocation47_spill] sm:$0xff] }
0x11a2   : > { %v5124_v26 = vpop.permute.xlu0 %5123 }
0x11a3   : > { %v5156_v42 = vmul.f32 %v5124_v26, %v5076_v50  ;;  %v5122_v34 = vpop.permute.xlu1 %5121  ;;  %v1304_v50 = vcvt.f32.s32 %v11393_v48  ;;  %v11394_v26 = vld [vmem:[#allocation85_spill] sm:$0xff]  ;;  %v3888_v48 = vmul.f32 0.6931472, %v6443_v62 }
0x11a4   : > { %v5155_v7 = vmul.f32 %v5122_v34, %v5075_v22  ;;  %v1350_v49 = vcvt.f32.s32 %v11394_v26  ;;  %v11395_v22 = vld [vmem:[#allocation43_spill] sm:$0xff] }
0x11a5   : > { %v5188_v38 = vadd.f32 %v5172_v12, %v5156_v42  ;;  %6446 = vlog2.f32 %v11395_v22  ;;  %v1291_v12 = vshll.u32 %v1290_v28, 16  ;;  %v11396_v42 = vld [vmem:[#allocation83_spill] sm:$0xff]  ;;  %v1364_v28 = vcvt.f32.s32 %v11407_v55  ;;  %v11420_v55 = vld [vmem:[#allocation22_spill] sm:$0xff] }
0x11a6   : > { %v5187_v13 = vadd.f32 %v5171_v16, %v5155_v7  ;;  %v1319_v34 = vcvt.f32.s32 %v11396_v42  ;;  %6448 = vlog2.f32 %v11397_v35  ;;  %v10562_v16 = vadd.s32 %v1276_v0, %v1274_v24  ;;  %v11411_v0 = vld [vmem:[#allocation33_spill] sm:$0xff]  ;;  %v11412_v42 = vld [vmem:[#allocation36_spill] sm:$0xff] }
0x11a7   : > { %5267 = vrot.lane.b32.xlu0 %v5188_v38, %s6678_s15  ;;  %v1306_v7 = vshll.u32 %v1305_v10, 16  ;;  %v11398_v38 = vld [vmem:[#allocation92_spill] sm:$0xff]  ;;  %6450 = vlog2.f32 %v11399_v27  ;;  %v10566_v9 = vadd.s32 %v1291_v12, %v1289_v30  ;;  %v1351_v4 = vshll.u32 %v1350_v49, 16  ;;  %v11409_v10 = vld [vmem:[#allocation114_spill] sm:$0xff]  ;;  %v11410_v30 = vld [vmem:[#allocation57_spill] sm:$0xff] }
0x11a8   : > { %5265 = vrot.lane.b32.xlu1 %v5187_v13, %s6678_s15  ;;  %v1349_v13 = vcvt.f32.s32 %v11398_v38  ;;  %6452 = vlog2.f32 %v11401_v18  ;;  %v10575_v23 = vadd.s32 %v1321_v20, %v1319_v34  ;;  %v5191_v24 = vcvt.s32.f32 %v10562_v16  ;;  %v11413_v35 = vld [vmem:[#allocation105_spill] sm:$0xff]  ;;  %v11415_v27 = vld [vmem:[#allocation99_spill] sm:$0xff] }
0x11a9   : > { %v10570_v60 = vadd.s32 %v1306_v7, %v1304_v50  ;;  %6454 = vlog2.f32 %v11403_v41  ;;  %v5192_v25 = vcvt.s32.f32 %v10566_v9  ;;  %v10597_v22 = vshll.u32 %v1380_v33, 16  ;;  %v11414_v38 = vld [vmem:[#allocation89_spill] sm:$0xff]  ;;  %v11416_v18 = vld [vmem:[#allocation75_spill] sm:$0xff] }
0x11aa   : > { %6456 = vlog2.f32 %v11405_v58  ;;  %v10579_v19 = vadd.s32 %v1351_v4, %v1349_v13  ;;  %v5194_v29 = vcvt.s32.f32 %v10575_v23  ;;  %v10599_v12 = vadd.s32 %v1366_v57, %v1364_v28  ;;  %v11418_v41 = vld [vmem:[#allocation103_spill] sm:$0xff] }
0x11ab   : > { %6458 = vlog2.f32 %v11408_v40  ;;  %v5206_v13 = vcvt.s32.f32 %v11414_v38  ;;  %v5205_v20 = vcvt.s32.f32 %v11415_v27  ;;  %v5208_v4 = vcvt.s32.f32 %v11416_v18  ;;  %v11421_v40 = vld [vmem:[#allocation30_spill] sm:$0xff] }
0x11ac   : > { %6460 = vlog2.f32 %v11409_v10  ;;  %v5196_v49 = vcvt.s32.f32 %v10579_v19  ;;  %v3919_v58 = vadd.f32 %v3888_v48, %v1554_v31  ;;  %v5210_v28 = vcvt.s32.f32 %v11420_v55  ;;  %v11423_v31 = vld [vmem:[#allocation81_spill] sm:$0xff] }
0x11ad   : > { %6462 = vlog2.f32 %v11410_v30 }
0x11ae   : > { %6464 = vlog2.f32 %v11411_v0 }
0x11af   : > { %v6447_v26 = vpop.eup %6446  ;;  %6466 = vlog2.f32 %v11412_v42 }
0x11b0   : > { %v6449_v34 = vpop.eup %6448  ;;  %6468 = vlog2.f32 %v11418_v41  ;;  %v3894_v62 = vmul.f32 0.6931472, %v6447_v26  ;;  %v11422_v26 = vld [vmem:[#allocation108_spill] sm:$0xff] }
0x11b1   : > { %v6451_v52 = vpop.eup %6450  ;;  %6470 = vlog2.f32 %v11419_v59  ;;  %v1560_v3 = vmul.f32 0.6931472, %v6449_v34  ;;  %v11424_v59 = vld [vmem:[#allocation34_spill] sm:$0xff] }
0x11b2   : > { %v6453_v61 = vpop.eup %6452  ;;  %6472 = vlog2.f32 %v11421_v40  ;;  %v3890_v57 = vmul.f32 0.6931472, %v6451_v52  ;;  %v11425_v40 = vld [vmem:[#allocation109_spill] sm:$0xff] }
0x11b3   : > { %v6455_v33 = vpop.eup %6454  ;;  %v1556_v27 = vmul.f32 0.6931472, %v6453_v61  ;;  %6474 = vlog2.f32 %v11423_v31 }
0x11b4   : > { %v6457_v10 = vpop.eup %6456  ;;  %6476 = vlog2.f32 %v11424_v59  ;;  %v3898_v34 = vmul.f32 0.6931472, %v6455_v33 }
0x11b5   : > { %v6459_v48 = vpop.eup %6458  ;;  %6478 = vlog2.f32 %v11426_v11  ;;  %v3920_v42 = vadd.f32 %v3890_v57, %v1556_v27  ;;  %v11427_v11 = vld [vmem:[#allocation35_spill] sm:$0xff] }
0x11b6   : > { %v6461_v41 = vpop.eup %6460  ;;  %v3892_v7 = vmul.f32 0.6931472, %v6459_v48  ;;  %6480 = vlog2.f32 %v11427_v11 }
0x11dc   : > { %v10594_v50 = vpop.xlane.xlu0 %1452 }
0x11e0   : > { %v5238_v43 = vpop.permute.xlu0 %5237 }
0x11e1   : > { %v5285_v51 = vsel %vm582_vm0, %v5238_v43, %v10516_v45  ;;  %v3922_v45 = vadd.f32 %v3894_v62, %v1560_v3  ;;  %v1558_v3 = vmul.f32 0.6931472, %v6461_v41 }
0x11e2   : > { %v5302_v30 = vsel %vm5301_vm6, %v5285_v51, %v3919_v58  ;;  %v10615_v0 = vpop.xlane.xlu1 %1467  ;;  %v6463_v58 = vpop.eup %6462  ;;  %v5212_v51 = vcvt.s32.f32 %v11425_v40 }
0x11e3   : > { %v5319_v18 = vsel %vm5318_vm7, %v5302_v30, %v5189_v56  ;;  %v6465_v56 = vpop.eup %6464  ;;  %v1564_v30 = vmul.f32 0.6931472, %v6457_v10  ;;  %v3902_v48 = vmul.f32 0.6931472, %v6463_v58 }
0x11e4   : > { %v5336_v52 = vsel %vm5335_vm8, %v5319_v18, %v5205_v20  ;;  %v5244_v43 = vpop.permute.xlu0 %5243  ;;  %v6467_v33 = vpop.eup %6466 }
0x11e5   : > { %v5353_v61 = vsel %vm5352_vm9, %v5336_v52, 0.0  ;;  %v5288_v31 = vsel %vm582_vm0, %v5244_v43, %v10520_v47  ;;  %v3924_v57 = vadd.f32 %v3898_v34, %v1564_v30  ;;  %v1568_v52 = vmul.f32 0.6931472, %v6465_v56 }
0x11e6   : > { %5369 = vst [vmem:[%s10629_s23] sm:$0xff] %v5353_v61  ;;  %v5305_v20 = vsel %vm5301_vm6, %v5288_v31, %v3922_v45  ;;  %v5240_v62 = vpop.permute.xlu1 %5239  ;;  %v6469_v45 = vpop.eup %6468  ;;  %v3921_v34 = vadd.f32 %v3892_v7, %v1558_v3  ;;  %v3896_v43 = vmul.f32 0.6931472, %v6467_v33  ;;  %v11428_v31 = vld [vmem:[#allocation48_spill] sm:$0xff] }
0x11e7   : > { %v5322_v47 = vsel %vm5318_vm7, %v5305_v20, %v5192_v25  ;;  %v5286_v10 = vsel %vm582_vm0, %v5240_v62, %v10508_v44  ;;  %v6471_v44 = vpop.eup %6470  ;;  %6482 = vlog2.f32 %v11428_v31  ;;  %v1562_v7 = vmul.f32 0.6931472, %v6469_v45  ;;  %v11432_v45 = vld [vmem:[#allocation45_spill] sm:$0xff] }
0x11e8   : > { %v5339_v27 = vsel %vm5335_vm8, %v5322_v47, %v5208_v4  ;;  %v5303_v18 = vsel %vm5301_vm6, %v5286_v10, %v3920_v42  ;;  %v5248_v59 = vpop.permute.xlu0 %5247  ;;  %v6473_v61 = vpop.eup %6472  ;;  %v3926_v38 = vadd.f32 %v3902_v48, %v1568_v52  ;;  %v1566_v62 = vmul.f32 0.6931472, %v6471_v44 }
0x11e9   : > { %v5356_v41 = vsel %vm5352_vm9, %v5339_v27, 0.0  ;;  %v5320_v9 = vsel %vm5318_vm7, %v5303_v18, %v5190_v14  ;;  %v5290_v25 = vsel %vm582_vm0, %v5248_v59, %v10530_v39  ;;  %v6475_v20 = vpop.eup %6474  ;;  %v3923_v3 = vadd.f32 %v3896_v43, %v1562_v7 }
0x11ea   : > { %5372 = vst [vmem:[%s10629_s23 + $0x18] sm:$0xff] %v5356_v41  ;;  %v5337_v4 = vsel %vm5335_vm8, %v5320_v9, %v5206_v13  ;;  %v5307_v42 = vsel %vm5301_vm6, %v5290_v25, %v3924_v57  ;;  %v5242_v58 = vpop.permute.xlu1 %5241  ;;  %v6477_v33 = vpop.eup %6476  ;;  %v3900_v55 = vmul.f32 0.6931472, %v6473_v61  ;;  %v11429_v57 = vld [vmem:[#allocation107_spill] sm:$0xff]  ;;  %v3906_v48 = vmul.f32 0.6931472, %v6475_v20 }
0x11eb   : > { %v5354_v54 = vsel %vm5352_vm9, %v5337_v4, 0.0  ;;  %v5324_v39 = vsel %vm5318_vm7, %v5307_v42, %v5194_v29  ;;  %v5287_v14 = vsel %vm582_vm0, %v5242_v58, %v10524_v37  ;;  %v6479_v10 = vpop.eup %6478  ;;  %6484 = vlog2.f32 %v11429_v57  ;;  %v11436_v4 = vld [vmem:[#allocation21_spill] sm:$0xff] }
0x11ec   : > { %5370 = vst [vmem:[%s10629_s23 + $0x8] sm:$0xff] %v5354_v54  ;;  %v5341_v13 = vsel %vm5335_vm8, %v5324_v39, %v5210_v28  ;;  %v5304_v56 = vsel %vm5301_vm6, %v5287_v14, %v3921_v34  ;;  %v5252_v30 = vpop.permute.xlu0 %5251  ;;  %6486 = vlog2.f32 %v11430_v8  ;;  %v6481_v18 = vpop.eup %6480  ;;  %v11431_v59 = vcvt.f32.s32 %v11413_v35 }
0x11ed   : > { %v5358_v23 = vsel %vm5352_vm9, %v5341_v13, 0.0  ;;  %v5321_v29 = vsel %vm5318_vm7, %v5304_v56, %v5191_v24  ;;  %v5292_v37 = vsel %vm582_vm0, %v5252_v30, %v10534_v63  ;;  %6488 = vlog2.f32 %v11432_v45 }
0x11ee   : > { %5374 = vst [vmem:[%s10629_s23 + $0x28] sm:$0xff] %v5358_v23  ;;  %v5338_v28 = vsel %vm5335_vm8, %v5321_v29, %v5207_v53  ;;  %v5309_v11 = vsel %vm5301_vm6, %v5292_v37, %v3926_v38  ;;  %v5246_v47 = vpop.permute.xlu1 %5245  ;;  %v1382_v19 = vadd.s32 %v10597_v22, %v11431_v59  ;;  %v1572_v41 = vmul.f32 0.6931472, %v6477_v33  ;;  %v11435_v22 = vld [vmem:[#allocation61_spill] sm:$0xff]  ;;  %v11437_v38 = vld [vmem:[#allocation76_spill] sm:$0xff]  ;;  %v11439_v33 = vld [vmem:[#allocation95_spill] sm:$0xff] }
0x11ef   : > { %v5355_v16 = vsel %vm5352_vm9, %v5338_v28, 0.0  ;;  %v5326_v63 = vsel %vm5318_vm7, %v5309_v11, %v5196_v49  ;;  %v5289_v24 = vsel %vm582_vm0, %v5246_v47, %v10540_v17  ;;  %v11433_v49 = vcvt.s32.f32 %v10570_v60  ;;  %v11443_v59 = vld [vmem:[#allocation110_spill] sm:$0xff] }
0x11f0   : > { %5371 = vst [vmem:[%s10629_s23 + $0x10] sm:$0xff] %v5355_v16  ;;  %v5343_v53 = vsel %vm5335_vm8, %v5326_v63, %v5212_v51  ;;  %v5306_v27 = vsel %vm5301_vm6, %v5289_v24, %v3923_v3  ;;  %v3925_v40 = vadd.f32 %v3900_v55, %v1566_v62  ;;  %v3904_v9 = vmul.f32 0.6931472, %v6479_v10  ;;  %v11438_v62 = vld [vmem:[#allocation98_spill] sm:$0xff]  ;;  %v11441_v10 = vld [vmem:[#allocation116_spill] sm:$0xff] }
0x11f1   : > { %v5360_v17 = vsel %vm5352_vm9, %v5343_v53, 0.0  ;;  %v5323_v52 = vsel %vm5318_vm7, %v5306_v27, %v11433_v49  ;;  %v11434_v51 = vcvt.s32.f32 %v11422_v26  ;;  %v868_v44 = vadd.f32 %v11435_v22, %v11372_v36  ;;  %v6483_v54 = vpop.eup %6482  ;;  %v11444_v49 = vld [vmem:[#allocation74_spill] sm:$0xff] }
0x11f2   : > { %5376 = vst [vmem:[%s10629_s23 + $0x38] sm:$0xff] %v5360_v17  ;;  %v5250_v35 = vpop.permute.xlu1 %5249  ;;  %v5195_v34 = vcvt.s32.f32 %v10591_v1  ;;  %v5211_v42 = vcvt.s32.f32 %v11436_v4  ;;  %v1570_v58 = vmul.f32 0.6931472, %v6481_v18  ;;  %v3928_v61 = vadd.f32 %v3906_v48, %v1572_v41  ;;  %v11442_v48 = vld [vmem:[#allocation112_spill] sm:$0xff] }
0x11f3   : > { %v5340_v25 = vsel %vm5335_vm8, %v5323_v52, %v11434_v51  ;;  %v5291_v60 = vsel %vm582_vm0, %v5250_v35, %v10546_v15  ;;  %v5197_v39 = vcvt.s32.f32 %v10599_v12  ;;  %v5198_v14 = vcvt.s32.f32 %v1382_v19  ;;  %v11445_v52 = vld [vmem:[#allocation28_spill] sm:$0xff]  ;;  %v11447_v35 = vld [vmem:[#allocation62_spill] sm:$0xff] }
0x11f4   : > { %v5357_v43 = vsel %vm5352_vm9, %v5340_v25, 0.0  ;;  %v5308_v26 = vsel %vm5301_vm6, %v5291_v60, %v3925_v40  ;;  %v5256_v31 = vpop.permute.xlu0 %5255  ;;  %v5214_v15 = vcvt.s32.f32 %v11437_v38  ;;  %v3927_v13 = vadd.f32 %v3904_v9, %v1570_v58  ;;  %v11446_v51 = vld [vmem:[#allocation56_spill] sm:$0xff] }
0x11f5   : > { %5373 = vst [vmem:[%s10629_s23 + $0x20] sm:$0xff] %v5357_v43  ;;  %v5325_v1 = vsel %vm5318_vm7, %v5308_v26, %v5195_v34  ;;  %v5294_v7 = vsel %vm582_vm0, %v5256_v31, %v10512_v32  ;;  %v1410_v23 = vcvt.f32.s32 %v11438_v62  ;;  %v1395_v3 = vcvt.f32.s32 %v11439_v33  ;;  %v11440_v32 = vld [vmem:[#allocation115_spill] sm:$0xff]  ;;  %v6485_v47 = vpop.eup %6484  ;;  %v11448_v34 = vld [vmem:[#allocation65_spill] sm:$0xff]  ;;  %v11449_v31 = vld [vmem:[#allocation90_spill] sm:$0xff] }
0x11f6   : > { %v5342_v56 = vsel %vm5335_vm8, %v5325_v1, %v5211_v42  ;;  %v5311_v30 = vsel %vm5301_vm6, %v5294_v7, %v3928_v61  ;;  %v5254_v20 = vpop.permute.xlu1 %5253  ;;  %v5213_v55 = vcvt.s32.f32 %v11440_v32  ;;  %v1409_v57 = vcvt.f32.s32 %v11441_v10  ;;  %v6487_v24 = vpop.eup %6486  ;;  %v11450_v7 = vld [vmem:[#allocation100_spill] sm:$0xff] }
0x11f7   : > { %v5359_v29 = vsel %vm5352_vm9, %v5342_v56, 0.0  ;;  %v5328_v12 = vsel %vm5318_vm7, %v5311_v30, %v5198_v14  ;;  %v5293_v37 = vsel %vm582_vm0, %v5254_v20, %v868_v44  ;;  %v1394_v8 = vcvt.f32.s32 %v11442_v48  ;;  %v6489_v27 = vpop.eup %6488  ;;  %v11451_v30 = vld [vmem:[#allocation113_spill] sm:$0xff]  ;;  %v11454_v48 = vld [vmem:[#allocation32_spill] sm:$0xff] }
0x11f8   : > { %5375 = vst [vmem:[%s10629_s23 + $0x30] sm:$0xff] %v5359_v29  ;;  %v5345_v28 = vsel %vm5335_vm8, %v5328_v12, %v5214_v15  ;;  %v5310_v11 = vsel %vm5301_vm6, %v5293_v37, %v3927_v13  ;;  %v1411_v18 = vshll.u32 %v1410_v23, 16  ;;  %6490 = vlog2.f32 %v11443_v59  ;;  %v11457_v59 = vld [vmem:[#allocation71_spill] sm:$0xff] }
0x11f9   : > { %v5362_v16 = vsel %vm5352_vm9, %v5345_v28, 0.0  ;;  %v5327_v63 = vsel %vm5318_vm7, %v5310_v11, %v5197_v39  ;;  %v1396_v45 = vshll.u32 %v1395_v3, 16  ;;  %v3910_v17 = vmul.f32 0.6931472, %v6485_v47 }
0x11fa   : > { %5378 = vst [vmem:[%s10629_s23 + $0x48] sm:$0xff] %v5362_v16  ;;  %v5344_v53 = vsel %vm5335_vm8, %v5327_v63, %v5213_v55  ;;  %6492 = vlog2.f32 %v11444_v49  ;;  %v3908_v41 = vmul.f32 0.6931472, %v6487_v24  ;;  %v1412_v40 = vadd.s32 %v1411_v18, %v1409_v57  ;;  %v11452_v57 = vld [vmem:[#allocation23_spill] sm:$0xff]  ;;  %v11456_v18 = vld [vmem:[#allocation54_spill] sm:$0xff] }
0x11fb   : > { %v5361_v19 = vsel %vm5352_vm9, %v5344_v53, 0.0  ;;  %6494 = vlog2.f32 %v11445_v52  ;;  %v1576_v9 = vmul.f32 0.6931472, %v6483_v54  ;;  %v1397_v25 = vadd.s32 %v1396_v45, %v1394_v8 }
0x11fc   : > { %5377 = vst [vmem:[%s10629_s23 + $0x40] sm:$0xff] %v5361_v19  ;;  %6496 = vlog2.f32 %v11446_v51  ;;  %v871_v22 = vadd.f32 %v11447_v35, %v11372_v36  ;;  %v1574_v44 = vmul.f32 0.6931472, %v6489_v27  ;;  %v870_v43 = vadd.f32 %v11448_v34, %v11372_v36 }
0x11fd   : > { %v3930_v60 = vadd.f32 %v3910_v17, %v1576_v9  ;;  %v5200_v58 = vcvt.s32.f32 %v1412_v40  ;;  %v5216_v39 = vcvt.s32.f32 %v11449_v31  ;;  %v5199_v54 = vcvt.s32.f32 %v1397_v25  ;;  %v11458_v9 = vld [vmem:[#allocation77_spill] sm:$0xff] }
0x11fe   : > { %v3929_v42 = vadd.f32 %v3908_v41, %v1574_v44  ;;  %v5215_v38 = vcvt.s32.f32 %v11450_v7  ;;  %v1440_v15 = vcvt.f32.s32 %v10087_v5  ;;  %v1425_v20 = vcvt.f32.s32 %v11451_v30  ;;  %v11459_v44 = vld [vmem:[#allocation97_spill] sm:$0xff] }
0x11ff   : > { %v1439_v12 = vcvt.f32.s32 %v10440_v6  ;;  %v1424_v5 = vcvt.f32.s32 %v10437_v2  ;;  %6498 = vlog2.f32 %v11452_v57  ;;  %v11453_v6 = vld [vmem:[#allocation19_spill] sm:$0xff]  ;;  %v872_v19 = vadd.f32 %v11457_v59, %v11372_v36 }
0x1200   : > { %v5260_v4 = vpop.permute.xlu0 %5259  ;;  %v1441_v28 = vshll.u32 %v1440_v15, 16  ;;  %v1426_v47 = vshll.u32 %v1425_v20, 16  ;;  %6500 = vlog2.f32 %v11453_v6  ;;  %v11455_v2 = vld [vmem:[#allocation67_spill] sm:$0xff]  ;;  %v5218_v51 = vcvt.s32.f32 %v11458_v9 }
0x1201   : > { %v5296_v61 = vsel %vm582_vm0, %v5260_v4, %v871_v22  ;;  %v5258_v26 = vpop.permute.xlu1 %5257  ;;  %6502 = vlog2.f32 %v11454_v48  ;;  %v873_v53 = vadd.f32 %v11455_v2, %v11372_v36  ;;  %v5217_v34 = vcvt.s32.f32 %v11459_v44 }
0x1202   : > { %v5313_v14 = vsel %vm5301_vm6, %v5296_v61, %v3930_v60  ;;  %v5295_v1 = vsel %vm582_vm0, %v5258_v26, %v870_v43  ;;  %v6491_v29 = vpop.eup %6490  ;;  %v1442_v63 = vadd.s32 %v1441_v28, %v1439_v12  ;;  %v1427_v8 = vadd.s32 %v1426_v47, %v1424_v5  ;;  %v11461_v12 = vld [vmem:[#allocation73_spill] sm:$0xff]  ;;  %v11462_v28 = vld [vmem:[#allocation24_spill] sm:$0xff] }
0x1203   : > { %v5330_v13 = vsel %vm5318_vm7, %v5313_v14, %v5200_v58  ;;  %v5312_v56 = vsel %vm5301_vm6, %v5295_v1, %v3929_v42  ;;  %v3914_v10 = vmul.f32 0.6931472, %v6491_v29  ;;  %6504 = vlog2.f32 %v11456_v18 }
0x1204   : > { %v5347_v62 = vsel %vm5335_vm8, %v5330_v13, %v5216_v39  ;;  %v5329_v23 = vsel %vm5318_vm7, %v5312_v56, %v5199_v54  ;;  %v6493_v3 = vpop.eup %6492  ;;  %v5202_v52 = vcvt.s32.f32 %v1442_v63  ;;  %v5201_v25 = vcvt.s32.f32 %v1427_v8 }
0x1205   : > { %v5364_v37 = vsel %vm5352_vm9, %v5347_v62, 0.0  ;;  %v5346_v33 = vsel %vm5335_vm8, %v5329_v23, %v5215_v38  ;;  %v6495_v55 = vpop.eup %6494  ;;  %v3912_v16 = vmul.f32 0.6931472, %v6493_v3  ;;  %v1470_v4 = vcvt.f32.s32 %v10097_v46 }
0x1206   : > { %5380 = vst [vmem:[%s10629_s23 + $0x58] sm:$0xff] %v5364_v37  ;;  %v5363_v32 = vsel %vm5352_vm9, %v5346_v33, 0.0  ;;  %v6497_v11 = vpop.eup %6496  ;;  %v1580_v24 = vmul.f32 0.6931472, %v6495_v55  ;;  %v1455_v61 = vcvt.f32.s32 %v10095_v21  ;;  %v1469_v54 = vcvt.f32.s32 %v10615_v0  ;;  %v11460_v0 = vld [vmem:[#allocation69_spill] sm:$0xff] }
0x1207   : > { %5379 = vst [vmem:[%s10629_s23 + $0x50] sm:$0xff] %v5363_v32  ;;  %v1578_v27 = vmul.f32 0.6931472, %v6497_v11  ;;  %v1454_v7 = vcvt.f32.s32 %v10594_v50  ;;  %v1471_v38 = vshll.u32 %v1470_v4, 16  ;;  %v875_v23 = vadd.f32 %v11460_v0, %v11372_v36 }
0x1208   : > { %v3932_v45 = vadd.f32 %v3914_v10, %v1580_v24  ;;  %v1456_v13 = vshll.u32 %v1455_v61, 16  ;;  %v874_v37 = vadd.f32 %v11461_v12, %v11372_v36  ;;  %v5220_v11 = vcvt.s32.f32 %v11462_v28  ;;  %v11463_v36 = vld [vmem:[#allocation111_spill] sm:$0xff] }
0x1209   : > { %v3931_v49 = vadd.f32 %v3912_v16, %v1578_v27  ;;  %v6499_v39 = vpop.eup %6498  ;;  %v1472_v30 = vadd.s32 %v1471_v38, %v1469_v54  ;;  %v5219_v16 = vcvt.s32.f32 %v11463_v36 }
0x120a   : > { %v6501_v1 = vpop.eup %6500  ;;  %v3918_v21 = vmul.f32 0.6931472, %v6499_v39  ;;  %v1457_v62 = vadd.s32 %v1456_v13, %v1454_v7 }
0x120b   : > { %v6503_v46 = vpop.eup %6502  ;;  %v3916_v56 = vmul.f32 0.6931472, %v6501_v1  ;;  %v5204_v5 = vcvt.s32.f32 %v1472_v30 }
0x120c   : > { %v5264_v17 = vpop.permute.xlu0 %5263  ;;  %v1584_v20 = vmul.f32 0.6931472, %v6503_v46  ;;  %v5203_v47 = vcvt.s32.f32 %v1457_v62 }
0x120d   : > { %v5298_v41 = vsel %vm582_vm0, %v5264_v17, %v873_v53  ;;  %v5262_v40 = vpop.permute.xlu1 %5261  ;;  %v6505_v15 = vpop.eup %6504 }
0x120e   : > { %v5315_v35 = vsel %vm5301_vm6, %v5298_v41, %v3932_v45  ;;  %v5297_v22 = vsel %vm582_vm0, %v5262_v40, %v872_v19  ;;  %v1582_v29 = vmul.f32 0.6931472, %v6505_v15  ;;  %v3934_v50 = vadd.f32 %v3918_v21, %v1584_v20 }
0x120f   : > { %v5332_v43 = vsel %vm5318_vm7, %v5315_v35, %v5202_v52  ;;  %v5314_v60 = vsel %vm5301_vm6, %v5297_v22, %v3931_v49 }
0x1210   : > { %v5349_v42 = vsel %vm5335_vm8, %v5332_v43, %v5218_v51  ;;  %v5331_v58 = vsel %vm5318_vm7, %v5314_v60, %v5201_v25  ;;  %v3933_v3 = vadd.f32 %v3916_v56, %v1582_v29 }
0x1211   : > { %v5366_v26 = vsel %vm5352_vm9, %v5349_v42, 0.0  ;;  %v5348_v31 = vsel %vm5335_vm8, %v5331_v58, %v5217_v34 }
0x1212   : > { %5382 = vst [vmem:[%s10629_s23 + $0x68] sm:$0xff] %v5366_v26  ;;  %v5365_v14 = vsel %vm5352_vm9, %v5348_v31, 0.0 }
0x1213   : > { %5381 = vst [vmem:[%s10629_s23 + $0x60] sm:$0xff] %v5365_v14 }
0x1219   : > { %v5268_v33 = vpop.permute.xlu0 %5267 }
0x121a   : > { %v5300_v32 = vsel %vm582_vm0, %v5268_v33, %v875_v23  ;;  %v5266_v55 = vpop.permute.xlu1 %5265 }
0x121b   : > { %v5317_v10 = vsel %vm5301_vm6, %v5300_v32, %v3934_v50  ;;  %v5299_v57 = vsel %vm582_vm0, %v5266_v55, %v874_v37 }
0x121c   : > { %v5334_v6 = vsel %vm5318_vm7, %v5317_v10, %v5204_v5  ;;  %v5316_v63 = vsel %vm5301_vm6, %v5299_v57, %v3933_v3 }
0x121d   : > { %v5351_v24 = vsel %vm5335_vm8, %v5334_v6, %v5220_v11  ;;  %v5333_v48 = vsel %vm5318_vm7, %v5316_v63, %v5203_v47 }
0x121e   : > { %v5368_v8 = vsel %vm5352_vm9, %v5351_v24, 0.0  ;;  %v5350_v2 = vsel %vm5335_vm8, %v5333_v48, %v5219_v16 }
0x121f   : > { %5384 = vst [vmem:[%s10629_s23 + $0x78] sm:$0xff] %v5368_v8  ;;  %v5367_v53 = vsel %vm5352_vm9, %v5350_v2, 0.0 }
0x1220   : > { %5383 = vst [vmem:[%s10629_s23 + $0x70] sm:$0xff] %v5367_v53 }
0x1221   : > { %6613 = shalt.err (!%p6610_p7)
}
0x1222   : > { %s6614_s26 = scalar_lea.hbm %s10803_s6, 2048  ;;  %s6618_s3 = scalar_lea.hbm %s10856_s2, 4096 }
0x1223   : > { %p6615_p9 = scmp.ne.s32.totalorder %s10803_s6, %s6614_s26  ;;  %p6619_p5 = scmp.lt.u32.totalorder %s10803_s6, %s10856_s2 }
0x1224   : > { %p6620_p11 = scmp.lt.u32.totalorder %s6618_s3, %s6614_s26  ;;  %p6622_p4 = scmp.lt.u32.totalorder %s6614_s26, %s10803_s6 }
0x1225   : > { %p6616_p2 = pnand %p6615_p9, %p6795_p12 }
0x1226   : > { %p6621_p1 = por %p6620_p11, %p6619_p5 }
0x1227   : > { %p6617_p0 = pneg %p6616_p2 }
0x1228   : > { %p6623_p6 = por %p6622_p4, %p6621_p1 }
0x122a   : > { %p6624_p8 = pnand %p6623_p6, %p6617_p0 }
0x122c   : > { %6627 = shalt.err (!%p6624_p8)
}
0x122d   : > { %s6687_s27 = smov 128   ;;  %s6688_s22 = smov 8  }
0x122e   : > { %5824 = dma.vmem_to_hbm [thread:$0]  (%p6795_p12), %s10805_s4, 2048, %s10803_s6, %s5386_s7, %s6687_s27, %s6687_s27, %s6688_s22  }
0x122f PF: > { %s5414_s23 = sand.u32 1, %s6658_s9   ;;  %p11464_p10 = scmp.ne.s32.totalorder %s11004_s16, 0 }
0x1230   : > { %p11465_p13 = scmp.ge.s32.totalorder %s6670_s12, 2  ;;  %s5415_s28 = scalar_lea.sflag [#allocation4], %s5414_s23 }
0x1232   : > { %p5835_p3 = pnand %p11465_p13, %p11464_p10 }
0x1234   : > { %6653 = dma.done.wait (!%p5835_p3), %s5415_s28, 2048  }
0x1235   : > { %6655 = vsyncadd (!%p5835_p3), %s5415_s28, 4294965248  ;;  %p16_p7 = scmp.ge.s32.totalorder %s6760_s21, 4   ;;  %s11466_s9 = smov %s6662_s10 }
0x1236   : > { %s11467_s10 = smov %s6666_s11  ;;  %s11468_s11 = smov %s6791_s8 }
0x1237   : > { %s11469_s12 = smov %s6760_s21  ;;  %18 = sbr.rel (!%p16_p7) target bundleno = 6 (0x6), region = 77 }
0x123e   :  { %5420 = vsyncpa [#allocation3], 1 }
0x123f   :  { %5422 = vsyncpa [#allocation3 + $0x1], 1 }
0x1240   :  { %5423 = vsyncpa [#allocation6], 1 }
0x1241   :  { %5424 = vsyncpa [#allocation4], 1 }
0x1242   :  { %5426 = vsyncpa [#allocation4 + $0x1], 1 }

</bundles_post_ra>
